<compile_context>
chip_gen: v7x
topology: tpu7x:2x2x1
jax: 0.10.0
libtpu: 0.0.40
codegen_flags: <defaults>
</compile_context>

<pallas_src>
import functools

import jax
import jax.numpy as jnp
from jax.experimental import pallas as pl
from jax.experimental.pallas import tpu as pltpu


def _round_up(x, m):
    return (x + m - 1) // m * m


# ----------------------------------------------------------------------------
# Pallas kernel: GEMM + bias (+ optional fused ReLU), bf16 operands, f32 accum
# ----------------------------------------------------------------------------
def _gemm_bias_kernel(a_ref, w_ref, b_ref, o_ref, *, apply_relu):
    acc = jnp.dot(a_ref[...], w_ref[...], preferred_element_type=jnp.float32)
    acc = acc + b_ref[...]                 # (1, Np) f32 bias, broadcasts over rows
    if apply_relu:
        acc = jnp.maximum(acc, 0.0)        # epilogue stays f32 (v5e-safe)
    o_ref[...] = acc.astype(o_ref.dtype)


# Fixed M-tile: single block for everything at small batch (no extra grid steps
# on 1-TC v5e/v6e, no pointless split of ~40 MFLOP GEMMs on v7x); above 2048
# rows it becomes a pipelined fixed-size tile grid with bounded VMEM.
_TM_MAX = 2048


def pallas_gemm_bias(a, w_p, b_p, relu=False, out_dtype=jnp.float32):
    """out = (relu)(a @ w_p + b_p).

    w_p: (Kp, Np) bf16, pre-padded at init (Kp, Np multiples of 128).
    b_p: (1, Np)  f32,  pre-padded at init.
    a  : (M, K) with K <= Kp (conv wrappers already produce aligned patches).
    """
    m, k = a.shape
    kp, np_ = w_p.shape
    if m <= _TM_MAX:
        mp = _round_up(m, 16)              # multiple of 16 -> bf16-safe sublanes
        tm = mp
    else:
        tm = _TM_MAX                       # multiple of 16
        mp = _round_up(m, tm)
    nm = mp // tm
    if (m, k) != (mp, kp):
        a = jnp.pad(a, ((0, mp - m), (0, kp - k)))
    a = a.astype(jnp.bfloat16)

    return pl.pallas_call(
        functools.partial(_gemm_bias_kernel, apply_relu=relu),
        out_shape=jax.ShapeDtypeStruct((mp, np_), out_dtype),
        grid=(nm,),
        in_specs=[
            pl.BlockSpec((tm, kp), lambda i: (i, 0)),
            pl.BlockSpec((kp, np_), lambda i: (0, 0)),
            pl.BlockSpec((1, np_), lambda i: (0, 0)),
        ],
        out_specs=pl.BlockSpec((tm, np_), lambda i: (i, 0)),
        compiler_params=pltpu.CompilerParams(
            dimension_semantics=("parallel",)),
    )(a, w_p, b_p)


# ----------------------------------------------------------------------------
# Conv / pooling glue (patch extraction in XLA, GEMM in Pallas)
# ----------------------------------------------------------------------------
def _im2col(x_nhwc, kh, kw, pad, kp):
    """Stride-1 conv patches with K already padded to kp (the zero slab is part
    of the single concat, so no extra pad op at runtime)."""
    # TODO(synk): at batch >~16, move the tap loop into the kernel (reduction
    # grid axis over kh*kw with index_map offsets) to avoid kh*kw HBM inflation.
    n, h, w, c = x_nhwc.shape
    xp = jnp.pad(x_nhwc, ((0, 0), (pad, pad), (pad, pad), (0, 0))) if pad else x_nhwc
    ho = h + 2 * pad - kh + 1
    wo = w + 2 * pad - kw + 1
    cols = [xp[:, i:i + ho, j:j + wo, :] for i in range(kh) for j in range(kw)]
    k = kh * kw * c
    if kp > k:
        cols.append(jnp.zeros((n, ho, wo, kp - k), x_nhwc.dtype))
    patches = jnp.concatenate(cols, axis=-1).reshape(n * ho * wo, kp)
    return patches, (n, ho, wo)


def conv2d(x_nhwc, layer, pad=0, relu=False):
    """PyTorch-style stride-1 conv as im2col + Pallas GEMM."""
    kh, kw, cout = layer['kh'], layer['kw'], layer['cout']
    kp = layer['w'].shape[0]
    patches, (n, ho, wo) = _im2col(x_nhwc, kh, kw, pad, kp)
    out = pallas_gemm_bias(patches, layer['w'], layer['b'],
                           relu=relu, out_dtype=jnp.bfloat16)
    m = n * ho * wo
    return out[:m, :cout].reshape(n, ho, wo, cout)


def linear(a_2d, layer):
    out = pallas_gemm_bias(a_2d, layer['w'], layer['b'],
                           relu=False, out_dtype=jnp.float32)
    return out[:a_2d.shape[0], :layer['cout']]


def maxpool2(x_nhwc):
    # TODO(synk): trivial 2x2/stride-2 max kept in XLA glue; fusing it into the
    # conv GEMM epilogue only pays off at much larger batch.
    n, h, w, c = x_nhwc.shape
    return x_nhwc.reshape(n, h // 2, 2, w // 2, 2, c).max(axis=(2, 4))


# ----------------------------------------------------------------------------
# Raw parameters (deterministic, PyTorch-default-style uniform init)
# ----------------------------------------------------------------------------
def _conv_params(key, cout, cin, k):
    k1, k2 = jax.random.split(key)
    scale = 1.0 / (cin * k * k) ** 0.5
    w = jax.random.uniform(k1, (cout, cin, k, k), jnp.float32, -scale, scale)
    b = jax.random.uniform(k2, (cout,), jnp.float32, -scale, scale)
    return w, b


def _inception_params(key, cin):
    ks = jax.random.split(key, 7)
    return dict(
        b1=_conv_params(ks[0], 16, cin, 1),
        b2a=_conv_params(ks[1], 16, cin, 1),
        b2b=_conv_params(ks[2], 24, 16, 5),
        b3a=_conv_params(ks[3], 16, cin, 1),
        b3b=_conv_params(ks[4], 24, 16, 3),
        b3c=_conv_params(ks[5], 24, 24, 3),
        b4=_conv_params(ks[6], 24, cin, 1),
    )


def init_params(key):
    ks = jax.random.split(key, 6)
    fc_scale = 1.0 / 1408.0 ** 0.5
    return dict(
        conv1=_conv_params(ks[0], 10, 1, 5),
        inc1=_inception_params(ks[1], 10),
        conv2=_conv_params(ks[2], 20, 88, 5),
        inc2=_inception_params(ks[3], 20),
        fc_w=jax.random.uniform(ks[4], (10, 1408), jnp.float32, -fc_scale, fc_scale),
        fc_b=jax.random.uniform(ks[5], (10,), jnp.float32, -fc_scale, fc_scale),
    )


# ----------------------------------------------------------------------------
# One-time weight layout work (fuse / transpose / pad / bf16 cast)
# ----------------------------------------------------------------------------
def _prep_conv(w, b):
    """torch (Cout,Cin,kh,kw)+(Cout,) -> {(Kp,Np) bf16 weight, (1,Np) f32 bias}."""
    cout, cin, kh, kw = w.shape
    k = kh * kw * cin
    kp = _round_up(k, 128)
    np_ = _round_up(cout, 128)
    w_mat = jnp.transpose(w, (2, 3, 1, 0)).reshape(k, cout)   # matches patch order
    w_mat = jnp.pad(w_mat, ((0, kp - k), (0, np_ - cout))).astype(jnp.bfloat16)
    b_row = jnp.pad(b, (0, np_ - cout)).astype(jnp.float32).reshape(1, np_)
    return dict(w=w_mat, b=b_row, cout=cout, kh=kh, kw=kw)


def _fuse_inception_stem(p1, p2a, p3a, p4):
    """Fold b1 (1x1), b2a (1x1), b3a (1x1) and avgpool3x3+1x1 (b4) — all reading
    the block input — into ONE 3x3 conv with 16+16+16+24 = 72 channels:
      * 1x1 conv == 3x3 conv (pad 1) with the weight on the centre tap,
      * avgpool(3x3, stride 1, pad 1, count_include_pad=True) + 1x1 conv
        == 3x3 conv with weight w_1x1 / 9 on every tap."""
    def centre3(w1x1):
        cout, cin = w1x1.shape[:2]
        z = jnp.zeros((cout, cin, 3, 3), jnp.float32)
        return z.at[:, :, 1, 1].set(w1x1[:, :, 0, 0])

    w1, b1 = p1
    w2, b2 = p2a
    w3, b3 = p3a
    w4, b4 = p4
    w_avg = jnp.broadcast_to(w4 / 9.0, (w4.shape[0], w4.shape[1], 3, 3))
    w_f = jnp.concatenate([centre3(w1), centre3(w2), centre3(w3), w_avg], axis=0)
    b_f = jnp.concatenate([b1, b2, b3, b4])
    return w_f, b_f


def _fuse_inception_mid(p2b, p3b):
    """Block-diagonal fusion of b2b (5x5 over stem[16:32]) and b3b (3x3 over
    stem[32:48], embedded on the centre 3x3 taps) into ONE 5x5 conv over the
    32-channel slab stem[16:48], producing [b2(0:24) | b3_mid(24:48)]."""
    w2b, b2b = p2b                         # (24, 16, 5, 5)
    w3b, b3b = p3b                         # (24, 16, 3, 3)
    w_f = jnp.zeros((48, 32, 5, 5), jnp.float32)
    w_f = w_f.at[0:24, 0:16, :, :].set(w2b)
    w_f = w_f.at[24:48, 16:32, 1:4, 1:4].set(w3b)
    b_f = jnp.concatenate([b2b, b3b])
    return w_f, b_f


def _prep_inception(raw):
    return dict(
        stem=_prep_conv(*_fuse_inception_stem(raw['b1'], raw['b2a'],
                                              raw['b3a'], raw['b4'])),
        mid=_prep_conv(*_fuse_inception_mid(raw['b2b'], raw['b3b'])),
        b3c=_prep_conv(*raw['b3c']),
    )


def _prep_fc(w_torch, b, c, h, w):
    """Permute fc rows so it consumes the NHWC flatten directly (folds the
    runtime NHWC->NCHW transpose into the weight, done once here)."""
    out_f = w_torch.shape[0]
    k = c * h * w
    w_nhwc = jnp.transpose(w_torch.reshape(out_f, c, h, w),
                           (2, 3, 1, 0)).reshape(k, out_f)
    kp = _round_up(k, 128)
    np_ = _round_up(out_f, 128)
    w_mat = jnp.pad(w_nhwc, ((0, kp - k), (0, np_ - out_f))).astype(jnp.bfloat16)
    b_row = jnp.pad(b, (0, np_ - out_f)).astype(jnp.float32).reshape(1, np_)
    return dict(w=w_mat, b=b_row, cout=out_f)


def prepare_params(raw):
    return dict(
        conv1=_prep_conv(*raw['conv1']),
        inc1=_prep_inception(raw['inc1']),
        conv2=_prep_conv(*raw['conv2']),
        inc2=_prep_inception(raw['inc2']),
        fc=_prep_fc(raw['fc_w'], raw['fc_b'], c=88, h=4, w=4),
    )


# ----------------------------------------------------------------------------
# Forward pass
# ----------------------------------------------------------------------------
def inception_block(x, p):
    # 3 pallas_calls per block.
    # stem: [b1(0:16) | b2_in(16:32) | b3_in(32:48) | b4(48:72)]
    stem = conv2d(x, p['stem'], pad=1)
    # mid : [b2(0:24) | b3_mid(24:48)]  (block-diagonal fused b2b + b3b)
    mid = conv2d(stem[..., 16:48], p['mid'], pad=2)
    b3 = conv2d(mid[..., 24:48], p['b3c'], pad=1)      # 3x3 -> 24
    # NHWC channel concat == torch.cat(dim=1) in NCHW; order [b1,b2,b3,b4]
    return jnp.concatenate(
        [stem[..., 0:16], mid[..., 0:24], b3, stem[..., 48:72]], axis=-1)


def make_forward(prep):
    @jax.jit
    def forward(x_nchw):
        x = jnp.transpose(x_nchw, (0, 2, 3, 1)).astype(jnp.bfloat16)  # NCHW -> NHWC
        # relu fused into conv GEMM; relu(maxpool(.)) == maxpool(relu(.))
        x = conv2d(x, prep['conv1'], relu=True)        # (N,24,24,10)
        x = maxpool2(x)                                # (N,12,12,10)
        x = inception_block(x, prep['inc1'])           # (N,12,12,88)
        x = conv2d(x, prep['conv2'], relu=True)        # (N, 8, 8,20)
        x = maxpool2(x)                                # (N, 4, 4,20)
        x = inception_block(x, prep['inc2'])           # (N, 4, 4,88)
        n = x.shape[0]
        feats = x.reshape(n, -1)                       # NHWC flatten; fc rows pre-permuted
        return linear(feats, prep['fc'])               # (N,10) f32
    return forward


if __name__ == "__main__":
    key = jax.random.PRNGKey(0)
    kparam, kx = jax.random.split(key)
    params = prepare_params(init_params(kparam))
    forward = make_forward(params)
    # 28x28 single-channel input is required by the fc(1408, 10) layer.
    x = jax.random.normal(kx, (2, 1, 28, 28), dtype=jnp.float32)
    out = jax.block_until_ready(forward(x))
    assert out.shape == (2, 10), out.shape
    assert bool(jnp.all(jnp.isfinite(out)))
    print("KERNEL_OK")
</pallas_src>

<mosaic_0001>
module attributes {stable_mosaic.version = 11 : i64} {
  func.func @_gemm_bias_kernel(%arg0: i32, %arg1: memref<1152x128xbf16, #tpu.memory_space<vmem>>, %arg2: memref<128x128xbf16, #tpu.memory_space<vmem>>, %arg3: memref<1x128xf32, #tpu.memory_space<vmem>>, %arg4: memref<1152x128xbf16, #tpu.memory_space<vmem>>) attributes {dimension_semantics = [#tpu.dimension_semantics<parallel>], iteration_bounds = array<i64: 1>, scalar_prefetch = 0 : i64, scratch_operands = 0 : i64, tpu.core_type = #tpu.core_type<tc>, window_params = [{transform_indices = @transform_0, window_bounds = array<i64: 1152, 128>}, {pipeline_mode = #tpu.pipeline_mode<synchronous>, transform_indices = @transform_1, window_bounds = array<i64: 128, 128>}, {pipeline_mode = #tpu.pipeline_mode<synchronous>, transform_indices = @transform_2, window_bounds = array<i64: 1, 128>}, {transform_indices = @transform_3, window_bounds = array<i64: 1152, 128>}]} {
    %c0 = arith.constant 0 : index
    %c0_0 = arith.constant 0 : index
    %0 = vector.load %arg1[%c0, %c0_0] : memref<1152x128xbf16, #tpu.memory_space<vmem>>, vector<1152x128xbf16>
    %c0_1 = arith.constant 0 : index
    %c0_2 = arith.constant 0 : index
    %1 = vector.load %arg2[%c0_1, %c0_2] : memref<128x128xbf16, #tpu.memory_space<vmem>>, vector<128x128xbf16>
    %cst = arith.constant dense<0.000000e+00> : vector<1152x128xf32>
    %2 = tpu.matmul %0, %1, %cst {dimension_numbers = #tpu.dot_dimension_numbers<[1], [0], [0], [1], [0, 0, 1, 1], [], []>} : vector<1152x128xbf16>, vector<128x128xbf16>, vector<1152x128xf32> -> vector<1152x128xf32>
    %c0_3 = arith.constant 0 : index
    %c0_4 = arith.constant 0 : index
    %3 = vector.load %arg3[%c0_3, %c0_4] : memref<1x128xf32, #tpu.memory_space<vmem>>, vector<1x128xf32>
    %4 = vector.broadcast %3 : vector<1x128xf32> to vector<1152x128xf32>
    %5 = arith.addf %2, %4 : vector<1152x128xf32>
    %cst_5 = arith.constant 0.000000e+00 : f32
    %6 = vector.broadcast %cst_5 : f32 to vector<1152x128xf32>
    %7 = arith.maximumf %5, %6 : vector<1152x128xf32>
    %8 = arith.truncf %7 : vector<1152x128xf32> to vector<1152x128xbf16>
    %c0_6 = arith.constant 0 : index
    %c0_7 = arith.constant 0 : index
    %9 = vector.load %arg4[%c0_6, %c0_7] : memref<1152x128xbf16, #tpu.memory_space<vmem>>, vector<1152x128xbf16>
    tpu.vector_store %arg4[%c0_6, %c0_7], %8 {strides = array<i32>} : memref<1152x128xbf16, #tpu.memory_space<vmem>>, vector<1152x128xbf16>,
    return
  }
  func.func @transform_0(%arg0: i32) -> (i32, i32) {
    %c0_i32 = arith.constant 0 : i32
    %c0_i32_0 = arith.constant 0 : i32
    return %arg0, %c0_i32 : i32, i32
  }
  func.func @transform_1(%arg0: i32) -> (i32, i32) {
    %c0_i32 = arith.constant 0 : i32
    %c0_i32_0 = arith.constant 0 : i32
    %c0_i32_1 = arith.constant 0 : i32
    return %c0_i32, %c0_i32_0 : i32, i32
  }
  func.func @transform_2(%arg0: i32) -> (i32, i32) {
    %c0_i32 = arith.constant 0 : i32
    %c0_i32_0 = arith.constant 0 : i32
    %c0_i32_1 = arith.constant 0 : i32
    return %c0_i32, %c0_i32_0 : i32, i32
  }
  func.func @transform_3(%arg0: i32) -> (i32, i32) {
    %c0_i32 = arith.constant 0 : i32
    %c0_i32_0 = arith.constant 0 : i32
    return %arg0, %c0_i32 : i32, i32
  }
}

module attributes {stable_mosaic.version = 11 : i64} {
  func.func @_gemm_bias_kernel(%arg0: i32, %arg1: memref<288x128xbf16, #tpu.memory_space<vmem>>, %arg2: memref<128x128xbf16, #tpu.memory_space<vmem>>, %arg3: memref<1x128xf32, #tpu.memory_space<vmem>>, %arg4: memref<288x128xbf16, #tpu.memory_space<vmem>>) attributes {dimension_semantics = [#tpu.dimension_semantics<parallel>], iteration_bounds = array<i64: 1>, scalar_prefetch = 0 : i64, scratch_operands = 0 : i64, tpu.core_type = #tpu.core_type<tc>, window_params = [{transform_indices = @transform_0, window_bounds = array<i64: 288, 128>}, {pipeline_mode = #tpu.pipeline_mode<synchronous>, transform_indices = @transform_1, window_bounds = array<i64: 128, 128>}, {pipeline_mode = #tpu.pipeline_mode<synchronous>, transform_indices = @transform_2, window_bounds = array<i64: 1, 128>}, {transform_indices = @transform_3, window_bounds = array<i64: 288, 128>}]} {
    %c0 = arith.constant 0 : index
    %c0_0 = arith.constant 0 : index
    %0 = vector.load %arg1[%c0, %c0_0] : memref<288x128xbf16, #tpu.memory_space<vmem>>, vector<288x128xbf16>
    %c0_1 = arith.constant 0 : index
    %c0_2 = arith.constant 0 : index
    %1 = vector.load %arg2[%c0_1, %c0_2] : memref<128x128xbf16, #tpu.memory_space<vmem>>, vector<128x128xbf16>
    %cst = arith.constant dense<0.000000e+00> : vector<288x128xf32>
    %2 = tpu.matmul %0, %1, %cst {dimension_numbers = #tpu.dot_dimension_numbers<[1], [0], [0], [1], [0, 0, 1, 1], [], []>} : vector<288x128xbf16>, vector<128x128xbf16>, vector<288x128xf32> -> vector<288x128xf32>
    %c0_3 = arith.constant 0 : index
    %c0_4 = arith.constant 0 : index
    %3 = vector.load %arg3[%c0_3, %c0_4] : memref<1x128xf32, #tpu.memory_space<vmem>>, vector<1x128xf32>
    %4 = vector.broadcast %3 : vector<1x128xf32> to vector<288x128xf32>
    %5 = arith.addf %2, %4 : vector<288x128xf32>
    %6 = arith.truncf %5 : vector<288x128xf32> to vector<288x128xbf16>
    %c0_5 = arith.constant 0 : index
    %c0_6 = arith.constant 0 : index
    %7 = vector.load %arg4[%c0_5, %c0_6] : memref<288x128xbf16, #tpu.memory_space<vmem>>, vector<288x128xbf16>
    tpu.vector_store %arg4[%c0_5, %c0_6], %6 {strides = array<i32>} : memref<288x128xbf16, #tpu.memory_space<vmem>>, vector<288x128xbf16>,
    return
  }
  func.func @transform_0(%arg0: i32) -> (i32, i32) {
    %c0_i32 = arith.constant 0 : i32
    %c0_i32_0 = arith.constant 0 : i32
    return %arg0, %c0_i32 : i32, i32
  }
  func.func @transform_1(%arg0: i32) -> (i32, i32) {
    %c0_i32 = arith.constant 0 : i32
    %c0_i32_0 = arith.constant 0 : i32
    %c0_i32_1 = arith.constant 0 : i32
    return %c0_i32, %c0_i32_0 : i32, i32
  }
  func.func @transform_2(%arg0: i32) -> (i32, i32) {
    %c0_i32 = arith.constant 0 : i32
    %c0_i32_0 = arith.constant 0 : i32
    %c0_i32_1 = arith.constant 0 : i32
    return %c0_i32, %c0_i32_0 : i32, i32
  }
  func.func @transform_3(%arg0: i32) -> (i32, i32) {
    %c0_i32 = arith.constant 0 : i32
    %c0_i32_0 = arith.constant 0 : i32
    return %arg0, %c0_i32 : i32, i32
  }
}

module attributes {stable_mosaic.version = 11 : i64} {
  func.func @_gemm_bias_kernel(%arg0: i32, %arg1: memref<288x896xbf16, #tpu.memory_space<vmem>>, %arg2: memref<896x128xbf16, #tpu.memory_space<vmem>>, %arg3: memref<1x128xf32, #tpu.memory_space<vmem>>, %arg4: memref<288x128xbf16, #tpu.memory_space<vmem>>) attributes {dimension_semantics = [#tpu.dimension_semantics<parallel>], iteration_bounds = array<i64: 1>, scalar_prefetch = 0 : i64, scratch_operands = 0 : i64, tpu.core_type = #tpu.core_type<tc>, window_params = [{transform_indices = @transform_0, window_bounds = array<i64: 288, 896>}, {pipeline_mode = #tpu.pipeline_mode<synchronous>, transform_indices = @transform_1, window_bounds = array<i64: 896, 128>}, {pipeline_mode = #tpu.pipeline_mode<synchronous>, transform_indices = @transform_2, window_bounds = array<i64: 1, 128>}, {transform_indices = @transform_3, window_bounds = array<i64: 288, 128>}]} {
    %c0 = arith.constant 0 : index
    %c0_0 = arith.constant 0 : index
    %0 = vector.load %arg1[%c0, %c0_0] : memref<288x896xbf16, #tpu.memory_space<vmem>>, vector<288x896xbf16>
    %c0_1 = arith.constant 0 : index
    %c0_2 = arith.constant 0 : index
    %1 = vector.load %arg2[%c0_1, %c0_2] : memref<896x128xbf16, #tpu.memory_space<vmem>>, vector<896x128xbf16>
    %cst = arith.constant dense<0.000000e+00> : vector<288x128xf32>
    %2 = tpu.matmul %0, %1, %cst {dimension_numbers = #tpu.dot_dimension_numbers<[1], [0], [0], [1], [0, 0, 1, 1], [], []>} : vector<288x896xbf16>, vector<896x128xbf16>, vector<288x128xf32> -> vector<288x128xf32>
    %c0_3 = arith.constant 0 : index
    %c0_4 = arith.constant 0 : index
    %3 = vector.load %arg3[%c0_3, %c0_4] : memref<1x128xf32, #tpu.memory_space<vmem>>, vector<1x128xf32>
    %4 = vector.broadcast %3 : vector<1x128xf32> to vector<288x128xf32>
    %5 = arith.addf %2, %4 : vector<288x128xf32>
    %6 = arith.truncf %5 : vector<288x128xf32> to vector<288x128xbf16>
    %c0_5 = arith.constant 0 : index
    %c0_6 = arith.constant 0 : index
    %7 = vector.load %arg4[%c0_5, %c0_6] : memref<288x128xbf16, #tpu.memory_space<vmem>>, vector<288x128xbf16>
    tpu.vector_store %arg4[%c0_5, %c0_6], %6 {strides = array<i32>} : memref<288x128xbf16, #tpu.memory_space<vmem>>, vector<288x128xbf16>,
    return
  }
  func.func @transform_0(%arg0: i32) -> (i32, i32) {
    %c0_i32 = arith.constant 0 : i32
    %c0_i32_0 = arith.constant 0 : i32
    return %arg0, %c0_i32 : i32, i32
  }
  func.func @transform_1(%arg0: i32) -> (i32, i32) {
    %c0_i32 = arith.constant 0 : i32
    %c0_i32_0 = arith.constant 0 : i32
    %c0_i32_1 = arith.constant 0 : i32
    return %c0_i32, %c0_i32_0 : i32, i32
  }
  func.func @transform_2(%arg0: i32) -> (i32, i32) {
    %c0_i32 = arith.constant 0 : i32
    %c0_i32_0 = arith.constant 0 : i32
    %c0_i32_1 = arith.constant 0 : i32
    return %c0_i32, %c0_i32_0 : i32, i32
  }
  func.func @transform_3(%arg0: i32) -> (i32, i32) {
    %c0_i32 = arith.constant 0 : i32
    %c0_i32_0 = arith.constant 0 : i32
    return %arg0, %c0_i32 : i32, i32
  }
}

module attributes {stable_mosaic.version = 11 : i64} {
  func.func @_gemm_bias_kernel(%arg0: i32, %arg1: memref<288x256xbf16, #tpu.memory_space<vmem>>, %arg2: memref<256x128xbf16, #tpu.memory_space<vmem>>, %arg3: memref<1x128xf32, #tpu.memory_space<vmem>>, %arg4: memref<288x128xbf16, #tpu.memory_space<vmem>>) attributes {dimension_semantics = [#tpu.dimension_semantics<parallel>], iteration_bounds = array<i64: 1>, scalar_prefetch = 0 : i64, scratch_operands = 0 : i64, tpu.core_type = #tpu.core_type<tc>, window_params = [{transform_indices = @transform_0, window_bounds = array<i64: 288, 256>}, {pipeline_mode = #tpu.pipeline_mode<synchronous>, transform_indices = @transform_1, window_bounds = array<i64: 256, 128>}, {pipeline_mode = #tpu.pipeline_mode<synchronous>, transform_indices = @transform_2, window_bounds = array<i64: 1, 128>}, {transform_indices = @transform_3, window_bounds = array<i64: 288, 128>}]} {
    %c0 = arith.constant 0 : index
    %c0_0 = arith.constant 0 : index
    %0 = vector.load %arg1[%c0, %c0_0] : memref<288x256xbf16, #tpu.memory_space<vmem>>, vector<288x256xbf16>
    %c0_1 = arith.constant 0 : index
    %c0_2 = arith.constant 0 : index
    %1 = vector.load %arg2[%c0_1, %c0_2] : memref<256x128xbf16, #tpu.memory_space<vmem>>, vector<256x128xbf16>
    %cst = arith.constant dense<0.000000e+00> : vector<288x128xf32>
    %2 = tpu.matmul %0, %1, %cst {dimension_numbers = #tpu.dot_dimension_numbers<[1], [0], [0], [1], [0, 0, 1, 1], [], []>} : vector<288x256xbf16>, vector<256x128xbf16>, vector<288x128xf32> -> vector<288x128xf32>
    %c0_3 = arith.constant 0 : index
    %c0_4 = arith.constant 0 : index
    %3 = vector.load %arg3[%c0_3, %c0_4] : memref<1x128xf32, #tpu.memory_space<vmem>>, vector<1x128xf32>
    %4 = vector.broadcast %3 : vector<1x128xf32> to vector<288x128xf32>
    %5 = arith.addf %2, %4 : vector<288x128xf32>
    %6 = arith.truncf %5 : vector<288x128xf32> to vector<288x128xbf16>
    %c0_5 = arith.constant 0 : index
    %c0_6 = arith.constant 0 : index
    %7 = vector.load %arg4[%c0_5, %c0_6] : memref<288x128xbf16, #tpu.memory_space<vmem>>, vector<288x128xbf16>
    tpu.vector_store %arg4[%c0_5, %c0_6], %6 {strides = array<i32>} : memref<288x128xbf16, #tpu.memory_space<vmem>>, vector<288x128xbf16>,
    return
  }
  func.func @transform_0(%arg0: i32) -> (i32, i32) {
    %c0_i32 = arith.constant 0 : i32
    %c0_i32_0 = arith.constant 0 : i32
    return %arg0, %c0_i32 : i32, i32
  }
  func.func @transform_1(%arg0: i32) -> (i32, i32) {
    %c0_i32 = arith.constant 0 : i32
    %c0_i32_0 = arith.constant 0 : i32
    %c0_i32_1 = arith.constant 0 : i32
    return %c0_i32, %c0_i32_0 : i32, i32
  }
  func.func @transform_2(%arg0: i32) -> (i32, i32) {
    %c0_i32 = arith.constant 0 : i32
    %c0_i32_0 = arith.constant 0 : i32
    %c0_i32_1 = arith.constant 0 : i32
    return %c0_i32, %c0_i32_0 : i32, i32
  }
  func.func @transform_3(%arg0: i32) -> (i32, i32) {
    %c0_i32 = arith.constant 0 : i32
    %c0_i32_0 = arith.constant 0 : i32
    return %arg0, %c0_i32 : i32, i32
  }
}

module attributes {stable_mosaic.version = 11 : i64} {
  func.func @_gemm_bias_kernel(%arg0: i32, %arg1: memref<128x2304xbf16, #tpu.memory_space<vmem>>, %arg2: memref<2304x128xbf16, #tpu.memory_space<vmem>>, %arg3: memref<1x128xf32, #tpu.memory_space<vmem>>, %arg4: memref<128x128xbf16, #tpu.memory_space<vmem>>) attributes {dimension_semantics = [#tpu.dimension_semantics<parallel>], iteration_bounds = array<i64: 1>, scalar_prefetch = 0 : i64, scratch_operands = 0 : i64, tpu.core_type = #tpu.core_type<tc>, window_params = [{transform_indices = @transform_0, window_bounds = array<i64: 128, 2304>}, {pipeline_mode = #tpu.pipeline_mode<synchronous>, transform_indices = @transform_1, window_bounds = array<i64: 2304, 128>}, {pipeline_mode = #tpu.pipeline_mode<synchronous>, transform_indices = @transform_2, window_bounds = array<i64: 1, 128>}, {transform_indices = @transform_3, window_bounds = array<i64: 128, 128>}]} {
    %c0 = arith.constant 0 : index
    %c0_0 = arith.constant 0 : index
    %0 = vector.load %arg1[%c0, %c0_0] : memref<128x2304xbf16, #tpu.memory_space<vmem>>, vector<128x2304xbf16>
    %c0_1 = arith.constant 0 : index
    %c0_2 = arith.constant 0 : index
    %1 = vector.load %arg2[%c0_1, %c0_2] : memref<2304x128xbf16, #tpu.memory_space<vmem>>, vector<2304x128xbf16>
    %cst = arith.constant dense<0.000000e+00> : vector<128x128xf32>
    %2 = tpu.matmul %0, %1, %cst {dimension_numbers = #tpu.dot_dimension_numbers<[1], [0], [0], [1], [0, 0, 1, 1], [], []>} : vector<128x2304xbf16>, vector<2304x128xbf16>, vector<128x128xf32> -> vector<128x128xf32>
    %c0_3 = arith.constant 0 : index
    %c0_4 = arith.constant 0 : index
    %3 = vector.load %arg3[%c0_3, %c0_4] : memref<1x128xf32, #tpu.memory_space<vmem>>, vector<1x128xf32>
    %4 = vector.broadcast %3 : vector<1x128xf32> to vector<128x128xf32>
    %5 = arith.addf %2, %4 : vector<128x128xf32>
    %cst_5 = arith.constant 0.000000e+00 : f32
    %6 = vector.broadcast %cst_5 : f32 to vector<128x128xf32>
    %7 = arith.maximumf %5, %6 : vector<128x128xf32>
    %8 = arith.truncf %7 : vector<128x128xf32> to vector<128x128xbf16>
    %c0_6 = arith.constant 0 : index
    %c0_7 = arith.constant 0 : index
    %9 = vector.load %arg4[%c0_6, %c0_7] : memref<128x128xbf16, #tpu.memory_space<vmem>>, vector<128x128xbf16>
    tpu.vector_store %arg4[%c0_6, %c0_7], %8 {strides = array<i32>} : memref<128x128xbf16, #tpu.memory_space<vmem>>, vector<128x128xbf16>,
    return
  }
  func.func @transform_0(%arg0: i32) -> (i32, i32) {
    %c0_i32 = arith.constant 0 : i32
    %c0_i32_0 = arith.constant 0 : i32
    return %arg0, %c0_i32 : i32, i32
  }
  func.func @transform_1(%arg0: i32) -> (i32, i32) {
    %c0_i32 = arith.constant 0 : i32
    %c0_i32_0 = arith.constant 0 : i32
    %c0_i32_1 = arith.constant 0 : i32
    return %c0_i32, %c0_i32_0 : i32, i32
  }
  func.func @transform_2(%arg0: i32) -> (i32, i32) {
    %c0_i32 = arith.constant 0 : i32
    %c0_i32_0 = arith.constant 0 : i32
    %c0_i32_1 = arith.constant 0 : i32
    return %c0_i32, %c0_i32_0 : i32, i32
  }
  func.func @transform_3(%arg0: i32) -> (i32, i32) {
    %c0_i32 = arith.constant 0 : i32
    %c0_i32_0 = arith.constant 0 : i32
    return %arg0, %c0_i32 : i32, i32
  }
}

module attributes {stable_mosaic.version = 11 : i64} {
  func.func @_gemm_bias_kernel(%arg0: i32, %arg1: memref<32x256xbf16, #tpu.memory_space<vmem>>, %arg2: memref<256x128xbf16, #tpu.memory_space<vmem>>, %arg3: memref<1x128xf32, #tpu.memory_space<vmem>>, %arg4: memref<32x128xbf16, #tpu.memory_space<vmem>>) attributes {dimension_semantics = [#tpu.dimension_semantics<parallel>], iteration_bounds = array<i64: 1>, scalar_prefetch = 0 : i64, scratch_operands = 0 : i64, tpu.core_type = #tpu.core_type<tc>, window_params = [{transform_indices = @transform_0, window_bounds = array<i64: 32, 256>}, {pipeline_mode = #tpu.pipeline_mode<synchronous>, transform_indices = @transform_1, window_bounds = array<i64: 256, 128>}, {pipeline_mode = #tpu.pipeline_mode<synchronous>, transform_indices = @transform_2, window_bounds = array<i64: 1, 128>}, {transform_indices = @transform_3, window_bounds = array<i64: 32, 128>}]} {
    %c0 = arith.constant 0 : index
    %c0_0 = arith.constant 0 : index
    %0 = vector.load %arg1[%c0, %c0_0] : memref<32x256xbf16, #tpu.memory_space<vmem>>, vector<32x256xbf16>
    %c0_1 = arith.constant 0 : index
    %c0_2 = arith.constant 0 : index
    %1 = vector.load %arg2[%c0_1, %c0_2] : memref<256x128xbf16, #tpu.memory_space<vmem>>, vector<256x128xbf16>
    %cst = arith.constant dense<0.000000e+00> : vector<32x128xf32>
    %2 = tpu.matmul %0, %1, %cst {dimension_numbers = #tpu.dot_dimension_numbers<[1], [0], [0], [1], [0, 0, 1, 1], [], []>} : vector<32x256xbf16>, vector<256x128xbf16>, vector<32x128xf32> -> vector<32x128xf32>
    %c0_3 = arith.constant 0 : index
    %c0_4 = arith.constant 0 : index
    %3 = vector.load %arg3[%c0_3, %c0_4] : memref<1x128xf32, #tpu.memory_space<vmem>>, vector<1x128xf32>
    %4 = vector.broadcast %3 : vector<1x128xf32> to vector<32x128xf32>
    %5 = arith.addf %2, %4 : vector<32x128xf32>
    %6 = arith.truncf %5 : vector<32x128xf32> to vector<32x128xbf16>
    %c0_5 = arith.constant 0 : index
    %c0_6 = arith.constant 0 : index
    %7 = vector.load %arg4[%c0_5, %c0_6] : memref<32x128xbf16, #tpu.memory_space<vmem>>, vector<32x128xbf16>
    tpu.vector_store %arg4[%c0_5, %c0_6], %6 {strides = array<i32>} : memref<32x128xbf16, #tpu.memory_space<vmem>>, vector<32x128xbf16>,
    return
  }
  func.func @transform_0(%arg0: i32) -> (i32, i32) {
    %c0_i32 = arith.constant 0 : i32
    %c0_i32_0 = arith.constant 0 : i32
    return %arg0, %c0_i32 : i32, i32
  }
  func.func @transform_1(%arg0: i32) -> (i32, i32) {
    %c0_i32 = arith.constant 0 : i32
    %c0_i32_0 = arith.constant 0 : i32
    %c0_i32_1 = arith.constant 0 : i32
    return %c0_i32, %c0_i32_0 : i32, i32
  }
  func.func @transform_2(%arg0: i32) -> (i32, i32) {
    %c0_i32 = arith.constant 0 : i32
    %c0_i32_0 = arith.constant 0 : i32
    %c0_i32_1 = arith.constant 0 : i32
    return %c0_i32, %c0_i32_0 : i32, i32
  }
  func.func @transform_3(%arg0: i32) -> (i32, i32) {
    %c0_i32 = arith.constant 0 : i32
    %c0_i32_0 = arith.constant 0 : i32
    return %arg0, %c0_i32 : i32, i32
  }
}

module attributes {stable_mosaic.version = 11 : i64} {
  func.func @_gemm_bias_kernel(%arg0: i32, %arg1: memref<32x896xbf16, #tpu.memory_space<vmem>>, %arg2: memref<896x128xbf16, #tpu.memory_space<vmem>>, %arg3: memref<1x128xf32, #tpu.memory_space<vmem>>, %arg4: memref<32x128xbf16, #tpu.memory_space<vmem>>) attributes {dimension_semantics = [#tpu.dimension_semantics<parallel>], iteration_bounds = array<i64: 1>, scalar_prefetch = 0 : i64, scratch_operands = 0 : i64, tpu.core_type = #tpu.core_type<tc>, window_params = [{transform_indices = @transform_0, window_bounds = array<i64: 32, 896>}, {pipeline_mode = #tpu.pipeline_mode<synchronous>, transform_indices = @transform_1, window_bounds = array<i64: 896, 128>}, {pipeline_mode = #tpu.pipeline_mode<synchronous>, transform_indices = @transform_2, window_bounds = array<i64: 1, 128>}, {transform_indices = @transform_3, window_bounds = array<i64: 32, 128>}]} {
    %c0 = arith.constant 0 : index
    %c0_0 = arith.constant 0 : index
    %0 = vector.load %arg1[%c0, %c0_0] : memref<32x896xbf16, #tpu.memory_space<vmem>>, vector<32x896xbf16>
    %c0_1 = arith.constant 0 : index
    %c0_2 = arith.constant 0 : index
    %1 = vector.load %arg2[%c0_1, %c0_2] : memref<896x128xbf16, #tpu.memory_space<vmem>>, vector<896x128xbf16>
    %cst = arith.constant dense<0.000000e+00> : vector<32x128xf32>
    %2 = tpu.matmul %0, %1, %cst {dimension_numbers = #tpu.dot_dimension_numbers<[1], [0], [0], [1], [0, 0, 1, 1], [], []>} : vector<32x896xbf16>, vector<896x128xbf16>, vector<32x128xf32> -> vector<32x128xf32>
    %c0_3 = arith.constant 0 : index
    %c0_4 = arith.constant 0 : index
    %3 = vector.load %arg3[%c0_3, %c0_4] : memref<1x128xf32, #tpu.memory_space<vmem>>, vector<1x128xf32>
    %4 = vector.broadcast %3 : vector<1x128xf32> to vector<32x128xf32>
    %5 = arith.addf %2, %4 : vector<32x128xf32>
    %6 = arith.truncf %5 : vector<32x128xf32> to vector<32x128xbf16>
    %c0_5 = arith.constant 0 : index
    %c0_6 = arith.constant 0 : index
    %7 = vector.load %arg4[%c0_5, %c0_6] : memref<32x128xbf16, #tpu.memory_space<vmem>>, vector<32x128xbf16>
    tpu.vector_store %arg4[%c0_5, %c0_6], %6 {strides = array<i32>} : memref<32x128xbf16, #tpu.memory_space<vmem>>, vector<32x128xbf16>,
    return
  }
  func.func @transform_0(%arg0: i32) -> (i32, i32) {
    %c0_i32 = arith.constant 0 : i32
    %c0_i32_0 = arith.constant 0 : i32
    return %arg0, %c0_i32 : i32, i32
  }
  func.func @transform_1(%arg0: i32) -> (i32, i32) {
    %c0_i32 = arith.constant 0 : i32
    %c0_i32_0 = arith.constant 0 : i32
    %c0_i32_1 = arith.constant 0 : i32
    return %c0_i32, %c0_i32_0 : i32, i32
  }
  func.func @transform_2(%arg0: i32) -> (i32, i32) {
    %c0_i32 = arith.constant 0 : i32
    %c0_i32_0 = arith.constant 0 : i32
    %c0_i32_1 = arith.constant 0 : i32
    return %c0_i32, %c0_i32_0 : i32, i32
  }
  func.func @transform_3(%arg0: i32) -> (i32, i32) {
    %c0_i32 = arith.constant 0 : i32
    %c0_i32_0 = arith.constant 0 : i32
    return %arg0, %c0_i32 : i32, i32
  }
}

module attributes {stable_mosaic.version = 11 : i64} {
  func.func @_gemm_bias_kernel(%arg0: i32, %arg1: memref<16x1408xbf16, #tpu.memory_space<vmem>>, %arg2: memref<1408x128xbf16, #tpu.memory_space<vmem>>, %arg3: memref<1x128xf32, #tpu.memory_space<vmem>>, %arg4: memref<16x128xf32, #tpu.memory_space<vmem>>) attributes {dimension_semantics = [#tpu.dimension_semantics<parallel>], iteration_bounds = array<i64: 1>, scalar_prefetch = 0 : i64, scratch_operands = 0 : i64, tpu.core_type = #tpu.core_type<tc>, window_params = [{transform_indices = @transform_0, window_bounds = array<i64: 16, 1408>}, {pipeline_mode = #tpu.pipeline_mode<synchronous>, transform_indices = @transform_1, window_bounds = array<i64: 1408, 128>}, {pipeline_mode = #tpu.pipeline_mode<synchronous>, transform_indices = @transform_2, window_bounds = array<i64: 1, 128>}, {transform_indices = @transform_3, window_bounds = array<i64: 16, 128>}]} {
    %c0 = arith.constant 0 : index
    %c0_0 = arith.constant 0 : index
    %0 = vector.load %arg1[%c0, %c0_0] : memref<16x1408xbf16, #tpu.memory_space<vmem>>, vector<16x1408xbf16>
    %c0_1 = arith.constant 0 : index
    %c0_2 = arith.constant 0 : index
    %1 = vector.load %arg2[%c0_1, %c0_2] : memref<1408x128xbf16, #tpu.memory_space<vmem>>, vector<1408x128xbf16>
    %cst = arith.constant dense<0.000000e+00> : vector<16x128xf32>
    %2 = tpu.matmul %0, %1, %cst {dimension_numbers = #tpu.dot_dimension_numbers<[1], [0], [0], [1], [0, 0, 1, 1], [], []>} : vector<16x1408xbf16>, vector<1408x128xbf16>, vector<16x128xf32> -> vector<16x128xf32>
    %c0_3 = arith.constant 0 : index
    %c0_4 = arith.constant 0 : index
    %3 = vector.load %arg3[%c0_3, %c0_4] : memref<1x128xf32, #tpu.memory_space<vmem>>, vector<1x128xf32>
    %4 = vector.broadcast %3 : vector<1x128xf32> to vector<16x128xf32>
    %5 = arith.addf %2, %4 : vector<16x128xf32>
    %c0_5 = arith.constant 0 : index
    %c0_6 = arith.constant 0 : index
    %6 = vector.load %arg4[%c0_5, %c0_6] : memref<16x128xf32, #tpu.memory_space<vmem>>, vector<16x128xf32>
    tpu.vector_store %arg4[%c0_5, %c0_6], %5 {strides = array<i32>} : memref<16x128xf32, #tpu.memory_space<vmem>>, vector<16x128xf32>,
    return
  }
  func.func @transform_0(%arg0: i32) -> (i32, i32) {
    %c0_i32 = arith.constant 0 : i32
    %c0_i32_0 = arith.constant 0 : i32
    return %arg0, %c0_i32 : i32, i32
  }
  func.func @transform_1(%arg0: i32) -> (i32, i32) {
    %c0_i32 = arith.constant 0 : i32
    %c0_i32_0 = arith.constant 0 : i32
    %c0_i32_1 = arith.constant 0 : i32
    return %c0_i32, %c0_i32_0 : i32, i32
  }
  func.func @transform_2(%arg0: i32) -> (i32, i32) {
    %c0_i32 = arith.constant 0 : i32
    %c0_i32_0 = arith.constant 0 : i32
    %c0_i32_1 = arith.constant 0 : i32
    return %c0_i32, %c0_i32_0 : i32, i32
  }
  func.func @transform_3(%arg0: i32) -> (i32, i32) {
    %c0_i32 = arith.constant 0 : i32
    %c0_i32_0 = arith.constant 0 : i32
    return %arg0, %c0_i32 : i32, i32
  }
}

</mosaic_0001>

<bundles_post_ra>
// kernel: forward.9
= control target key start
LH: loop header
LB: loop body
LE: loop exit
PB: predicated region body
PF: predicated region fallthrough
CT: control target
= control target key end

     0   :  { %s3888_s1 = inlined_call_operand.vmem [shape: bf16[128,128], index: 1, kind: input, shape index: {}]   ;;  %s3889_s0 = inlined_call_operand.vmem [shape: bf16[1152,128], index: 0, kind: input, shape index: {}]   ;;  %s3890_s2 = inlined_call_operand.vmem [shape: f32[1,128], index: 2, kind: input, shape index: {}]   ;;  %s3891_s3 = inlined_call_operand.vmem [shape: bf16[1152,128], index: 3, kind: output, shape index: {}]  }
   0x1   :  { %v3195_v0 = vld [vmem:[%s3888_s1] sm:$0xff]   ;;  %v3196_v1 = vld [vmem:[%s3888_s1 + $0x8] sm:$0xff]   ;;  %v3197_v2 = vld [vmem:[%s3888_s1 + $0x10] sm:$0xff]  }
   0x2   :  { %3019 = vmatprep.subr.bf16.mxu0 %v3195_v0  ;;  %3179 = vmatprep.subr.bf16.mxu1 %v3195_v0  ;;  %v3198_v3 = vld [vmem:[%s3888_s1 + $0x18] sm:$0xff]   ;;  %v3203_v4 = vld [vmem:[%s3889_s0] sm:$0xff]   ;;  %v3200_v7 = vld [vmem:[%s3888_s1 + $0x28] sm:$0xff]  }
   0x3   :  { %3020 = vmatpush3.bf16.msra.mxu0 %v3195_v0  ;;  %3187 = vmatpush3.bf16.msra.mxu1 %v3195_v0  ;;  %v3204_v5 = vld [vmem:[%s3889_s0 + $0x120] sm:$0xff]   ;;  %v3201_v8 = vld [vmem:[%s3888_s1 + $0x30] sm:$0xff]   ;;  %v3202_v9 = vld [vmem:[%s3888_s1 + $0x38] sm:$0xff]  }
   0x4   :  { %3021 = vmatprep.subr.bf16.mxu0 %v3196_v1  ;;  %3180 = vmatprep.subr.bf16.mxu1 %v3196_v1  ;;  %v3199_v6 = vld [vmem:[%s3888_s1 + $0x20] sm:$0xff]   ;;  %v3205_v10 = vld [vmem:[%s3889_s0 + $0x8] sm:$0xff]   ;;  %v3207_v12 = vld [vmem:[%s3889_s0 + $0x10] sm:$0xff]  }
   0x5   :  { %3035 = vmatprep.mubr.bf16.mxu0 %v3203_v4  ;;  %3107 = vmatprep.mubr.bf16.mxu1 %v3204_v5  ;;  %v3206_v11 = vld [vmem:[%s3889_s0 + $0x128] sm:$0xff]   ;;  %v3208_v13 = vld [vmem:[%s3889_s0 + $0x130] sm:$0xff]   ;;  %v3209_v14 = vld [vmem:[%s3889_s0 + $0x18] sm:$0xff]  }
   0x6   :  { %v3210_v15 = vld [vmem:[%s3889_s0 + $0x138] sm:$0xff]   ;;  %v3211_v16 = vld [vmem:[%s3889_s0 + $0x20] sm:$0xff]   ;;  %v3213_v18 = vld [vmem:[%s3889_s0 + $0x28] sm:$0xff]  }
   0x7   :  { %3022 = vmatpush3.bf16.msra.mxu0 %v3196_v1  ;;  %3188 = vmatpush3.bf16.msra.mxu1 %v3196_v1  ;;  %v3212_v17 = vld [vmem:[%s3889_s0 + $0x140] sm:$0xff]   ;;  %v3214_v19 = vld [vmem:[%s3889_s0 + $0x148] sm:$0xff]   ;;  %v3215_v20 = vld [vmem:[%s3889_s0 + $0x30] sm:$0xff]  }
   0x8   :  { %3023 = vmatprep.subr.bf16.mxu0 %v3197_v2  ;;  %3181 = vmatprep.subr.bf16.mxu1 %v3197_v2  ;;  %v3216_v21 = vld [vmem:[%s3889_s0 + $0x150] sm:$0xff]   ;;  %v3217_v22 = vld [vmem:[%s3889_s0 + $0x38] sm:$0xff]   ;;  %v3219_v24 = vld [vmem:[%s3889_s0 + $0x40] sm:$0xff]  }
   0x9   :  { %v3218_v23 = vld [vmem:[%s3889_s0 + $0x158] sm:$0xff]   ;;  %v3220_v25 = vld [vmem:[%s3889_s0 + $0x160] sm:$0xff]   ;;  %v3221_v26 = vld [vmem:[%s3889_s0 + $0x48] sm:$0xff]  }
   0xa   :  { %v3222_v27 = vld [vmem:[%s3889_s0 + $0x168] sm:$0xff]   ;;  %v3223_v28 = vld [vmem:[%s3889_s0 + $0x50] sm:$0xff]   ;;  %v3225_v30 = vld [vmem:[%s3889_s0 + $0x58] sm:$0xff]  }
   0xb   :  { %3024 = vmatpush3.bf16.msra.mxu0 %v3197_v2  ;;  %3189 = vmatpush3.bf16.msra.mxu1 %v3197_v2  ;;  %v3224_v29 = vld [vmem:[%s3889_s0 + $0x170] sm:$0xff]   ;;  %v3226_v31 = vld [vmem:[%s3889_s0 + $0x178] sm:$0xff]   ;;  %v3227_v32 = vld [vmem:[%s3889_s0 + $0x60] sm:$0xff]  }
   0xc   :  { %3025 = vmatprep.subr.bf16.mxu0 %v3198_v3  ;;  %3182 = vmatprep.subr.bf16.mxu1 %v3198_v3  ;;  %v3228_v33 = vld [vmem:[%s3889_s0 + $0x180] sm:$0xff]   ;;  %v3229_v34 = vld [vmem:[%s3889_s0 + $0x68] sm:$0xff]   ;;  %v3231_v36 = vld [vmem:[%s3889_s0 + $0x70] sm:$0xff]  }
   0xd   :  { %v3230_v35 = vld [vmem:[%s3889_s0 + $0x188] sm:$0xff]   ;;  %v3232_v37 = vld [vmem:[%s3889_s0 + $0x190] sm:$0xff]   ;;  %v3233_v38 = vld [vmem:[%s3889_s0 + $0x78] sm:$0xff]  }
   0xe   :  { %v3234_v39 = vld [vmem:[%s3889_s0 + $0x198] sm:$0xff]   ;;  %v3235_v40 = vld [vmem:[%s3889_s0 + $0x80] sm:$0xff]   ;;  %v3237_v42 = vld [vmem:[%s3889_s0 + $0x88] sm:$0xff]  }
   0xf   :  { %3026 = vmatpush3.bf16.msra.mxu0 %v3198_v3  ;;  %3190 = vmatpush3.bf16.msra.mxu1 %v3198_v3  ;;  %v3236_v41 = vld [vmem:[%s3889_s0 + $0x1a0] sm:$0xff]   ;;  %v3238_v43 = vld [vmem:[%s3889_s0 + $0x1a8] sm:$0xff]   ;;  %v3239_v44 = vld [vmem:[%s3889_s0 + $0x90] sm:$0xff]  }
  0x10   :  { %3027 = vmatprep.subr.bf16.mxu0 %v3199_v6  ;;  %3183 = vmatprep.subr.bf16.mxu1 %v3199_v6  ;;  %v3240_v45 = vld [vmem:[%s3889_s0 + $0x1b0] sm:$0xff]   ;;  %v3241_v46 = vld [vmem:[%s3889_s0 + $0x98] sm:$0xff]   ;;  %v3243_v48 = vld [vmem:[%s3889_s0 + $0xa0] sm:$0xff]  }
  0x11   :  { %v3242_v47 = vld [vmem:[%s3889_s0 + $0x1b8] sm:$0xff]   ;;  %v3244_v49 = vld [vmem:[%s3889_s0 + $0x1c0] sm:$0xff]   ;;  %v3245_v50 = vld [vmem:[%s3889_s0 + $0xa8] sm:$0xff]  }
  0x12   :  { %v3246_v51 = vld [vmem:[%s3889_s0 + $0x1c8] sm:$0xff]   ;;  %v3247_v52 = vld [vmem:[%s3889_s0 + $0xb0] sm:$0xff]   ;;  %v3249_v54 = vld [vmem:[%s3889_s0 + $0xb8] sm:$0xff]  }
  0x13   :  { %3028 = vmatpush3.bf16.msra.mxu0 %v3199_v6  ;;  %3191 = vmatpush3.bf16.msra.mxu1 %v3199_v6  ;;  %v3248_v53 = vld [vmem:[%s3889_s0 + $0x1d0] sm:$0xff]   ;;  %v3250_v55 = vld [vmem:[%s3889_s0 + $0x1d8] sm:$0xff]   ;;  %v3251_v56 = vld [vmem:[%s3889_s0 + $0xc0] sm:$0xff]  }
  0x14   :  { %3029 = vmatprep.subr.bf16.mxu0 %v3200_v7  ;;  %3184 = vmatprep.subr.bf16.mxu1 %v3200_v7  ;;  %v3252_v57 = vld [vmem:[%s3889_s0 + $0x1e0] sm:$0xff]   ;;  %v3253_v58 = vld [vmem:[%s3889_s0 + $0xc8] sm:$0xff]   ;;  %v3255_v60 = vld [vmem:[%s3889_s0 + $0xd0] sm:$0xff]  }
  0x15   :  { %v3254_v59 = vld [vmem:[%s3889_s0 + $0x1e8] sm:$0xff]   ;;  %v3256_v61 = vld [vmem:[%s3889_s0 + $0x1f0] sm:$0xff]   ;;  %v3257_v62 = vld [vmem:[%s3889_s0 + $0xd8] sm:$0xff]  }
  0x16   :  { %v3258_v63 = vld [vmem:[%s3889_s0 + $0x1f8] sm:$0xff]   ;;  %v3259_v0 = vld [vmem:[%s3889_s0 + $0xe0] sm:$0xff]   ;;  %v3261_v2 = vld [vmem:[%s3889_s0 + $0xe8] sm:$0xff]  }
  0x17   :  { %3030 = vmatpush3.bf16.msra.mxu0 %v3200_v7  ;;  %3192 = vmatpush3.bf16.msra.mxu1 %v3200_v7  ;;  %v3260_v1 = vld [vmem:[%s3889_s0 + $0x200] sm:$0xff]   ;;  %v3262_v3 = vld [vmem:[%s3889_s0 + $0x208] sm:$0xff]   ;;  %v3263_v4 = vld [vmem:[%s3889_s0 + $0xf0] sm:$0xff]  }
  0x18   :  { %3031 = vmatprep.subr.bf16.mxu0 %v3201_v8  ;;  %3185 = vmatprep.subr.bf16.mxu1 %v3201_v8  ;;  %v3264_v5 = vld [vmem:[%s3889_s0 + $0x210] sm:$0xff]   ;;  %v3265_v6 = vld [vmem:[%s3889_s0 + $0xf8] sm:$0xff]  }
  0x19   :  { %v3266_v7 = vld [vmem:[%s3889_s0 + $0x218] sm:$0xff]  }
  0x1b   :  { %3032 = vmatpush3.bf16.msra.mxu0 %v3201_v8  ;;  %3193 = vmatpush3.bf16.msra.mxu1 %v3201_v8  ;;  %v3267_v8 = vld [vmem:[%s3889_s0 + $0x100] sm:$0xff]  }
  0x1c   :  { %3033 = vmatprep.subr.bf16.mxu0 %v3202_v9  ;;  %3186 = vmatprep.subr.bf16.mxu1 %v3202_v9 }
  0x1f   :  { %3034 = vmatpush3.bf16.msra.mxu0 %v3202_v9  ;;  %3194 = vmatpush3.bf16.msra.mxu1 %v3202_v9  ;;  %v3268_v9 = vld [vmem:[%s3889_s0 + $0x220] sm:$0xff]  }
  0x22   :  { %3036 = vmatmul.mubr.bf16.vlgmr.msra.gmra.mrb[0].mxu0 %v3205_v10  ;;  %3108 = vmatmul.mubr.bf16.vlgmr.msra.gmra.mrb[0].mxu1 %v3206_v11  ;;  %v3269_v10 = vld [vmem:[%s3889_s0 + $0x108] sm:$0xff]  }
  0x23   :  { %3039 = vmatprep.mubr.bf16.mxu0 %v3207_v12  ;;  %3111 = vmatprep.mubr.bf16.mxu1 %v3208_v13  ;;  %v3270_v11 = vld [vmem:[%s3889_s0 + $0x228] sm:$0xff]   ;;  %v3271_v12 = vld [vmem:[%s3889_s0 + $0x110] sm:$0xff]  }
  0x24   :  { %v3272_v13 = vld [vmem:[%s3889_s0 + $0x230] sm:$0xff]  }
  0x2a   :  { %3040 = vmatmul.mubr.bf16.gmra.mrb[4].mxu0 %v3209_v14  ;;  %3112 = vmatmul.mubr.bf16.gmra.mrb[4].mxu1 %v3210_v15  ;;  %v3273_v14 = vld [vmem:[%s3889_s0 + $0x118] sm:$0xff]  }
  0x2b   :  { %3043 = vmatprep.mubr.bf16.mxu0 %v3211_v16  ;;  %3115 = vmatprep.mubr.bf16.mxu1 %v3212_v17  ;;  %v3274_v15 = vld [vmem:[%s3889_s0 + $0x238] sm:$0xff]   ;;  %v3539_v16 = vld [vmem:[%s3890_s2] ss:$0 sm:$0xff] }
  0x32   :  { %3044 = vmatmul.mubr.bf16.gmra.mrb[8].mxu0 %v3213_v18  ;;  %3116 = vmatmul.mubr.bf16.gmra.mrb[8].mxu1 %v3214_v19 }
  0x33   :  { %3047 = vmatprep.mubr.bf16.mxu0 %v3215_v20  ;;  %3119 = vmatprep.mubr.bf16.mxu1 %v3216_v21 }
  0x3a   :  { %3048 = vmatmul.mubr.bf16.gmra.mrb[12].mxu0 %v3217_v22  ;;  %3120 = vmatmul.mubr.bf16.gmra.mrb[12].mxu1 %v3218_v23 }
  0x3b   :  { %3051 = vmatprep.mubr.bf16.mxu0 %v3219_v24  ;;  %3123 = vmatprep.mubr.bf16.mxu1 %v3220_v25 }
  0x42   :  { %3052 = vmatmul.mubr.bf16.gmra.mrb[16].mxu0 %v3221_v26  ;;  %3124 = vmatmul.mubr.bf16.gmra.mrb[16].mxu1 %v3222_v27 }
  0x43   :  { %3055 = vmatprep.mubr.bf16.mxu0 %v3223_v28  ;;  %3127 = vmatprep.mubr.bf16.mxu1 %v3224_v29 }
  0x4a   :  { %3056 = vmatmul.mubr.bf16.gmra.mrb[20].mxu0 %v3225_v30  ;;  %3128 = vmatmul.mubr.bf16.gmra.mrb[20].mxu1 %v3226_v31 }
  0x4b   :  { %3059 = vmatprep.mubr.bf16.mxu0 %v3227_v32  ;;  %3131 = vmatprep.mubr.bf16.mxu1 %v3228_v33 }
  0x52   :  { %3060 = vmatmul.mubr.bf16.gmra.mrb[24].mxu0 %v3229_v34  ;;  %3132 = vmatmul.mubr.bf16.gmra.mrb[24].mxu1 %v3230_v35 }
  0x53   :  { %3063 = vmatprep.mubr.bf16.mxu0 %v3231_v36  ;;  %3135 = vmatprep.mubr.bf16.mxu1 %v3232_v37 }
  0x5a   :  { %3064 = vmatmul.mubr.bf16.gmra.mrb[28].mxu0 %v3233_v38  ;;  %3136 = vmatmul.mubr.bf16.gmra.mrb[28].mxu1 %v3234_v39 }
  0x5b   :  { %3067 = vmatprep.mubr.bf16.mxu0 %v3235_v40  ;;  %3139 = vmatprep.mubr.bf16.mxu1 %v3236_v41 }
  0x62   :  { %3068 = vmatmul.mubr.bf16.gmra.mrb[32].mxu0 %v3237_v42  ;;  %3140 = vmatmul.mubr.bf16.gmra.mrb[32].mxu1 %v3238_v43 }
  0x63   :  { %3071 = vmatprep.mubr.bf16.mxu0 %v3239_v44  ;;  %3143 = vmatprep.mubr.bf16.mxu1 %v3240_v45 }
  0x6a   :  { %3072 = vmatmul.mubr.bf16.gmra.mrb[36].mxu0 %v3241_v46  ;;  %3144 = vmatmul.mubr.bf16.gmra.mrb[36].mxu1 %v3242_v47 }
  0x6b   :  { %3075 = vmatprep.mubr.bf16.mxu0 %v3243_v48  ;;  %3147 = vmatprep.mubr.bf16.mxu1 %v3244_v49 }
  0x72   :  { %3076 = vmatmul.mubr.bf16.gmra.mrb[40].mxu0 %v3245_v50  ;;  %3148 = vmatmul.mubr.bf16.gmra.mrb[40].mxu1 %v3246_v51 }
  0x73   :  { %3079 = vmatprep.mubr.bf16.mxu0 %v3247_v52  ;;  %3151 = vmatprep.mubr.bf16.mxu1 %v3248_v53 }
  0x7a   :  { %3080 = vmatmul.mubr.bf16.gmra.mrb[44].mxu0 %v3249_v54  ;;  %3152 = vmatmul.mubr.bf16.gmra.mrb[44].mxu1 %v3250_v55 }
  0x7b   :  { %3083 = vmatprep.mubr.bf16.mxu0 %v3251_v56  ;;  %3155 = vmatprep.mubr.bf16.mxu1 %v3252_v57 }
  0x82   :  { %3084 = vmatmul.mubr.bf16.gmra.mrb[48].mxu0 %v3253_v58  ;;  %3156 = vmatmul.mubr.bf16.gmra.mrb[48].mxu1 %v3254_v59 }
  0x83   :  { %3087 = vmatprep.mubr.bf16.mxu0 %v3255_v60  ;;  %3159 = vmatprep.mubr.bf16.mxu1 %v3256_v61 }
  0x8a   :  { %3088 = vmatmul.mubr.bf16.gmra.mrb[52].mxu0 %v3257_v62  ;;  %3160 = vmatmul.mubr.bf16.gmra.mrb[52].mxu1 %v3258_v63 }
  0x8b   :  { %3091 = vmatprep.mubr.bf16.mxu0 %v3259_v0  ;;  %3163 = vmatprep.mubr.bf16.mxu1 %v3260_v1 }
  0x92   :  { %3092 = vmatmul.mubr.bf16.gmra.mrb[56].mxu0 %v3261_v2  ;;  %3164 = vmatmul.mubr.bf16.gmra.mrb[56].mxu1 %v3262_v3 }
  0x93   :  { %3095 = vmatprep.mubr.bf16.mxu0 %v3263_v4  ;;  %3167 = vmatprep.mubr.bf16.mxu1 %v3264_v5 }
  0x9a   :  { %3096 = vmatmul.mubr.bf16.gmra.mrb[60].mxu0 %v3265_v6  ;;  %3168 = vmatmul.mubr.bf16.gmra.mrb[60].mxu1 %v3266_v7 }
  0x9b   :  { %3099 = vmatprep.mubr.bf16.mxu0 %v3267_v8  ;;  %3171 = vmatprep.mubr.bf16.mxu1 %v3268_v9 }
  0xa2   :  { %3100 = vmatmul.mubr.bf16.gmra.mrb[64].mxu0 %v3269_v10  ;;  %3172 = vmatmul.mubr.bf16.gmra.mrb[64].mxu1 %v3270_v11 }
  0xa3   :  { %3103 = vmatprep.mubr.bf16.mxu0 %v3271_v12  ;;  %3175 = vmatprep.mubr.bf16.mxu1 %v3272_v13 }
  0xaa   :  { %3104 = vmatmul.mubr.bf16.gmra.mrb[68].mxu0 %v3273_v14  ;;  %3176 = vmatmul.mubr.bf16.gmra.mrb[68].mxu1 %v3274_v15 }
  0xf5   :  { %v3037_v17 = vpop.f32.mrb[0].mxu0  ;;  %v3109_v18 = vpop.f32.mrb[0].mxu1 }
  0xf6   :  { %v705_v19 = vadd.f32 %v3037_v17, %v3539_v16  ;;  %v993_v20 = vadd.f32 %v3109_v18, %v3539_v16  ;;  %v696_v21 = vpop.f32.mrb[1].mxu0  ;;  %v984_v22 = vpop.f32.mrb[1].mxu1 }
  0xf7   :  { %v697_v23 = vadd.f32 %v3539_v16, %v696_v21  ;;  %v985_v24 = vadd.f32 %v3539_v16, %v984_v22  ;;  %v3038_v25 = vpop.f32.mrb[2].mxu0  ;;  %v3110_v26 = vpop.f32.mrb[2].mxu1 }
  0xf8   :  { %v708_v27 = vadd.f32 %v3038_v25, %v3539_v16  ;;  %v996_v28 = vadd.f32 %v3110_v26, %v3539_v16  ;;  %v699_v29 = vpop.f32.mrb[3].mxu0  ;;  %v987_v30 = vpop.f32.mrb[3].mxu1  ;;  %v1273_v33 = vmax.f32 %v705_v19, 0.0  ;;  %v1345_v34 = vmax.f32 %v993_v20, 0.0 }
  0xf9   :  { %v700_v31 = vadd.f32 %v3539_v16, %v699_v29  ;;  %v988_v32 = vadd.f32 %v3539_v16, %v987_v30  ;;  %v1271_v37 = vmax.f32 %v697_v23, 0.0  ;;  %v1343_v38 = vmax.f32 %v985_v24, 0.0 }
  0xfa   :  { %v1274_v35 = vmax.f32 %v708_v27, 0.0  ;;  %v1346_v36 = vmax.f32 %v996_v28, 0.0 }
  0xfb   :  { %v1272_v39 = vmax.f32 %v700_v31, 0.0  ;;  %v1344_v40 = vmax.f32 %v988_v32, 0.0 }
  0xfc   :  { %v2516_v41 = vpack.c.bf16 %v1274_v35, %v1273_v33  ;;  %v2696_v42 = vpack.c.bf16 %v1346_v36, %v1345_v34 }
  0xfd   :  { %v2511_v43 = vpack.c.bf16 %v1272_v39, %v1271_v37  ;;  %v2691_v44 = vpack.c.bf16 %v1344_v40, %v1343_v38  ;;  %v3041_v45 = vpop.f32.mrb[4].mxu0  ;;  %v3113_v46 = vpop.f32.mrb[4].mxu1 }
  0xfe   :  { %2868 = vst [vmem:[%s3891_s3 + $0x8] sm:$0xff] %v2516_v41   ;;  %2904 = vst [vmem:[%s3891_s3 + $0x128] sm:$0xff] %v2696_v42   ;;  %v721_v47 = vadd.f32 %v3041_v45, %v3539_v16  ;;  %v1009_v48 = vadd.f32 %v3113_v46, %v3539_v16  ;;  %v712_v49 = vpop.f32.mrb[5].mxu0  ;;  %v1000_v50 = vpop.f32.mrb[5].mxu1 }
  0xff   :  { %2512 = vst [vmem:[%s3891_s3] sm:$0xff] %v2511_v43   ;;  %2903 = vst [vmem:[%s3891_s3 + $0x120] sm:$0xff] %v2691_v44   ;;  %v713_v51 = vadd.f32 %v3539_v16, %v712_v49  ;;  %v1001_v52 = vadd.f32 %v3539_v16, %v1000_v50  ;;  %v3042_v53 = vpop.f32.mrb[6].mxu0  ;;  %v3114_v54 = vpop.f32.mrb[6].mxu1 }
 0x100   :  { %v724_v55 = vadd.f32 %v3042_v53, %v3539_v16  ;;  %v1012_v56 = vadd.f32 %v3114_v54, %v3539_v16  ;;  %v715_v57 = vpop.f32.mrb[7].mxu0  ;;  %v1003_v58 = vpop.f32.mrb[7].mxu1  ;;  %v1277_v61 = vmax.f32 %v721_v47, 0.0  ;;  %v1349_v62 = vmax.f32 %v1009_v48, 0.0 }
 0x101   :  { %v716_v59 = vadd.f32 %v3539_v16, %v715_v57  ;;  %v1004_v60 = vadd.f32 %v3539_v16, %v1003_v58  ;;  %v1275_v1 = vmax.f32 %v713_v51, 0.0  ;;  %v1347_v2 = vmax.f32 %v1001_v52, 0.0 }
 0x102   :  { %v1278_v63 = vmax.f32 %v724_v55, 0.0  ;;  %v1350_v0 = vmax.f32 %v1012_v56, 0.0 }
 0x103   :  { %v1276_v3 = vmax.f32 %v716_v59, 0.0  ;;  %v1348_v4 = vmax.f32 %v1004_v60, 0.0 }
 0x104   :  { %v2526_v5 = vpack.c.bf16 %v1278_v63, %v1277_v61  ;;  %v2706_v6 = vpack.c.bf16 %v1350_v0, %v1349_v62 }
 0x105   :  { %v2521_v7 = vpack.c.bf16 %v1276_v3, %v1275_v1  ;;  %v2701_v8 = vpack.c.bf16 %v1348_v4, %v1347_v2  ;;  %v3045_v9 = vpop.f32.mrb[8].mxu0  ;;  %v3117_v10 = vpop.f32.mrb[8].mxu1 }
 0x106   :  { %2870 = vst [vmem:[%s3891_s3 + $0x18] sm:$0xff] %v2526_v5   ;;  %2906 = vst [vmem:[%s3891_s3 + $0x138] sm:$0xff] %v2706_v6   ;;  %v737_v11 = vadd.f32 %v3045_v9, %v3539_v16  ;;  %v1025_v12 = vadd.f32 %v3117_v10, %v3539_v16  ;;  %v728_v13 = vpop.f32.mrb[9].mxu0  ;;  %v1016_v14 = vpop.f32.mrb[9].mxu1 }
 0x107   :  { %2869 = vst [vmem:[%s3891_s3 + $0x10] sm:$0xff] %v2521_v7   ;;  %2905 = vst [vmem:[%s3891_s3 + $0x130] sm:$0xff] %v2701_v8   ;;  %v729_v15 = vadd.f32 %v3539_v16, %v728_v13  ;;  %v1017_v17 = vadd.f32 %v3539_v16, %v1016_v14  ;;  %v3046_v18 = vpop.f32.mrb[10].mxu0  ;;  %v3118_v19 = vpop.f32.mrb[10].mxu1 }
 0x108   :  { %v740_v20 = vadd.f32 %v3046_v18, %v3539_v16  ;;  %v1028_v21 = vadd.f32 %v3118_v19, %v3539_v16  ;;  %v731_v22 = vpop.f32.mrb[11].mxu0  ;;  %v1019_v23 = vpop.f32.mrb[11].mxu1  ;;  %v1281_v26 = vmax.f32 %v737_v11, 0.0  ;;  %v1353_v27 = vmax.f32 %v1025_v12, 0.0 }
 0x109   :  { %v732_v24 = vadd.f32 %v3539_v16, %v731_v22  ;;  %v1020_v25 = vadd.f32 %v3539_v16, %v1019_v23  ;;  %v1279_v30 = vmax.f32 %v729_v15, 0.0  ;;  %v1351_v31 = vmax.f32 %v1017_v17, 0.0 }
 0x10a   :  { %v1282_v28 = vmax.f32 %v740_v20, 0.0  ;;  %v1354_v29 = vmax.f32 %v1028_v21, 0.0 }
 0x10b   :  { %v1280_v32 = vmax.f32 %v732_v24, 0.0  ;;  %v1352_v33 = vmax.f32 %v1020_v25, 0.0 }
 0x10c   :  { %v2536_v34 = vpack.c.bf16 %v1282_v28, %v1281_v26  ;;  %v2716_v35 = vpack.c.bf16 %v1354_v29, %v1353_v27 }
 0x10d   :  { %v2531_v36 = vpack.c.bf16 %v1280_v32, %v1279_v30  ;;  %v2711_v37 = vpack.c.bf16 %v1352_v33, %v1351_v31  ;;  %v3049_v38 = vpop.f32.mrb[12].mxu0  ;;  %v3121_v39 = vpop.f32.mrb[12].mxu1 }
 0x10e   :  { %2872 = vst [vmem:[%s3891_s3 + $0x28] sm:$0xff] %v2536_v34   ;;  %2908 = vst [vmem:[%s3891_s3 + $0x148] sm:$0xff] %v2716_v35   ;;  %v753_v40 = vadd.f32 %v3049_v38, %v3539_v16  ;;  %v1041_v41 = vadd.f32 %v3121_v39, %v3539_v16  ;;  %v744_v42 = vpop.f32.mrb[13].mxu0  ;;  %v1032_v43 = vpop.f32.mrb[13].mxu1 }
 0x10f   :  { %2871 = vst [vmem:[%s3891_s3 + $0x20] sm:$0xff] %v2531_v36   ;;  %2907 = vst [vmem:[%s3891_s3 + $0x140] sm:$0xff] %v2711_v37   ;;  %v745_v44 = vadd.f32 %v3539_v16, %v744_v42  ;;  %v1033_v45 = vadd.f32 %v3539_v16, %v1032_v43  ;;  %v3050_v46 = vpop.f32.mrb[14].mxu0  ;;  %v3122_v47 = vpop.f32.mrb[14].mxu1 }
 0x110   :  { %v756_v48 = vadd.f32 %v3050_v46, %v3539_v16  ;;  %v1044_v49 = vadd.f32 %v3122_v47, %v3539_v16  ;;  %v747_v50 = vpop.f32.mrb[15].mxu0  ;;  %v1035_v51 = vpop.f32.mrb[15].mxu1  ;;  %v1285_v54 = vmax.f32 %v753_v40, 0.0  ;;  %v1357_v55 = vmax.f32 %v1041_v41, 0.0 }
 0x111   :  { %v748_v52 = vadd.f32 %v3539_v16, %v747_v50  ;;  %v1036_v53 = vadd.f32 %v3539_v16, %v1035_v51  ;;  %v1283_v58 = vmax.f32 %v745_v44, 0.0  ;;  %v1355_v59 = vmax.f32 %v1033_v45, 0.0 }
 0x112   :  { %v1286_v56 = vmax.f32 %v756_v48, 0.0  ;;  %v1358_v57 = vmax.f32 %v1044_v49, 0.0 }
 0x113   :  { %v1284_v60 = vmax.f32 %v748_v52, 0.0  ;;  %v1356_v61 = vmax.f32 %v1036_v53, 0.0 }
 0x114   :  { %v2546_v62 = vpack.c.bf16 %v1286_v56, %v1285_v54  ;;  %v2726_v63 = vpack.c.bf16 %v1358_v57, %v1357_v55 }
 0x115   :  { %v2541_v0 = vpack.c.bf16 %v1284_v60, %v1283_v58  ;;  %v2721_v1 = vpack.c.bf16 %v1356_v61, %v1355_v59  ;;  %v3053_v2 = vpop.f32.mrb[16].mxu0  ;;  %v3125_v3 = vpop.f32.mrb[16].mxu1 }
 0x116   :  { %2874 = vst [vmem:[%s3891_s3 + $0x38] sm:$0xff] %v2546_v62   ;;  %2910 = vst [vmem:[%s3891_s3 + $0x158] sm:$0xff] %v2726_v63   ;;  %v769_v4 = vadd.f32 %v3053_v2, %v3539_v16  ;;  %v1057_v5 = vadd.f32 %v3125_v3, %v3539_v16  ;;  %v760_v6 = vpop.f32.mrb[17].mxu0  ;;  %v1048_v7 = vpop.f32.mrb[17].mxu1 }
 0x117   :  { %2873 = vst [vmem:[%s3891_s3 + $0x30] sm:$0xff] %v2541_v0   ;;  %2909 = vst [vmem:[%s3891_s3 + $0x150] sm:$0xff] %v2721_v1   ;;  %v761_v8 = vadd.f32 %v3539_v16, %v760_v6  ;;  %v1049_v9 = vadd.f32 %v3539_v16, %v1048_v7  ;;  %v3054_v10 = vpop.f32.mrb[18].mxu0  ;;  %v3126_v11 = vpop.f32.mrb[18].mxu1 }
 0x118   :  { %v772_v12 = vadd.f32 %v3054_v10, %v3539_v16  ;;  %v1060_v13 = vadd.f32 %v3126_v11, %v3539_v16  ;;  %v763_v14 = vpop.f32.mrb[19].mxu0  ;;  %v1051_v15 = vpop.f32.mrb[19].mxu1  ;;  %v1289_v19 = vmax.f32 %v769_v4, 0.0  ;;  %v1361_v20 = vmax.f32 %v1057_v5, 0.0 }
 0x119   :  { %v764_v17 = vadd.f32 %v3539_v16, %v763_v14  ;;  %v1052_v18 = vadd.f32 %v3539_v16, %v1051_v15  ;;  %v1287_v23 = vmax.f32 %v761_v8, 0.0  ;;  %v1359_v24 = vmax.f32 %v1049_v9, 0.0 }
 0x11a   :  { %v1290_v21 = vmax.f32 %v772_v12, 0.0  ;;  %v1362_v22 = vmax.f32 %v1060_v13, 0.0 }
 0x11b   :  { %v1288_v25 = vmax.f32 %v764_v17, 0.0  ;;  %v1360_v26 = vmax.f32 %v1052_v18, 0.0 }
 0x11c   :  { %v2556_v27 = vpack.c.bf16 %v1290_v21, %v1289_v19  ;;  %v2736_v28 = vpack.c.bf16 %v1362_v22, %v1361_v20 }
 0x11d   :  { %v2551_v29 = vpack.c.bf16 %v1288_v25, %v1287_v23  ;;  %v2731_v30 = vpack.c.bf16 %v1360_v26, %v1359_v24  ;;  %v3057_v31 = vpop.f32.mrb[20].mxu0  ;;  %v3129_v32 = vpop.f32.mrb[20].mxu1 }
 0x11e   :  { %2876 = vst [vmem:[%s3891_s3 + $0x48] sm:$0xff] %v2556_v27   ;;  %2912 = vst [vmem:[%s3891_s3 + $0x168] sm:$0xff] %v2736_v28   ;;  %v785_v33 = vadd.f32 %v3057_v31, %v3539_v16  ;;  %v1073_v34 = vadd.f32 %v3129_v32, %v3539_v16  ;;  %v776_v35 = vpop.f32.mrb[21].mxu0  ;;  %v1064_v36 = vpop.f32.mrb[21].mxu1 }
 0x11f   :  { %2875 = vst [vmem:[%s3891_s3 + $0x40] sm:$0xff] %v2551_v29   ;;  %2911 = vst [vmem:[%s3891_s3 + $0x160] sm:$0xff] %v2731_v30   ;;  %v777_v37 = vadd.f32 %v3539_v16, %v776_v35  ;;  %v1065_v38 = vadd.f32 %v3539_v16, %v1064_v36  ;;  %v3058_v39 = vpop.f32.mrb[22].mxu0  ;;  %v3130_v40 = vpop.f32.mrb[22].mxu1 }
 0x120   :  { %v788_v41 = vadd.f32 %v3058_v39, %v3539_v16  ;;  %v1076_v42 = vadd.f32 %v3130_v40, %v3539_v16  ;;  %v779_v43 = vpop.f32.mrb[23].mxu0  ;;  %v1067_v44 = vpop.f32.mrb[23].mxu1  ;;  %v1293_v47 = vmax.f32 %v785_v33, 0.0  ;;  %v1365_v48 = vmax.f32 %v1073_v34, 0.0 }
 0x121   :  { %v780_v45 = vadd.f32 %v3539_v16, %v779_v43  ;;  %v1068_v46 = vadd.f32 %v3539_v16, %v1067_v44  ;;  %v1291_v51 = vmax.f32 %v777_v37, 0.0  ;;  %v1363_v52 = vmax.f32 %v1065_v38, 0.0 }
 0x122   :  { %v1294_v49 = vmax.f32 %v788_v41, 0.0  ;;  %v1366_v50 = vmax.f32 %v1076_v42, 0.0 }
 0x123   :  { %v1292_v53 = vmax.f32 %v780_v45, 0.0  ;;  %v1364_v54 = vmax.f32 %v1068_v46, 0.0 }
 0x124   :  { %v2566_v55 = vpack.c.bf16 %v1294_v49, %v1293_v47  ;;  %v2746_v56 = vpack.c.bf16 %v1366_v50, %v1365_v48 }
 0x125   :  { %v2561_v57 = vpack.c.bf16 %v1292_v53, %v1291_v51  ;;  %v2741_v58 = vpack.c.bf16 %v1364_v54, %v1363_v52  ;;  %v3061_v59 = vpop.f32.mrb[24].mxu0  ;;  %v3133_v60 = vpop.f32.mrb[24].mxu1 }
 0x126   :  { %2878 = vst [vmem:[%s3891_s3 + $0x58] sm:$0xff] %v2566_v55   ;;  %2914 = vst [vmem:[%s3891_s3 + $0x178] sm:$0xff] %v2746_v56   ;;  %v801_v61 = vadd.f32 %v3061_v59, %v3539_v16  ;;  %v1089_v62 = vadd.f32 %v3133_v60, %v3539_v16  ;;  %v792_v63 = vpop.f32.mrb[25].mxu0  ;;  %v1080_v0 = vpop.f32.mrb[25].mxu1 }
 0x127   :  { %2877 = vst [vmem:[%s3891_s3 + $0x50] sm:$0xff] %v2561_v57   ;;  %2913 = vst [vmem:[%s3891_s3 + $0x170] sm:$0xff] %v2741_v58   ;;  %v793_v1 = vadd.f32 %v3539_v16, %v792_v63  ;;  %v1081_v2 = vadd.f32 %v3539_v16, %v1080_v0  ;;  %v3062_v3 = vpop.f32.mrb[26].mxu0  ;;  %v3134_v4 = vpop.f32.mrb[26].mxu1 }
 0x128   :  { %v804_v5 = vadd.f32 %v3062_v3, %v3539_v16  ;;  %v1092_v6 = vadd.f32 %v3134_v4, %v3539_v16  ;;  %v795_v7 = vpop.f32.mrb[27].mxu0  ;;  %v1083_v8 = vpop.f32.mrb[27].mxu1  ;;  %v1297_v11 = vmax.f32 %v801_v61, 0.0  ;;  %v1369_v12 = vmax.f32 %v1089_v62, 0.0 }
 0x129   :  { %v796_v9 = vadd.f32 %v3539_v16, %v795_v7  ;;  %v1084_v10 = vadd.f32 %v3539_v16, %v1083_v8  ;;  %v1295_v15 = vmax.f32 %v793_v1, 0.0  ;;  %v1367_v17 = vmax.f32 %v1081_v2, 0.0 }
 0x12a   :  { %v1298_v13 = vmax.f32 %v804_v5, 0.0  ;;  %v1370_v14 = vmax.f32 %v1092_v6, 0.0 }
 0x12b   :  { %v1296_v18 = vmax.f32 %v796_v9, 0.0  ;;  %v1368_v19 = vmax.f32 %v1084_v10, 0.0 }
 0x12c   :  { %v2576_v20 = vpack.c.bf16 %v1298_v13, %v1297_v11  ;;  %v2756_v21 = vpack.c.bf16 %v1370_v14, %v1369_v12 }
 0x12d   :  { %v2571_v22 = vpack.c.bf16 %v1296_v18, %v1295_v15  ;;  %v2751_v23 = vpack.c.bf16 %v1368_v19, %v1367_v17  ;;  %v3065_v24 = vpop.f32.mrb[28].mxu0  ;;  %v3137_v25 = vpop.f32.mrb[28].mxu1 }
 0x12e   :  { %2880 = vst [vmem:[%s3891_s3 + $0x68] sm:$0xff] %v2576_v20   ;;  %2916 = vst [vmem:[%s3891_s3 + $0x188] sm:$0xff] %v2756_v21   ;;  %v817_v26 = vadd.f32 %v3065_v24, %v3539_v16  ;;  %v1105_v27 = vadd.f32 %v3137_v25, %v3539_v16  ;;  %v808_v28 = vpop.f32.mrb[29].mxu0  ;;  %v1096_v29 = vpop.f32.mrb[29].mxu1 }
 0x12f   :  { %2879 = vst [vmem:[%s3891_s3 + $0x60] sm:$0xff] %v2571_v22   ;;  %2915 = vst [vmem:[%s3891_s3 + $0x180] sm:$0xff] %v2751_v23   ;;  %v809_v30 = vadd.f32 %v3539_v16, %v808_v28  ;;  %v1097_v31 = vadd.f32 %v3539_v16, %v1096_v29  ;;  %v3066_v32 = vpop.f32.mrb[30].mxu0  ;;  %v3138_v33 = vpop.f32.mrb[30].mxu1 }
 0x130   :  { %v820_v34 = vadd.f32 %v3066_v32, %v3539_v16  ;;  %v1108_v35 = vadd.f32 %v3138_v33, %v3539_v16  ;;  %v811_v36 = vpop.f32.mrb[31].mxu0  ;;  %v1099_v37 = vpop.f32.mrb[31].mxu1  ;;  %v1301_v40 = vmax.f32 %v817_v26, 0.0  ;;  %v1373_v41 = vmax.f32 %v1105_v27, 0.0 }
 0x131   :  { %v812_v38 = vadd.f32 %v3539_v16, %v811_v36  ;;  %v1100_v39 = vadd.f32 %v3539_v16, %v1099_v37  ;;  %v1299_v44 = vmax.f32 %v809_v30, 0.0  ;;  %v1371_v45 = vmax.f32 %v1097_v31, 0.0 }
 0x132   :  { %v1302_v42 = vmax.f32 %v820_v34, 0.0  ;;  %v1374_v43 = vmax.f32 %v1108_v35, 0.0 }
 0x133   :  { %v1300_v46 = vmax.f32 %v812_v38, 0.0  ;;  %v1372_v47 = vmax.f32 %v1100_v39, 0.0 }
 0x134   :  { %v2586_v48 = vpack.c.bf16 %v1302_v42, %v1301_v40  ;;  %v2766_v49 = vpack.c.bf16 %v1374_v43, %v1373_v41 }
 0x135   :  { %v2581_v50 = vpack.c.bf16 %v1300_v46, %v1299_v44  ;;  %v2761_v51 = vpack.c.bf16 %v1372_v47, %v1371_v45  ;;  %v3069_v52 = vpop.f32.mrb[32].mxu0  ;;  %v3141_v53 = vpop.f32.mrb[32].mxu1 }
 0x136   :  { %2882 = vst [vmem:[%s3891_s3 + $0x78] sm:$0xff] %v2586_v48   ;;  %2918 = vst [vmem:[%s3891_s3 + $0x198] sm:$0xff] %v2766_v49   ;;  %v833_v54 = vadd.f32 %v3069_v52, %v3539_v16  ;;  %v1121_v55 = vadd.f32 %v3141_v53, %v3539_v16  ;;  %v824_v56 = vpop.f32.mrb[33].mxu0  ;;  %v1112_v57 = vpop.f32.mrb[33].mxu1 }
 0x137   :  { %2881 = vst [vmem:[%s3891_s3 + $0x70] sm:$0xff] %v2581_v50   ;;  %2917 = vst [vmem:[%s3891_s3 + $0x190] sm:$0xff] %v2761_v51   ;;  %v825_v58 = vadd.f32 %v3539_v16, %v824_v56  ;;  %v1113_v59 = vadd.f32 %v3539_v16, %v1112_v57  ;;  %v3070_v60 = vpop.f32.mrb[34].mxu0  ;;  %v3142_v61 = vpop.f32.mrb[34].mxu1 }
 0x138   :  { %v836_v62 = vadd.f32 %v3070_v60, %v3539_v16  ;;  %v1124_v63 = vadd.f32 %v3142_v61, %v3539_v16  ;;  %v827_v0 = vpop.f32.mrb[35].mxu0  ;;  %v1115_v1 = vpop.f32.mrb[35].mxu1  ;;  %v1305_v4 = vmax.f32 %v833_v54, 0.0  ;;  %v1377_v5 = vmax.f32 %v1121_v55, 0.0 }
 0x139   :  { %v828_v2 = vadd.f32 %v3539_v16, %v827_v0  ;;  %v1116_v3 = vadd.f32 %v3539_v16, %v1115_v1  ;;  %v1303_v8 = vmax.f32 %v825_v58, 0.0  ;;  %v1375_v9 = vmax.f32 %v1113_v59, 0.0 }
 0x13a   :  { %v1306_v6 = vmax.f32 %v836_v62, 0.0  ;;  %v1378_v7 = vmax.f32 %v1124_v63, 0.0 }
 0x13b   :  { %v1304_v10 = vmax.f32 %v828_v2, 0.0  ;;  %v1376_v11 = vmax.f32 %v1116_v3, 0.0 }
 0x13c   :  { %v2596_v12 = vpack.c.bf16 %v1306_v6, %v1305_v4  ;;  %v2776_v13 = vpack.c.bf16 %v1378_v7, %v1377_v5 }
 0x13d   :  { %v2591_v14 = vpack.c.bf16 %v1304_v10, %v1303_v8  ;;  %v2771_v15 = vpack.c.bf16 %v1376_v11, %v1375_v9  ;;  %v3073_v17 = vpop.f32.mrb[36].mxu0  ;;  %v3145_v18 = vpop.f32.mrb[36].mxu1 }
 0x13e   :  { %2884 = vst [vmem:[%s3891_s3 + $0x88] sm:$0xff] %v2596_v12   ;;  %2920 = vst [vmem:[%s3891_s3 + $0x1a8] sm:$0xff] %v2776_v13   ;;  %v849_v19 = vadd.f32 %v3073_v17, %v3539_v16  ;;  %v1137_v20 = vadd.f32 %v3145_v18, %v3539_v16  ;;  %v840_v21 = vpop.f32.mrb[37].mxu0  ;;  %v1128_v22 = vpop.f32.mrb[37].mxu1 }
 0x13f   :  { %2883 = vst [vmem:[%s3891_s3 + $0x80] sm:$0xff] %v2591_v14   ;;  %2919 = vst [vmem:[%s3891_s3 + $0x1a0] sm:$0xff] %v2771_v15   ;;  %v841_v23 = vadd.f32 %v3539_v16, %v840_v21  ;;  %v1129_v24 = vadd.f32 %v3539_v16, %v1128_v22  ;;  %v3074_v25 = vpop.f32.mrb[38].mxu0  ;;  %v3146_v26 = vpop.f32.mrb[38].mxu1 }
 0x140   :  { %v852_v27 = vadd.f32 %v3074_v25, %v3539_v16  ;;  %v1140_v28 = vadd.f32 %v3146_v26, %v3539_v16  ;;  %v843_v29 = vpop.f32.mrb[39].mxu0  ;;  %v1131_v30 = vpop.f32.mrb[39].mxu1  ;;  %v1309_v33 = vmax.f32 %v849_v19, 0.0  ;;  %v1381_v34 = vmax.f32 %v1137_v20, 0.0 }
 0x141   :  { %v844_v31 = vadd.f32 %v3539_v16, %v843_v29  ;;  %v1132_v32 = vadd.f32 %v3539_v16, %v1131_v30  ;;  %v1307_v37 = vmax.f32 %v841_v23, 0.0  ;;  %v1379_v38 = vmax.f32 %v1129_v24, 0.0 }
 0x142   :  { %v1310_v35 = vmax.f32 %v852_v27, 0.0  ;;  %v1382_v36 = vmax.f32 %v1140_v28, 0.0 }
 0x143   :  { %v1308_v39 = vmax.f32 %v844_v31, 0.0  ;;  %v1380_v40 = vmax.f32 %v1132_v32, 0.0 }
 0x144   :  { %v2606_v41 = vpack.c.bf16 %v1310_v35, %v1309_v33  ;;  %v2786_v42 = vpack.c.bf16 %v1382_v36, %v1381_v34 }
 0x145   :  { %v2601_v43 = vpack.c.bf16 %v1308_v39, %v1307_v37  ;;  %v2781_v44 = vpack.c.bf16 %v1380_v40, %v1379_v38  ;;  %v3077_v45 = vpop.f32.mrb[40].mxu0  ;;  %v3149_v46 = vpop.f32.mrb[40].mxu1 }
 0x146   :  { %2886 = vst [vmem:[%s3891_s3 + $0x98] sm:$0xff] %v2606_v41   ;;  %2922 = vst [vmem:[%s3891_s3 + $0x1b8] sm:$0xff] %v2786_v42   ;;  %v865_v47 = vadd.f32 %v3077_v45, %v3539_v16  ;;  %v1153_v48 = vadd.f32 %v3149_v46, %v3539_v16  ;;  %v856_v49 = vpop.f32.mrb[41].mxu0  ;;  %v1144_v50 = vpop.f32.mrb[41].mxu1 }
 0x147   :  { %2885 = vst [vmem:[%s3891_s3 + $0x90] sm:$0xff] %v2601_v43   ;;  %2921 = vst [vmem:[%s3891_s3 + $0x1b0] sm:$0xff] %v2781_v44   ;;  %v857_v51 = vadd.f32 %v3539_v16, %v856_v49  ;;  %v1145_v52 = vadd.f32 %v3539_v16, %v1144_v50  ;;  %v3078_v53 = vpop.f32.mrb[42].mxu0  ;;  %v3150_v54 = vpop.f32.mrb[42].mxu1 }
 0x148   :  { %v868_v55 = vadd.f32 %v3078_v53, %v3539_v16  ;;  %v1156_v56 = vadd.f32 %v3150_v54, %v3539_v16  ;;  %v859_v57 = vpop.f32.mrb[43].mxu0  ;;  %v1147_v58 = vpop.f32.mrb[43].mxu1  ;;  %v1313_v61 = vmax.f32 %v865_v47, 0.0  ;;  %v1385_v62 = vmax.f32 %v1153_v48, 0.0 }
 0x149   :  { %v860_v59 = vadd.f32 %v3539_v16, %v859_v57  ;;  %v1148_v60 = vadd.f32 %v3539_v16, %v1147_v58  ;;  %v1311_v1 = vmax.f32 %v857_v51, 0.0  ;;  %v1383_v2 = vmax.f32 %v1145_v52, 0.0 }
 0x14a   :  { %v1314_v63 = vmax.f32 %v868_v55, 0.0  ;;  %v1386_v0 = vmax.f32 %v1156_v56, 0.0 }
 0x14b   :  { %v1312_v3 = vmax.f32 %v860_v59, 0.0  ;;  %v1384_v4 = vmax.f32 %v1148_v60, 0.0 }
 0x14c   :  { %v2616_v5 = vpack.c.bf16 %v1314_v63, %v1313_v61  ;;  %v2796_v6 = vpack.c.bf16 %v1386_v0, %v1385_v62 }
 0x14d   :  { %v2611_v7 = vpack.c.bf16 %v1312_v3, %v1311_v1  ;;  %v2791_v8 = vpack.c.bf16 %v1384_v4, %v1383_v2  ;;  %v3081_v9 = vpop.f32.mrb[44].mxu0  ;;  %v3153_v10 = vpop.f32.mrb[44].mxu1 }
 0x14e   :  { %2888 = vst [vmem:[%s3891_s3 + $0xa8] sm:$0xff] %v2616_v5   ;;  %2924 = vst [vmem:[%s3891_s3 + $0x1c8] sm:$0xff] %v2796_v6   ;;  %v881_v11 = vadd.f32 %v3081_v9, %v3539_v16  ;;  %v1169_v12 = vadd.f32 %v3153_v10, %v3539_v16  ;;  %v872_v13 = vpop.f32.mrb[45].mxu0  ;;  %v1160_v14 = vpop.f32.mrb[45].mxu1 }
 0x14f   :  { %2887 = vst [vmem:[%s3891_s3 + $0xa0] sm:$0xff] %v2611_v7   ;;  %2923 = vst [vmem:[%s3891_s3 + $0x1c0] sm:$0xff] %v2791_v8   ;;  %v873_v15 = vadd.f32 %v3539_v16, %v872_v13  ;;  %v1161_v17 = vadd.f32 %v3539_v16, %v1160_v14  ;;  %v3082_v18 = vpop.f32.mrb[46].mxu0  ;;  %v3154_v19 = vpop.f32.mrb[46].mxu1 }
 0x150   :  { %v884_v20 = vadd.f32 %v3082_v18, %v3539_v16  ;;  %v1172_v21 = vadd.f32 %v3154_v19, %v3539_v16  ;;  %v875_v22 = vpop.f32.mrb[47].mxu0  ;;  %v1163_v23 = vpop.f32.mrb[47].mxu1  ;;  %v1317_v26 = vmax.f32 %v881_v11, 0.0  ;;  %v1389_v27 = vmax.f32 %v1169_v12, 0.0 }
 0x151   :  { %v876_v24 = vadd.f32 %v3539_v16, %v875_v22  ;;  %v1164_v25 = vadd.f32 %v3539_v16, %v1163_v23  ;;  %v1315_v30 = vmax.f32 %v873_v15, 0.0  ;;  %v1387_v31 = vmax.f32 %v1161_v17, 0.0 }
 0x152   :  { %v1318_v28 = vmax.f32 %v884_v20, 0.0  ;;  %v1390_v29 = vmax.f32 %v1172_v21, 0.0 }
 0x153   :  { %v1316_v32 = vmax.f32 %v876_v24, 0.0  ;;  %v1388_v33 = vmax.f32 %v1164_v25, 0.0 }
 0x154   :  { %v2626_v34 = vpack.c.bf16 %v1318_v28, %v1317_v26  ;;  %v2806_v35 = vpack.c.bf16 %v1390_v29, %v1389_v27 }
 0x155   :  { %v2621_v36 = vpack.c.bf16 %v1316_v32, %v1315_v30  ;;  %v2801_v37 = vpack.c.bf16 %v1388_v33, %v1387_v31  ;;  %v3085_v38 = vpop.f32.mrb[48].mxu0  ;;  %v3157_v39 = vpop.f32.mrb[48].mxu1 }
 0x156   :  { %2890 = vst [vmem:[%s3891_s3 + $0xb8] sm:$0xff] %v2626_v34   ;;  %2926 = vst [vmem:[%s3891_s3 + $0x1d8] sm:$0xff] %v2806_v35   ;;  %v897_v40 = vadd.f32 %v3085_v38, %v3539_v16  ;;  %v1185_v41 = vadd.f32 %v3157_v39, %v3539_v16  ;;  %v888_v42 = vpop.f32.mrb[49].mxu0  ;;  %v1176_v43 = vpop.f32.mrb[49].mxu1 }
 0x157   :  { %2889 = vst [vmem:[%s3891_s3 + $0xb0] sm:$0xff] %v2621_v36   ;;  %2925 = vst [vmem:[%s3891_s3 + $0x1d0] sm:$0xff] %v2801_v37   ;;  %v889_v44 = vadd.f32 %v3539_v16, %v888_v42  ;;  %v1177_v45 = vadd.f32 %v3539_v16, %v1176_v43  ;;  %v3086_v46 = vpop.f32.mrb[50].mxu0  ;;  %v3158_v47 = vpop.f32.mrb[50].mxu1 }
 0x158   :  { %v900_v48 = vadd.f32 %v3086_v46, %v3539_v16  ;;  %v1188_v49 = vadd.f32 %v3158_v47, %v3539_v16  ;;  %v891_v50 = vpop.f32.mrb[51].mxu0  ;;  %v1179_v51 = vpop.f32.mrb[51].mxu1  ;;  %v1321_v54 = vmax.f32 %v897_v40, 0.0  ;;  %v1393_v55 = vmax.f32 %v1185_v41, 0.0 }
 0x159   :  { %v892_v52 = vadd.f32 %v3539_v16, %v891_v50  ;;  %v1180_v53 = vadd.f32 %v3539_v16, %v1179_v51  ;;  %v1319_v58 = vmax.f32 %v889_v44, 0.0  ;;  %v1391_v59 = vmax.f32 %v1177_v45, 0.0 }
 0x15a   :  { %v1322_v56 = vmax.f32 %v900_v48, 0.0  ;;  %v1394_v57 = vmax.f32 %v1188_v49, 0.0 }
 0x15b   :  { %v1320_v60 = vmax.f32 %v892_v52, 0.0  ;;  %v1392_v61 = vmax.f32 %v1180_v53, 0.0 }
 0x15c   :  { %v2636_v62 = vpack.c.bf16 %v1322_v56, %v1321_v54  ;;  %v2816_v63 = vpack.c.bf16 %v1394_v57, %v1393_v55 }
 0x15d   :  { %v2631_v0 = vpack.c.bf16 %v1320_v60, %v1319_v58  ;;  %v2811_v1 = vpack.c.bf16 %v1392_v61, %v1391_v59  ;;  %v3089_v2 = vpop.f32.mrb[52].mxu0  ;;  %v3161_v3 = vpop.f32.mrb[52].mxu1 }
 0x15e   :  { %2892 = vst [vmem:[%s3891_s3 + $0xc8] sm:$0xff] %v2636_v62   ;;  %2928 = vst [vmem:[%s3891_s3 + $0x1e8] sm:$0xff] %v2816_v63   ;;  %v913_v4 = vadd.f32 %v3089_v2, %v3539_v16  ;;  %v1201_v5 = vadd.f32 %v3161_v3, %v3539_v16  ;;  %v904_v6 = vpop.f32.mrb[53].mxu0  ;;  %v1192_v7 = vpop.f32.mrb[53].mxu1 }
 0x15f   :  { %2891 = vst [vmem:[%s3891_s3 + $0xc0] sm:$0xff] %v2631_v0   ;;  %2927 = vst [vmem:[%s3891_s3 + $0x1e0] sm:$0xff] %v2811_v1   ;;  %v905_v8 = vadd.f32 %v3539_v16, %v904_v6  ;;  %v1193_v9 = vadd.f32 %v3539_v16, %v1192_v7  ;;  %v3090_v10 = vpop.f32.mrb[54].mxu0  ;;  %v3162_v11 = vpop.f32.mrb[54].mxu1 }
 0x160   :  { %v916_v12 = vadd.f32 %v3090_v10, %v3539_v16  ;;  %v1204_v13 = vadd.f32 %v3162_v11, %v3539_v16  ;;  %v907_v14 = vpop.f32.mrb[55].mxu0  ;;  %v1195_v15 = vpop.f32.mrb[55].mxu1  ;;  %v1325_v19 = vmax.f32 %v913_v4, 0.0  ;;  %v1397_v20 = vmax.f32 %v1201_v5, 0.0 }
 0x161   :  { %v908_v17 = vadd.f32 %v3539_v16, %v907_v14  ;;  %v1196_v18 = vadd.f32 %v3539_v16, %v1195_v15  ;;  %v1323_v23 = vmax.f32 %v905_v8, 0.0  ;;  %v1395_v24 = vmax.f32 %v1193_v9, 0.0 }
 0x162   :  { %v1326_v21 = vmax.f32 %v916_v12, 0.0  ;;  %v1398_v22 = vmax.f32 %v1204_v13, 0.0 }
 0x163   :  { %v1324_v25 = vmax.f32 %v908_v17, 0.0  ;;  %v1396_v26 = vmax.f32 %v1196_v18, 0.0 }
 0x164   :  { %v2646_v27 = vpack.c.bf16 %v1326_v21, %v1325_v19  ;;  %v2826_v28 = vpack.c.bf16 %v1398_v22, %v1397_v20 }
 0x165   :  { %v2641_v29 = vpack.c.bf16 %v1324_v25, %v1323_v23  ;;  %v2821_v30 = vpack.c.bf16 %v1396_v26, %v1395_v24  ;;  %v3093_v31 = vpop.f32.mrb[56].mxu0  ;;  %v3165_v32 = vpop.f32.mrb[56].mxu1 }
 0x166   :  { %2894 = vst [vmem:[%s3891_s3 + $0xd8] sm:$0xff] %v2646_v27   ;;  %2930 = vst [vmem:[%s3891_s3 + $0x1f8] sm:$0xff] %v2826_v28   ;;  %v929_v33 = vadd.f32 %v3093_v31, %v3539_v16  ;;  %v1217_v34 = vadd.f32 %v3165_v32, %v3539_v16  ;;  %v920_v35 = vpop.f32.mrb[57].mxu0  ;;  %v1208_v36 = vpop.f32.mrb[57].mxu1 }
 0x167   :  { %2893 = vst [vmem:[%s3891_s3 + $0xd0] sm:$0xff] %v2641_v29   ;;  %2929 = vst [vmem:[%s3891_s3 + $0x1f0] sm:$0xff] %v2821_v30   ;;  %v921_v37 = vadd.f32 %v3539_v16, %v920_v35  ;;  %v1209_v38 = vadd.f32 %v3539_v16, %v1208_v36  ;;  %v3094_v39 = vpop.f32.mrb[58].mxu0  ;;  %v3166_v40 = vpop.f32.mrb[58].mxu1 }
 0x168   :  { %v932_v41 = vadd.f32 %v3094_v39, %v3539_v16  ;;  %v1220_v42 = vadd.f32 %v3166_v40, %v3539_v16  ;;  %v923_v43 = vpop.f32.mrb[59].mxu0  ;;  %v1211_v44 = vpop.f32.mrb[59].mxu1  ;;  %v1329_v47 = vmax.f32 %v929_v33, 0.0  ;;  %v1401_v48 = vmax.f32 %v1217_v34, 0.0 }
 0x169   :  { %v924_v45 = vadd.f32 %v3539_v16, %v923_v43  ;;  %v1212_v46 = vadd.f32 %v3539_v16, %v1211_v44  ;;  %v1327_v51 = vmax.f32 %v921_v37, 0.0  ;;  %v1399_v52 = vmax.f32 %v1209_v38, 0.0 }
 0x16a   :  { %v1330_v49 = vmax.f32 %v932_v41, 0.0  ;;  %v1402_v50 = vmax.f32 %v1220_v42, 0.0 }
 0x16b   :  { %v1328_v53 = vmax.f32 %v924_v45, 0.0  ;;  %v1400_v54 = vmax.f32 %v1212_v46, 0.0 }
 0x16c   :  { %v2656_v55 = vpack.c.bf16 %v1330_v49, %v1329_v47  ;;  %v2836_v56 = vpack.c.bf16 %v1402_v50, %v1401_v48 }
 0x16d   :  { %v2651_v57 = vpack.c.bf16 %v1328_v53, %v1327_v51  ;;  %v2831_v58 = vpack.c.bf16 %v1400_v54, %v1399_v52  ;;  %v3097_v59 = vpop.f32.mrb[60].mxu0  ;;  %v3169_v60 = vpop.f32.mrb[60].mxu1 }
 0x16e   :  { %2896 = vst [vmem:[%s3891_s3 + $0xe8] sm:$0xff] %v2656_v55   ;;  %2932 = vst [vmem:[%s3891_s3 + $0x208] sm:$0xff] %v2836_v56   ;;  %v945_v61 = vadd.f32 %v3097_v59, %v3539_v16  ;;  %v1233_v62 = vadd.f32 %v3169_v60, %v3539_v16  ;;  %v936_v63 = vpop.f32.mrb[61].mxu0  ;;  %v1224_v0 = vpop.f32.mrb[61].mxu1 }
 0x16f   :  { %2895 = vst [vmem:[%s3891_s3 + $0xe0] sm:$0xff] %v2651_v57   ;;  %2931 = vst [vmem:[%s3891_s3 + $0x200] sm:$0xff] %v2831_v58   ;;  %v937_v1 = vadd.f32 %v3539_v16, %v936_v63  ;;  %v1225_v2 = vadd.f32 %v3539_v16, %v1224_v0  ;;  %v3098_v3 = vpop.f32.mrb[62].mxu0  ;;  %v3170_v4 = vpop.f32.mrb[62].mxu1 }
 0x170   :  { %v948_v5 = vadd.f32 %v3098_v3, %v3539_v16  ;;  %v1236_v6 = vadd.f32 %v3170_v4, %v3539_v16  ;;  %v939_v7 = vpop.f32.mrb[63].mxu0  ;;  %v1227_v8 = vpop.f32.mrb[63].mxu1  ;;  %v1333_v11 = vmax.f32 %v945_v61, 0.0  ;;  %v1405_v12 = vmax.f32 %v1233_v62, 0.0 }
 0x171   :  { %v940_v9 = vadd.f32 %v3539_v16, %v939_v7  ;;  %v1228_v10 = vadd.f32 %v3539_v16, %v1227_v8  ;;  %v1331_v15 = vmax.f32 %v937_v1, 0.0  ;;  %v1403_v17 = vmax.f32 %v1225_v2, 0.0  ;;  %v3275_v16 = vld [vmem:[%s3890_s2] ss:$0 sm:$0xff] }
 0x172   :  { %v1334_v13 = vmax.f32 %v948_v5, 0.0  ;;  %v1406_v14 = vmax.f32 %v1236_v6, 0.0 }
 0x173   :  { %v1332_v18 = vmax.f32 %v940_v9, 0.0  ;;  %v1404_v19 = vmax.f32 %v1228_v10, 0.0 }
 0x174   :  { %v2666_v20 = vpack.c.bf16 %v1334_v13, %v1333_v11  ;;  %v2846_v21 = vpack.c.bf16 %v1406_v14, %v1405_v12 }
 0x175   :  { %v2661_v22 = vpack.c.bf16 %v1332_v18, %v1331_v15  ;;  %v2841_v23 = vpack.c.bf16 %v1404_v19, %v1403_v17  ;;  %v3101_v24 = vpop.f32.mrb[64].mxu0  ;;  %v3173_v25 = vpop.f32.mrb[64].mxu1 }
 0x176   :  { %2898 = vst [vmem:[%s3891_s3 + $0xf8] sm:$0xff] %v2666_v20   ;;  %2934 = vst [vmem:[%s3891_s3 + $0x218] sm:$0xff] %v2846_v21   ;;  %v961_v26 = vadd.f32 %v3275_v16, %v3101_v24  ;;  %v1249_v27 = vadd.f32 %v3275_v16, %v3173_v25  ;;  %v952_v28 = vpop.f32.mrb[65].mxu0  ;;  %v1240_v29 = vpop.f32.mrb[65].mxu1 }
 0x177   :  { %2897 = vst [vmem:[%s3891_s3 + $0xf0] sm:$0xff] %v2661_v22   ;;  %2933 = vst [vmem:[%s3891_s3 + $0x210] sm:$0xff] %v2841_v23   ;;  %v953_v30 = vadd.f32 %v3275_v16, %v952_v28  ;;  %v1241_v31 = vadd.f32 %v3275_v16, %v1240_v29  ;;  %v3102_v32 = vpop.f32.mrb[66].mxu0  ;;  %v3174_v33 = vpop.f32.mrb[66].mxu1 }
 0x178   :  { %v964_v34 = vadd.f32 %v3275_v16, %v3102_v32  ;;  %v1252_v35 = vadd.f32 %v3275_v16, %v3174_v33  ;;  %v955_v36 = vpop.f32.mrb[67].mxu0  ;;  %v1243_v37 = vpop.f32.mrb[67].mxu1  ;;  %v1337_v40 = vmax.f32 %v961_v26, 0.0  ;;  %v1409_v41 = vmax.f32 %v1249_v27, 0.0 }
 0x179   :  { %v956_v38 = vadd.f32 %v3275_v16, %v955_v36  ;;  %v1244_v39 = vadd.f32 %v3275_v16, %v1243_v37  ;;  %v1335_v44 = vmax.f32 %v953_v30, 0.0  ;;  %v1407_v45 = vmax.f32 %v1241_v31, 0.0 }
 0x17a   :  { %v1338_v42 = vmax.f32 %v964_v34, 0.0  ;;  %v1410_v43 = vmax.f32 %v1252_v35, 0.0 }
 0x17b   :  { %v1336_v46 = vmax.f32 %v956_v38, 0.0  ;;  %v1408_v47 = vmax.f32 %v1244_v39, 0.0 }
 0x17c   :  { %v2676_v48 = vpack.c.bf16 %v1338_v42, %v1337_v40  ;;  %v2856_v49 = vpack.c.bf16 %v1410_v43, %v1409_v41 }
 0x17d   :  { %v2671_v50 = vpack.c.bf16 %v1336_v46, %v1335_v44  ;;  %v2851_v51 = vpack.c.bf16 %v1408_v47, %v1407_v45  ;;  %v3105_v52 = vpop.f32.mrb[68].mxu0  ;;  %v3177_v53 = vpop.f32.mrb[68].mxu1 }
 0x17e   :  { %2900 = vst [vmem:[%s3891_s3 + $0x108] sm:$0xff] %v2676_v48   ;;  %2936 = vst [vmem:[%s3891_s3 + $0x228] sm:$0xff] %v2856_v49   ;;  %v977_v54 = vadd.f32 %v3275_v16, %v3105_v52  ;;  %v1265_v55 = vadd.f32 %v3275_v16, %v3177_v53  ;;  %v968_v56 = vpop.f32.mrb[69].mxu0  ;;  %v1256_v57 = vpop.f32.mrb[69].mxu1 }
 0x17f   :  { %2899 = vst [vmem:[%s3891_s3 + $0x100] sm:$0xff] %v2671_v50   ;;  %2935 = vst [vmem:[%s3891_s3 + $0x220] sm:$0xff] %v2851_v51   ;;  %v969_v58 = vadd.f32 %v3275_v16, %v968_v56  ;;  %v1257_v59 = vadd.f32 %v3275_v16, %v1256_v57  ;;  %v3106_v60 = vpop.f32.mrb[70].mxu0  ;;  %v3178_v61 = vpop.f32.mrb[70].mxu1 }
 0x180   :  { %v980_v62 = vadd.f32 %v3275_v16, %v3106_v60  ;;  %v1268_v63 = vadd.f32 %v3275_v16, %v3178_v61  ;;  %v971_v0 = vpop.f32.mrb[71].mxu0  ;;  %v1259_v1 = vpop.f32.mrb[71].mxu1  ;;  %v1341_v4 = vmax.f32 %v977_v54, 0.0  ;;  %v1413_v5 = vmax.f32 %v1265_v55, 0.0 }
 0x181   :  { %v972_v2 = vadd.f32 %v3275_v16, %v971_v0  ;;  %v1260_v3 = vadd.f32 %v3275_v16, %v1259_v1  ;;  %v1339_v8 = vmax.f32 %v969_v58, 0.0  ;;  %v1411_v9 = vmax.f32 %v1257_v59, 0.0 }
 0x182   :  { %v1342_v6 = vmax.f32 %v980_v62, 0.0  ;;  %v1414_v7 = vmax.f32 %v1268_v63, 0.0 }
 0x183   :  { %v1340_v10 = vmax.f32 %v972_v2, 0.0  ;;  %v1412_v11 = vmax.f32 %v1260_v3, 0.0 }
 0x184   :  { %v2686_v12 = vpack.c.bf16 %v1342_v6, %v1341_v4  ;;  %v2866_v13 = vpack.c.bf16 %v1414_v7, %v1413_v5 }
 0x185   :  { %v2681_v14 = vpack.c.bf16 %v1340_v10, %v1339_v8  ;;  %v2861_v15 = vpack.c.bf16 %v1412_v11, %v1411_v9 }
 0x186   :  { %2902 = vst [vmem:[%s3891_s3 + $0x118] sm:$0xff] %v2686_v12   ;;  %2938 = vst [vmem:[%s3891_s3 + $0x238] sm:$0xff] %v2866_v13  }
 0x187   :  { %2901 = vst [vmem:[%s3891_s3 + $0x110] sm:$0xff] %v2681_v14   ;;  %2937 = vst [vmem:[%s3891_s3 + $0x230] sm:$0xff] %v2861_v15  }

// kernel: forward.10
= control target key start
LH: loop header
LB: loop body
LE: loop exit
PB: predicated region body
PF: predicated region fallthrough
CT: control target
= control target key end

     0   :  { %s1110_s1 = inlined_call_operand.vmem [shape: bf16[128,128], index: 1, kind: input, shape index: {}]   ;;  %s1111_s0 = inlined_call_operand.vmem [shape: bf16[288,128], index: 0, kind: input, shape index: {}]   ;;  %s1112_s2 = inlined_call_operand.vmem [shape: f32[1,128], index: 2, kind: input, shape index: {}]   ;;  %s1113_s3 = inlined_call_operand.vmem [shape: bf16[288,128], index: 3, kind: output, shape index: {}]  }
   0x1   :  { %v891_v0 = vld [vmem:[%s1110_s1] sm:$0xff]   ;;  %v892_v1 = vld [vmem:[%s1110_s1 + $0x8] sm:$0xff]   ;;  %v893_v2 = vld [vmem:[%s1110_s1 + $0x10] sm:$0xff]  }
   0x2   :  { %823 = vmatprep.subr.bf16.mxu0 %v891_v0  ;;  %875 = vmatprep.subr.bf16.mxu1 %v891_v0  ;;  %v894_v3 = vld [vmem:[%s1110_s1 + $0x18] sm:$0xff]   ;;  %v899_v4 = vld [vmem:[%s1111_s0] sm:$0xff]   ;;  %v901_v5 = vld [vmem:[%s1111_s0 + $0x50] sm:$0xff]  }
   0x3   :  { %824 = vmatpush3.bf16.msra.mxu0 %v891_v0  ;;  %883 = vmatpush3.bf16.msra.mxu1 %v891_v0  ;;  %v895_v6 = vld [vmem:[%s1110_s1 + $0x20] sm:$0xff]   ;;  %v896_v7 = vld [vmem:[%s1110_s1 + $0x28] sm:$0xff]   ;;  %v897_v8 = vld [vmem:[%s1110_s1 + $0x30] sm:$0xff]  }
   0x4   :  { %825 = vmatprep.subr.bf16.mxu0 %v892_v1  ;;  %876 = vmatprep.subr.bf16.mxu1 %v892_v1  ;;  %v898_v9 = vld [vmem:[%s1110_s1 + $0x38] sm:$0xff]   ;;  %v900_v10 = vld [vmem:[%s1111_s0 + $0x8] sm:$0xff]   ;;  %v903_v12 = vld [vmem:[%s1111_s0 + $0x10] sm:$0xff]  }
   0x5   :  { %839 = vmatprep.mubr.bf16.mxu0 %v899_v4  ;;  %859 = vmatprep.mubr.bf16.mxu1 %v901_v5  ;;  %v902_v11 = vld [vmem:[%s1111_s0 + $0x58] sm:$0xff]   ;;  %v905_v13 = vld [vmem:[%s1111_s0 + $0x60] sm:$0xff]   ;;  %v906_v15 = vld [vmem:[%s1111_s0 + $0x68] sm:$0xff]  }
   0x6   :  { %v904_v14 = vld [vmem:[%s1111_s0 + $0x18] sm:$0xff]   ;;  %v907_v16 = vld [vmem:[%s1111_s0 + $0x20] sm:$0xff]   ;;  %v909_v17 = vld [vmem:[%s1111_s0 + $0x70] sm:$0xff]  }
   0x7   :  { %826 = vmatpush3.bf16.msra.mxu0 %v892_v1  ;;  %884 = vmatpush3.bf16.msra.mxu1 %v892_v1  ;;  %v908_v18 = vld [vmem:[%s1111_s0 + $0x28] sm:$0xff]   ;;  %v910_v19 = vld [vmem:[%s1111_s0 + $0x78] sm:$0xff]   ;;  %v911_v20 = vld [vmem:[%s1111_s0 + $0x30] sm:$0xff]  }
   0x8   :  { %827 = vmatprep.subr.bf16.mxu0 %v893_v2  ;;  %877 = vmatprep.subr.bf16.mxu1 %v893_v2  ;;  %v913_v21 = vld [vmem:[%s1111_s0 + $0x80] sm:$0xff]   ;;  %v912_v22 = vld [vmem:[%s1111_s0 + $0x38] sm:$0xff]   ;;  %v914_v23 = vld [vmem:[%s1111_s0 + $0x88] sm:$0xff]  }
   0x9   :  { %v915_v24 = vld [vmem:[%s1111_s0 + $0x40] sm:$0xff]   ;;  %v916_v25 = vld [vmem:[%s1111_s0 + $0x48] sm:$0xff]  }
   0xa   :  { %v1018_v27 = vld [vmem:[%s1112_s2] ss:$0 sm:$0xff] }
   0xb   :  { %828 = vmatpush3.bf16.msra.mxu0 %v893_v2  ;;  %885 = vmatpush3.bf16.msra.mxu1 %v893_v2 }
   0xc   :  { %829 = vmatprep.subr.bf16.mxu0 %v894_v3  ;;  %878 = vmatprep.subr.bf16.mxu1 %v894_v3 }
   0xf   :  { %830 = vmatpush3.bf16.msra.mxu0 %v894_v3  ;;  %886 = vmatpush3.bf16.msra.mxu1 %v894_v3 }
  0x10   :  { %831 = vmatprep.subr.bf16.mxu0 %v895_v6  ;;  %879 = vmatprep.subr.bf16.mxu1 %v895_v6 }
  0x13   :  { %832 = vmatpush3.bf16.msra.mxu0 %v895_v6  ;;  %887 = vmatpush3.bf16.msra.mxu1 %v895_v6 }
  0x14   :  { %833 = vmatprep.subr.bf16.mxu0 %v896_v7  ;;  %880 = vmatprep.subr.bf16.mxu1 %v896_v7 }
  0x17   :  { %834 = vmatpush3.bf16.msra.mxu0 %v896_v7  ;;  %888 = vmatpush3.bf16.msra.mxu1 %v896_v7 }
  0x18   :  { %835 = vmatprep.subr.bf16.mxu0 %v897_v8  ;;  %881 = vmatprep.subr.bf16.mxu1 %v897_v8 }
  0x1b   :  { %836 = vmatpush3.bf16.msra.mxu0 %v897_v8  ;;  %889 = vmatpush3.bf16.msra.mxu1 %v897_v8 }
  0x1c   :  { %837 = vmatprep.subr.bf16.mxu0 %v898_v9  ;;  %882 = vmatprep.subr.bf16.mxu1 %v898_v9 }
  0x1f   :  { %838 = vmatpush3.bf16.msra.mxu0 %v898_v9  ;;  %890 = vmatpush3.bf16.msra.mxu1 %v898_v9 }
  0x22   :  { %840 = vmatmul.mubr.bf16.vlgmr.msra.gmra.mrb[0].mxu0 %v900_v10  ;;  %860 = vmatmul.mubr.bf16.vlgmr.msra.gmra.mrb[0].mxu1 %v902_v11 }
  0x23   :  { %843 = vmatprep.mubr.bf16.mxu0 %v903_v12  ;;  %863 = vmatprep.mubr.bf16.mxu1 %v905_v13 }
  0x2a   :  { %844 = vmatmul.mubr.bf16.gmra.mrb[4].mxu0 %v904_v14  ;;  %864 = vmatmul.mubr.bf16.gmra.mrb[4].mxu1 %v906_v15 }
  0x2b   :  { %847 = vmatprep.mubr.bf16.mxu0 %v907_v16  ;;  %867 = vmatprep.mubr.bf16.mxu1 %v909_v17 }
  0x32   :  { %848 = vmatmul.mubr.bf16.gmra.mrb[8].mxu0 %v908_v18  ;;  %868 = vmatmul.mubr.bf16.gmra.mrb[8].mxu1 %v910_v19 }
  0x33   :  { %851 = vmatprep.mubr.bf16.mxu0 %v911_v20  ;;  %871 = vmatprep.mubr.bf16.mxu1 %v913_v21 }
  0x3a   :  { %852 = vmatmul.mubr.bf16.gmra.mrb[12].mxu0 %v912_v22  ;;  %872 = vmatmul.mubr.bf16.gmra.mrb[12].mxu1 %v914_v23 }
  0x3b   :  { %855 = vmatprep.mubr.bf16.mxu0 %v915_v24 }
  0x42   :  { %856 = vmatmul.mubr.bf16.gmra.mrb[16].mxu0 %v916_v25 }
  0xf5   :  { %v841_v26 = vpop.f32.mrb[0].mxu0  ;;  %v861_v28 = vpop.f32.mrb[0].mxu1 }
  0xf6   :  { %v264_v29 = vpop.f32.mrb[1].mxu0  ;;  %v353_v30 = vadd.f32 %v861_v28, %v1018_v27  ;;  %v344_v31 = vpop.f32.mrb[1].mxu1  ;;  %v273_v35 = vadd.f32 %v841_v26, %v1018_v27 }
  0xf7   :  { %v842_v32 = vpop.f32.mrb[2].mxu0  ;;  %v345_v33 = vadd.f32 %v1018_v27, %v344_v31  ;;  %v862_v34 = vpop.f32.mrb[2].mxu1  ;;  %v265_v40 = vadd.f32 %v1018_v27, %v264_v29 }
  0xf8   :  { %v276_v36 = vadd.f32 %v842_v32, %v1018_v27  ;;  %v267_v37 = vpop.f32.mrb[3].mxu0  ;;  %v356_v38 = vadd.f32 %v862_v34, %v1018_v27  ;;  %v347_v39 = vpop.f32.mrb[3].mxu1 }
  0xf9   :  { %v268_v41 = vadd.f32 %v1018_v27, %v267_v37  ;;  %v348_v42 = vadd.f32 %v1018_v27, %v347_v39 }
  0xfa   :  { %v698_v43 = vpack.c.bf16 %v276_v36, %v273_v35  ;;  %v748_v44 = vpack.c.bf16 %v356_v38, %v353_v30 }
  0xfb   :  { %v693_v45 = vpack.c.bf16 %v268_v41, %v265_v40  ;;  %v743_v46 = vpack.c.bf16 %v348_v42, %v345_v33 }
  0xfc   :  { %780 = vst [vmem:[%s1113_s3 + $0x8] sm:$0xff] %v698_v43   ;;  %790 = vst [vmem:[%s1113_s3 + $0x58] sm:$0xff] %v748_v44  }
  0xfd   :  { %694 = vst [vmem:[%s1113_s3] sm:$0xff] %v693_v45   ;;  %v845_v47 = vpop.f32.mrb[4].mxu0  ;;  %789 = vst [vmem:[%s1113_s3 + $0x50] sm:$0xff] %v743_v46   ;;  %v865_v48 = vpop.f32.mrb[4].mxu1 }
  0xfe   :  { %v280_v49 = vpop.f32.mrb[5].mxu0  ;;  %v369_v50 = vadd.f32 %v865_v48, %v1018_v27  ;;  %v360_v51 = vpop.f32.mrb[5].mxu1  ;;  %v289_v55 = vadd.f32 %v845_v47, %v1018_v27 }
  0xff   :  { %v846_v52 = vpop.f32.mrb[6].mxu0  ;;  %v361_v53 = vadd.f32 %v1018_v27, %v360_v51  ;;  %v866_v54 = vpop.f32.mrb[6].mxu1  ;;  %v281_v60 = vadd.f32 %v1018_v27, %v280_v49 }
 0x100   :  { %v292_v56 = vadd.f32 %v846_v52, %v1018_v27  ;;  %v283_v57 = vpop.f32.mrb[7].mxu0  ;;  %v372_v58 = vadd.f32 %v866_v54, %v1018_v27  ;;  %v363_v59 = vpop.f32.mrb[7].mxu1 }
 0x101   :  { %v284_v61 = vadd.f32 %v1018_v27, %v283_v57  ;;  %v364_v62 = vadd.f32 %v1018_v27, %v363_v59 }
 0x102   :  { %v708_v63 = vpack.c.bf16 %v292_v56, %v289_v55  ;;  %v758_v0 = vpack.c.bf16 %v372_v58, %v369_v50 }
 0x103   :  { %v703_v1 = vpack.c.bf16 %v284_v61, %v281_v60  ;;  %v753_v2 = vpack.c.bf16 %v364_v62, %v361_v53 }
 0x104   :  { %782 = vst [vmem:[%s1113_s3 + $0x18] sm:$0xff] %v708_v63   ;;  %792 = vst [vmem:[%s1113_s3 + $0x68] sm:$0xff] %v758_v0  }
 0x105   :  { %781 = vst [vmem:[%s1113_s3 + $0x10] sm:$0xff] %v703_v1   ;;  %v849_v3 = vpop.f32.mrb[8].mxu0  ;;  %791 = vst [vmem:[%s1113_s3 + $0x60] sm:$0xff] %v753_v2   ;;  %v869_v4 = vpop.f32.mrb[8].mxu1 }
 0x106   :  { %v296_v5 = vpop.f32.mrb[9].mxu0  ;;  %v385_v6 = vadd.f32 %v869_v4, %v1018_v27  ;;  %v376_v7 = vpop.f32.mrb[9].mxu1  ;;  %v305_v11 = vadd.f32 %v849_v3, %v1018_v27 }
 0x107   :  { %v850_v8 = vpop.f32.mrb[10].mxu0  ;;  %v377_v9 = vadd.f32 %v1018_v27, %v376_v7  ;;  %v870_v10 = vpop.f32.mrb[10].mxu1  ;;  %v297_v16 = vadd.f32 %v1018_v27, %v296_v5 }
 0x108   :  { %v308_v12 = vadd.f32 %v850_v8, %v1018_v27  ;;  %v299_v13 = vpop.f32.mrb[11].mxu0  ;;  %v388_v14 = vadd.f32 %v870_v10, %v1018_v27  ;;  %v379_v15 = vpop.f32.mrb[11].mxu1 }
 0x109   :  { %v300_v17 = vadd.f32 %v1018_v27, %v299_v13  ;;  %v380_v18 = vadd.f32 %v1018_v27, %v379_v15 }
 0x10a   :  { %v718_v19 = vpack.c.bf16 %v308_v12, %v305_v11  ;;  %v768_v20 = vpack.c.bf16 %v388_v14, %v385_v6 }
 0x10b   :  { %v713_v21 = vpack.c.bf16 %v300_v17, %v297_v16  ;;  %v763_v22 = vpack.c.bf16 %v380_v18, %v377_v9 }
 0x10c   :  { %784 = vst [vmem:[%s1113_s3 + $0x28] sm:$0xff] %v718_v19   ;;  %794 = vst [vmem:[%s1113_s3 + $0x78] sm:$0xff] %v768_v20  }
 0x10d   :  { %783 = vst [vmem:[%s1113_s3 + $0x20] sm:$0xff] %v713_v21   ;;  %v853_v23 = vpop.f32.mrb[12].mxu0  ;;  %793 = vst [vmem:[%s1113_s3 + $0x70] sm:$0xff] %v763_v22   ;;  %v873_v24 = vpop.f32.mrb[12].mxu1 }
 0x10e   :  { %v312_v25 = vpop.f32.mrb[13].mxu0  ;;  %v401_v26 = vadd.f32 %v873_v24, %v1018_v27  ;;  %v392_v28 = vpop.f32.mrb[13].mxu1  ;;  %v321_v32 = vadd.f32 %v853_v23, %v1018_v27 }
 0x10f   :  { %v854_v29 = vpop.f32.mrb[14].mxu0  ;;  %v393_v30 = vadd.f32 %v1018_v27, %v392_v28  ;;  %v874_v31 = vpop.f32.mrb[14].mxu1  ;;  %v313_v37 = vadd.f32 %v1018_v27, %v312_v25 }
 0x110   :  { %v324_v33 = vadd.f32 %v854_v29, %v1018_v27  ;;  %v315_v34 = vpop.f32.mrb[15].mxu0  ;;  %v404_v35 = vadd.f32 %v874_v31, %v1018_v27  ;;  %v395_v36 = vpop.f32.mrb[15].mxu1 }
 0x111   :  { %v316_v38 = vadd.f32 %v1018_v27, %v315_v34  ;;  %v396_v39 = vadd.f32 %v1018_v27, %v395_v36 }
 0x112   :  { %v728_v40 = vpack.c.bf16 %v324_v33, %v321_v32  ;;  %v778_v41 = vpack.c.bf16 %v404_v35, %v401_v26 }
 0x113   :  { %v723_v42 = vpack.c.bf16 %v316_v38, %v313_v37  ;;  %v773_v43 = vpack.c.bf16 %v396_v39, %v393_v30 }
 0x114   :  { %786 = vst [vmem:[%s1113_s3 + $0x38] sm:$0xff] %v728_v40   ;;  %796 = vst [vmem:[%s1113_s3 + $0x88] sm:$0xff] %v778_v41  }
 0x115   :  { %785 = vst [vmem:[%s1113_s3 + $0x30] sm:$0xff] %v723_v42   ;;  %v857_v44 = vpop.f32.mrb[16].mxu0  ;;  %795 = vst [vmem:[%s1113_s3 + $0x80] sm:$0xff] %v773_v43  }
 0x116   :  { %v328_v45 = vpop.f32.mrb[17].mxu0  ;;  %v337_v47 = vadd.f32 %v857_v44, %v1018_v27 }
 0x117   :  { %v858_v46 = vpop.f32.mrb[18].mxu0  ;;  %v329_v50 = vadd.f32 %v1018_v27, %v328_v45 }
 0x118   :  { %v340_v48 = vadd.f32 %v858_v46, %v1018_v27  ;;  %v331_v49 = vpop.f32.mrb[19].mxu0 }
 0x119   :  { %v332_v51 = vadd.f32 %v1018_v27, %v331_v49 }
 0x11a   :  { %v738_v52 = vpack.c.bf16 %v340_v48, %v337_v47 }
 0x11b   :  { %v733_v53 = vpack.c.bf16 %v332_v51, %v329_v50 }
 0x11c   :  { %788 = vst [vmem:[%s1113_s3 + $0x48] sm:$0xff] %v738_v52  }
 0x11d   :  { %787 = vst [vmem:[%s1113_s3 + $0x40] sm:$0xff] %v733_v53  }

// kernel: forward.11
= control target key start
LH: loop header
LB: loop body
LE: loop exit
PB: predicated region body
PF: predicated region fallthrough
CT: control target
= control target key end

     0   :  { %v3007_v0 = vmov 0   ;;  %s3963_s1 = inlined_call_operand.vmem [shape: bf16[896,128], index: 1, kind: input, shape index: {}]   ;;  %s3964_s0 = inlined_call_operand.vmem [shape: bf16[288,896], index: 0, kind: input, shape index: {}]   ;;  %s3965_s2 = inlined_call_operand.vmem [shape: f32[1,128], index: 2, kind: input, shape index: {}]   ;;  %s3966_s3 = inlined_call_operand.vmem [shape: bf16[288,128], index: 3, kind: output, shape index: {}]  }
   0x1   :  { %1262 = vmatprep.subr.bf16.mxu1 %v3007_v0  ;;  %1439 = vmatprep.subr.bf16.mxu0 %v3007_v0  ;;  %v2771_v1 = vld [vmem:[%s3963_s1] sm:$0xff]   ;;  %v2773_v3 = vld [vmem:[%s3963_s1 + $0x8] sm:$0xff]   ;;  %v2775_v5 = vld [vmem:[%s3963_s1 + $0x10] sm:$0xff]  }
   0x2   :  { %v3036_v2 = vld [vmem:[%s3963_s1 + $0x80] sm:$0xff]   ;;  %1263 = vmatpush1.bf16.msra.mxu1 %v2771_v1  ;;  %v3046_v4 = vld [vmem:[%s3963_s1 + $0x88] sm:$0xff]   ;;  %v3057_v6 = vld [vmem:[%s3963_s1 + $0x90] sm:$0xff]  }
   0x3   :  { %1440 = vmatpush1.bf16.msra.mxu0 %v3036_v2  ;;  %1264 = vmatprep.subr.bf16.mxu1 %v3007_v0  ;;  %v2777_v7 = vld [vmem:[%s3963_s1 + $0x18] sm:$0xff]   ;;  %v2779_v9 = vld [vmem:[%s3963_s1 + $0x20] sm:$0xff]   ;;  %v2781_v11 = vld [vmem:[%s3963_s1 + $0x28] sm:$0xff]  }
   0x4   :  { %1441 = vmatprep.subr.bf16.mxu0 %v3007_v0  ;;  %v3068_v8 = vld [vmem:[%s3963_s1 + $0x98] sm:$0xff]   ;;  %v3079_v10 = vld [vmem:[%s3963_s1 + $0xa0] sm:$0xff]   ;;  %v3090_v12 = vld [vmem:[%s3963_s1 + $0xa8] sm:$0xff]  }
   0x5   :  { %v2783_v13 = vld [vmem:[%s3963_s1 + $0x30] sm:$0xff]   ;;  %v2785_v15 = vld [vmem:[%s3963_s1 + $0x38] sm:$0xff]   ;;  %v2787_v17 = vld [vmem:[%s3963_s1 + $0x40] sm:$0xff]  }
   0x6   :  { %1265 = vmatpush1.bf16.msra.mxu1 %v2773_v3  ;;  %v3101_v14 = vld [vmem:[%s3963_s1 + $0xb0] sm:$0xff]   ;;  %v3112_v16 = vld [vmem:[%s3963_s1 + $0xb8] sm:$0xff]   ;;  %v3123_v18 = vld [vmem:[%s3963_s1 + $0xc0] sm:$0xff]  }
   0x7   :  { %1442 = vmatpush1.bf16.msra.mxu0 %v3046_v4  ;;  %1266 = vmatprep.subr.bf16.mxu1 %v3007_v0  ;;  %v2805_v19 = vld [vmem:[%s3964_s0 + $0x4] ss:$28 sps:$4 sm:$0xff]   ;;  %v2789_v20 = vld [vmem:[%s3963_s1 + $0x48] sm:$0xff]   ;;  %v2791_v23 = vld [vmem:[%s3963_s1 + $0x50] sm:$0xff]  }
   0x8   :  { %1443 = vmatprep.subr.bf16.mxu0 %v3007_v0  ;;  %v2808_v21 = vld [vmem:[%s3964_s0 + $0xc] ss:$28 sps:$4 sm:$0xff]   ;;  %1294 = vmatprep.mubr.bf16.mxu1 %v2805_v19  ;;  %v3151_v24 = vld [vmem:[%s3963_s1 + $0xd0] sm:$0xff]   ;;  %v2793_v25 = vld [vmem:[%s3963_s1 + $0x58] sm:$0xff]  }
   0x9   :  { %v3140_v22 = vld [vmem:[%s3963_s1 + $0xc8] sm:$0xff]   ;;  %1471 = vmatprep.mubr.bf16.mxu0 %v2808_v21  ;;  %v3162_v26 = vld [vmem:[%s3963_s1 + $0xd8] sm:$0xff]   ;;  %v2795_v27 = vld [vmem:[%s3963_s1 + $0x60] sm:$0xff]  }
   0xa   :  { %1267 = vmatpush1.bf16.msra.mxu1 %v2775_v5  ;;  %v3173_v28 = vld [vmem:[%s3963_s1 + $0xe0] sm:$0xff]   ;;  %v2797_v29 = vld [vmem:[%s3963_s1 + $0x68] sm:$0xff]   ;;  %v2799_v31 = vld [vmem:[%s3963_s1 + $0x70] sm:$0xff]  }
   0xb   :  { %1444 = vmatpush1.bf16.msra.mxu0 %v3057_v6  ;;  %1268 = vmatprep.subr.bf16.mxu1 %v3007_v0  ;;  %v3184_v30 = vld [vmem:[%s3963_s1 + $0xe8] sm:$0xff]   ;;  %v3195_v32 = vld [vmem:[%s3963_s1 + $0xf0] sm:$0xff]   ;;  %v2801_v33 = vld [vmem:[%s3963_s1 + $0x78] sm:$0xff]  }
   0xc   :  { %1445 = vmatprep.subr.bf16.mxu0 %v3007_v0  ;;  %v3206_v34 = vld [vmem:[%s3963_s1 + $0xf8] sm:$0xff]   ;;  %v2806_v36 = vld [vmem:[%s3964_s0 + $0x8] ss:$28 sps:$4 sm:$0xff]   ;;  %v2817_v43 = vld [vmem:[%s3964_s0 + $0x74] ss:$28 sps:$4 sm:$0xff]  }
   0xd   :  { %v2803_v35 = vld [vmem:[%s3964_s0] ss:$28 sps:$4 sm:$0xff]   ;;  %v2816_v40 = vld [vmem:[%s3963_s1 + $0x108] sm:$0xff]   ;;  %v2814_v41 = vld [vmem:[%s3964_s0 + $0x38] ss:$28 sps:$4 sm:$0xff]  }
   0xe   :  { %1269 = vmatpush1.bf16.msra.mxu1 %v2777_v7  ;;  %v2809_v37 = vld [vmem:[%s3963_s1 + $0x100] sm:$0xff]   ;;  %v2810_v38 = vld [vmem:[%s3964_s0 + $0x3c] ss:$28 sps:$4 sm:$0xff]   ;;  %v2821_v45 = vld [vmem:[%s3963_s1 + $0x110] sm:$0xff]  }
   0xf   :  { %1446 = vmatpush1.bf16.msra.mxu0 %v3068_v8  ;;  %1270 = vmatprep.subr.bf16.mxu1 %v3007_v0  ;;  %v2812_v39 = vld [vmem:[%s3964_s0 + $0x44] ss:$28 sps:$4 sm:$0xff]   ;;  %v2819_v44 = vld [vmem:[%s3964_s0 + $0x7c] ss:$28 sps:$4 sm:$0xff]   ;;  %v2822_v47 = vld [vmem:[%s3964_s0 + $0x70] ss:$28 sps:$4 sm:$0xff]  }
  0x10   :  { %1447 = vmatprep.subr.bf16.mxu0 %v3007_v0  ;;  %v2815_v42 = vld [vmem:[%s3964_s0 + $0x40] ss:$28 sps:$4 sm:$0xff]   ;;  %v2823_v48 = vld [vmem:[%s3964_s0 + $0x78] ss:$28 sps:$4 sm:$0xff]   ;;  %v2825_v49 = vld [vmem:[%s3964_s0 + $0xac] ss:$28 sps:$4 sm:$0xff]  }
  0x11   :  { %v2824_v46 = vld [vmem:[%s3963_s1 + $0x118] sm:$0xff]   ;;  %v2827_v50 = vld [vmem:[%s3964_s0 + $0xb4] ss:$28 sps:$4 sm:$0xff]   ;;  %v2831_v51 = vld [vmem:[%s3963_s1 + $0x120] sm:$0xff]  }
  0x12   :  { %1271 = vmatpush1.bf16.msra.mxu1 %v2779_v9  ;;  %v2838_v52 = vld [vmem:[%s3963_s1 + $0x128] sm:$0xff]   ;;  %v2832_v55 = vld [vmem:[%s3964_s0 + $0xe4] ss:$28 sps:$4 sm:$0xff]   ;;  %v2845_v57 = vld [vmem:[%s3963_s1 + $0x130] sm:$0xff]  }
  0x13   :  { %1448 = vmatpush1.bf16.msra.mxu0 %v3079_v10  ;;  %1272 = vmatprep.subr.bf16.mxu1 %v3007_v0  ;;  %v2829_v53 = vld [vmem:[%s3964_s0 + $0xa8] ss:$28 sps:$4 sm:$0xff]   ;;  %v2830_v54 = vld [vmem:[%s3964_s0 + $0xb0] ss:$28 sps:$4 sm:$0xff]   ;;  %v2852_v58 = vld [vmem:[%s3963_s1 + $0x138] sm:$0xff]  }
  0x14   :  { %1449 = vmatprep.subr.bf16.mxu0 %v3007_v0  ;;  %v2834_v56 = vld [vmem:[%s3964_s0 + $0xec] ss:$28 sps:$4 sm:$0xff]   ;;  %v2836_v59 = vld [vmem:[%s3964_s0 + $0xe0] ss:$28 sps:$4 sm:$0xff]   ;;  %v2851_v9 = vld [vmem:[%s3964_s0 + $0x158] ss:$28 sps:$4 sm:$0xff]  }
  0x15   :  { %v2837_v60 = vld [vmem:[%s3964_s0 + $0xe8] ss:$28 sps:$4 sm:$0xff]   ;;  %v2839_v61 = vld [vmem:[%s3964_s0 + $0x11c] ss:$28 sps:$4 sm:$0xff]   ;;  %v2850_v7 = vld [vmem:[%s3964_s0 + $0x150] ss:$28 sps:$4 sm:$0xff]  }
  0x16   :  { %1273 = vmatpush1.bf16.msra.mxu1 %v2781_v11  ;;  %v2841_v62 = vld [vmem:[%s3964_s0 + $0x124] ss:$28 sps:$4 sm:$0xff]   ;;  %v2866_v1 = vld [vmem:[%s3963_s1 + $0x148] sm:$0xff]   ;;  %v2848_v5 = vld [vmem:[%s3964_s0 + $0x15c] ss:$28 sps:$4 sm:$0xff]  }
  0x17   :  { %1450 = vmatpush1.bf16.msra.mxu0 %v3090_v12  ;;  %1274 = vmatprep.subr.bf16.mxu1 %v3007_v0  ;;  %v2859_v63 = vld [vmem:[%s3963_s1 + $0x140] sm:$0xff]   ;;  %v2855_v11 = vld [vmem:[%s3964_s0 + $0x194] ss:$28 sps:$4 sm:$0xff]  }
  0x18   :  { %1451 = vmatprep.subr.bf16.mxu0 %v3007_v0  ;;  %v2844_v3 = vld [vmem:[%s3964_s0 + $0x120] ss:$28 sps:$4 sm:$0xff]  }
  0x19   :  { %v2864_v19 = vld [vmem:[%s3964_s0 + $0x1c0] ss:$28 sps:$4 sm:$0xff]  }
  0x1a   :  { %1275 = vmatpush1.bf16.msra.mxu1 %v2783_v13  ;;  %v2888_v13 = vld [vmem:[%s3963_s1 + $0x168] sm:$0xff]   ;;  %v3404_v21 = vld [vmem:[%s3963_s1 + $0x180] sm:$0xff]  }
  0x1b   :  { %1452 = vmatpush1.bf16.msra.mxu0 %v3101_v14  ;;  %1276 = vmatprep.subr.bf16.mxu1 %v3007_v0 }
  0x1c   :  { %1453 = vmatprep.subr.bf16.mxu0 %v3007_v0 }
  0x1e   :  { %1277 = vmatpush1.bf16.msra.mxu1 %v2785_v15  ;;  %v2858_v15 = vld [vmem:[%s3964_s0 + $0x190] ss:$28 sps:$4 sm:$0xff]  }
  0x1f   :  { %1454 = vmatpush1.bf16.msra.mxu0 %v3112_v16  ;;  %1278 = vmatprep.subr.bf16.mxu1 %v3007_v0 }
  0x20   :  { %1455 = vmatprep.subr.bf16.mxu0 %v3007_v0 }
  0x22   :  { %1279 = vmatpush1.bf16.msra.mxu1 %v2787_v17  ;;  %v2862_v17 = vld [vmem:[%s3964_s0 + $0x1cc] ss:$28 sps:$4 sm:$0xff]  }
  0x23   :  { %1456 = vmatpush1.bf16.msra.mxu0 %v3123_v18  ;;  %1280 = vmatprep.subr.bf16.mxu1 %v3007_v0 }
  0x24   :  { %1457 = vmatprep.subr.bf16.mxu0 %v3007_v0 }
  0x26   :  { %1281 = vmatpush1.bf16.msra.mxu1 %v2789_v20  ;;  %v2902_v20 = vld [vmem:[%s3963_s1 + $0x178] sm:$0xff]  }
  0x27   :  { %1458 = vmatpush1.bf16.msra.mxu0 %v3140_v22  ;;  %1282 = vmatprep.subr.bf16.mxu1 %v3007_v0 }
  0x28   :  { %1459 = vmatprep.subr.bf16.mxu0 %v3007_v0 }
  0x2a   :  { %1283 = vmatpush1.bf16.msra.mxu1 %v2791_v23  ;;  %v2867_v23 = vld [vmem:[%s3964_s0 + $0x1fc] ss:$28 sps:$4 sm:$0xff]  }
  0x2b   :  { %1460 = vmatpush1.bf16.msra.mxu0 %v3151_v24  ;;  %1284 = vmatprep.subr.bf16.mxu1 %v3007_v0 }
  0x2c   :  { %1461 = vmatprep.subr.bf16.mxu0 %v3007_v0 }
  0x2e   :  { %1285 = vmatpush1.bf16.msra.mxu1 %v2793_v25  ;;  %v2872_v25 = vld [vmem:[%s3964_s0 + $0x1f8] ss:$28 sps:$4 sm:$0xff]  }
  0x2f   :  { %1462 = vmatpush1.bf16.msra.mxu0 %v3162_v26  ;;  %1286 = vmatprep.subr.bf16.mxu1 %v3007_v0 }
  0x30   :  { %1463 = vmatprep.subr.bf16.mxu0 %v3007_v0 }
  0x32   :  { %1287 = vmatpush1.bf16.msra.mxu1 %v2795_v27  ;;  %v2877_v27 = vld [vmem:[%s3964_s0 + $0x23c] ss:$28 sps:$4 sm:$0xff]  }
  0x33   :  { %1464 = vmatpush1.bf16.msra.mxu0 %v3173_v28  ;;  %1288 = vmatprep.subr.bf16.mxu1 %v3007_v0 }
  0x34   :  { %1465 = vmatprep.subr.bf16.mxu0 %v3007_v0 }
  0x36   :  { %1289 = vmatpush1.bf16.msra.mxu1 %v2797_v29  ;;  %v2880_v29 = vld [vmem:[%s3964_s0 + $0x238] ss:$28 sps:$4 sm:$0xff]  }
  0x37   :  { %1466 = vmatpush1.bf16.msra.mxu0 %v3184_v30  ;;  %1290 = vmatprep.subr.bf16.mxu1 %v3007_v0 }
  0x38   :  { %1467 = vmatprep.subr.bf16.mxu0 %v3007_v0 }
  0x3a   :  { %1291 = vmatpush1.bf16.msra.mxu1 %v2799_v31  ;;  %v2884_v31 = vld [vmem:[%s3964_s0 + $0x274] ss:$28 sps:$4 sm:$0xff]  }
  0x3b   :  { %1468 = vmatpush1.bf16.msra.mxu0 %v3195_v32  ;;  %1292 = vmatprep.subr.bf16.mxu1 %v3007_v0 }
  0x3c   :  { %1469 = vmatprep.subr.bf16.mxu0 %v3007_v0 }
  0x3e   :  { %1293 = vmatpush1.bf16.msra.mxu1 %v2801_v33  ;;  %v2887_v33 = vld [vmem:[%s3964_s0 + $0x270] ss:$28 sps:$4 sm:$0xff]  }
  0x3f   :  { %1470 = vmatpush1.bf16.msra.mxu0 %v3206_v34  ;;  %2594 = vmatprep.subr.bf16.mxu1 %v3007_v0 }
  0x40   :  { %1616 = vmatprep.subr.bf16.mxu0 %v3007_v0 }
  0x41   :  { %1295 = vmatmul.mubr.bf16.vlgmr.msra.gmra.mrb[0].mxu1 %v2803_v35  ;;  %v2891_v35 = vld [vmem:[%s3964_s0 + $0x2ac] ss:$28 sps:$4 sm:$0xff]  }
  0x42   :  { %1472 = vmatmul.mubr.bf16.vlgmr.msra.gmra.mrb[0].mxu0 %v2806_v36  ;;  %1302 = vmatprep.mubr.bf16.mxu1 %v2810_v38  ;;  %v2893_v36 = vld [vmem:[%s3964_s0 + $0x2a0] ss:$28 sps:$4 sm:$0xff]  }
  0x43   :  { %1617 = vmatpush1.bf16.msra.mxu0 %v2809_v37  ;;  %1479 = vmatprep.mubr.bf16.mxu0 %v2812_v39  ;;  %v2894_v37 = vld [vmem:[%s3964_s0 + $0x2a8] ss:$28 sps:$4 sm:$0xff]   ;;  %v2896_v38 = vld [vmem:[%s3964_s0 + $0x2dc] ss:$28 sps:$4 sm:$0xff]  }
  0x44   :  { %1618 = vmatprep.subr.bf16.mxu0 %v3007_v0  ;;  %2610 = vmatpush1.bf16.msra.mxu1 %v3036_v2  ;;  %v2843_v2 = vld [vmem:[%s3964_s0 + $0x118] ss:$28 sps:$4 sm:$0xff]   ;;  %v2898_v39 = vld [vmem:[%s3964_s0 + $0x2e4] ss:$28 sps:$4 sm:$0xff]  }
  0x45   :  { %2595 = vmatprep.subr.bf16.mxu1 %v3007_v0 }
  0x47   :  { %1619 = vmatpush1.bf16.msra.mxu0 %v2816_v40  ;;  %v2900_v40 = vld [vmem:[%s3964_s0 + $0x2d8] ss:$28 sps:$4 sm:$0xff]  }
  0x48   :  { %1620 = vmatprep.subr.bf16.mxu0 %v3007_v0  ;;  %2611 = vmatpush1.bf16.msra.mxu1 %v3046_v4  ;;  %v2846_v4 = vld [vmem:[%s3964_s0 + $0x154] ss:$28 sps:$4 sm:$0xff]  }
  0x49   :  { %1303 = vmatmul.mubr.bf16.gmra.mrb[4].mxu1 %v2814_v41  ;;  %2596 = vmatprep.subr.bf16.mxu1 %v3007_v0  ;;  %v2901_v41 = vld [vmem:[%s3964_s0 + $0x2e0] ss:$28 sps:$4 sm:$0xff]  }
  0x4a   :  { %1480 = vmatmul.mubr.bf16.gmra.mrb[4].mxu0 %v2815_v42  ;;  %1310 = vmatprep.mubr.bf16.mxu1 %v2817_v43  ;;  %v2903_v42 = vld [vmem:[%s3964_s0 + $0x314] ss:$28 sps:$4 sm:$0xff]  }
  0x4b   :  { %1487 = vmatprep.mubr.bf16.mxu0 %v2819_v44  ;;  %1621 = vmatpush1.bf16.msra.mxu0 %v2821_v45  ;;  %v2907_v43 = vld [vmem:[%s3964_s0 + $0x14] ss:$28 sps:$4 sm:$0xff]  }
  0x4c   :  { %1622 = vmatprep.subr.bf16.mxu0 %v3007_v0  ;;  %2612 = vmatpush1.bf16.msra.mxu1 %v3057_v6  ;;  %v2871_v6 = vld [vmem:[%s3963_s1 + $0x150] sm:$0xff]  }
  0x4d   :  { %2597 = vmatprep.subr.bf16.mxu1 %v3007_v0  ;;  %v2908_v44 = vld [vmem:[%s3964_s0 + $0x310] ss:$28 sps:$4 sm:$0xff]  }
  0x4e   :  { %v2905_v45 = vld [vmem:[%s3964_s0 + $0x10] ss:$28 sps:$4 sm:$0xff]  }
  0x4f   :  { %1623 = vmatpush1.bf16.msra.mxu0 %v2824_v46  ;;  %v2909_v46 = vld [vmem:[%s3964_s0 + $0x34c] ss:$28 sps:$4 sm:$0xff]  }
  0x50   :  { %1624 = vmatprep.subr.bf16.mxu0 %v3007_v0  ;;  %2613 = vmatpush1.bf16.msra.mxu1 %v3068_v8  ;;  %v2874_v8 = vld [vmem:[%s3963_s1 + $0x158] sm:$0xff]  }
  0x51   :  { %1311 = vmatmul.mubr.bf16.gmra.mrb[8].mxu1 %v2822_v47  ;;  %2598 = vmatprep.subr.bf16.mxu1 %v3007_v0  ;;  %v2911_v47 = vld [vmem:[%s3964_s0 + $0x4c] ss:$28 sps:$4 sm:$0xff]  }
  0x52   :  { %1488 = vmatmul.mubr.bf16.gmra.mrb[8].mxu0 %v2823_v48  ;;  %1318 = vmatprep.mubr.bf16.mxu1 %v2825_v49  ;;  %v2913_v48 = vld [vmem:[%s3964_s0 + $0x348] ss:$28 sps:$4 sm:$0xff]  }
  0x53   :  { %1495 = vmatprep.mubr.bf16.mxu0 %v2827_v50  ;;  %1625 = vmatpush1.bf16.msra.mxu0 %v2831_v51  ;;  %v2914_v49 = vld [vmem:[%s3964_s0 + $0x48] ss:$28 sps:$4 sm:$0xff]  }
  0x54   :  { %1626 = vmatprep.subr.bf16.mxu0 %v3007_v0  ;;  %2614 = vmatpush1.bf16.msra.mxu1 %v3079_v10  ;;  %v2853_v10 = vld [vmem:[%s3964_s0 + $0x18c] ss:$28 sps:$4 sm:$0xff]   ;;  %v2915_v50 = vld [vmem:[%s3964_s0 + $0x384] ss:$28 sps:$4 sm:$0xff]  }
  0x55   :  { %2599 = vmatprep.subr.bf16.mxu1 %v3007_v0  ;;  %v2917_v51 = vld [vmem:[%s3964_s0 + $0x84] ss:$28 sps:$4 sm:$0xff]  }
  0x57   :  { %1627 = vmatpush1.bf16.msra.mxu0 %v2838_v52  ;;  %v2919_v52 = vld [vmem:[%s3964_s0 + $0x380] ss:$28 sps:$4 sm:$0xff]  }
  0x58   :  { %1628 = vmatprep.subr.bf16.mxu0 %v3007_v0  ;;  %2615 = vmatpush1.bf16.msra.mxu1 %v3090_v12  ;;  %v2881_v12 = vld [vmem:[%s3963_s1 + $0x160] sm:$0xff]  }
  0x59   :  { %1319 = vmatmul.mubr.bf16.gmra.mrb[12].mxu1 %v2829_v53  ;;  %2600 = vmatprep.subr.bf16.mxu1 %v3007_v0  ;;  %v2920_v53 = vld [vmem:[%s3964_s0 + $0x80] ss:$28 sps:$4 sm:$0xff]  }
  0x5a   :  { %1496 = vmatmul.mubr.bf16.gmra.mrb[12].mxu0 %v2830_v54  ;;  %1326 = vmatprep.mubr.bf16.mxu1 %v2832_v55  ;;  %v2921_v54 = vld [vmem:[%s3964_s0 + $0x3bc] ss:$28 sps:$4 sm:$0xff]  }
  0x5b   :  { %1503 = vmatprep.mubr.bf16.mxu0 %v2834_v56  ;;  %1629 = vmatpush1.bf16.msra.mxu0 %v2845_v57  ;;  %v2923_v55 = vld [vmem:[%s3964_s0 + $0xbc] ss:$28 sps:$4 sm:$0xff]  }
  0x5c   :  { %1630 = vmatprep.subr.bf16.mxu0 %v3007_v0  ;;  %2616 = vmatpush1.bf16.msra.mxu1 %v3101_v14  ;;  %v2857_v14 = vld [vmem:[%s3964_s0 + $0x188] ss:$28 sps:$4 sm:$0xff]   ;;  %v2925_v56 = vld [vmem:[%s3964_s0 + $0x3b8] ss:$28 sps:$4 sm:$0xff]  }
  0x5d   :  { %2601 = vmatprep.subr.bf16.mxu1 %v3007_v0  ;;  %v2926_v57 = vld [vmem:[%s3964_s0 + $0xb8] ss:$28 sps:$4 sm:$0xff]  }
  0x5f   :  { %1631 = vmatpush1.bf16.msra.mxu0 %v2852_v58  ;;  %v2929_v58 = vld [vmem:[%s3964_s0 + $0x31c] ss:$28 sps:$4 sm:$0xff]  }
  0x60   :  { %1632 = vmatprep.subr.bf16.mxu0 %v3007_v0  ;;  %2617 = vmatpush1.bf16.msra.mxu1 %v3112_v16  ;;  %v2860_v16 = vld [vmem:[%s3964_s0 + $0x1c4] ss:$28 sps:$4 sm:$0xff]  }
  0x61   :  { %1327 = vmatmul.mubr.bf16.gmra.mrb[16].mxu1 %v2836_v59  ;;  %2602 = vmatprep.subr.bf16.mxu1 %v3007_v0  ;;  %v2930_v59 = vld [vmem:[%s3964_s0 + $0xf4] ss:$28 sps:$4 sm:$0xff]  }
  0x62   :  { %1504 = vmatmul.mubr.bf16.gmra.mrb[16].mxu0 %v2837_v60  ;;  %1334 = vmatprep.mubr.bf16.mxu1 %v2839_v61  ;;  %v2927_v60 = vld [vmem:[%s3964_s0 + $0x318] ss:$28 sps:$4 sm:$0xff]   ;;  %v2932_v61 = vld [vmem:[%s3964_s0 + $0xf0] ss:$28 sps:$4 sm:$0xff]  }
  0x63   :  { %1511 = vmatprep.mubr.bf16.mxu0 %v2841_v62  ;;  %1633 = vmatpush1.bf16.msra.mxu0 %v2859_v63  ;;  %v2934_v62 = vld [vmem:[%s3963_s1 + $0x188] sm:$0xff]   ;;  %v2935_v63 = vld [vmem:[%s3964_s0 + $0x354] ss:$28 sps:$4 sm:$0xff]  }
  0x64   :  { %1634 = vmatprep.subr.bf16.mxu0 %v3007_v0  ;;  %2618 = vmatpush1.bf16.msra.mxu1 %v3123_v18  ;;  %v2895_v18 = vld [vmem:[%s3963_s1 + $0x170] sm:$0xff]  }
  0x65   :  { %2603 = vmatprep.subr.bf16.mxu1 %v3007_v0 }
  0x67   :  { %1635 = vmatpush1.bf16.msra.mxu0 %v2866_v1  ;;  %v2937_v1 = vld [vmem:[%s3964_s0 + $0x12c] ss:$28 sps:$4 sm:$0xff]  }
  0x68   :  { %1636 = vmatprep.subr.bf16.mxu0 %v3007_v0  ;;  %2619 = vmatpush1.bf16.msra.mxu1 %v3140_v22  ;;  %v2865_v22 = vld [vmem:[%s3964_s0 + $0x1c8] ss:$28 sps:$4 sm:$0xff]  }
  0x69   :  { %1335 = vmatmul.mubr.bf16.gmra.mrb[20].mxu1 %v2843_v2  ;;  %2604 = vmatprep.subr.bf16.mxu1 %v3007_v0  ;;  %v2941_v2 = vld [vmem:[%s3963_s1 + $0x190] sm:$0xff]  }
  0x6a   :  { %1512 = vmatmul.mubr.bf16.gmra.mrb[20].mxu0 %v2844_v3  ;;  %1342 = vmatprep.mubr.bf16.mxu1 %v2846_v4  ;;  %v2939_v3 = vld [vmem:[%s3964_s0 + $0x350] ss:$28 sps:$4 sm:$0xff]   ;;  %v2940_v4 = vld [vmem:[%s3964_s0 + $0x128] ss:$28 sps:$4 sm:$0xff]  }
  0x6b   :  { %1519 = vmatprep.mubr.bf16.mxu0 %v2848_v5  ;;  %1637 = vmatpush1.bf16.msra.mxu0 %v2871_v6  ;;  %v2942_v5 = vld [vmem:[%s3963_s1 + $0x198] sm:$0xff]   ;;  %v2943_v6 = vld [vmem:[%s3964_s0 + $0x38c] ss:$28 sps:$4 sm:$0xff]  }
  0x6c   :  { %1638 = vmatprep.subr.bf16.mxu0 %v3007_v0  ;;  %2620 = vmatpush1.bf16.msra.mxu1 %v3151_v24  ;;  %v2869_v24 = vld [vmem:[%s3964_s0 + $0x204] ss:$28 sps:$4 sm:$0xff]  }
  0x6d   :  { %2605 = vmatprep.subr.bf16.mxu1 %v3007_v0 }
  0x6f   :  { %1639 = vmatpush1.bf16.msra.mxu0 %v2874_v8  ;;  %v2949_v8 = vld [vmem:[%s3963_s1 + $0x1a0] sm:$0xff]  }
  0x70   :  { %1640 = vmatprep.subr.bf16.mxu0 %v3007_v0  ;;  %2621 = vmatpush1.bf16.msra.mxu1 %v3162_v26  ;;  %v2873_v26 = vld [vmem:[%s3964_s0 + $0x200] ss:$28 sps:$4 sm:$0xff]  }
  0x71   :  { %1343 = vmatmul.mubr.bf16.gmra.mrb[24].mxu1 %v2850_v7  ;;  %2606 = vmatprep.subr.bf16.mxu1 %v3007_v0  ;;  %v2945_v7 = vld [vmem:[%s3964_s0 + $0x164] ss:$28 sps:$4 sm:$0xff]  }
  0x72   :  { %1520 = vmatmul.mubr.bf16.gmra.mrb[24].mxu0 %v2851_v9  ;;  %1350 = vmatprep.mubr.bf16.mxu1 %v2853_v10  ;;  %v2947_v9 = vld [vmem:[%s3964_s0 + $0x388] ss:$28 sps:$4 sm:$0xff]   ;;  %v2948_v10 = vld [vmem:[%s3964_s0 + $0x160] ss:$28 sps:$4 sm:$0xff]  }
  0x73   :  { %1527 = vmatprep.mubr.bf16.mxu0 %v2855_v11  ;;  %1641 = vmatpush1.bf16.msra.mxu0 %v2881_v12  ;;  %v2950_v11 = vld [vmem:[%s3963_s1 + $0x1a8] sm:$0xff]   ;;  %v2951_v12 = vld [vmem:[%s3964_s0 + $0x3c4] ss:$28 sps:$4 sm:$0xff]  }
  0x74   :  { %1642 = vmatprep.subr.bf16.mxu0 %v3007_v0  ;;  %2622 = vmatpush1.bf16.msra.mxu1 %v3173_v28  ;;  %v2879_v28 = vld [vmem:[%s3964_s0 + $0x230] ss:$28 sps:$4 sm:$0xff]  }
  0x75   :  { %2607 = vmatprep.subr.bf16.mxu1 %v3007_v0 }
  0x77   :  { %1643 = vmatpush1.bf16.msra.mxu0 %v2888_v13  ;;  %v2953_v13 = vld [vmem:[%s3964_s0 + $0x19c] ss:$28 sps:$4 sm:$0xff]  }
  0x78   :  { %1644 = vmatprep.subr.bf16.mxu0 %v3007_v0  ;;  %2623 = vmatpush1.bf16.msra.mxu1 %v3184_v30  ;;  %v2882_v30 = vld [vmem:[%s3964_s0 + $0x26c] ss:$28 sps:$4 sm:$0xff]  }
  0x79   :  { %1351 = vmatmul.mubr.bf16.gmra.mrb[28].mxu1 %v2857_v14  ;;  %2608 = vmatprep.subr.bf16.mxu1 %v3007_v0  ;;  %v2957_v14 = vld [vmem:[%s3963_s1 + $0x1b0] sm:$0xff]  }
  0x7a   :  { %1528 = vmatmul.mubr.bf16.gmra.mrb[28].mxu0 %v2858_v15  ;;  %1358 = vmatprep.mubr.bf16.mxu1 %v2860_v16  ;;  %v2955_v15 = vld [vmem:[%s3964_s0 + $0x3c0] ss:$28 sps:$4 sm:$0xff]   ;;  %v2956_v16 = vld [vmem:[%s3964_s0 + $0x198] ss:$28 sps:$4 sm:$0xff]  }
  0x7b   :  { %1535 = vmatprep.mubr.bf16.mxu0 %v2862_v17  ;;  %1645 = vmatpush1.bf16.msra.mxu0 %v2895_v18  ;;  %v2958_v17 = vld [vmem:[%s3963_s1 + $0x1b8] sm:$0xff]   ;;  %v2959_v18 = vld [vmem:[%s3964_s0 + $0x1d4] ss:$28 sps:$4 sm:$0xff]  }
  0x7c   :  { %1646 = vmatprep.subr.bf16.mxu0 %v3007_v0  ;;  %2624 = vmatpush1.bf16.msra.mxu1 %v3195_v32  ;;  %v2886_v32 = vld [vmem:[%s3964_s0 + $0x268] ss:$28 sps:$4 sm:$0xff]  }
  0x7d   :  { %2609 = vmatprep.subr.bf16.mxu1 %v3007_v0  ;;  %v2875_v0 = vld [vmem:[%s3964_s0 + $0x234] ss:$28 sps:$4 sm:$0xff]  }
  0x7f   :  { %1647 = vmatpush1.bf16.msra.mxu0 %v2902_v20  ;;  %v2963_v20 = vld [vmem:[%s3964_s0 + $0x50] ss:$28 sps:$4 sm:$0xff]  }
  0x80   :  { %2625 = vmatpush1.bf16.msra.mxu1 %v3206_v34  ;;  %v2889_v34 = vld [vmem:[%s3964_s0 + $0x2a4] ss:$28 sps:$4 sm:$0xff]  }
  0x81   :  { %1359 = vmatmul.mubr.bf16.gmra.mrb[32].mxu1 %v2864_v19  ;;  %2542 = vmatprep.subr.bf16.mxu1 %v3404_v21  ;;  %v2961_v19 = vld [vmem:[%s3964_s0 + $0x18] ss:$28 sps:$4 sm:$0xff]  }
  0x82   :  { %1536 = vmatmul.mubr.bf16.gmra.mrb[32].mxu0 %v2865_v22  ;;  %1366 = vmatprep.mubr.bf16.mxu1 %v2867_v23  ;;  %v2966_v22 = vld [vmem:[%s3964_s0 + $0x88] ss:$28 sps:$4 sm:$0xff]  }
  0x83   :  { %1543 = vmatprep.mubr.bf16.mxu0 %v2869_v24  ;;  %v2964_v23 = vld [vmem:[%s3964_s0 + $0x20c] ss:$28 sps:$4 sm:$0xff]   ;;  %v2968_v24 = vld [vmem:[%s3964_s0 + $0xc0] ss:$28 sps:$4 sm:$0xff]  }
  0x89   :  { %1367 = vmatmul.mubr.bf16.gmra.mrb[36].mxu1 %v2872_v25  ;;  %v2967_v25 = vld [vmem:[%s3964_s0 + $0x208] ss:$28 sps:$4 sm:$0xff]  }
  0x8a   :  { %1544 = vmatmul.mubr.bf16.gmra.mrb[36].mxu0 %v2873_v26  ;;  %1374 = vmatprep.mubr.bf16.mxu1 %v2875_v0  ;;  %v2971_v26 = vld [vmem:[%s3964_s0 + $0xf8] ss:$28 sps:$4 sm:$0xff]   ;;  %v2969_v0 = vld [vmem:[%s3964_s0 + $0x244] ss:$28 sps:$4 sm:$0xff]  }
  0x8b   :  { %1551 = vmatprep.mubr.bf16.mxu0 %v2877_v27  ;;  %v2973_v27 = vld [vmem:[%s3964_s0 + $0x130] ss:$28 sps:$4 sm:$0xff]  }
  0x91   :  { %1375 = vmatmul.mubr.bf16.gmra.mrb[40].mxu1 %v2879_v28  ;;  %v2972_v28 = vld [vmem:[%s3964_s0 + $0x240] ss:$28 sps:$4 sm:$0xff]  }
  0x92   :  { %1552 = vmatmul.mubr.bf16.gmra.mrb[40].mxu0 %v2880_v29  ;;  %1382 = vmatprep.mubr.bf16.mxu1 %v2882_v30  ;;  %v2976_v29 = vld [vmem:[%s3964_s0 + $0x168] ss:$28 sps:$4 sm:$0xff]   ;;  %v2974_v30 = vld [vmem:[%s3964_s0 + $0x27c] ss:$28 sps:$4 sm:$0xff]  }
  0x93   :  { %1559 = vmatprep.mubr.bf16.mxu0 %v2884_v31  ;;  %v2978_v31 = vld [vmem:[%s3964_s0 + $0x1a0] ss:$28 sps:$4 sm:$0xff]  }
  0x99   :  { %1383 = vmatmul.mubr.bf16.gmra.mrb[44].mxu1 %v2886_v32  ;;  %v2977_v32 = vld [vmem:[%s3964_s0 + $0x278] ss:$28 sps:$4 sm:$0xff]  }
  0x9a   :  { %1560 = vmatmul.mubr.bf16.gmra.mrb[44].mxu0 %v2887_v33  ;;  %1390 = vmatprep.mubr.bf16.mxu1 %v2889_v34  ;;  %v2981_v33 = vld [vmem:[%s3964_s0 + $0x1d8] ss:$28 sps:$4 sm:$0xff]  }
  0x9b   :  { %1567 = vmatprep.mubr.bf16.mxu0 %v2891_v35  ;;  %v2979_v34 = vld [vmem:[%s3964_s0 + $0x2b4] ss:$28 sps:$4 sm:$0xff]  }
  0x9c   :  { %v2983_v35 = vld [vmem:[%s3964_s0 + $0x210] ss:$28 sps:$4 sm:$0xff]  }
  0xa1   :  { %1391 = vmatmul.mubr.bf16.gmra.mrb[48].mxu1 %v2893_v36  ;;  %v2982_v36 = vld [vmem:[%s3964_s0 + $0x2b0] ss:$28 sps:$4 sm:$0xff]  }
  0xa2   :  { %1568 = vmatmul.mubr.bf16.gmra.mrb[48].mxu0 %v2894_v37  ;;  %1398 = vmatprep.mubr.bf16.mxu1 %v2896_v38  ;;  %v2986_v37 = vld [vmem:[%s3964_s0 + $0x248] ss:$28 sps:$4 sm:$0xff]  }
  0xa3   :  { %1575 = vmatprep.mubr.bf16.mxu0 %v2898_v39  ;;  %v2984_v38 = vld [vmem:[%s3964_s0 + $0x2ec] ss:$28 sps:$4 sm:$0xff]  }
  0xa9   :  { %1399 = vmatmul.mubr.bf16.gmra.mrb[52].mxu1 %v2900_v40  ;;  %v2988_v40 = vld [vmem:[%s3964_s0 + $0x280] ss:$28 sps:$4 sm:$0xff]  }
  0xaa   :  { %1576 = vmatmul.mubr.bf16.gmra.mrb[52].mxu0 %v2901_v41  ;;  %1406 = vmatprep.mubr.bf16.mxu1 %v2903_v42  ;;  %v2987_v42 = vld [vmem:[%s3964_s0 + $0x2e8] ss:$28 sps:$4 sm:$0xff]  }
  0xab   :  { %1648 = vmatprep.mubr.bf16.mxu0 %v2907_v43 }
  0xb1   :  { %1407 = vmatmul.mubr.bf16.gmra.mrb[56].mxu1 %v2908_v44  ;;  %v2991_v44 = vld [vmem:[%s3964_s0 + $0x2b8] ss:$28 sps:$4 sm:$0xff]  }
  0xb2   :  { %1649 = vmatmul.mubr.bf16.vlgmr.msra.gmra.mrb[0].mxu0 %v2905_v45  ;;  %1414 = vmatprep.mubr.bf16.mxu1 %v2909_v46  ;;  %v2989_v46 = vld [vmem:[%s3964_s0 + $0x324] ss:$28 sps:$4 sm:$0xff]  }
  0xb3   :  { %1656 = vmatprep.mubr.bf16.mxu0 %v2911_v47 }
  0xb9   :  { %1415 = vmatmul.mubr.bf16.gmra.mrb[60].mxu1 %v2913_v48  ;;  %v2993_v48 = vld [vmem:[%s3964_s0 + $0x2f0] ss:$28 sps:$4 sm:$0xff]  }
  0xba   :  { %1657 = vmatmul.mubr.bf16.gmra.mrb[4].mxu0 %v2914_v49  ;;  %1422 = vmatprep.mubr.bf16.mxu1 %v2915_v50  ;;  %v2992_v50 = vld [vmem:[%s3964_s0 + $0x320] ss:$28 sps:$4 sm:$0xff]  }
  0xbb   :  { %1664 = vmatprep.mubr.bf16.mxu0 %v2917_v51 }
  0xc1   :  { %1423 = vmatmul.mubr.bf16.gmra.mrb[64].mxu1 %v2919_v52  ;;  %v2996_v52 = vld [vmem:[%s3964_s0 + $0x328] ss:$28 sps:$4 sm:$0xff]  }
  0xc2   :  { %1665 = vmatmul.mubr.bf16.gmra.mrb[8].mxu0 %v2920_v53  ;;  %1430 = vmatprep.mubr.bf16.mxu1 %v2921_v54  ;;  %v2994_v54 = vld [vmem:[%s3964_s0 + $0x35c] ss:$28 sps:$4 sm:$0xff]  }
  0xc3   :  { %1672 = vmatprep.mubr.bf16.mxu0 %v2923_v55 }
  0xc9   :  { %1431 = vmatmul.mubr.bf16.gmra.mrb[68].mxu1 %v2925_v56  ;;  %v2998_v56 = vld [vmem:[%s3964_s0 + $0x360] ss:$28 sps:$4 sm:$0xff]  }
  0xca   :  { %1673 = vmatmul.mubr.bf16.gmra.mrb[12].mxu0 %v2926_v57  ;;  %1583 = vmatprep.mubr.bf16.mxu1 %v2929_v58  ;;  %v2997_v58 = vld [vmem:[%s3964_s0 + $0x358] ss:$28 sps:$4 sm:$0xff]  }
  0xcb   :  { %1680 = vmatprep.mubr.bf16.mxu0 %v2930_v59 }
  0xd1   :  { %1584 = vmatmul.mubr.bf16.vlgmr.msra.gmra.mrb[56].mxu1 %v2927_v60  ;;  %v3002_v60 = vld [vmem:[%s3964_s0 + $0x398] ss:$28 sps:$4 sm:$0xff]  }
  0xd2   :  { %1681 = vmatmul.mubr.bf16.gmra.mrb[16].mxu0 %v2932_v61  ;;  %2543 = vmatpush3.bf16.msra.mxu1 %v3404_v21  ;;  %v2962_v21 = vld [vmem:[%s3964_s0 + $0x1d0] ss:$28 sps:$4 sm:$0xff]  }
  0xd3   :  { %2544 = vmatprep.subr.bf16.mxu1 %v2934_v62  ;;  %1591 = vmatprep.mubr.bf16.mxu1 %v2935_v63 }
  0xd4   :  { %1688 = vmatprep.mubr.bf16.mxu0 %v2937_v1  ;;  %v3003_v1 = vld [vmem:[%s3964_s0 + $0x3d0] ss:$28 sps:$4 sm:$0xff]  }
  0xd6   :  { %2545 = vmatpush3.bf16.msra.mxu1 %v2934_v62  ;;  %v2999_v62 = vld [vmem:[%s3964_s0 + $0x394] ss:$28 sps:$4 sm:$0xff]  }
  0xd7   :  { %2546 = vmatprep.subr.bf16.mxu1 %v2941_v2 }
  0xd9   :  { %1592 = vmatmul.mubr.bf16.gmra.mrb[60].mxu1 %v2939_v3  ;;  %v3001_v3 = vld [vmem:[%s3964_s0 + $0x390] ss:$28 sps:$4 sm:$0xff]  }
  0xda   :  { %1689 = vmatmul.mubr.bf16.gmra.mrb[20].mxu0 %v2940_v4  ;;  %2547 = vmatpush3.bf16.msra.mxu1 %v2941_v2 }
  0xdb   :  { %2548 = vmatprep.subr.bf16.mxu1 %v2942_v5  ;;  %1599 = vmatprep.mubr.bf16.mxu1 %v2943_v6  ;;  %v3004_v6 = vld [vmem:[%s3964_s0 + $0x3cc] ss:$28 sps:$4 sm:$0xff]  }
  0xdc   :  { %1696 = vmatprep.mubr.bf16.mxu0 %v2945_v7 }
  0xde   :  { %2549 = vmatpush3.bf16.msra.mxu1 %v2942_v5 }
  0xdf   :  { %2550 = vmatprep.subr.bf16.mxu1 %v2949_v8 }
  0xe1   :  { %1600 = vmatmul.mubr.bf16.gmra.mrb[64].mxu1 %v2947_v9  ;;  %v3006_v9 = vld [vmem:[%s3964_s0 + $0x3c8] ss:$28 sps:$4 sm:$0xff]  }
  0xe2   :  { %1697 = vmatmul.mubr.bf16.gmra.mrb[24].mxu0 %v2948_v10  ;;  %2551 = vmatpush3.bf16.msra.mxu1 %v2949_v8 }
  0xe3   :  { %2552 = vmatprep.subr.bf16.mxu1 %v2950_v11  ;;  %1607 = vmatprep.mubr.bf16.mxu1 %v2951_v12 }
  0xe4   :  { %1704 = vmatprep.mubr.bf16.mxu0 %v2953_v13 }
  0xe6   :  { %2553 = vmatpush3.bf16.msra.mxu1 %v2950_v11 }
  0xe7   :  { %2554 = vmatprep.subr.bf16.mxu1 %v2957_v14 }
  0xe9   :  { %1608 = vmatmul.mubr.bf16.gmra.mrb[68].mxu1 %v2955_v15 }
  0xea   :  { %1705 = vmatmul.mubr.bf16.gmra.mrb[28].mxu0 %v2956_v16  ;;  %2555 = vmatpush3.bf16.msra.mxu1 %v2957_v14 }
  0xeb   :  { %2556 = vmatprep.subr.bf16.mxu1 %v2958_v17  ;;  %1712 = vmatprep.mubr.bf16.mxu0 %v2959_v18 }
  0xec   :  { %2558 = vmatprep.mubr.bf16.mxu1 %v2961_v19 }
  0xee   :  { %2557 = vmatpush3.bf16.msra.mxu1 %v2958_v17 }
  0xf1   :  { %2559 = vmatmul.mubr.bf16.vlgmr.msra.gmra.mrb[72].mxu1 %v2963_v20 }
  0xf2   :  { %1713 = vmatmul.mubr.bf16.gmra.mrb[32].mxu0 %v2962_v21  ;;  %2562 = vmatprep.mubr.bf16.mxu1 %v2966_v22 }
  0xf3   :  { %1720 = vmatprep.mubr.bf16.mxu0 %v2964_v23 }
  0xf9   :  { %2563 = vmatmul.mubr.bf16.gmra.mrb[76].mxu1 %v2968_v24 }
  0xfa   :  { %1721 = vmatmul.mubr.bf16.gmra.mrb[36].mxu0 %v2967_v25  ;;  %2566 = vmatprep.mubr.bf16.mxu1 %v2971_v26 }
  0xfb   :  { %1728 = vmatprep.mubr.bf16.mxu0 %v2969_v0 }
 0x101   :  { %2567 = vmatmul.mubr.bf16.gmra.mrb[80].mxu1 %v2973_v27 }
 0x102   :  { %1729 = vmatmul.mubr.bf16.gmra.mrb[40].mxu0 %v2972_v28  ;;  %2570 = vmatprep.mubr.bf16.mxu1 %v2976_v29 }
 0x103   :  { %1736 = vmatprep.mubr.bf16.mxu0 %v2974_v30 }
 0x109   :  { %2571 = vmatmul.mubr.bf16.gmra.mrb[84].mxu1 %v2978_v31 }
 0x10a   :  { %1737 = vmatmul.mubr.bf16.gmra.mrb[44].mxu0 %v2977_v32  ;;  %2574 = vmatprep.mubr.bf16.mxu1 %v2981_v33 }
 0x10b   :  { %1744 = vmatprep.mubr.bf16.mxu0 %v2979_v34 }
 0x111   :  { %2575 = vmatmul.mubr.bf16.gmra.mrb[88].mxu1 %v2983_v35 }
 0x112   :  { %1745 = vmatmul.mubr.bf16.gmra.mrb[48].mxu0 %v2982_v36  ;;  %2578 = vmatprep.mubr.bf16.mxu1 %v2986_v37 }
 0x113   :  { %1752 = vmatprep.mubr.bf16.mxu0 %v2984_v38 }
 0x114   :  { %v3658_v39 = vpop.f32.mrb[0].mxu1 }
 0x115   :  { %v1298_v41 = vpop.f32.mrb[1].mxu1 }
 0x116   :  { %v3666_v43 = vpop.f32.mrb[2].mxu1 }
 0x117   :  { %v1301_v45 = vpop.f32.mrb[3].mxu1 }
 0x119   :  { %2579 = vmatmul.mubr.bf16.gmra.mrb[92].mxu1 %v2988_v40 }
 0x11a   :  { %1753 = vmatmul.mubr.bf16.gmra.mrb[52].mxu0 %v2987_v42  ;;  %2582 = vmatprep.mubr.bf16.mxu1 %v2991_v44 }
 0x11b   :  { %1760 = vmatprep.mubr.bf16.mxu0 %v2989_v46 }
 0x11c   :  { %v3674_v47 = vpop.f32.mrb[4].mxu1 }
 0x11d   :  { %v1306_v49 = vpop.f32.mrb[5].mxu1 }
 0x11e   :  { %v3682_v51 = vpop.f32.mrb[6].mxu1 }
 0x11f   :  { %v1309_v53 = vpop.f32.mrb[7].mxu1 }
 0x121   :  { %2583 = vmatmul.mubr.bf16.gmra.mrb[96].mxu1 %v2993_v48 }
 0x122   :  { %1761 = vmatmul.mubr.bf16.gmra.mrb[56].mxu0 %v2992_v50  ;;  %2586 = vmatprep.mubr.bf16.mxu1 %v2996_v52  ;;  %v3765_v50 = vld [vmem:[%s3965_s2] ss:$0 sm:$0xff] }
 0x123   :  { %1768 = vmatprep.mubr.bf16.mxu0 %v2994_v54  ;;  %v1297_v52 = vadd.f32 %v3765_v50, %v3658_v39  ;;  %v1300_v54 = vadd.f32 %v3765_v50, %v3666_v43 }
 0x124   :  { %v3690_v55 = vpop.f32.mrb[8].mxu1 }
 0x125   :  { %v1314_v57 = vpop.f32.mrb[9].mxu1 }
 0x126   :  { %v3698_v59 = vpop.f32.mrb[10].mxu1 }
 0x127   :  { %v1317_v61 = vpop.f32.mrb[11].mxu1 }
 0x129   :  { %2587 = vmatmul.mubr.bf16.gmra.mrb[100].mxu1 %v2998_v56 }
 0x12a   :  { %1769 = vmatmul.mubr.bf16.gmra.mrb[60].mxu0 %v2997_v58  ;;  %2590 = vmatprep.mubr.bf16.mxu1 %v3002_v60 }
 0x12b   :  { %1776 = vmatprep.mubr.bf16.mxu0 %v2999_v62  ;;  %v1305_v62 = vadd.f32 %v3765_v50, %v3674_v47 }
 0x12c   :  { %v3706_v63 = vpop.f32.mrb[12].mxu1 }
 0x12d   :  { %v1322_v2 = vpop.f32.mrb[13].mxu1 }
 0x12e   :  { %v3714_v4 = vpop.f32.mrb[14].mxu1  ;;  %v1308_v2 = vadd.f32 %v3765_v50, %v3682_v51 }
 0x12f   :  { %v1325_v5 = vpop.f32.mrb[15].mxu1 }
 0x131   :  { %2591 = vmatmul.mubr.bf16.gmra.mrb[104].mxu1 %v3003_v1 }
 0x132   :  { %1777 = vmatmul.mubr.bf16.gmra.mrb[64].mxu0 %v3001_v3 }
 0x133   :  { %1784 = vmatprep.mubr.bf16.mxu0 %v3004_v6 }
 0x134   :  { %v3719_v7 = vpop.f32.mrb[16].mxu1 }
 0x135   :  { %v1330_v8 = vpop.f32.mrb[17].mxu1 }
 0x136   :  { %v3724_v10 = vpop.f32.mrb[18].mxu1  ;;  %v1313_v8 = vadd.f32 %v3765_v50, %v3690_v55 }
 0x137   :  { %v1333_v11 = vpop.f32.mrb[19].mxu1 }
 0x138   :  { %v1316_v11 = vadd.f32 %v3765_v50, %v3698_v59 }
 0x13a   :  { %1785 = vmatmul.mubr.bf16.gmra.mrb[68].mxu0 %v3006_v9 }
 0x13c   :  { %v3726_v12 = vpop.f32.mrb[20].mxu1 }
 0x13d   :  { %v1338_v13 = vpop.f32.mrb[21].mxu1 }
 0x13e   :  { %v3728_v14 = vpop.f32.mrb[22].mxu1 }
 0x13f   :  { %v1341_v15 = vpop.f32.mrb[23].mxu1 }
 0x144   :  { %v3730_v16 = vpop.f32.mrb[24].mxu1 }
 0x145   :  { %v1346_v17 = vpop.f32.mrb[25].mxu1 }
 0x146   :  { %v3732_v18 = vpop.f32.mrb[26].mxu1 }
 0x147   :  { %v1349_v19 = vpop.f32.mrb[27].mxu1 }
 0x148   :  { %v1321_v19 = vadd.f32 %v3765_v50, %v3706_v63  ;;  %v1332_v63 = vadd.f32 %v3765_v50, %v3724_v10  ;;  %v1340_v10 = vadd.f32 %v3765_v50, %v3728_v14  ;;  %v1348_v14 = vadd.f32 %v3765_v50, %v3732_v18 }
 0x14c   :  { %v3734_v20 = vpop.f32.mrb[28].mxu1 }
 0x14d   :  { %v1354_v21 = vpop.f32.mrb[29].mxu1 }
 0x14e   :  { %v3736_v22 = vpop.f32.mrb[30].mxu1 }
 0x14f   :  { %v1357_v23 = vpop.f32.mrb[31].mxu1  ;;  %v1356_v18 = vadd.f32 %v3765_v50, %v3736_v22 }
 0x150   :  { %v1324_v23 = vadd.f32 %v3765_v50, %v3714_v4 }
 0x154   :  { %v3738_v24 = vpop.f32.mrb[32].mxu1 }
 0x155   :  { %v1362_v25 = vpop.f32.mrb[33].mxu1 }
 0x156   :  { %v3740_v26 = vpop.f32.mrb[34].mxu1 }
 0x157   :  { %v1365_v0 = vpop.f32.mrb[35].mxu1  ;;  %v1364_v22 = vadd.f32 %v3765_v50, %v3740_v26 }
 0x15c   :  { %v3742_v27 = vpop.f32.mrb[36].mxu1 }
 0x15d   :  { %v1370_v28 = vpop.f32.mrb[37].mxu1  ;;  %v1369_v26 = vadd.f32 %v3765_v50, %v3742_v27 }
 0x15e   :  { %v3744_v29 = vpop.f32.mrb[38].mxu1 }
 0x15f   :  { %v1373_v30 = vpop.f32.mrb[39].mxu1 }
 0x160   :  { %v1329_v30 = vadd.f32 %v3765_v50, %v3719_v7  ;;  %v1337_v7 = vadd.f32 %v3765_v50, %v3726_v12  ;;  %v1345_v12 = vadd.f32 %v3765_v50, %v3730_v16  ;;  %v1353_v16 = vadd.f32 %v3765_v50, %v3734_v20 }
 0x161   :  { %v1361_v20 = vadd.f32 %v3765_v50, %v3738_v24 }
 0x164   :  { %v3746_v31 = vpop.f32.mrb[40].mxu1 }
 0x165   :  { %v1378_v32 = vpop.f32.mrb[41].mxu1 }
 0x166   :  { %v3748_v33 = vpop.f32.mrb[42].mxu1 }
 0x167   :  { %v1381_v34 = vpop.f32.mrb[43].mxu1 }
 0x16c   :  { %v3750_v35 = vpop.f32.mrb[44].mxu1 }
 0x16d   :  { %v1386_v36 = vpop.f32.mrb[45].mxu1 }
 0x16e   :  { %v3752_v37 = vpop.f32.mrb[46].mxu1 }
 0x16f   :  { %v1389_v38 = vpop.f32.mrb[47].mxu1 }
 0x174   :  { %v3754_v40 = vpop.f32.mrb[48].mxu1 }
 0x175   :  { %v1394_v41 = vpop.f32.mrb[49].mxu1 }
 0x176   :  { %v3756_v42 = vpop.f32.mrb[50].mxu1 }
 0x177   :  { %v1397_v44 = vpop.f32.mrb[51].mxu1 }
 0x17c   :  { %v3758_v45 = vpop.f32.mrb[52].mxu1 }
 0x17d   :  { %v1402_v46 = vpop.f32.mrb[53].mxu1 }
 0x17e   :  { %v3760_v48 = vpop.f32.mrb[54].mxu1 }
 0x17f   :  { %v1405_v49 = vpop.f32.mrb[55].mxu1 }
 0x185   :  { %v1650_v53 = vpop.f32.mrb[0].mxu0 }
 0x186   :  { %v3771_v56 = vadd.f32 %v1650_v53, %v1297_v52  ;;  %v1652_v57 = vpop.f32.mrb[1].mxu0 }
 0x187   :  { %v1653_v58 = vpop.f32.mrb[2].mxu0 }
 0x188   :  { %v3773_v60 = vadd.f32 %v1653_v58, %v1300_v54  ;;  %v1655_v61 = vpop.f32.mrb[3].mxu0 }
 0x18d   :  { %v1658_v1 = vpop.f32.mrb[4].mxu0 }
 0x18e   :  { %v3779_v3 = vadd.f32 %v1658_v1, %v1305_v62  ;;  %v1660_v39 = vpop.f32.mrb[5].mxu0 }
 0x18f   :  { %v1661_v5 = vpop.f32.mrb[6].mxu0 }
 0x190   :  { %v3781_v6 = vadd.f32 %v1661_v5, %v1308_v2  ;;  %v1663_v43 = vpop.f32.mrb[7].mxu0 }
 0x195   :  { %v1666_v9 = vpop.f32.mrb[8].mxu0 }
 0x196   :  { %v3787_v13 = vadd.f32 %v1666_v9, %v1313_v8  ;;  %v1668_v47 = vpop.f32.mrb[9].mxu0 }
 0x197   :  { %v1669_v15 = vpop.f32.mrb[10].mxu0 }
 0x198   :  { %v3789_v17 = vadd.f32 %v1669_v15, %v1316_v11  ;;  %v1671_v51 = vpop.f32.mrb[11].mxu0 }
 0x19d   :  { %v1674_v21 = vpop.f32.mrb[12].mxu0 }
 0x19e   :  { %v3795_v25 = vadd.f32 %v1674_v21, %v1321_v19  ;;  %v1676_v55 = vpop.f32.mrb[13].mxu0 }
 0x19f   :  { %v1677_v0 = vpop.f32.mrb[14].mxu0 }
 0x1a0   :  { %v3797_v28 = vadd.f32 %v1677_v0, %v1324_v23  ;;  %v1679_v59 = vpop.f32.mrb[15].mxu0 }
 0x1a4   :  { %v3801_v32 = vpop.f32.mrb[56].mxu1 }
 0x1a5   :  { %v1682_v34 = vpop.f32.mrb[16].mxu0  ;;  %v1587_v36 = vpop.f32.mrb[57].mxu1 }
 0x1a6   :  { %v3805_v38 = vadd.f32 %v1682_v34, %v1329_v30  ;;  %v1684_v4 = vpop.f32.mrb[17].mxu0  ;;  %v3807_v41 = vpop.f32.mrb[58].mxu1 }
 0x1a7   :  { %v1685_v44 = vpop.f32.mrb[18].mxu0  ;;  %v1590_v46 = vpop.f32.mrb[59].mxu1 }
 0x1a8   :  { %v3809_v49 = vadd.f32 %v1685_v44, %v1332_v63  ;;  %v1687_v52 = vpop.f32.mrb[19].mxu0 }
 0x1ac   :  { %v3813_v53 = vpop.f32.mrb[60].mxu1 }
 0x1ad   :  { %v1690_v54 = vpop.f32.mrb[20].mxu0  ;;  %v1595_v57 = vpop.f32.mrb[61].mxu1 }
 0x1ae   :  { %v3817_v58 = vadd.f32 %v1690_v54, %v1337_v7  ;;  %v1692_v61 = vpop.f32.mrb[21].mxu0  ;;  %v3819_v62 = vpop.f32.mrb[62].mxu1 }
 0x1af   :  { %v1693_v1 = vpop.f32.mrb[22].mxu0  ;;  %v1598_v2 = vpop.f32.mrb[63].mxu1 }
 0x1b0   :  { %v3821_v39 = vadd.f32 %v1693_v1, %v1340_v10  ;;  %v1695_v5 = vpop.f32.mrb[23].mxu0 }
 0x1b4   :  { %v3825_v43 = vpop.f32.mrb[64].mxu1 }
 0x1b5   :  { %v1698_v8 = vpop.f32.mrb[24].mxu0  ;;  %v1603_v9 = vpop.f32.mrb[65].mxu1 }
 0x1b6   :  { %v3829_v11 = vadd.f32 %v1698_v8, %v1345_v12  ;;  %v1700_v47 = vpop.f32.mrb[25].mxu0  ;;  %v3831_v15 = vpop.f32.mrb[66].mxu1 }
 0x1b7   :  { %v1701_v51 = vpop.f32.mrb[26].mxu0  ;;  %v1606_v19 = vpop.f32.mrb[67].mxu1 }
 0x1b8   :  { %v3833_v21 = vadd.f32 %v1701_v51, %v1348_v14  ;;  %v1703_v23 = vpop.f32.mrb[27].mxu0 }
 0x1bc   :  { %v3837_v55 = vpop.f32.mrb[68].mxu1 }
 0x1bd   :  { %v1706_v0 = vpop.f32.mrb[28].mxu0  ;;  %v1611_v59 = vpop.f32.mrb[69].mxu1 }
 0x1be   :  { %v3841_v30 = vadd.f32 %v1706_v0, %v1353_v16  ;;  %v1708_v34 = vpop.f32.mrb[29].mxu0  ;;  %v3843_v36 = vpop.f32.mrb[70].mxu1 }
 0x1bf   :  { %v1709_v63 = vpop.f32.mrb[30].mxu0  ;;  %v1614_v4 = vpop.f32.mrb[71].mxu1 }
 0x1c0   :  { %v3845_v44 = vadd.f32 %v1709_v63, %v1356_v18  ;;  %v1711_v46 = vpop.f32.mrb[31].mxu0 }
 0x1c4   :  { %v2560_v52 = vpop.f32.mrb[72].mxu1 }
 0x1c5   :  { %v1714_v7 = vpop.f32.mrb[32].mxu0  ;;  %v1836_v54 = vadd.f32 %v3779_v3, %v2560_v52  ;;  %v1827_v57 = vpop.f32.mrb[73].mxu1 }
 0x1c6   :  { %v3852_v10 = vadd.f32 %v1714_v7, %v1361_v20  ;;  %v1716_v61 = vpop.f32.mrb[33].mxu0  ;;  %v1828_v1 = vadd.f32 %v3771_v56, %v1827_v57  ;;  %v2561_v2 = vpop.f32.mrb[74].mxu1 }
 0x1c7   :  { %v1717_v5 = vpop.f32.mrb[34].mxu0  ;;  %v1839_v12 = vadd.f32 %v3781_v6, %v2561_v2  ;;  %v1830_v8 = vpop.f32.mrb[75].mxu1 }
 0x1c8   :  { %v3856_v9 = vadd.f32 %v1717_v5, %v1364_v22  ;;  %v1719_v24 = vpop.f32.mrb[35].mxu0  ;;  %v1831_v14 = vadd.f32 %v3773_v60, %v1830_v8  ;;  %v1372_v60 = vadd.f32 %v3765_v50, %v3744_v29  ;;  %v1377_v29 = vadd.f32 %v3765_v50, %v3746_v31 }
 0x1c9   :  { %v2417_v3 = vpack.c.bf16 %v1839_v12, %v1836_v54 }
 0x1ca   :  { %v2412_v47 = vpack.c.bf16 %v1831_v14, %v1828_v1 }
 0x1cb   :  { %2499 = vst [vmem:[%s3966_s3 + $0x8] sm:$0xff] %v2417_v3  }
 0x1cc   :  { %2413 = vst [vmem:[%s3966_s3] sm:$0xff] %v2412_v47   ;;  %v2564_v56 = vpop.f32.mrb[76].mxu1 }
 0x1cd   :  { %v1722_v6 = vpop.f32.mrb[36].mxu0  ;;  %v1852_v51 = vadd.f32 %v3795_v25, %v2564_v56  ;;  %v1843_v19 = vpop.f32.mrb[77].mxu1 }
 0x1ce   :  { %v2663_v23 = vadd.f32 %v1722_v6, %v1369_v26  ;;  %v1724_v16 = vpop.f32.mrb[37].mxu0  ;;  %v1844_v0 = vadd.f32 %v3787_v13, %v1843_v19  ;;  %v2565_v59 = vpop.f32.mrb[78].mxu1 }
 0x1cf   :  { %v1725_v18 = vpop.f32.mrb[38].mxu0  ;;  %v1855_v27 = vadd.f32 %v3797_v28, %v2565_v59  ;;  %v1846_v34 = vpop.f32.mrb[79].mxu1 }
 0x1d0   :  { %v2665_v63 = vadd.f32 %v1725_v18, %v1372_v60  ;;  %v1727_v4 = vpop.f32.mrb[39].mxu0  ;;  %v1847_v46 = vadd.f32 %v3789_v17, %v1846_v34  ;;  %v1380_v17 = vadd.f32 %v3765_v50, %v3748_v33  ;;  %v1385_v33 = vadd.f32 %v3765_v50, %v3750_v35 }
 0x1d1   :  { %v2427_v20 = vpack.c.bf16 %v1855_v27, %v1852_v51 }
 0x1d2   :  { %v2422_v52 = vpack.c.bf16 %v1847_v46, %v1844_v0 }
 0x1d3   :  { %2501 = vst [vmem:[%s3966_s3 + $0x18] sm:$0xff] %v2427_v20  }
 0x1d4   :  { %2500 = vst [vmem:[%s3966_s3 + $0x10] sm:$0xff] %v2422_v52   ;;  %v2568_v13 = vpop.f32.mrb[80].mxu1 }
 0x1d5   :  { %v1730_v25 = vpop.f32.mrb[40].mxu0  ;;  %v1868_v28 = vadd.f32 %v3817_v58, %v2568_v13  ;;  %v1859_v7 = vpop.f32.mrb[81].mxu1 }
 0x1d6   :  { %v2667_v54 = vadd.f32 %v1730_v25, %v1377_v29  ;;  %v1732_v57 = vpop.f32.mrb[41].mxu0  ;;  %v1860_v22 = vadd.f32 %v3805_v38, %v1859_v7  ;;  %v2569_v61 = vpop.f32.mrb[82].mxu1 }
 0x1d7   :  { %v1733_v1 = vpop.f32.mrb[42].mxu0  ;;  %v1871_v31 = vadd.f32 %v3821_v39, %v2569_v61  ;;  %v1862_v2 = vpop.f32.mrb[83].mxu1 }
 0x1d8   :  { %v2669_v5 = vadd.f32 %v1733_v1, %v1380_v17  ;;  %v1735_v12 = vpop.f32.mrb[43].mxu0  ;;  %v1863_v8 = vadd.f32 %v3809_v49, %v1862_v2  ;;  %v1388_v49 = vadd.f32 %v3765_v50, %v3752_v37  ;;  %v1393_v37 = vadd.f32 %v3765_v50, %v3754_v40 }
 0x1d9   :  { %v2437_v24 = vpack.c.bf16 %v1871_v31, %v1868_v28 }
 0x1da   :  { %v2432_v14 = vpack.c.bf16 %v1863_v8, %v1860_v22 }
 0x1db   :  { %2503 = vst [vmem:[%s3966_s3 + $0x28] sm:$0xff] %v2437_v24  }
 0x1dc   :  { %2502 = vst [vmem:[%s3966_s3 + $0x20] sm:$0xff] %v2432_v14   ;;  %v2572_v38 = vpop.f32.mrb[84].mxu1 }
 0x1dd   :  { %v1738_v58 = vpop.f32.mrb[44].mxu0  ;;  %v1884_v39 = vadd.f32 %v3841_v30, %v2572_v38  ;;  %v1875_v3 = vpop.f32.mrb[85].mxu1 }
 0x1de   :  { %v2671_v47 = vadd.f32 %v1738_v58, %v1385_v33  ;;  %v1740_v26 = vpop.f32.mrb[45].mxu0  ;;  %v1876_v56 = vadd.f32 %v3829_v11, %v1875_v3  ;;  %v2573_v6 = vpop.f32.mrb[86].mxu1  ;;  %v2682_v58 = vadd.f32 %v3765_v50, %v3801_v32 }
 0x1df   :  { %v1741_v51 = vpop.f32.mrb[46].mxu0  ;;  %v1887_v35 = vadd.f32 %v3845_v44, %v2573_v6  ;;  %v1878_v19 = vpop.f32.mrb[87].mxu1 }
 0x1e0   :  { %v2673_v60 = vadd.f32 %v1741_v51, %v1388_v49  ;;  %v1743_v16 = vpop.f32.mrb[47].mxu0  ;;  %v1879_v0 = vadd.f32 %v3833_v21, %v1878_v19  ;;  %v1396_v21 = vadd.f32 %v3765_v50, %v3756_v42  ;;  %v1401_v42 = vadd.f32 %v3765_v50, %v3758_v45 }
 0x1e1   :  { %v2447_v59 = vpack.c.bf16 %v1887_v35, %v1884_v39 }
 0x1e2   :  { %v2442_v18 = vpack.c.bf16 %v1879_v0, %v1876_v56 }
 0x1e3   :  { %2505 = vst [vmem:[%s3966_s3 + $0x38] sm:$0xff] %v2447_v59   ;;  %v2686_v59 = vadd.f32 %v3765_v50, %v3813_v53 }
 0x1e4   :  { %2504 = vst [vmem:[%s3966_s3 + $0x30] sm:$0xff] %v2442_v18   ;;  %v2576_v11 = vpop.f32.mrb[88].mxu1 }
 0x1e5   :  { %v1746_v30 = vpop.f32.mrb[48].mxu0  ;;  %v1900_v44 = vadd.f32 %v2663_v23, %v2576_v11  ;;  %v1891_v27 = vpop.f32.mrb[89].mxu1  ;;  %v2688_v11 = vadd.f32 %v3765_v50, %v3819_v62 }
 0x1e6   :  { %v2675_v34 = vadd.f32 %v1746_v30, %v1393_v37  ;;  %v1748_v4 = vpop.f32.mrb[49].mxu0  ;;  %v1892_v46 = vadd.f32 %v3852_v10, %v1891_v27  ;;  %v2577_v20 = vpop.f32.mrb[90].mxu1 }
 0x1e7   :  { %v1749_v52 = vpop.f32.mrb[50].mxu0  ;;  %v1903_v29 = vadd.f32 %v2665_v63, %v2577_v20  ;;  %v1894_v13 = vpop.f32.mrb[91].mxu1 }
 0x1e8   :  { %v2677_v40 = vadd.f32 %v1749_v52, %v1396_v21  ;;  %v1751_v25 = vpop.f32.mrb[51].mxu0  ;;  %v1895_v28 = vadd.f32 %v3856_v9, %v1894_v13  ;;  %v1404_v9 = vadd.f32 %v3765_v50, %v3760_v48 }
 0x1e9   :  { %v2457_v7 = vpack.c.bf16 %v1903_v29, %v1900_v44 }
 0x1ea   :  { %v2452_v17 = vpack.c.bf16 %v1895_v28, %v1892_v46 }
 0x1eb   :  { %2507 = vst [vmem:[%s3966_s3 + $0x48] sm:$0xff] %v2457_v7  }
 0x1ec   :  { %2506 = vst [vmem:[%s3966_s3 + $0x40] sm:$0xff] %v2452_v17   ;;  %v2580_v10 = vpop.f32.mrb[92].mxu1  ;;  %v2692_v17 = vadd.f32 %v3765_v50, %v3831_v15  ;;  %v2696_v15 = vadd.f32 %v3765_v50, %v3843_v36 }
 0x1ed   :  { %v1754_v23 = vpop.f32.mrb[52].mxu0  ;;  %v1916_v63 = vadd.f32 %v2671_v47, %v2580_v10  ;;  %v1907_v57 = vpop.f32.mrb[93].mxu1 }
 0x1ee   :  { %v2679_v22 = vadd.f32 %v1754_v23, %v1401_v42  ;;  %v1756_v61 = vpop.f32.mrb[53].mxu0  ;;  %v1908_v1 = vadd.f32 %v2667_v54, %v1907_v57  ;;  %v2581_v31 = vpop.f32.mrb[94].mxu1 }
 0x1ef   :  { %v1757_v2 = vpop.f32.mrb[54].mxu0  ;;  %v1919_v12 = vadd.f32 %v2673_v60, %v2581_v31  ;;  %v1910_v8 = vpop.f32.mrb[95].mxu1 }
 0x1f0   :  { %v2681_v24 = vadd.f32 %v1757_v2, %v1404_v9  ;;  %v1759_v45 = vpop.f32.mrb[55].mxu0  ;;  %v1911_v14 = vadd.f32 %v2669_v5, %v1910_v8  ;;  %v2684_v5 = vadd.f32 %v3765_v50, %v3807_v41 }
 0x1f1   :  { %v2467_v33 = vpack.c.bf16 %v1919_v12, %v1916_v63 }
 0x1f2   :  { %v2462_v38 = vpack.c.bf16 %v1911_v14, %v1908_v1  ;;  %v2694_v1 = vadd.f32 %v3765_v50, %v3837_v55 }
 0x1f3   :  { %2509 = vst [vmem:[%s3966_s3 + $0x58] sm:$0xff] %v2467_v33  }
 0x1f4   :  { %2508 = vst [vmem:[%s3966_s3 + $0x50] sm:$0xff] %v2462_v38   ;;  %v2584_v48 = vpop.f32.mrb[96].mxu1 }
 0x1f5   :  { %v1762_v54 = vpop.f32.mrb[56].mxu0  ;;  %v1932_v39 = vadd.f32 %v2679_v22, %v2584_v48  ;;  %v1923_v3 = vpop.f32.mrb[97].mxu1 }
 0x1f6   :  { %v2683_v49 = vadd.f32 %v2682_v58, %v1762_v54  ;;  %v1764_v47 = vpop.f32.mrb[57].mxu0  ;;  %v1924_v26 = vadd.f32 %v2675_v34, %v1923_v3  ;;  %v2585_v56 = vpop.f32.mrb[98].mxu1 }
 0x1f7   :  { %v1765_v6 = vpop.f32.mrb[58].mxu0  ;;  %v1935_v51 = vadd.f32 %v2681_v24, %v2585_v56  ;;  %v1926_v35 = vpop.f32.mrb[99].mxu1 }
 0x1f8   :  { %v2685_v19 = vadd.f32 %v2684_v5, %v1765_v6  ;;  %v1767_v32 = vpop.f32.mrb[59].mxu0  ;;  %v1927_v60 = vadd.f32 %v2677_v40, %v1926_v35  ;;  %v2690_v40 = vadd.f32 %v3765_v50, %v3825_v43 }
 0x1f9   :  { %v2477_v16 = vpack.c.bf16 %v1935_v51, %v1932_v39 }
 0x1fa   :  { %v2472_v0 = vpack.c.bf16 %v1927_v60, %v1924_v26 }
 0x1fb   :  { %2511 = vst [vmem:[%s3966_s3 + $0x68] sm:$0xff] %v2477_v16  }
 0x1fc   :  { %2510 = vst [vmem:[%s3966_s3 + $0x60] sm:$0xff] %v2472_v0   ;;  %v2588_v41 = vpop.f32.mrb[100].mxu1 }
 0x1fd   :  { %v1770_v18 = vpop.f32.mrb[60].mxu0  ;;  %v1939_v37 = vpop.f32.mrb[101].mxu1 }
 0x1fe   :  { %v2687_v30 = vadd.f32 %v2686_v59, %v1770_v18  ;;  %v1772_v44 = vpop.f32.mrb[61].mxu0  ;;  %v1940_v27 = vadd.f32 %v2683_v49, %v1939_v37  ;;  %v2589_v21 = vpop.f32.mrb[102].mxu1 }
 0x1ff   :  { %v1773_v34 = vpop.f32.mrb[62].mxu0  ;;  %v1942_v4 = vpop.f32.mrb[103].mxu1 }
 0x200   :  { %v1948_v46 = vadd.f32 %v2687_v30, %v2588_v41  ;;  %v2689_v20 = vadd.f32 %v2688_v11, %v1773_v34  ;;  %v1775_v52 = vpop.f32.mrb[63].mxu0  ;;  %v1943_v53 = vadd.f32 %v2685_v19, %v1942_v4 }
 0x202   :  { %v1951_v29 = vadd.f32 %v2689_v20, %v2589_v21  ;;  %v2482_v13 = vpack.c.bf16 %v1943_v53, %v1940_v27 }
 0x204   :  { %v2487_v25 = vpack.c.bf16 %v1951_v29, %v1948_v46  ;;  %2512 = vst [vmem:[%s3966_s3 + $0x70] sm:$0xff] %v2482_v13   ;;  %v2592_v62 = vpop.f32.mrb[104].mxu1 }
 0x205   :  { %v1778_v28 = vpop.f32.mrb[64].mxu0  ;;  %v1955_v7 = vpop.f32.mrb[105].mxu1 }
 0x206   :  { %2513 = vst [vmem:[%s3966_s3 + $0x78] sm:$0xff] %v2487_v25   ;;  %v2691_v42 = vadd.f32 %v2690_v40, %v1778_v28  ;;  %v1780_v10 = vpop.f32.mrb[65].mxu0  ;;  %v2593_v23 = vpop.f32.mrb[106].mxu1 }
 0x207   :  { %v1781_v63 = vpop.f32.mrb[66].mxu0  ;;  %v1958_v43 = vpop.f32.mrb[107].mxu1 }
 0x208   :  { %v2693_v57 = vadd.f32 %v2692_v17, %v1781_v63  ;;  %v1956_v9 = vadd.f32 %v2691_v42, %v1955_v7  ;;  %v1783_v22 = vpop.f32.mrb[67].mxu0 }
 0x20a   :  { %v1959_v61 = vadd.f32 %v2693_v57, %v1958_v43 }
 0x20c   :  { %v2492_v31 = vpack.c.bf16 %v1959_v61, %v1956_v9 }
 0x20d   :  { %v1786_v2 = vpop.f32.mrb[68].mxu0 }
 0x20e   :  { %2514 = vst [vmem:[%s3966_s3 + $0x80] sm:$0xff] %v2492_v31   ;;  %v2695_v12 = vadd.f32 %v2694_v1, %v1786_v2  ;;  %v1788_v8 = vpop.f32.mrb[69].mxu0 }
 0x20f   :  { %v1789_v24 = vpop.f32.mrb[70].mxu0 }
 0x210   :  { %v1964_v45 = vadd.f32 %v2695_v12, %v2592_v62  ;;  %v2697_v14 = vadd.f32 %v2696_v15, %v1789_v24  ;;  %v1791_v33 = vpop.f32.mrb[71].mxu0 }
 0x212   :  { %v1967_v38 = vadd.f32 %v2697_v14, %v2593_v23 }
 0x214   :  { %v2497_v58 = vpack.c.bf16 %v1967_v38, %v1964_v45 }
 0x216   :  { %2515 = vst [vmem:[%s3966_s3 + $0x88] sm:$0xff] %v2497_v58  }

// kernel: forward.12
= control target key start
LH: loop header
LB: loop body
LE: loop exit
PB: predicated region body
PF: predicated region fallthrough
CT: control target
= control target key end

     0   :  { %v1062_v0 = vmov 0   ;;  %s1366_s1 = inlined_call_operand.vmem [shape: bf16[256,128], index: 1, kind: input, shape index: {}]   ;;  %s1367_s0 = inlined_call_operand.vmem [shape: bf16[288,256], index: 0, kind: input, shape index: {}]   ;;  %s1368_s2 = inlined_call_operand.vmem [shape: f32[1,128], index: 2, kind: input, shape index: {}]   ;;  %s1369_s3 = inlined_call_operand.vmem [shape: bf16[288,128], index: 3, kind: output, shape index: {}]  }
   0x1   :  { %366 = vmatprep.subr.bf16.mxu0 %v1062_v0  ;;  %959 = vmatprep.subr.bf16.mxu1 %v1062_v0  ;;  %v992_v1 = vld [vmem:[%s1366_s1] sm:$0xff]   ;;  %v993_v2 = vld [vmem:[%s1366_s1 + $0x8] sm:$0xff]   ;;  %v994_v3 = vld [vmem:[%s1366_s1 + $0x10] sm:$0xff]  }
   0x2   :  { %367 = vmatpush1.bf16.msra.mxu0 %v992_v1  ;;  %975 = vmatpush1.bf16.msra.mxu1 %v992_v1  ;;  %v995_v4 = vld [vmem:[%s1366_s1 + $0x18] sm:$0xff]   ;;  %v996_v5 = vld [vmem:[%s1366_s1 + $0x20] sm:$0xff]   ;;  %v997_v7 = vld [vmem:[%s1366_s1 + $0x28] sm:$0xff]  }
   0x3   :  { %368 = vmatprep.subr.bf16.mxu0 %v1062_v0  ;;  %960 = vmatprep.subr.bf16.mxu1 %v1062_v0  ;;  %v1010_v6 = vld [vmem:[%s1367_s0 + $0x4] ss:$8 sps:$4 sm:$0xff]   ;;  %v1013_v8 = vld [vmem:[%s1367_s0 + $0x94] ss:$8 sps:$4 sm:$0xff]   ;;  %v1008_v19 = vld [vmem:[%s1367_s0] ss:$8 sps:$4 sm:$0xff]  }
   0x4   :  { %398 = vmatprep.mubr.bf16.mxu0 %v1010_v6  ;;  %470 = vmatprep.mubr.bf16.mxu1 %v1013_v8  ;;  %v998_v9 = vld [vmem:[%s1366_s1 + $0x30] sm:$0xff]   ;;  %v999_v10 = vld [vmem:[%s1366_s1 + $0x38] sm:$0xff]   ;;  %v1000_v11 = vld [vmem:[%s1366_s1 + $0x40] sm:$0xff]  }
   0x5   :  { %v1001_v12 = vld [vmem:[%s1366_s1 + $0x48] sm:$0xff]   ;;  %v1002_v13 = vld [vmem:[%s1366_s1 + $0x50] sm:$0xff]   ;;  %v1003_v14 = vld [vmem:[%s1366_s1 + $0x58] sm:$0xff]  }
   0x6   :  { %369 = vmatpush1.bf16.msra.mxu0 %v993_v2  ;;  %976 = vmatpush1.bf16.msra.mxu1 %v993_v2  ;;  %v1004_v15 = vld [vmem:[%s1366_s1 + $0x60] sm:$0xff]   ;;  %v1005_v16 = vld [vmem:[%s1366_s1 + $0x68] sm:$0xff]   ;;  %v1006_v17 = vld [vmem:[%s1366_s1 + $0x70] sm:$0xff]  }
   0x7   :  { %370 = vmatprep.subr.bf16.mxu0 %v1062_v0  ;;  %961 = vmatprep.subr.bf16.mxu1 %v1062_v0  ;;  %v1007_v18 = vld [vmem:[%s1366_s1 + $0x78] sm:$0xff]   ;;  %v1016_v22 = vld [vmem:[%s1367_s0 + $0xa4] ss:$8 sps:$4 sm:$0xff]   ;;  %v1019_v24 = vld [vmem:[%s1367_s0 + $0xa0] ss:$8 sps:$4 sm:$0xff]  }
   0x8   :  { %v1011_v20 = vld [vmem:[%s1367_s0 + $0x90] ss:$8 sps:$4 sm:$0xff]   ;;  %v1014_v21 = vld [vmem:[%s1367_s0 + $0x14] ss:$8 sps:$4 sm:$0xff]   ;;  %v1020_v25 = vld [vmem:[%s1367_s0 + $0x24] ss:$8 sps:$4 sm:$0xff]  }
   0x9   :  { %v1018_v23 = vld [vmem:[%s1367_s0 + $0x10] ss:$8 sps:$4 sm:$0xff]   ;;  %v1022_v26 = vld [vmem:[%s1367_s0 + $0xb4] ss:$8 sps:$4 sm:$0xff]   ;;  %v1024_v27 = vld [vmem:[%s1367_s0 + $0x20] ss:$8 sps:$4 sm:$0xff]  }
   0xa   :  { %371 = vmatpush1.bf16.msra.mxu0 %v994_v3  ;;  %977 = vmatpush1.bf16.msra.mxu1 %v994_v3  ;;  %v1025_v28 = vld [vmem:[%s1367_s0 + $0xb0] ss:$8 sps:$4 sm:$0xff]   ;;  %v1026_v29 = vld [vmem:[%s1367_s0 + $0x34] ss:$8 sps:$4 sm:$0xff]   ;;  %v1028_v30 = vld [vmem:[%s1367_s0 + $0xc4] ss:$8 sps:$4 sm:$0xff]  }
   0xb   :  { %372 = vmatprep.subr.bf16.mxu0 %v1062_v0  ;;  %962 = vmatprep.subr.bf16.mxu1 %v1062_v0  ;;  %v1030_v31 = vld [vmem:[%s1367_s0 + $0x30] ss:$8 sps:$4 sm:$0xff]   ;;  %v1031_v32 = vld [vmem:[%s1367_s0 + $0xc0] ss:$8 sps:$4 sm:$0xff]   ;;  %v1032_v33 = vld [vmem:[%s1367_s0 + $0x44] ss:$8 sps:$4 sm:$0xff]  }
   0xc   :  { %v1034_v34 = vld [vmem:[%s1367_s0 + $0xd4] ss:$8 sps:$4 sm:$0xff]   ;;  %v1036_v35 = vld [vmem:[%s1367_s0 + $0x40] ss:$8 sps:$4 sm:$0xff]   ;;  %v1037_v36 = vld [vmem:[%s1367_s0 + $0xd0] ss:$8 sps:$4 sm:$0xff]  }
   0xd   :  { %v1038_v37 = vld [vmem:[%s1367_s0 + $0x54] ss:$8 sps:$4 sm:$0xff]   ;;  %v1040_v38 = vld [vmem:[%s1367_s0 + $0xe4] ss:$8 sps:$4 sm:$0xff]   ;;  %v1042_v39 = vld [vmem:[%s1367_s0 + $0x50] ss:$8 sps:$4 sm:$0xff]  }
   0xe   :  { %373 = vmatpush1.bf16.msra.mxu0 %v995_v4  ;;  %978 = vmatpush1.bf16.msra.mxu1 %v995_v4  ;;  %v1043_v40 = vld [vmem:[%s1367_s0 + $0xe0] ss:$8 sps:$4 sm:$0xff]   ;;  %v1044_v41 = vld [vmem:[%s1367_s0 + $0x64] ss:$8 sps:$4 sm:$0xff]   ;;  %v1046_v42 = vld [vmem:[%s1367_s0 + $0xf4] ss:$8 sps:$4 sm:$0xff]  }
   0xf   :  { %374 = vmatprep.subr.bf16.mxu0 %v1062_v0  ;;  %963 = vmatprep.subr.bf16.mxu1 %v1062_v0  ;;  %v1048_v43 = vld [vmem:[%s1367_s0 + $0x60] ss:$8 sps:$4 sm:$0xff]   ;;  %v1049_v44 = vld [vmem:[%s1367_s0 + $0xf0] ss:$8 sps:$4 sm:$0xff]   ;;  %v1050_v45 = vld [vmem:[%s1367_s0 + $0x74] ss:$8 sps:$4 sm:$0xff]  }
  0x10   :  { %v1052_v46 = vld [vmem:[%s1367_s0 + $0x104] ss:$8 sps:$4 sm:$0xff]   ;;  %v1054_v47 = vld [vmem:[%s1367_s0 + $0x70] ss:$8 sps:$4 sm:$0xff]   ;;  %v1055_v48 = vld [vmem:[%s1367_s0 + $0x100] ss:$8 sps:$4 sm:$0xff]  }
  0x11   :  { %v1056_v49 = vld [vmem:[%s1367_s0 + $0x84] ss:$8 sps:$4 sm:$0xff]   ;;  %v1058_v50 = vld [vmem:[%s1367_s0 + $0x114] ss:$8 sps:$4 sm:$0xff]   ;;  %v1060_v51 = vld [vmem:[%s1367_s0 + $0x80] ss:$8 sps:$4 sm:$0xff]  }
  0x12   :  { %375 = vmatpush1.bf16.msra.mxu0 %v996_v5  ;;  %979 = vmatpush1.bf16.msra.mxu1 %v996_v5  ;;  %v1061_v52 = vld [vmem:[%s1367_s0 + $0x110] ss:$8 sps:$4 sm:$0xff]   ;;  %v1274_v53 = vld [vmem:[%s1368_s2] ss:$0 sm:$0xff] }
  0x13   :  { %376 = vmatprep.subr.bf16.mxu0 %v1062_v0  ;;  %964 = vmatprep.subr.bf16.mxu1 %v1062_v0 }
  0x16   :  { %377 = vmatpush1.bf16.msra.mxu0 %v997_v7  ;;  %980 = vmatpush1.bf16.msra.mxu1 %v997_v7 }
  0x17   :  { %378 = vmatprep.subr.bf16.mxu0 %v1062_v0  ;;  %965 = vmatprep.subr.bf16.mxu1 %v1062_v0 }
  0x1a   :  { %379 = vmatpush1.bf16.msra.mxu0 %v998_v9  ;;  %981 = vmatpush1.bf16.msra.mxu1 %v998_v9 }
  0x1b   :  { %380 = vmatprep.subr.bf16.mxu0 %v1062_v0  ;;  %966 = vmatprep.subr.bf16.mxu1 %v1062_v0 }
  0x1e   :  { %381 = vmatpush1.bf16.msra.mxu0 %v999_v10  ;;  %982 = vmatpush1.bf16.msra.mxu1 %v999_v10 }
  0x1f   :  { %382 = vmatprep.subr.bf16.mxu0 %v1062_v0  ;;  %967 = vmatprep.subr.bf16.mxu1 %v1062_v0 }
  0x22   :  { %383 = vmatpush1.bf16.msra.mxu0 %v1000_v11  ;;  %983 = vmatpush1.bf16.msra.mxu1 %v1000_v11 }
  0x23   :  { %384 = vmatprep.subr.bf16.mxu0 %v1062_v0  ;;  %968 = vmatprep.subr.bf16.mxu1 %v1062_v0 }
  0x26   :  { %385 = vmatpush1.bf16.msra.mxu0 %v1001_v12  ;;  %984 = vmatpush1.bf16.msra.mxu1 %v1001_v12 }
  0x27   :  { %386 = vmatprep.subr.bf16.mxu0 %v1062_v0  ;;  %969 = vmatprep.subr.bf16.mxu1 %v1062_v0 }
  0x2a   :  { %387 = vmatpush1.bf16.msra.mxu0 %v1002_v13  ;;  %985 = vmatpush1.bf16.msra.mxu1 %v1002_v13 }
  0x2b   :  { %388 = vmatprep.subr.bf16.mxu0 %v1062_v0  ;;  %970 = vmatprep.subr.bf16.mxu1 %v1062_v0 }
  0x2e   :  { %389 = vmatpush1.bf16.msra.mxu0 %v1003_v14  ;;  %986 = vmatpush1.bf16.msra.mxu1 %v1003_v14 }
  0x2f   :  { %390 = vmatprep.subr.bf16.mxu0 %v1062_v0  ;;  %971 = vmatprep.subr.bf16.mxu1 %v1062_v0 }
  0x32   :  { %391 = vmatpush1.bf16.msra.mxu0 %v1004_v15  ;;  %987 = vmatpush1.bf16.msra.mxu1 %v1004_v15 }
  0x33   :  { %392 = vmatprep.subr.bf16.mxu0 %v1062_v0  ;;  %972 = vmatprep.subr.bf16.mxu1 %v1062_v0 }
  0x36   :  { %393 = vmatpush1.bf16.msra.mxu0 %v1005_v16  ;;  %988 = vmatpush1.bf16.msra.mxu1 %v1005_v16 }
  0x37   :  { %394 = vmatprep.subr.bf16.mxu0 %v1062_v0  ;;  %973 = vmatprep.subr.bf16.mxu1 %v1062_v0 }
  0x3a   :  { %395 = vmatpush1.bf16.msra.mxu0 %v1006_v17  ;;  %989 = vmatpush1.bf16.msra.mxu1 %v1006_v17 }
  0x3b   :  { %396 = vmatprep.subr.bf16.mxu0 %v1062_v0  ;;  %974 = vmatprep.subr.bf16.mxu1 %v1062_v0 }
  0x3e   :  { %397 = vmatpush1.bf16.msra.mxu0 %v1007_v18  ;;  %990 = vmatpush1.bf16.msra.mxu1 %v1007_v18 }
  0x41   :  { %399 = vmatmul.mubr.bf16.vlgmr.msra.gmra.mrb[0].mxu0 %v1008_v19  ;;  %471 = vmatmul.mubr.bf16.vlgmr.msra.gmra.mrb[0].mxu1 %v1011_v20 }
  0x42   :  { %406 = vmatprep.mubr.bf16.mxu0 %v1014_v21  ;;  %478 = vmatprep.mubr.bf16.mxu1 %v1016_v22 }
  0x49   :  { %407 = vmatmul.mubr.bf16.gmra.mrb[4].mxu0 %v1018_v23  ;;  %479 = vmatmul.mubr.bf16.gmra.mrb[4].mxu1 %v1019_v24 }
  0x4a   :  { %414 = vmatprep.mubr.bf16.mxu0 %v1020_v25  ;;  %486 = vmatprep.mubr.bf16.mxu1 %v1022_v26 }
  0x51   :  { %415 = vmatmul.mubr.bf16.gmra.mrb[8].mxu0 %v1024_v27  ;;  %487 = vmatmul.mubr.bf16.gmra.mrb[8].mxu1 %v1025_v28 }
  0x52   :  { %422 = vmatprep.mubr.bf16.mxu0 %v1026_v29  ;;  %494 = vmatprep.mubr.bf16.mxu1 %v1028_v30 }
  0x59   :  { %423 = vmatmul.mubr.bf16.gmra.mrb[12].mxu0 %v1030_v31  ;;  %495 = vmatmul.mubr.bf16.gmra.mrb[12].mxu1 %v1031_v32 }
  0x5a   :  { %430 = vmatprep.mubr.bf16.mxu0 %v1032_v33  ;;  %502 = vmatprep.mubr.bf16.mxu1 %v1034_v34 }
  0x61   :  { %431 = vmatmul.mubr.bf16.gmra.mrb[16].mxu0 %v1036_v35  ;;  %503 = vmatmul.mubr.bf16.gmra.mrb[16].mxu1 %v1037_v36 }
  0x62   :  { %438 = vmatprep.mubr.bf16.mxu0 %v1038_v37  ;;  %510 = vmatprep.mubr.bf16.mxu1 %v1040_v38 }
  0x69   :  { %439 = vmatmul.mubr.bf16.gmra.mrb[20].mxu0 %v1042_v39  ;;  %511 = vmatmul.mubr.bf16.gmra.mrb[20].mxu1 %v1043_v40 }
  0x6a   :  { %446 = vmatprep.mubr.bf16.mxu0 %v1044_v41  ;;  %518 = vmatprep.mubr.bf16.mxu1 %v1046_v42 }
  0x71   :  { %447 = vmatmul.mubr.bf16.gmra.mrb[24].mxu0 %v1048_v43  ;;  %519 = vmatmul.mubr.bf16.gmra.mrb[24].mxu1 %v1049_v44 }
  0x72   :  { %454 = vmatprep.mubr.bf16.mxu0 %v1050_v45  ;;  %526 = vmatprep.mubr.bf16.mxu1 %v1052_v46 }
  0x79   :  { %455 = vmatmul.mubr.bf16.gmra.mrb[28].mxu0 %v1054_v47  ;;  %527 = vmatmul.mubr.bf16.gmra.mrb[28].mxu1 %v1055_v48 }
  0x7a   :  { %462 = vmatprep.mubr.bf16.mxu0 %v1056_v49  ;;  %534 = vmatprep.mubr.bf16.mxu1 %v1058_v50 }
  0x81   :  { %463 = vmatmul.mubr.bf16.gmra.mrb[32].mxu0 %v1060_v51  ;;  %535 = vmatmul.mubr.bf16.gmra.mrb[32].mxu1 %v1061_v52 }
 0x114   :  { %v400_v54 = vpop.f32.mrb[0].mxu0  ;;  %v472_v55 = vpop.f32.mrb[0].mxu1 }
 0x115   :  { %v402_v56 = vpop.f32.mrb[1].mxu0  ;;  %v474_v57 = vpop.f32.mrb[1].mxu1  ;;  %v401_v60 = vadd.f32 %v1274_v53, %v400_v54  ;;  %v473_v61 = vadd.f32 %v1274_v53, %v472_v55 }
 0x116   :  { %v403_v58 = vpop.f32.mrb[2].mxu0  ;;  %v475_v59 = vpop.f32.mrb[2].mxu1 }
 0x117   :  { %v404_v62 = vadd.f32 %v1274_v53, %v403_v58  ;;  %v476_v63 = vadd.f32 %v1274_v53, %v475_v59  ;;  %v405_v0 = vpop.f32.mrb[3].mxu0  ;;  %v477_v1 = vpop.f32.mrb[3].mxu1 }
 0x119   :  { %v855_v2 = vpack.c.bf16 %v404_v62, %v401_v60  ;;  %v900_v3 = vpack.c.bf16 %v476_v63, %v473_v61 }
 0x11b   :  { %856 = vst [vmem:[%s1369_s3] sm:$0xff] %v855_v2   ;;  %950 = vst [vmem:[%s1369_s3 + $0x48] sm:$0xff] %v900_v3  }
 0x11c   :  { %v408_v4 = vpop.f32.mrb[4].mxu0  ;;  %v480_v5 = vpop.f32.mrb[4].mxu1 }
 0x11d   :  { %v410_v6 = vpop.f32.mrb[5].mxu0  ;;  %v482_v7 = vpop.f32.mrb[5].mxu1  ;;  %v409_v10 = vadd.f32 %v1274_v53, %v408_v4  ;;  %v481_v11 = vadd.f32 %v1274_v53, %v480_v5 }
 0x11e   :  { %v411_v8 = vpop.f32.mrb[6].mxu0  ;;  %v483_v9 = vpop.f32.mrb[6].mxu1 }
 0x11f   :  { %v412_v12 = vadd.f32 %v1274_v53, %v411_v8  ;;  %v484_v13 = vadd.f32 %v1274_v53, %v483_v9  ;;  %v413_v14 = vpop.f32.mrb[7].mxu0  ;;  %v485_v15 = vpop.f32.mrb[7].mxu1 }
 0x121   :  { %v860_v16 = vpack.c.bf16 %v412_v12, %v409_v10  ;;  %v905_v17 = vpack.c.bf16 %v484_v13, %v481_v11 }
 0x123   :  { %942 = vst [vmem:[%s1369_s3 + $0x8] sm:$0xff] %v860_v16   ;;  %951 = vst [vmem:[%s1369_s3 + $0x50] sm:$0xff] %v905_v17  }
 0x124   :  { %v416_v18 = vpop.f32.mrb[8].mxu0  ;;  %v488_v19 = vpop.f32.mrb[8].mxu1 }
 0x125   :  { %v418_v20 = vpop.f32.mrb[9].mxu0  ;;  %v490_v21 = vpop.f32.mrb[9].mxu1  ;;  %v417_v24 = vadd.f32 %v1274_v53, %v416_v18  ;;  %v489_v25 = vadd.f32 %v1274_v53, %v488_v19 }
 0x126   :  { %v419_v22 = vpop.f32.mrb[10].mxu0  ;;  %v491_v23 = vpop.f32.mrb[10].mxu1 }
 0x127   :  { %v420_v26 = vadd.f32 %v1274_v53, %v419_v22  ;;  %v492_v27 = vadd.f32 %v1274_v53, %v491_v23  ;;  %v421_v28 = vpop.f32.mrb[11].mxu0  ;;  %v493_v29 = vpop.f32.mrb[11].mxu1 }
 0x129   :  { %v865_v30 = vpack.c.bf16 %v420_v26, %v417_v24  ;;  %v910_v31 = vpack.c.bf16 %v492_v27, %v489_v25 }
 0x12b   :  { %943 = vst [vmem:[%s1369_s3 + $0x10] sm:$0xff] %v865_v30   ;;  %952 = vst [vmem:[%s1369_s3 + $0x58] sm:$0xff] %v910_v31  }
 0x12c   :  { %v424_v32 = vpop.f32.mrb[12].mxu0  ;;  %v496_v33 = vpop.f32.mrb[12].mxu1 }
 0x12d   :  { %v426_v34 = vpop.f32.mrb[13].mxu0  ;;  %v498_v35 = vpop.f32.mrb[13].mxu1  ;;  %v425_v38 = vadd.f32 %v1274_v53, %v424_v32  ;;  %v497_v39 = vadd.f32 %v1274_v53, %v496_v33 }
 0x12e   :  { %v427_v36 = vpop.f32.mrb[14].mxu0  ;;  %v499_v37 = vpop.f32.mrb[14].mxu1 }
 0x12f   :  { %v428_v40 = vadd.f32 %v1274_v53, %v427_v36  ;;  %v500_v41 = vadd.f32 %v1274_v53, %v499_v37  ;;  %v429_v42 = vpop.f32.mrb[15].mxu0  ;;  %v501_v43 = vpop.f32.mrb[15].mxu1 }
 0x131   :  { %v870_v44 = vpack.c.bf16 %v428_v40, %v425_v38  ;;  %v915_v45 = vpack.c.bf16 %v500_v41, %v497_v39 }
 0x133   :  { %944 = vst [vmem:[%s1369_s3 + $0x18] sm:$0xff] %v870_v44   ;;  %953 = vst [vmem:[%s1369_s3 + $0x60] sm:$0xff] %v915_v45  }
 0x134   :  { %v432_v46 = vpop.f32.mrb[16].mxu0  ;;  %v504_v47 = vpop.f32.mrb[16].mxu1 }
 0x135   :  { %v434_v48 = vpop.f32.mrb[17].mxu0  ;;  %v506_v49 = vpop.f32.mrb[17].mxu1  ;;  %v433_v52 = vadd.f32 %v1274_v53, %v432_v46  ;;  %v505_v54 = vadd.f32 %v1274_v53, %v504_v47 }
 0x136   :  { %v435_v50 = vpop.f32.mrb[18].mxu0  ;;  %v507_v51 = vpop.f32.mrb[18].mxu1 }
 0x137   :  { %v436_v55 = vadd.f32 %v1274_v53, %v435_v50  ;;  %v508_v56 = vadd.f32 %v1274_v53, %v507_v51  ;;  %v437_v57 = vpop.f32.mrb[19].mxu0  ;;  %v509_v58 = vpop.f32.mrb[19].mxu1 }
 0x139   :  { %v875_v59 = vpack.c.bf16 %v436_v55, %v433_v52  ;;  %v920_v60 = vpack.c.bf16 %v508_v56, %v505_v54 }
 0x13b   :  { %945 = vst [vmem:[%s1369_s3 + $0x20] sm:$0xff] %v875_v59   ;;  %954 = vst [vmem:[%s1369_s3 + $0x68] sm:$0xff] %v920_v60  }
 0x13c   :  { %v440_v61 = vpop.f32.mrb[20].mxu0  ;;  %v512_v62 = vpop.f32.mrb[20].mxu1 }
 0x13d   :  { %v442_v63 = vpop.f32.mrb[21].mxu0  ;;  %v514_v0 = vpop.f32.mrb[21].mxu1  ;;  %v441_v3 = vadd.f32 %v1274_v53, %v440_v61  ;;  %v513_v4 = vadd.f32 %v1274_v53, %v512_v62 }
 0x13e   :  { %v443_v1 = vpop.f32.mrb[22].mxu0  ;;  %v515_v2 = vpop.f32.mrb[22].mxu1 }
 0x13f   :  { %v444_v5 = vadd.f32 %v1274_v53, %v443_v1  ;;  %v516_v6 = vadd.f32 %v1274_v53, %v515_v2  ;;  %v445_v7 = vpop.f32.mrb[23].mxu0  ;;  %v517_v8 = vpop.f32.mrb[23].mxu1 }
 0x141   :  { %v880_v9 = vpack.c.bf16 %v444_v5, %v441_v3  ;;  %v925_v10 = vpack.c.bf16 %v516_v6, %v513_v4 }
 0x143   :  { %946 = vst [vmem:[%s1369_s3 + $0x28] sm:$0xff] %v880_v9   ;;  %955 = vst [vmem:[%s1369_s3 + $0x70] sm:$0xff] %v925_v10  }
 0x144   :  { %v448_v11 = vpop.f32.mrb[24].mxu0  ;;  %v520_v12 = vpop.f32.mrb[24].mxu1 }
 0x145   :  { %v450_v13 = vpop.f32.mrb[25].mxu0  ;;  %v522_v14 = vpop.f32.mrb[25].mxu1  ;;  %v449_v17 = vadd.f32 %v1274_v53, %v448_v11  ;;  %v521_v18 = vadd.f32 %v1274_v53, %v520_v12 }
 0x146   :  { %v451_v15 = vpop.f32.mrb[26].mxu0  ;;  %v523_v16 = vpop.f32.mrb[26].mxu1 }
 0x147   :  { %v452_v19 = vadd.f32 %v1274_v53, %v451_v15  ;;  %v524_v20 = vadd.f32 %v1274_v53, %v523_v16  ;;  %v453_v21 = vpop.f32.mrb[27].mxu0  ;;  %v525_v22 = vpop.f32.mrb[27].mxu1 }
 0x149   :  { %v885_v23 = vpack.c.bf16 %v452_v19, %v449_v17  ;;  %v930_v24 = vpack.c.bf16 %v524_v20, %v521_v18 }
 0x14b   :  { %947 = vst [vmem:[%s1369_s3 + $0x30] sm:$0xff] %v885_v23   ;;  %956 = vst [vmem:[%s1369_s3 + $0x78] sm:$0xff] %v930_v24  }
 0x14c   :  { %v456_v25 = vpop.f32.mrb[28].mxu0  ;;  %v528_v26 = vpop.f32.mrb[28].mxu1 }
 0x14d   :  { %v458_v27 = vpop.f32.mrb[29].mxu0  ;;  %v530_v28 = vpop.f32.mrb[29].mxu1  ;;  %v457_v31 = vadd.f32 %v1274_v53, %v456_v25  ;;  %v529_v32 = vadd.f32 %v1274_v53, %v528_v26 }
 0x14e   :  { %v459_v29 = vpop.f32.mrb[30].mxu0  ;;  %v531_v30 = vpop.f32.mrb[30].mxu1 }
 0x14f   :  { %v460_v33 = vadd.f32 %v1274_v53, %v459_v29  ;;  %v532_v34 = vadd.f32 %v1274_v53, %v531_v30  ;;  %v461_v35 = vpop.f32.mrb[31].mxu0  ;;  %v533_v36 = vpop.f32.mrb[31].mxu1 }
 0x151   :  { %v890_v37 = vpack.c.bf16 %v460_v33, %v457_v31  ;;  %v935_v38 = vpack.c.bf16 %v532_v34, %v529_v32 }
 0x153   :  { %948 = vst [vmem:[%s1369_s3 + $0x38] sm:$0xff] %v890_v37   ;;  %957 = vst [vmem:[%s1369_s3 + $0x80] sm:$0xff] %v935_v38  }
 0x154   :  { %v464_v39 = vpop.f32.mrb[32].mxu0  ;;  %v536_v40 = vpop.f32.mrb[32].mxu1 }
 0x155   :  { %v465_v41 = vadd.f32 %v1274_v53, %v464_v39  ;;  %v537_v42 = vadd.f32 %v1274_v53, %v536_v40  ;;  %v466_v43 = vpop.f32.mrb[33].mxu0  ;;  %v538_v44 = vpop.f32.mrb[33].mxu1 }
 0x156   :  { %v467_v45 = vpop.f32.mrb[34].mxu0  ;;  %v539_v46 = vpop.f32.mrb[34].mxu1 }
 0x157   :  { %v468_v47 = vadd.f32 %v1274_v53, %v467_v45  ;;  %v540_v48 = vadd.f32 %v1274_v53, %v539_v46  ;;  %v469_v49 = vpop.f32.mrb[35].mxu0  ;;  %v541_v50 = vpop.f32.mrb[35].mxu1 }
 0x159   :  { %v895_v51 = vpack.c.bf16 %v468_v47, %v465_v41  ;;  %v940_v52 = vpack.c.bf16 %v540_v48, %v537_v42 }
 0x15b   :  { %949 = vst [vmem:[%s1369_s3 + $0x40] sm:$0xff] %v895_v51   ;;  %958 = vst [vmem:[%s1369_s3 + $0x88] sm:$0xff] %v940_v52  }

// kernel: forward.14
= control target key start
LH: loop header
LB: loop body
LE: loop exit
PB: predicated region body
PF: predicated region fallthrough
CT: control target
= control target key end

     0   :  { %s442_s1 = inlined_call_operand.vmem [shape: bf16[256,128], index: 1, kind: input, shape index: {}]   ;;  %s443_s0 = inlined_call_operand.vmem [shape: bf16[32,256], index: 0, kind: input, shape index: {}]   ;;  %s444_s2 = inlined_call_operand.vmem [shape: f32[1,128], index: 2, kind: input, shape index: {}]   ;;  %s445_s3 = inlined_call_operand.vmem [shape: bf16[32,128], index: 3, kind: output, shape index: {}]  }
   0x1   :  { %v331_v0 = vld [vmem:[%s442_s1 + $0x40] sm:$0xff]   ;;  %v333_v2 = vld [vmem:[%s442_s1 + $0x48] sm:$0xff]   ;;  %v335_v4 = vld [vmem:[%s442_s1 + $0x50] sm:$0xff]  }
   0x2   :  { %v332_v1 = vld [vmem:[%s442_s1] sm:$0xff]   ;;  %287 = vmatprep.subr.bf16.mxu0 %v331_v0  ;;  %315 = vmatprep.subr.bf16.mxu1 %v331_v0  ;;  %v334_v3 = vld [vmem:[%s442_s1 + $0x8] sm:$0xff]   ;;  %v336_v5 = vld [vmem:[%s442_s1 + $0x10] sm:$0xff]  }
   0x3   :  { %288 = vmatpush3.bf16.msra.mxu0 %v332_v1  ;;  %323 = vmatpush3.bf16.msra.mxu1 %v332_v1  ;;  %v337_v6 = vld [vmem:[%s442_s1 + $0x58] sm:$0xff]   ;;  %v339_v8 = vld [vmem:[%s442_s1 + $0x60] sm:$0xff]   ;;  %v341_v10 = vld [vmem:[%s442_s1 + $0x68] sm:$0xff]  }
   0x4   :  { %289 = vmatprep.subr.bf16.mxu0 %v333_v2  ;;  %316 = vmatprep.subr.bf16.mxu1 %v333_v2  ;;  %v338_v7 = vld [vmem:[%s442_s1 + $0x18] sm:$0xff]   ;;  %v340_v9 = vld [vmem:[%s442_s1 + $0x20] sm:$0xff]   ;;  %v342_v13 = vld [vmem:[%s442_s1 + $0x28] sm:$0xff]  }
   0x5   :  { %v349_v11 = vld [vmem:[%s443_s0 + $0x4] ss:$8 sps:$4 sm:$0xff]   ;;  %v352_v12 = vld [vmem:[%s443_s0 + $0x14] ss:$8 sps:$4 sm:$0xff]   ;;  %v347_v18 = vld [vmem:[%s443_s0] ss:$8 sps:$4 sm:$0xff]  }
   0x6   :  { %v343_v14 = vld [vmem:[%s442_s1 + $0x70] sm:$0xff]   ;;  %206 = vmatprep.mubr.bf16.mxu0 %v349_v11  ;;  %214 = vmatprep.mubr.bf16.mxu1 %v352_v12  ;;  %v345_v16 = vld [vmem:[%s442_s1 + $0x78] sm:$0xff]   ;;  %v247_v28 = vld [vmem:[%s444_s2] ss:$0 sm:$0xff] }
   0x7   :  { %290 = vmatpush3.bf16.msra.mxu0 %v334_v3  ;;  %324 = vmatpush3.bf16.msra.mxu1 %v334_v3  ;;  %v344_v15 = vld [vmem:[%s442_s1 + $0x30] sm:$0xff]   ;;  %v346_v17 = vld [vmem:[%s442_s1 + $0x38] sm:$0xff]  }
   0x8   :  { %291 = vmatprep.subr.bf16.mxu0 %v335_v4  ;;  %317 = vmatprep.subr.bf16.mxu1 %v335_v4  ;;  %v350_v19 = vld [vmem:[%s443_s0 + $0x10] ss:$8 sps:$4 sm:$0xff]  }
   0xb   :  { %292 = vmatpush3.bf16.msra.mxu0 %v336_v5  ;;  %325 = vmatpush3.bf16.msra.mxu1 %v336_v5 }
   0xc   :  { %293 = vmatprep.subr.bf16.mxu0 %v337_v6  ;;  %318 = vmatprep.subr.bf16.mxu1 %v337_v6 }
   0xf   :  { %294 = vmatpush3.bf16.msra.mxu0 %v338_v7  ;;  %326 = vmatpush3.bf16.msra.mxu1 %v338_v7 }
  0x10   :  { %295 = vmatprep.subr.bf16.mxu0 %v339_v8  ;;  %319 = vmatprep.subr.bf16.mxu1 %v339_v8 }
  0x13   :  { %296 = vmatpush3.bf16.msra.mxu0 %v340_v9  ;;  %327 = vmatpush3.bf16.msra.mxu1 %v340_v9 }
  0x14   :  { %297 = vmatprep.subr.bf16.mxu0 %v341_v10  ;;  %320 = vmatprep.subr.bf16.mxu1 %v341_v10 }
  0x17   :  { %298 = vmatpush3.bf16.msra.mxu0 %v342_v13  ;;  %328 = vmatpush3.bf16.msra.mxu1 %v342_v13 }
  0x18   :  { %299 = vmatprep.subr.bf16.mxu0 %v343_v14  ;;  %321 = vmatprep.subr.bf16.mxu1 %v343_v14 }
  0x1b   :  { %300 = vmatpush3.bf16.msra.mxu0 %v344_v15  ;;  %329 = vmatpush3.bf16.msra.mxu1 %v344_v15 }
  0x1c   :  { %301 = vmatprep.subr.bf16.mxu0 %v345_v16  ;;  %322 = vmatprep.subr.bf16.mxu1 %v345_v16 }
  0x1f   :  { %302 = vmatpush3.bf16.msra.mxu0 %v346_v17  ;;  %330 = vmatpush3.bf16.msra.mxu1 %v346_v17 }
  0x22   :  { %207 = vmatmul.mubr.bf16.vlgmr.msra.gmra.mrb[0].mxu0 %v347_v18  ;;  %215 = vmatmul.mubr.bf16.vlgmr.msra.gmra.mrb[0].mxu1 %v350_v19 }
  0xf5   :  { %v303_v20 = vpop.f32.mrb[0].mxu0  ;;  %v309_v21 = vpop.f32.mrb[0].mxu1 }
  0xf6   :  { %v304_v22 = vpop.f32.mrb[1].mxu0  ;;  %v310_v23 = vpop.f32.mrb[1].mxu1 }
  0xf7   :  { %v305_v24 = vadd.f32 %v304_v22, %v303_v20  ;;  %v311_v25 = vadd.f32 %v310_v23, %v309_v21  ;;  %v306_v26 = vpop.f32.mrb[2].mxu0  ;;  %v312_v27 = vpop.f32.mrb[2].mxu1 }
  0xf8   :  { %v307_v29 = vpop.f32.mrb[3].mxu0  ;;  %v313_v30 = vpop.f32.mrb[3].mxu1 }
  0xf9   :  { %v308_v31 = vadd.f32 %v307_v29, %v306_v26  ;;  %v314_v32 = vadd.f32 %v313_v30, %v312_v27  ;;  %v209_v33 = vadd.f32 %v305_v24, %v247_v28  ;;  %v217_v34 = vadd.f32 %v311_v25, %v247_v28 }
  0xfb   :  { %v212_v35 = vadd.f32 %v308_v31, %v247_v28  ;;  %v220_v36 = vadd.f32 %v314_v32, %v247_v28 }
  0xfd   :  { %v279_v37 = vpack.c.bf16 %v212_v35, %v209_v33  ;;  %v284_v38 = vpack.c.bf16 %v220_v36, %v217_v34 }
  0xff   :  { %280 = vst [vmem:[%s445_s3] sm:$0xff] %v279_v37   ;;  %286 = vst [vmem:[%s445_s3 + $0x8] sm:$0xff] %v284_v38  }

// kernel: forward.13
= control target key start
LH: loop header
LB: loop body
LE: loop exit
PB: predicated region body
PF: predicated region fallthrough
CT: control target
= control target key end

     0   :  { %s5452_s1 = inlined_call_operand.vmem [shape: bf16[2304,128], index: 1, kind: input, shape index: {}]   ;;  %s5453_s0 = inlined_call_operand.vmem [shape: bf16[128,2304], index: 0, kind: input, shape index: {}]   ;;  %s5454_s2 = inlined_call_operand.vmem [shape: f32[1,128], index: 2, kind: input, shape index: {}]   ;;  %s5455_s3 = inlined_call_operand.vmem [shape: bf16[128,128], index: 3, kind: output, shape index: {}]  }
   0x1   :  { %v3971_v0 = vld [vmem:[%s5452_s1 + $0x40] sm:$0xff]   ;;  %v3973_v2 = vld [vmem:[%s5452_s1 + $0x48] sm:$0xff]   ;;  %v3975_v4 = vld [vmem:[%s5452_s1 + $0x50] sm:$0xff]  }
   0x2   :  { %v3972_v1 = vld [vmem:[%s5452_s1] sm:$0xff]   ;;  %3379 = vmatprep.subr.bf16.mxu0 %v3971_v0  ;;  %3955 = vmatprep.subr.bf16.mxu1 %v3971_v0  ;;  %v3974_v3 = vld [vmem:[%s5452_s1 + $0x8] sm:$0xff]   ;;  %v3976_v5 = vld [vmem:[%s5452_s1 + $0x10] sm:$0xff]  }
   0x3   :  { %3380 = vmatpush3.bf16.msra.mxu0 %v3972_v1  ;;  %3963 = vmatpush3.bf16.msra.mxu1 %v3972_v1  ;;  %v3977_v6 = vld [vmem:[%s5452_s1 + $0x58] sm:$0xff]   ;;  %v3979_v8 = vld [vmem:[%s5452_s1 + $0x60] sm:$0xff]   ;;  %v3981_v10 = vld [vmem:[%s5452_s1 + $0x68] sm:$0xff]  }
   0x4   :  { %3381 = vmatprep.subr.bf16.mxu0 %v3973_v2  ;;  %3956 = vmatprep.subr.bf16.mxu1 %v3973_v2  ;;  %v3978_v7 = vld [vmem:[%s5452_s1 + $0x18] sm:$0xff]   ;;  %v3980_v9 = vld [vmem:[%s5452_s1 + $0x20] sm:$0xff]   ;;  %v3982_v13 = vld [vmem:[%s5452_s1 + $0x28] sm:$0xff]  }
   0x5   :  { %v3989_v11 = vld [vmem:[%s5453_s0 + $0x4] ss:$72 sps:$4 sm:$0xff]   ;;  %v3983_v14 = vld [vmem:[%s5452_s1 + $0x70] sm:$0xff]   ;;  %v3985_v16 = vld [vmem:[%s5452_s1 + $0x78] sm:$0xff]  }
   0x6   :  { %v3992_v12 = vld [vmem:[%s5453_s0 + $0x244] ss:$72 sps:$4 sm:$0xff]   ;;  %2070 = vmatprep.mubr.bf16.mxu0 %v3989_v11  ;;  %v3984_v15 = vld [vmem:[%s5452_s1 + $0x30] sm:$0xff]   ;;  %v3986_v17 = vld [vmem:[%s5452_s1 + $0x38] sm:$0xff]  }
   0x7   :  { %3382 = vmatpush3.bf16.msra.mxu0 %v3974_v3  ;;  %3964 = vmatpush3.bf16.msra.mxu1 %v3974_v3  ;;  %v3987_v18 = vld [vmem:[%s5453_s0] ss:$72 sps:$4 sm:$0xff]   ;;  %v4001_v26 = vld [vmem:[%s5453_s0 + $0x94] ss:$72 sps:$4 sm:$0xff]   ;;  %v4005_v31 = vld [vmem:[%s5453_s0 + $0x90] ss:$72 sps:$4 sm:$0xff]  }
   0x8   :  { %3383 = vmatprep.subr.bf16.mxu0 %v3975_v4  ;;  %3957 = vmatprep.subr.bf16.mxu1 %v3975_v4  ;;  %v3990_v19 = vld [vmem:[%s5453_s0 + $0x240] ss:$72 sps:$4 sm:$0xff]   ;;  %v4003_v28 = vld [vmem:[%s5453_s0 + $0x2d4] ss:$72 sps:$4 sm:$0xff]   ;;  %v4006_v33 = vld [vmem:[%s5453_s0 + $0x2d0] ss:$72 sps:$4 sm:$0xff]  }
   0x9   :  { %2102 = vmatprep.mubr.bf16.mxu1 %v3992_v12  ;;  %v3993_v20 = vld [vmem:[%s5452_s1 + $0xc0] sm:$0xff]   ;;  %v3997_v24 = vld [vmem:[%s5452_s1 + $0xc8] sm:$0xff]   ;;  %v4007_v30 = vld [vmem:[%s5452_s1 + $0xd0] sm:$0xff]  }
   0xa   :  { %v3994_v21 = vld [vmem:[%s5452_s1 + $0x140] sm:$0xff]   ;;  %v3998_v25 = vld [vmem:[%s5452_s1 + $0x148] sm:$0xff]   ;;  %v4008_v32 = vld [vmem:[%s5452_s1 + $0x150] sm:$0xff]  }
   0xb   :  { %3384 = vmatpush3.bf16.msra.mxu0 %v3976_v5  ;;  %3965 = vmatpush3.bf16.msra.mxu1 %v3976_v5  ;;  %v3995_v22 = vld [vmem:[%s5452_s1 + $0x80] sm:$0xff]   ;;  %v3999_v27 = vld [vmem:[%s5452_s1 + $0x88] sm:$0xff]   ;;  %v4009_v34 = vld [vmem:[%s5452_s1 + $0x90] sm:$0xff]  }
   0xc   :  { %3385 = vmatprep.subr.bf16.mxu0 %v3977_v6  ;;  %3958 = vmatprep.subr.bf16.mxu1 %v3977_v6  ;;  %v3996_v23 = vld [vmem:[%s5452_s1 + $0x100] sm:$0xff]   ;;  %v4000_v29 = vld [vmem:[%s5452_s1 + $0x108] sm:$0xff]   ;;  %v4010_v35 = vld [vmem:[%s5452_s1 + $0x110] sm:$0xff]  }
   0xd   :  { %v4011_v36 = vld [vmem:[%s5452_s1 + $0xd8] sm:$0xff]   ;;  %v4015_v38 = vld [vmem:[%s5453_s0 + $0x124] ss:$72 sps:$4 sm:$0xff]   ;;  %v4019_v43 = vld [vmem:[%s5453_s0 + $0x120] ss:$72 sps:$4 sm:$0xff]  }
   0xe   :  { %v4012_v37 = vld [vmem:[%s5452_s1 + $0x158] sm:$0xff]   ;;  %v4017_v40 = vld [vmem:[%s5453_s0 + $0x364] ss:$72 sps:$4 sm:$0xff]   ;;  %v4020_v44 = vld [vmem:[%s5453_s0 + $0x360] ss:$72 sps:$4 sm:$0xff]  }
   0xf   :  { %3386 = vmatpush3.bf16.msra.mxu0 %v3978_v7  ;;  %3966 = vmatpush3.bf16.msra.mxu1 %v3978_v7  ;;  %v4013_v39 = vld [vmem:[%s5452_s1 + $0x98] sm:$0xff]   ;;  %v4021_v42 = vld [vmem:[%s5452_s1 + $0xe0] sm:$0xff]   ;;  %v4025_v48 = vld [vmem:[%s5452_s1 + $0xe8] sm:$0xff]  }
  0x10   :  { %3387 = vmatprep.subr.bf16.mxu0 %v3979_v8  ;;  %3959 = vmatprep.subr.bf16.mxu1 %v3979_v8  ;;  %v4014_v41 = vld [vmem:[%s5452_s1 + $0x118] sm:$0xff]   ;;  %v4022_v45 = vld [vmem:[%s5452_s1 + $0x160] sm:$0xff]   ;;  %v4026_v49 = vld [vmem:[%s5452_s1 + $0x168] sm:$0xff]  }
  0x11   :  { %v4023_v46 = vld [vmem:[%s5452_s1 + $0xa0] sm:$0xff]   ;;  %v4029_v50 = vld [vmem:[%s5453_s0 + $0x1b4] ss:$72 sps:$4 sm:$0xff]   ;;  %v4027_v52 = vld [vmem:[%s5452_s1 + $0xa8] sm:$0xff]  }
  0x12   :  { %v4024_v47 = vld [vmem:[%s5452_s1 + $0x120] sm:$0xff]   ;;  %v4031_v51 = vld [vmem:[%s5453_s0 + $0x3f4] ss:$72 sps:$4 sm:$0xff]   ;;  %v4028_v53 = vld [vmem:[%s5452_s1 + $0x128] sm:$0xff]  }
  0x13   :  { %3388 = vmatpush3.bf16.msra.mxu0 %v3980_v9  ;;  %3967 = vmatpush3.bf16.msra.mxu1 %v3980_v9  ;;  %v4035_v54 = vld [vmem:[%s5452_s1 + $0xf0] sm:$0xff]   ;;  %v4039_v60 = vld [vmem:[%s5452_s1 + $0xf8] sm:$0xff]   ;;  %v4049_v4 = vld [vmem:[%s5452_s1 + $0x1c0] sm:$0xff]  }
  0x14   :  { %3389 = vmatprep.subr.bf16.mxu0 %v3981_v10  ;;  %3960 = vmatprep.subr.bf16.mxu1 %v3981_v10  ;;  %v4033_v55 = vld [vmem:[%s5453_s0 + $0x1b0] ss:$72 sps:$4 sm:$0xff]   ;;  %v4045_v0 = vld [vmem:[%s5453_s0 + $0xc] ss:$72 sps:$4 sm:$0xff]   ;;  %v4050_v5 = vld [vmem:[%s5452_s1 + $0x180] sm:$0xff]  }
  0x15   :  { %v4034_v56 = vld [vmem:[%s5453_s0 + $0x3f0] ss:$72 sps:$4 sm:$0xff]   ;;  %v4048_v3 = vld [vmem:[%s5453_s0 + $0x14] ss:$72 sps:$4 sm:$0xff]   ;;  %v4051_v6 = vld [vmem:[%s5452_s1 + $0x240] sm:$0xff]  }
  0x16   :  { %v4036_v57 = vld [vmem:[%s5452_s1 + $0x170] sm:$0xff]   ;;  %v4040_v61 = vld [vmem:[%s5452_s1 + $0x178] sm:$0xff]   ;;  %v4052_v7 = vld [vmem:[%s5452_s1 + $0x200] sm:$0xff]  }
  0x17   :  { %3390 = vmatpush3.bf16.msra.mxu0 %v3982_v13  ;;  %3968 = vmatpush3.bf16.msra.mxu1 %v3982_v13  ;;  %v4037_v58 = vld [vmem:[%s5452_s1 + $0xb0] sm:$0xff]   ;;  %v4041_v62 = vld [vmem:[%s5452_s1 + $0xb8] sm:$0xff]   ;;  %v4055_v9 = vld [vmem:[%s5453_s0 + $0xa4] ss:$72 sps:$4 sm:$0xff]  }
  0x18   :  { %3391 = vmatprep.subr.bf16.mxu0 %v3983_v14  ;;  %3961 = vmatprep.subr.bf16.mxu1 %v3983_v14  ;;  %v4038_v59 = vld [vmem:[%s5452_s1 + $0x130] sm:$0xff]   ;;  %v4042_v63 = vld [vmem:[%s5452_s1 + $0x138] sm:$0xff]   ;;  %v4058_v11 = vld [vmem:[%s5453_s0 + $0xa0] ss:$72 sps:$4 sm:$0xff]  }
  0x19   :  { %v4043_v1 = vld [vmem:[%s5453_s0 + $0x8] ss:$72 sps:$4 sm:$0xff]   ;;  %v4053_v8 = vld [vmem:[%s5453_s0 + $0x9c] ss:$72 sps:$4 sm:$0xff]   ;;  %v4057_v10 = vld [vmem:[%s5453_s0 + $0x98] ss:$72 sps:$4 sm:$0xff]  }
  0x1a   :  { %v4046_v2 = vld [vmem:[%s5453_s0 + $0x10] ss:$72 sps:$4 sm:$0xff]   ;;  %v4059_v12 = vld [vmem:[%s5452_s1 + $0x1c8] sm:$0xff]  }
  0x1b   :  { %3392 = vmatpush3.bf16.msra.mxu0 %v3984_v15  ;;  %3969 = vmatpush3.bf16.msra.mxu1 %v3984_v15  ;;  %v4060_v13 = vld [vmem:[%s5452_s1 + $0x188] sm:$0xff]  }
  0x1c   :  { %3393 = vmatprep.subr.bf16.mxu0 %v3985_v16  ;;  %3962 = vmatprep.subr.bf16.mxu1 %v3985_v16  ;;  %v4061_v14 = vld [vmem:[%s5452_s1 + $0x248] sm:$0xff]  }
  0x1d   :  { %v4062_v15 = vld [vmem:[%s5452_s1 + $0x208] sm:$0xff]  }
  0x1e   :  { %v4063_v16 = vld [vmem:[%s5453_s0 + $0x12c] ss:$72 sps:$4 sm:$0xff]  }
  0x1f   :  { %3394 = vmatpush3.bf16.msra.mxu0 %v3986_v17  ;;  %3970 = vmatpush3.bf16.msra.mxu1 %v3986_v17  ;;  %v4065_v17 = vld [vmem:[%s5453_s0 + $0x134] ss:$72 sps:$4 sm:$0xff]  }
  0x20   :  { %3443 = vmatprep.subr.bf16.mxu1 %v3993_v20  ;;  %3507 = vmatprep.subr.bf16.mxu0 %v3994_v21  ;;  %v4068_v20 = vld [vmem:[%s5453_s0 + $0x130] ss:$72 sps:$4 sm:$0xff]  }
  0x21   :  { %v4070_v21 = vld [vmem:[%s5452_s1 + $0x190] sm:$0xff]  }
  0x22   :  { %2071 = vmatmul.mubr.bf16.vlgmr.msra.gmra.mrb[0].mxu0 %v3987_v18  ;;  %2103 = vmatmul.mubr.bf16.vlgmr.msra.gmra.mrb[0].mxu1 %v3990_v19  ;;  %v4069_v18 = vld [vmem:[%s5452_s1 + $0x1d0] sm:$0xff]  }
  0x23   :  { %3444 = vmatpush3.bf16.msra.mxu1 %v3995_v22  ;;  %3508 = vmatpush3.bf16.msra.mxu0 %v3996_v23  ;;  %v4067_v19 = vld [vmem:[%s5453_s0 + $0x128] ss:$72 sps:$4 sm:$0xff]  }
  0x24   :  { %3445 = vmatprep.subr.bf16.mxu1 %v3997_v24  ;;  %3509 = vmatprep.subr.bf16.mxu0 %v3998_v25  ;;  %v4071_v22 = vld [vmem:[%s5452_s1 + $0x250] sm:$0xff]   ;;  %v4073_v24 = vld [vmem:[%s5453_s0 + $0x1bc] ss:$72 sps:$4 sm:$0xff]  }
  0x25   :  { %2078 = vmatprep.mubr.bf16.mxu0 %v4001_v26  ;;  %2110 = vmatprep.mubr.bf16.mxu1 %v4003_v28  ;;  %v4072_v23 = vld [vmem:[%s5452_s1 + $0x210] sm:$0xff]   ;;  %v4075_v25 = vld [vmem:[%s5453_s0 + $0x1c4] ss:$72 sps:$4 sm:$0xff]   ;;  %v4079_v26 = vld [vmem:[%s5452_s1 + $0x1d8] sm:$0xff]  }
  0x26   :  { %v4077_v28 = vld [vmem:[%s5453_s0 + $0x1b8] ss:$72 sps:$4 sm:$0xff]  }
  0x27   :  { %3446 = vmatpush3.bf16.msra.mxu1 %v3999_v27  ;;  %3510 = vmatpush3.bf16.msra.mxu0 %v4000_v29  ;;  %v4080_v27 = vld [vmem:[%s5452_s1 + $0x198] sm:$0xff]  }
  0x28   :  { %3447 = vmatprep.subr.bf16.mxu1 %v4007_v30  ;;  %3511 = vmatprep.subr.bf16.mxu0 %v4008_v32  ;;  %v4081_v29 = vld [vmem:[%s5452_s1 + $0x258] sm:$0xff]   ;;  %v4083_v32 = vld [vmem:[%s5453_s0 + $0x24c] ss:$72 sps:$4 sm:$0xff]  }
  0x29   :  { %v4082_v30 = vld [vmem:[%s5452_s1 + $0x218] sm:$0xff]  }
  0x2a   :  { %2079 = vmatmul.mubr.bf16.gmra.mrb[4].mxu0 %v4005_v31  ;;  %2111 = vmatmul.mubr.bf16.gmra.mrb[4].mxu1 %v4006_v33  ;;  %v4078_v31 = vld [vmem:[%s5453_s0 + $0x1c0] ss:$72 sps:$4 sm:$0xff]   ;;  %v4085_v33 = vld [vmem:[%s5453_s0 + $0x254] ss:$72 sps:$4 sm:$0xff]  }
  0x2b   :  { %3448 = vmatpush3.bf16.msra.mxu1 %v4009_v34  ;;  %3512 = vmatpush3.bf16.msra.mxu0 %v4010_v35  ;;  %v4089_v34 = vld [vmem:[%s5452_s1 + $0x1e0] sm:$0xff]  }
  0x2c   :  { %3449 = vmatprep.subr.bf16.mxu1 %v4011_v36  ;;  %3513 = vmatprep.subr.bf16.mxu0 %v4012_v37  ;;  %v4090_v35 = vld [vmem:[%s5452_s1 + $0x1a0] sm:$0xff]  }
  0x2d   :  { %2086 = vmatprep.mubr.bf16.mxu0 %v4015_v38  ;;  %2118 = vmatprep.mubr.bf16.mxu1 %v4017_v40  ;;  %v4091_v36 = vld [vmem:[%s5452_s1 + $0x260] sm:$0xff]   ;;  %v4087_v38 = vld [vmem:[%s5453_s0 + $0x248] ss:$72 sps:$4 sm:$0xff]  }
  0x2e   :  { %v4092_v37 = vld [vmem:[%s5452_s1 + $0x220] sm:$0xff]  }
  0x2f   :  { %3450 = vmatpush3.bf16.msra.mxu1 %v4013_v39  ;;  %3514 = vmatpush3.bf16.msra.mxu0 %v4014_v41  ;;  %v4088_v39 = vld [vmem:[%s5453_s0 + $0x250] ss:$72 sps:$4 sm:$0xff]   ;;  %v4093_v40 = vld [vmem:[%s5453_s0 + $0x2dc] ss:$72 sps:$4 sm:$0xff]  }
  0x30   :  { %3451 = vmatprep.subr.bf16.mxu1 %v4021_v42  ;;  %3515 = vmatprep.subr.bf16.mxu0 %v4022_v45  ;;  %v4095_v41 = vld [vmem:[%s5453_s0 + $0x2e4] ss:$72 sps:$4 sm:$0xff]  }
  0x31   :  { %v4099_v42 = vld [vmem:[%s5452_s1 + $0x1e8] sm:$0xff]  }
  0x32   :  { %2087 = vmatmul.mubr.bf16.gmra.mrb[8].mxu0 %v4019_v43  ;;  %2119 = vmatmul.mubr.bf16.gmra.mrb[8].mxu1 %v4020_v44  ;;  %v4100_v43 = vld [vmem:[%s5452_s1 + $0x1a8] sm:$0xff]  }
  0x33   :  { %3452 = vmatpush3.bf16.msra.mxu1 %v4023_v46  ;;  %3516 = vmatpush3.bf16.msra.mxu0 %v4024_v47  ;;  %v4101_v44 = vld [vmem:[%s5452_s1 + $0x268] sm:$0xff]   ;;  %v4097_v46 = vld [vmem:[%s5453_s0 + $0x2d8] ss:$72 sps:$4 sm:$0xff]  }
  0x34   :  { %3453 = vmatprep.subr.bf16.mxu1 %v4025_v48  ;;  %3517 = vmatprep.subr.bf16.mxu0 %v4026_v49  ;;  %v4102_v45 = vld [vmem:[%s5452_s1 + $0x228] sm:$0xff]   ;;  %v4105_v49 = vld [vmem:[%s5453_s0 + $0x374] ss:$72 sps:$4 sm:$0xff]  }
  0x35   :  { %2094 = vmatprep.mubr.bf16.mxu0 %v4029_v50  ;;  %2126 = vmatprep.mubr.bf16.mxu1 %v4031_v51  ;;  %v4098_v47 = vld [vmem:[%s5453_s0 + $0x2e0] ss:$72 sps:$4 sm:$0xff]   ;;  %v4103_v48 = vld [vmem:[%s5453_s0 + $0x36c] ss:$72 sps:$4 sm:$0xff]  }
  0x36   :  { %v4109_v50 = vld [vmem:[%s5452_s1 + $0x1f0] sm:$0xff]  }
  0x37   :  { %3454 = vmatpush3.bf16.msra.mxu1 %v4027_v52  ;;  %3518 = vmatpush3.bf16.msra.mxu0 %v4028_v53  ;;  %v4110_v51 = vld [vmem:[%s5452_s1 + $0x1b0] sm:$0xff]  }
  0x38   :  { %3455 = vmatprep.subr.bf16.mxu1 %v4035_v54  ;;  %3519 = vmatprep.subr.bf16.mxu0 %v4036_v57  ;;  %v4111_v52 = vld [vmem:[%s5452_s1 + $0x270] sm:$0xff]   ;;  %v4113_v57 = vld [vmem:[%s5453_s0 + $0x3fc] ss:$72 sps:$4 sm:$0xff]  }
  0x39   :  { %v4112_v53 = vld [vmem:[%s5452_s1 + $0x230] sm:$0xff]  }
  0x3a   :  { %2095 = vmatmul.mubr.bf16.gmra.mrb[12].mxu0 %v4033_v55  ;;  %2127 = vmatmul.mubr.bf16.gmra.mrb[12].mxu1 %v4034_v56  ;;  %v4107_v54 = vld [vmem:[%s5453_s0 + $0x368] ss:$72 sps:$4 sm:$0xff]   ;;  %v4119_v56 = vld [vmem:[%s5452_s1 + $0x1f8] sm:$0xff]  }
  0x3b   :  { %3456 = vmatpush3.bf16.msra.mxu1 %v4037_v58  ;;  %3520 = vmatpush3.bf16.msra.mxu0 %v4038_v59  ;;  %v4108_v55 = vld [vmem:[%s5453_s0 + $0x370] ss:$72 sps:$4 sm:$0xff]   ;;  %v4115_v58 = vld [vmem:[%s5453_s0 + $0x404] ss:$72 sps:$4 sm:$0xff]  }
  0x3c   :  { %3457 = vmatprep.subr.bf16.mxu1 %v4039_v60  ;;  %3521 = vmatprep.subr.bf16.mxu0 %v4040_v61  ;;  %v4120_v59 = vld [vmem:[%s5452_s1 + $0x1b8] sm:$0xff]  }
  0x3d   :  { %2167 = vmatprep.mubr.bf16.mxu1 %v4045_v0  ;;  %2264 = vmatprep.mubr.bf16.mxu0 %v4048_v3  ;;  %v4121_v60 = vld [vmem:[%s5452_s1 + $0x278] sm:$0xff]   ;;  %v4118_v0 = vld [vmem:[%s5453_s0 + $0x400] ss:$72 sps:$4 sm:$0xff]   ;;  %v4128_v3 = vld [vmem:[%s5453_s0 + $0x24] ss:$72 sps:$4 sm:$0xff]  }
  0x3e   :  { %v4122_v61 = vld [vmem:[%s5452_s1 + $0x238] sm:$0xff]  }
  0x3f   :  { %3458 = vmatpush3.bf16.msra.mxu1 %v4041_v62  ;;  %3522 = vmatpush3.bf16.msra.mxu0 %v4042_v63  ;;  %v4129_v62 = vld [vmem:[%s5452_s1 + $0x2c0] sm:$0xff]  }
  0x40   :  { %3571 = vmatprep.subr.bf16.mxu1 %v4049_v4  ;;  %3635 = vmatprep.subr.bf16.mxu0 %v4051_v6  ;;  %v4117_v63 = vld [vmem:[%s5453_s0 + $0x3f8] ss:$72 sps:$4 sm:$0xff]  }
  0x41   :  { %v4123_v4 = vld [vmem:[%s5453_s0 + $0x18] ss:$72 sps:$4 sm:$0xff]  }
  0x42   :  { %2168 = vmatmul.mubr.bf16.vlgmr.msra.gmra.mrb[16].mxu1 %v4043_v1  ;;  %2265 = vmatmul.mubr.bf16.vlgmr.msra.gmra.mrb[16].mxu0 %v4046_v2  ;;  %v4131_v1 = vld [vmem:[%s5452_s1 + $0x340] sm:$0xff]  }
  0x43   :  { %3572 = vmatpush3.bf16.msra.mxu1 %v4050_v5  ;;  %3636 = vmatpush3.bf16.msra.mxu0 %v4052_v7  ;;  %v4125_v2 = vld [vmem:[%s5453_s0 + $0x1c] ss:$72 sps:$4 sm:$0xff]   ;;  %v4126_v5 = vld [vmem:[%s5453_s0 + $0x20] ss:$72 sps:$4 sm:$0xff]  }
  0x44   :  { %2175 = vmatprep.mubr.bf16.mxu1 %v4053_v8  ;;  %2272 = vmatprep.mubr.bf16.mxu0 %v4055_v9  ;;  %v4130_v6 = vld [vmem:[%s5452_s1 + $0x280] sm:$0xff]   ;;  %v4133_v8 = vld [vmem:[%s5453_s0 + $0xac] ss:$72 sps:$4 sm:$0xff]  }
  0x45   :  { %3573 = vmatprep.subr.bf16.mxu1 %v4059_v12  ;;  %3637 = vmatprep.subr.bf16.mxu0 %v4061_v14  ;;  %v4132_v7 = vld [vmem:[%s5452_s1 + $0x300] sm:$0xff]   ;;  %v4135_v9 = vld [vmem:[%s5453_s0 + $0xb4] ss:$72 sps:$4 sm:$0xff]   ;;  %v4141_v12 = vld [vmem:[%s5452_s1 + $0x348] sm:$0xff]  }
  0x46   :  { %v4149_v14 = vld [vmem:[%s5452_s1 + $0x2d0] sm:$0xff]  }
  0x47   :  { %3574 = vmatpush3.bf16.msra.mxu1 %v4060_v13  ;;  %3638 = vmatpush3.bf16.msra.mxu0 %v4062_v15  ;;  %v4142_v13 = vld [vmem:[%s5452_s1 + $0x308] sm:$0xff]  }
  0x48   :  { %3575 = vmatprep.subr.bf16.mxu1 %v4069_v18  ;;  %3639 = vmatprep.subr.bf16.mxu0 %v4071_v22  ;;  %v4137_v15 = vld [vmem:[%s5453_s0 + $0xa8] ss:$72 sps:$4 sm:$0xff]   ;;  %v4143_v18 = vld [vmem:[%s5453_s0 + $0x13c] ss:$72 sps:$4 sm:$0xff]  }
  0x49   :  { %v4159_v22 = vld [vmem:[%s5452_s1 + $0x2d8] sm:$0xff]  }
  0x4a   :  { %2176 = vmatmul.mubr.bf16.gmra.mrb[20].mxu1 %v4057_v10  ;;  %2273 = vmatmul.mubr.bf16.gmra.mrb[20].mxu0 %v4058_v11  ;;  %v4139_v10 = vld [vmem:[%s5452_s1 + $0x2c8] sm:$0xff]  }
  0x4b   :  { %2183 = vmatprep.mubr.bf16.mxu1 %v4063_v16  ;;  %2280 = vmatprep.mubr.bf16.mxu0 %v4065_v17  ;;  %v4140_v11 = vld [vmem:[%s5452_s1 + $0x288] sm:$0xff]   ;;  %v4138_v16 = vld [vmem:[%s5453_s0 + $0xb0] ss:$72 sps:$4 sm:$0xff]  }
  0x4c   :  { %3576 = vmatpush3.bf16.msra.mxu1 %v4070_v21  ;;  %3640 = vmatpush3.bf16.msra.mxu0 %v4072_v23  ;;  %v4151_v17 = vld [vmem:[%s5452_s1 + $0x350] sm:$0xff]   ;;  %v4161_v23 = vld [vmem:[%s5452_s1 + $0x358] sm:$0xff]  }
  0x4d   :  { %3577 = vmatprep.subr.bf16.mxu1 %v4079_v26  ;;  %3641 = vmatprep.subr.bf16.mxu0 %v4081_v29  ;;  %v4152_v21 = vld [vmem:[%s5452_s1 + $0x310] sm:$0xff]   ;;  %v4160_v26 = vld [vmem:[%s5452_s1 + $0x298] sm:$0xff]  }
  0x4e   :  { %v4155_v29 = vld [vmem:[%s5453_s0 + $0x1d4] ss:$72 sps:$4 sm:$0xff]  }
  0x50   :  { %3578 = vmatpush3.bf16.msra.mxu1 %v4080_v27  ;;  %3642 = vmatpush3.bf16.msra.mxu0 %v4082_v30  ;;  %v4162_v27 = vld [vmem:[%s5452_s1 + $0x318] sm:$0xff]   ;;  %v4169_v30 = vld [vmem:[%s5452_s1 + $0x2e0] sm:$0xff]  }
  0x51   :  { %3579 = vmatprep.subr.bf16.mxu1 %v4089_v34  ;;  %3643 = vmatprep.subr.bf16.mxu0 %v4091_v36  ;;  %v4157_v34 = vld [vmem:[%s5453_s0 + $0x1c8] ss:$72 sps:$4 sm:$0xff]  }
  0x52   :  { %2184 = vmatmul.mubr.bf16.gmra.mrb[24].mxu1 %v4067_v19  ;;  %2281 = vmatmul.mubr.bf16.gmra.mrb[24].mxu0 %v4068_v20  ;;  %v4145_v19 = vld [vmem:[%s5453_s0 + $0x144] ss:$72 sps:$4 sm:$0xff]   ;;  %v4150_v20 = vld [vmem:[%s5452_s1 + $0x290] sm:$0xff]  }
  0x53   :  { %2191 = vmatprep.mubr.bf16.mxu1 %v4073_v24  ;;  %2288 = vmatprep.mubr.bf16.mxu0 %v4075_v25  ;;  %v4147_v24 = vld [vmem:[%s5453_s0 + $0x138] ss:$72 sps:$4 sm:$0xff]   ;;  %v4179_v36 = vld [vmem:[%s5452_s1 + $0x2e8] sm:$0xff]  }
  0x54   :  { %3580 = vmatpush3.bf16.msra.mxu1 %v4090_v35  ;;  %3644 = vmatpush3.bf16.msra.mxu0 %v4092_v37  ;;  %v4148_v25 = vld [vmem:[%s5453_s0 + $0x140] ss:$72 sps:$4 sm:$0xff]   ;;  %v4158_v35 = vld [vmem:[%s5453_s0 + $0x1d0] ss:$72 sps:$4 sm:$0xff]   ;;  %v4163_v37 = vld [vmem:[%s5453_s0 + $0x25c] ss:$72 sps:$4 sm:$0xff]  }
  0x55   :  { %3581 = vmatprep.subr.bf16.mxu1 %v4099_v42  ;;  %3645 = vmatprep.subr.bf16.mxu0 %v4101_v44  ;;  %v4189_v42 = vld [vmem:[%s5452_s1 + $0x2f0] sm:$0xff]   ;;  %v4168_v44 = vld [vmem:[%s5453_s0 + $0x260] ss:$72 sps:$4 sm:$0xff]  }
  0x58   :  { %3582 = vmatpush3.bf16.msra.mxu1 %v4100_v43  ;;  %3646 = vmatpush3.bf16.msra.mxu0 %v4102_v45  ;;  %v4167_v43 = vld [vmem:[%s5453_s0 + $0x258] ss:$72 sps:$4 sm:$0xff]   ;;  %v4190_v45 = vld [vmem:[%s5452_s1 + $0x2b0] sm:$0xff]  }
  0x59   :  { %3583 = vmatprep.subr.bf16.mxu1 %v4109_v50  ;;  %3647 = vmatprep.subr.bf16.mxu0 %v4111_v52  ;;  %v4199_v50 = vld [vmem:[%s5452_s1 + $0x2f8] sm:$0xff]  }
  0x5a   :  { %2192 = vmatmul.mubr.bf16.gmra.mrb[28].mxu1 %v4077_v28  ;;  %2289 = vmatmul.mubr.bf16.gmra.mrb[28].mxu0 %v4078_v31  ;;  %v4153_v28 = vld [vmem:[%s5453_s0 + $0x1cc] ss:$72 sps:$4 sm:$0xff]   ;;  %v4170_v31 = vld [vmem:[%s5452_s1 + $0x2a0] sm:$0xff]   ;;  %v4201_v52 = vld [vmem:[%s5452_s1 + $0x378] sm:$0xff]  }
  0x5b   :  { %2199 = vmatprep.mubr.bf16.mxu1 %v4083_v32  ;;  %2296 = vmatprep.mubr.bf16.mxu0 %v4085_v33  ;;  %v4171_v32 = vld [vmem:[%s5452_s1 + $0x360] sm:$0xff]  }
  0x5c   :  { %3584 = vmatpush3.bf16.msra.mxu1 %v4110_v51  ;;  %3648 = vmatpush3.bf16.msra.mxu0 %v4112_v53  ;;  %v4172_v33 = vld [vmem:[%s5452_s1 + $0x320] sm:$0xff]   ;;  %v4200_v51 = vld [vmem:[%s5452_s1 + $0x2b8] sm:$0xff]  }
  0x5d   :  { %3585 = vmatprep.subr.bf16.mxu1 %v4119_v56  ;;  %3649 = vmatprep.subr.bf16.mxu0 %v4121_v60  ;;  %v4202_v53 = vld [vmem:[%s5452_s1 + $0x338] sm:$0xff]  }
  0x5e   :  { %v4183_v56 = vld [vmem:[%s5453_s0 + $0x37c] ss:$72 sps:$4 sm:$0xff]   ;;  %v4187_v60 = vld [vmem:[%s5453_s0 + $0x378] ss:$72 sps:$4 sm:$0xff]  }
  0x60   :  { %3586 = vmatpush3.bf16.msra.mxu1 %v4120_v59  ;;  %3650 = vmatpush3.bf16.msra.mxu0 %v4122_v61  ;;  %v4211_v59 = vld [vmem:[%s5452_s1 + $0x440] sm:$0xff]  }
  0x61   :  { %3699 = vmatprep.subr.bf16.mxu1 %v4129_v62  ;;  %3763 = vmatprep.subr.bf16.mxu0 %v4131_v1  ;;  %v4188_v61 = vld [vmem:[%s5453_s0 + $0x380] ss:$72 sps:$4 sm:$0xff]   ;;  %v4193_v62 = vld [vmem:[%s5453_s0 + $0x40c] ss:$72 sps:$4 sm:$0xff]   ;;  %v4198_v1 = vld [vmem:[%s5453_s0 + $0x410] ss:$72 sps:$4 sm:$0xff]  }
  0x62   :  { %2200 = vmatmul.mubr.bf16.gmra.mrb[32].mxu1 %v4087_v38  ;;  %2297 = vmatmul.mubr.bf16.gmra.mrb[32].mxu0 %v4088_v39  ;;  %v4165_v38 = vld [vmem:[%s5453_s0 + $0x264] ss:$72 sps:$4 sm:$0xff]  }
  0x63   :  { %2207 = vmatprep.mubr.bf16.mxu1 %v4093_v40  ;;  %2304 = vmatprep.mubr.bf16.mxu0 %v4095_v41  ;;  %v4180_v39 = vld [vmem:[%s5452_s1 + $0x2a8] sm:$0xff]  }
  0x64   :  { %v4181_v40 = vld [vmem:[%s5452_s1 + $0x368] sm:$0xff]  }
  0x65   :  { %v4182_v41 = vld [vmem:[%s5452_s1 + $0x328] sm:$0xff]  }
  0x6a   :  { %2208 = vmatmul.mubr.bf16.gmra.mrb[36].mxu1 %v4097_v46  ;;  %2305 = vmatmul.mubr.bf16.gmra.mrb[36].mxu0 %v4098_v47  ;;  %v4173_v46 = vld [vmem:[%s5453_s0 + $0x2ec] ss:$72 sps:$4 sm:$0xff]  }
  0x6b   :  { %2215 = vmatprep.mubr.bf16.mxu1 %v4103_v48  ;;  %2312 = vmatprep.mubr.bf16.mxu0 %v4105_v49  ;;  %v4191_v47 = vld [vmem:[%s5452_s1 + $0x370] sm:$0xff]  }
  0x6c   :  { %v4192_v48 = vld [vmem:[%s5452_s1 + $0x330] sm:$0xff]  }
  0x6d   :  { %v4175_v49 = vld [vmem:[%s5453_s0 + $0x2f4] ss:$72 sps:$4 sm:$0xff]  }
  0x72   :  { %2216 = vmatmul.mubr.bf16.gmra.mrb[40].mxu1 %v4107_v54  ;;  %2313 = vmatmul.mubr.bf16.gmra.mrb[40].mxu0 %v4108_v55  ;;  %v4177_v54 = vld [vmem:[%s5453_s0 + $0x2e8] ss:$72 sps:$4 sm:$0xff]  }
  0x73   :  { %2223 = vmatprep.mubr.bf16.mxu1 %v4113_v57  ;;  %2320 = vmatprep.mubr.bf16.mxu0 %v4115_v58  ;;  %v4178_v55 = vld [vmem:[%s5453_s0 + $0x2f0] ss:$72 sps:$4 sm:$0xff]   ;;  %v4185_v57 = vld [vmem:[%s5453_s0 + $0x384] ss:$72 sps:$4 sm:$0xff]  }
  0x74   :  { %v4209_v58 = vld [vmem:[%s5452_s1 + $0x3c0] sm:$0xff]  }
  0x7a   :  { %2224 = vmatmul.mubr.bf16.gmra.mrb[44].mxu1 %v4117_v63  ;;  %2321 = vmatmul.mubr.bf16.gmra.mrb[44].mxu0 %v4118_v0  ;;  %v4195_v63 = vld [vmem:[%s5453_s0 + $0x414] ss:$72 sps:$4 sm:$0xff]   ;;  %v4197_v0 = vld [vmem:[%s5453_s0 + $0x408] ss:$72 sps:$4 sm:$0xff]  }
  0x7b   :  { %2361 = vmatprep.mubr.bf16.mxu1 %v4125_v2  ;;  %2458 = vmatprep.mubr.bf16.mxu0 %v4128_v3  ;;  %v4205_v2 = vld [vmem:[%s5453_s0 + $0x2c] ss:$72 sps:$4 sm:$0xff]  }
  0x7c   :  { %v4208_v3 = vld [vmem:[%s5453_s0 + $0x34] ss:$72 sps:$4 sm:$0xff]  }
  0x82   :  { %2362 = vmatmul.mubr.bf16.vlgmr.msra.gmra.mrb[48].mxu1 %v4123_v4  ;;  %2459 = vmatmul.mubr.bf16.vlgmr.msra.gmra.mrb[48].mxu0 %v4126_v5  ;;  %v4203_v4 = vld [vmem:[%s5453_s0 + $0x28] ss:$72 sps:$4 sm:$0xff]  }
  0x83   :  { %3700 = vmatpush3.bf16.msra.mxu1 %v4130_v6  ;;  %3764 = vmatpush3.bf16.msra.mxu0 %v4132_v7  ;;  %v4206_v5 = vld [vmem:[%s5453_s0 + $0x30] ss:$72 sps:$4 sm:$0xff]   ;;  %v4210_v6 = vld [vmem:[%s5452_s1 + $0x380] sm:$0xff]  }
  0x84   :  { %2369 = vmatprep.mubr.bf16.mxu1 %v4133_v8  ;;  %2466 = vmatprep.mubr.bf16.mxu0 %v4135_v9  ;;  %v4212_v7 = vld [vmem:[%s5452_s1 + $0x400] sm:$0xff]  }
  0x85   :  { %3701 = vmatprep.subr.bf16.mxu1 %v4139_v10  ;;  %3765 = vmatprep.subr.bf16.mxu0 %v4141_v12  ;;  %v4213_v8 = vld [vmem:[%s5453_s0 + $0xbc] ss:$72 sps:$4 sm:$0xff]   ;;  %v4219_v10 = vld [vmem:[%s5452_s1 + $0x3c8] sm:$0xff]  }
  0x86   :  { %v4215_v9 = vld [vmem:[%s5453_s0 + $0xc4] ss:$72 sps:$4 sm:$0xff]  }
  0x87   :  { %3702 = vmatpush3.bf16.msra.mxu1 %v4140_v11  ;;  %3766 = vmatpush3.bf16.msra.mxu0 %v4142_v13  ;;  %v4221_v11 = vld [vmem:[%s5452_s1 + $0x448] sm:$0xff]  }
  0x88   :  { %3703 = vmatprep.subr.bf16.mxu1 %v4149_v14  ;;  %3767 = vmatprep.subr.bf16.mxu0 %v4151_v17  ;;  %v4220_v12 = vld [vmem:[%s5452_s1 + $0x388] sm:$0xff]   ;;  %v4229_v14 = vld [vmem:[%s5452_s1 + $0x3d0] sm:$0xff]  }
  0x89   :  { %v4222_v13 = vld [vmem:[%s5452_s1 + $0x408] sm:$0xff]   ;;  %v4231_v17 = vld [vmem:[%s5452_s1 + $0x450] sm:$0xff]  }
  0x8a   :  { %2370 = vmatmul.mubr.bf16.gmra.mrb[52].mxu1 %v4137_v15  ;;  %2467 = vmatmul.mubr.bf16.gmra.mrb[52].mxu0 %v4138_v16  ;;  %v4217_v15 = vld [vmem:[%s5453_s0 + $0xb8] ss:$72 sps:$4 sm:$0xff]  }
  0x8b   :  { %2377 = vmatprep.mubr.bf16.mxu1 %v4143_v18  ;;  %2474 = vmatprep.mubr.bf16.mxu0 %v4145_v19  ;;  %v4218_v16 = vld [vmem:[%s5453_s0 + $0xc0] ss:$72 sps:$4 sm:$0xff]   ;;  %v4223_v18 = vld [vmem:[%s5453_s0 + $0x14c] ss:$72 sps:$4 sm:$0xff]  }
  0x8c   :  { %3704 = vmatpush3.bf16.msra.mxu1 %v4150_v20  ;;  %3768 = vmatpush3.bf16.msra.mxu0 %v4152_v21  ;;  %v4225_v19 = vld [vmem:[%s5453_s0 + $0x154] ss:$72 sps:$4 sm:$0xff]  }
  0x8d   :  { %3705 = vmatprep.subr.bf16.mxu1 %v4159_v22  ;;  %3769 = vmatprep.subr.bf16.mxu0 %v4161_v23  ;;  %v4230_v20 = vld [vmem:[%s5452_s1 + $0x390] sm:$0xff]   ;;  %v4239_v22 = vld [vmem:[%s5452_s1 + $0x3d8] sm:$0xff]  }
  0x8e   :  { %v4232_v21 = vld [vmem:[%s5452_s1 + $0x410] sm:$0xff]   ;;  %v4241_v23 = vld [vmem:[%s5452_s1 + $0x458] sm:$0xff]  }
  0x90   :  { %3706 = vmatpush3.bf16.msra.mxu1 %v4160_v26  ;;  %3770 = vmatpush3.bf16.msra.mxu0 %v4162_v27  ;;  %v4227_v26 = vld [vmem:[%s5453_s0 + $0x148] ss:$72 sps:$4 sm:$0xff]  }
  0x91   :  { %3707 = vmatprep.subr.bf16.mxu1 %v4169_v30  ;;  %3771 = vmatprep.subr.bf16.mxu0 %v4171_v32  ;;  %v4228_v27 = vld [vmem:[%s5453_s0 + $0x150] ss:$72 sps:$4 sm:$0xff]   ;;  %v4233_v30 = vld [vmem:[%s5453_s0 + $0x1dc] ss:$72 sps:$4 sm:$0xff]  }
  0x92   :  { %2378 = vmatmul.mubr.bf16.gmra.mrb[56].mxu1 %v4147_v24  ;;  %2475 = vmatmul.mubr.bf16.gmra.mrb[56].mxu0 %v4148_v25  ;;  %v4240_v24 = vld [vmem:[%s5452_s1 + $0x398] sm:$0xff]   ;;  %v4250_v32 = vld [vmem:[%s5452_s1 + $0x3a0] sm:$0xff]  }
  0x93   :  { %2385 = vmatprep.mubr.bf16.mxu1 %v4153_v28  ;;  %2482 = vmatprep.mubr.bf16.mxu0 %v4155_v29  ;;  %v4242_v25 = vld [vmem:[%s5452_s1 + $0x418] sm:$0xff]   ;;  %v4249_v28 = vld [vmem:[%s5452_s1 + $0x3e0] sm:$0xff]  }
  0x94   :  { %3708 = vmatpush3.bf16.msra.mxu1 %v4170_v31  ;;  %3772 = vmatpush3.bf16.msra.mxu0 %v4172_v33  ;;  %v4251_v29 = vld [vmem:[%s5452_s1 + $0x460] sm:$0xff]  }
  0x95   :  { %3709 = vmatprep.subr.bf16.mxu1 %v4179_v36  ;;  %3773 = vmatprep.subr.bf16.mxu0 %v4181_v40  ;;  %v4235_v31 = vld [vmem:[%s5453_s0 + $0x1e4] ss:$72 sps:$4 sm:$0xff]   ;;  %v4269_v40 = vld [vmem:[%s5452_s1 + $0x3f0] sm:$0xff]  }
  0x96   :  { %v4252_v33 = vld [vmem:[%s5452_s1 + $0x420] sm:$0xff]   ;;  %v4260_v36 = vld [vmem:[%s5452_s1 + $0x3a8] sm:$0xff]  }
  0x98   :  { %3710 = vmatpush3.bf16.msra.mxu1 %v4180_v39  ;;  %3774 = vmatpush3.bf16.msra.mxu0 %v4182_v41  ;;  %v4238_v39 = vld [vmem:[%s5453_s0 + $0x1e0] ss:$72 sps:$4 sm:$0xff]   ;;  %v4271_v41 = vld [vmem:[%s5452_s1 + $0x470] sm:$0xff]  }
  0x99   :  { %3711 = vmatprep.subr.bf16.mxu1 %v4189_v42  ;;  %3775 = vmatprep.subr.bf16.mxu0 %v4191_v47  ;;  %v4243_v42 = vld [vmem:[%s5453_s0 + $0x26c] ss:$72 sps:$4 sm:$0xff]   ;;  %v4281_v47 = vld [vmem:[%s5452_s1 + $0x478] sm:$0xff]  }
  0x9a   :  { %2386 = vmatmul.mubr.bf16.gmra.mrb[60].mxu1 %v4157_v34  ;;  %2483 = vmatmul.mubr.bf16.gmra.mrb[60].mxu0 %v4158_v35  ;;  %v4259_v34 = vld [vmem:[%s5452_s1 + $0x3e8] sm:$0xff]  }
  0x9b   :  { %2393 = vmatprep.mubr.bf16.mxu1 %v4163_v37  ;;  %2490 = vmatprep.mubr.bf16.mxu0 %v4165_v38  ;;  %v4261_v35 = vld [vmem:[%s5452_s1 + $0x468] sm:$0xff]   ;;  %v4237_v38 = vld [vmem:[%s5453_s0 + $0x1d8] ss:$72 sps:$4 sm:$0xff]  }
  0x9c   :  { %3712 = vmatpush3.bf16.msra.mxu1 %v4190_v45  ;;  %3776 = vmatpush3.bf16.msra.mxu0 %v4192_v48  ;;  %v4262_v37 = vld [vmem:[%s5452_s1 + $0x428] sm:$0xff]   ;;  %v4272_v45 = vld [vmem:[%s5452_s1 + $0x430] sm:$0xff]   ;;  %v4280_v48 = vld [vmem:[%s5452_s1 + $0x3b8] sm:$0xff]  }
  0x9d   :  { %3713 = vmatprep.subr.bf16.mxu1 %v4199_v50  ;;  %3777 = vmatprep.subr.bf16.mxu0 %v4201_v52  ;;  %v4247_v50 = vld [vmem:[%s5453_s0 + $0x268] ss:$72 sps:$4 sm:$0xff]   ;;  %v4253_v52 = vld [vmem:[%s5453_s0 + $0x2fc] ss:$72 sps:$4 sm:$0xff]  }
  0xa0   :  { %3714 = vmatpush3.bf16.msra.mxu1 %v4200_v51  ;;  %3778 = vmatpush3.bf16.msra.mxu0 %v4202_v53  ;;  %v4248_v51 = vld [vmem:[%s5453_s0 + $0x270] ss:$72 sps:$4 sm:$0xff]   ;;  %v4255_v53 = vld [vmem:[%s5453_s0 + $0x304] ss:$72 sps:$4 sm:$0xff]  }
  0xa1   :  { %3827 = vmatprep.subr.bf16.mxu1 %v4209_v58  ;;  %3891 = vmatprep.subr.bf16.mxu0 %v4211_v59  ;;  %v4267_v58 = vld [vmem:[%s5453_s0 + $0x388] ss:$72 sps:$4 sm:$0xff]  }
  0xa2   :  { %2394 = vmatmul.mubr.bf16.gmra.mrb[64].mxu1 %v4167_v43  ;;  %2491 = vmatmul.mubr.bf16.gmra.mrb[64].mxu0 %v4168_v44  ;;  %v4245_v43 = vld [vmem:[%s5453_s0 + $0x274] ss:$72 sps:$4 sm:$0xff]   ;;  %v4268_v59 = vld [vmem:[%s5453_s0 + $0x390] ss:$72 sps:$4 sm:$0xff]  }
  0xa3   :  { %2401 = vmatprep.mubr.bf16.mxu1 %v4173_v46  ;;  %2498 = vmatprep.mubr.bf16.mxu0 %v4175_v49  ;;  %v4270_v44 = vld [vmem:[%s5452_s1 + $0x3b0] sm:$0xff]   ;;  %v4279_v46 = vld [vmem:[%s5452_s1 + $0x3f8] sm:$0xff]  }
  0xa4   :  { %v4282_v49 = vld [vmem:[%s5452_s1 + $0x438] sm:$0xff]  }
  0xaa   :  { %2402 = vmatmul.mubr.bf16.gmra.mrb[68].mxu1 %v4177_v54  ;;  %2499 = vmatmul.mubr.bf16.gmra.mrb[68].mxu0 %v4178_v55  ;;  %v4257_v54 = vld [vmem:[%s5453_s0 + $0x2f8] ss:$72 sps:$4 sm:$0xff]  }
  0xab   :  { %2409 = vmatprep.mubr.bf16.mxu1 %v4183_v56  ;;  %2506 = vmatprep.mubr.bf16.mxu0 %v4185_v57  ;;  %v4258_v55 = vld [vmem:[%s5453_s0 + $0x300] ss:$72 sps:$4 sm:$0xff]   ;;  %v4263_v56 = vld [vmem:[%s5453_s0 + $0x38c] ss:$72 sps:$4 sm:$0xff]  }
  0xac   :  { %v4265_v57 = vld [vmem:[%s5453_s0 + $0x394] ss:$72 sps:$4 sm:$0xff]  }
  0xb2   :  { %2410 = vmatmul.mubr.bf16.gmra.mrb[72].mxu1 %v4187_v60  ;;  %2507 = vmatmul.mubr.bf16.gmra.mrb[72].mxu0 %v4188_v61  ;;  %v4273_v60 = vld [vmem:[%s5453_s0 + $0x41c] ss:$72 sps:$4 sm:$0xff]  }
  0xb3   :  { %2417 = vmatprep.mubr.bf16.mxu1 %v4193_v62  ;;  %2514 = vmatprep.mubr.bf16.mxu0 %v4195_v63  ;;  %v4275_v61 = vld [vmem:[%s5453_s0 + $0x424] ss:$72 sps:$4 sm:$0xff]  }
  0xba   :  { %2418 = vmatmul.mubr.bf16.gmra.mrb[76].mxu1 %v4197_v0  ;;  %2515 = vmatmul.mubr.bf16.gmra.mrb[76].mxu0 %v4198_v1 }
  0xbb   :  { %2555 = vmatprep.mubr.bf16.mxu1 %v4205_v2  ;;  %2652 = vmatprep.mubr.bf16.mxu0 %v4208_v3  ;;  %v4277_v2 = vld [vmem:[%s5453_s0 + $0x418] ss:$72 sps:$4 sm:$0xff]  }
  0xbc   :  { %v4278_v3 = vld [vmem:[%s5453_s0 + $0x420] ss:$72 sps:$4 sm:$0xff]  }
  0xc2   :  { %2556 = vmatmul.mubr.bf16.vlgmr.msra.gmra.mrb[80].mxu1 %v4203_v4  ;;  %2653 = vmatmul.mubr.bf16.vlgmr.msra.gmra.mrb[80].mxu0 %v4206_v5 }
  0xc3   :  { %3828 = vmatpush3.bf16.msra.mxu1 %v4210_v6  ;;  %3892 = vmatpush3.bf16.msra.mxu0 %v4212_v7 }
  0xc4   :  { %2563 = vmatprep.mubr.bf16.mxu1 %v4213_v8  ;;  %2660 = vmatprep.mubr.bf16.mxu0 %v4215_v9  ;;  %v4285_v8 = vld [vmem:[%s5453_s0 + $0x3c] ss:$72 sps:$4 sm:$0xff]  }
  0xc5   :  { %3829 = vmatprep.subr.bf16.mxu1 %v4219_v10  ;;  %3893 = vmatprep.subr.bf16.mxu0 %v4221_v11  ;;  %v4288_v9 = vld [vmem:[%s5453_s0 + $0x44] ss:$72 sps:$4 sm:$0xff]  }
  0xc7   :  { %3830 = vmatpush3.bf16.msra.mxu1 %v4220_v12  ;;  %3894 = vmatpush3.bf16.msra.mxu0 %v4222_v13 }
  0xc8   :  { %3831 = vmatprep.subr.bf16.mxu1 %v4229_v14  ;;  %3895 = vmatprep.subr.bf16.mxu0 %v4231_v17 }
  0xca   :  { %2564 = vmatmul.mubr.bf16.gmra.mrb[84].mxu1 %v4217_v15  ;;  %2661 = vmatmul.mubr.bf16.gmra.mrb[84].mxu0 %v4218_v16 }
  0xcb   :  { %2571 = vmatprep.mubr.bf16.mxu1 %v4223_v18  ;;  %2668 = vmatprep.mubr.bf16.mxu0 %v4225_v19  ;;  %v4283_v18 = vld [vmem:[%s5453_s0 + $0x38] ss:$72 sps:$4 sm:$0xff]  }
  0xcc   :  { %3832 = vmatpush3.bf16.msra.mxu1 %v4230_v20  ;;  %3896 = vmatpush3.bf16.msra.mxu0 %v4232_v21  ;;  %v4286_v19 = vld [vmem:[%s5453_s0 + $0x40] ss:$72 sps:$4 sm:$0xff]  }
  0xcd   :  { %3833 = vmatprep.subr.bf16.mxu1 %v4239_v22  ;;  %3897 = vmatprep.subr.bf16.mxu0 %v4241_v23 }
  0xd0   :  { %3834 = vmatpush3.bf16.msra.mxu1 %v4240_v24  ;;  %3898 = vmatpush3.bf16.msra.mxu0 %v4242_v25  ;;  %v4289_v24 = vld [vmem:[%s5453_s0 + $0xcc] ss:$72 sps:$4 sm:$0xff]  }
  0xd1   :  { %3835 = vmatprep.subr.bf16.mxu1 %v4249_v28  ;;  %3899 = vmatprep.subr.bf16.mxu0 %v4251_v29  ;;  %v4291_v25 = vld [vmem:[%s5453_s0 + $0xd4] ss:$72 sps:$4 sm:$0xff]  }
  0xd2   :  { %2572 = vmatmul.mubr.bf16.gmra.mrb[88].mxu1 %v4227_v26  ;;  %2669 = vmatmul.mubr.bf16.gmra.mrb[88].mxu0 %v4228_v27 }
  0xd3   :  { %2579 = vmatprep.mubr.bf16.mxu1 %v4233_v30  ;;  %2676 = vmatprep.mubr.bf16.mxu0 %v4235_v31 }
  0xd4   :  { %3836 = vmatpush3.bf16.msra.mxu1 %v4250_v32  ;;  %3900 = vmatpush3.bf16.msra.mxu0 %v4252_v33 }
  0xd5   :  { %3837 = vmatprep.subr.bf16.mxu1 %v4259_v34  ;;  %3901 = vmatprep.subr.bf16.mxu0 %v4261_v35  ;;  %v4293_v34 = vld [vmem:[%s5453_s0 + $0xc8] ss:$72 sps:$4 sm:$0xff]  }
  0xd6   :  { %v4294_v35 = vld [vmem:[%s5453_s0 + $0xd0] ss:$72 sps:$4 sm:$0xff]  }
  0xd8   :  { %3838 = vmatpush3.bf16.msra.mxu1 %v4260_v36  ;;  %3902 = vmatpush3.bf16.msra.mxu0 %v4262_v37 }
  0xd9   :  { %3839 = vmatprep.subr.bf16.mxu1 %v4269_v40  ;;  %3903 = vmatprep.subr.bf16.mxu0 %v4271_v41  ;;  %v4295_v40 = vld [vmem:[%s5453_s0 + $0x15c] ss:$72 sps:$4 sm:$0xff]  }
  0xda   :  { %2580 = vmatmul.mubr.bf16.gmra.mrb[92].mxu1 %v4237_v38  ;;  %2677 = vmatmul.mubr.bf16.gmra.mrb[92].mxu0 %v4238_v39  ;;  %v4297_v41 = vld [vmem:[%s5453_s0 + $0x164] ss:$72 sps:$4 sm:$0xff]  }
  0xdb   :  { %2587 = vmatprep.mubr.bf16.mxu1 %v4243_v42  ;;  %2684 = vmatprep.mubr.bf16.mxu0 %v4245_v43 }
  0xdc   :  { %3840 = vmatpush3.bf16.msra.mxu1 %v4270_v44  ;;  %3904 = vmatpush3.bf16.msra.mxu0 %v4272_v45 }
  0xdd   :  { %3841 = vmatprep.subr.bf16.mxu1 %v4279_v46  ;;  %3905 = vmatprep.subr.bf16.mxu0 %v4281_v47 }
  0xe0   :  { %3842 = vmatpush3.bf16.msra.mxu1 %v4280_v48  ;;  %3906 = vmatpush3.bf16.msra.mxu0 %v4282_v49 }
  0xe2   :  { %2588 = vmatmul.mubr.bf16.gmra.mrb[96].mxu1 %v4247_v50  ;;  %2685 = vmatmul.mubr.bf16.gmra.mrb[96].mxu0 %v4248_v51  ;;  %v4299_v50 = vld [vmem:[%s5453_s0 + $0x158] ss:$72 sps:$4 sm:$0xff]  }
  0xe3   :  { %2595 = vmatprep.mubr.bf16.mxu1 %v4253_v52  ;;  %2692 = vmatprep.mubr.bf16.mxu0 %v4255_v53  ;;  %v4300_v51 = vld [vmem:[%s5453_s0 + $0x160] ss:$72 sps:$4 sm:$0xff]  }
  0xea   :  { %2596 = vmatmul.mubr.bf16.gmra.mrb[100].mxu1 %v4257_v54  ;;  %2693 = vmatmul.mubr.bf16.gmra.mrb[100].mxu0 %v4258_v55 }
  0xeb   :  { %2603 = vmatprep.mubr.bf16.mxu1 %v4263_v56  ;;  %2700 = vmatprep.mubr.bf16.mxu0 %v4265_v57  ;;  %v4301_v56 = vld [vmem:[%s5453_s0 + $0x1ec] ss:$72 sps:$4 sm:$0xff]  }
  0xec   :  { %v4303_v57 = vld [vmem:[%s5453_s0 + $0x1f4] ss:$72 sps:$4 sm:$0xff]  }
  0xf2   :  { %2604 = vmatmul.mubr.bf16.gmra.mrb[104].mxu1 %v4267_v58  ;;  %2701 = vmatmul.mubr.bf16.gmra.mrb[104].mxu0 %v4268_v59 }
  0xf3   :  { %2611 = vmatprep.mubr.bf16.mxu1 %v4273_v60  ;;  %2708 = vmatprep.mubr.bf16.mxu0 %v4275_v61 }
  0xf5   :  { %v3395_v62 = vpop.f32.mrb[0].mxu0  ;;  %v3419_v63 = vpop.f32.mrb[0].mxu1 }
  0xf6   :  { %v3396_v0 = vpop.f32.mrb[1].mxu0  ;;  %v3420_v1 = vpop.f32.mrb[1].mxu1 }
  0xf7   :  { %v5119_v4 = vadd.f32 %v3396_v0, %v3395_v62  ;;  %v5121_v5 = vadd.f32 %v3420_v1, %v3419_v63  ;;  %v3398_v6 = vpop.f32.mrb[2].mxu0  ;;  %v3422_v7 = vpop.f32.mrb[2].mxu1  ;;  %v5196_v62 = vld [vmem:[%s5454_s2] ss:$0 sm:$0xff] }
  0xf8   :  { %v3399_v10 = vpop.f32.mrb[3].mxu0  ;;  %v3423_v11 = vpop.f32.mrb[3].mxu1 }
  0xf9   :  { %v5129_v12 = vadd.f32 %v3399_v10, %v3398_v6  ;;  %v5131_v13 = vadd.f32 %v3423_v11, %v3422_v7  ;;  %v4306_v6 = vld [vmem:[%s5453_s0 + $0x1f0] ss:$72 sps:$4 sm:$0xff]   ;;  %v2073_v7 = vadd.f32 %v5119_v4, %v5196_v62 }
  0xfa   :  { %2612 = vmatmul.mubr.bf16.gmra.mrb[108].mxu1 %v4277_v2  ;;  %2709 = vmatmul.mubr.bf16.gmra.mrb[108].mxu0 %v4278_v3  ;;  %v4305_v3 = vld [vmem:[%s5453_s0 + $0x1e8] ss:$72 sps:$4 sm:$0xff]  }
  0xfb   :  { %2749 = vmatprep.mubr.bf16.mxu1 %v4285_v8  ;;  %2846 = vmatprep.mubr.bf16.mxu0 %v4288_v9 }
  0xfd   :  { %v3401_v14 = vpop.f32.mrb[4].mxu0  ;;  %v3425_v15 = vpop.f32.mrb[4].mxu1 }
  0xfe   :  { %v3402_v16 = vpop.f32.mrb[5].mxu0  ;;  %v3426_v17 = vpop.f32.mrb[5].mxu1 }
  0xff   :  { %v5139_v20 = vadd.f32 %v3402_v16, %v3401_v14  ;;  %v5141_v21 = vadd.f32 %v3426_v17, %v3425_v15  ;;  %v3404_v22 = vpop.f32.mrb[6].mxu0  ;;  %v3428_v23 = vpop.f32.mrb[6].mxu1  ;;  %v4307_v14 = vld [vmem:[%s5453_s0 + $0x27c] ss:$72 sps:$4 sm:$0xff]  }
 0x100   :  { %v3405_v26 = vpop.f32.mrb[7].mxu0  ;;  %v3429_v27 = vpop.f32.mrb[7].mxu1  ;;  %v4309_v15 = vld [vmem:[%s5453_s0 + $0x284] ss:$72 sps:$4 sm:$0xff]  }
 0x101   :  { %v5149_v28 = vadd.f32 %v3405_v26, %v3404_v22  ;;  %v5151_v29 = vadd.f32 %v3429_v27, %v3428_v23 }
 0x102   :  { %2750 = vmatmul.mubr.bf16.vlgmr.msra.gmra.mrb[112].mxu1 %v4283_v18  ;;  %2847 = vmatmul.mubr.bf16.vlgmr.msra.gmra.mrb[112].mxu0 %v4286_v19  ;;  %v2076_v18 = vadd.f32 %v5129_v12, %v5196_v62  ;;  %v4311_v12 = vld [vmem:[%s5453_s0 + $0x278] ss:$72 sps:$4 sm:$0xff]  }
 0x103   :  { %2757 = vmatprep.mubr.bf16.mxu1 %v4289_v24  ;;  %2854 = vmatprep.mubr.bf16.mxu0 %v4291_v25 }
 0x105   :  { %v3407_v30 = vpop.f32.mrb[8].mxu0  ;;  %v3431_v31 = vpop.f32.mrb[8].mxu1 }
 0x106   :  { %v3408_v32 = vpop.f32.mrb[9].mxu0  ;;  %v3432_v33 = vpop.f32.mrb[9].mxu1 }
 0x107   :  { %v5159_v36 = vadd.f32 %v3408_v32, %v3407_v30  ;;  %v5161_v37 = vadd.f32 %v3432_v33, %v3431_v31  ;;  %v3410_v38 = vpop.f32.mrb[10].mxu0  ;;  %v3434_v39 = vpop.f32.mrb[10].mxu1  ;;  %v4312_v32 = vld [vmem:[%s5453_s0 + $0x280] ss:$72 sps:$4 sm:$0xff]   ;;  %v2081_v33 = vadd.f32 %v5139_v20, %v5196_v62 }
 0x108   :  { %v3411_v42 = vpop.f32.mrb[11].mxu0  ;;  %v3435_v43 = vpop.f32.mrb[11].mxu1 }
 0x109   :  { %v5169_v44 = vadd.f32 %v3411_v42, %v3410_v38  ;;  %v5171_v45 = vadd.f32 %v3435_v43, %v3434_v39 }
 0x10a   :  { %2758 = vmatmul.mubr.bf16.gmra.mrb[116].mxu1 %v4293_v34  ;;  %2855 = vmatmul.mubr.bf16.gmra.mrb[116].mxu0 %v4294_v35 }
 0x10b   :  { %2765 = vmatprep.mubr.bf16.mxu1 %v4295_v40  ;;  %2862 = vmatprep.mubr.bf16.mxu0 %v4297_v41  ;;  %v4313_v40 = vld [vmem:[%s5453_s0 + $0x30c] ss:$72 sps:$4 sm:$0xff]  }
 0x10c   :  { %v4315_v41 = vld [vmem:[%s5453_s0 + $0x314] ss:$72 sps:$4 sm:$0xff]  }
 0x10d   :  { %v3413_v46 = vpop.f32.mrb[12].mxu0  ;;  %v3437_v47 = vpop.f32.mrb[12].mxu1 }
 0x10e   :  { %v3414_v48 = vpop.f32.mrb[13].mxu0  ;;  %v3438_v49 = vpop.f32.mrb[13].mxu1 }
 0x10f   :  { %v5179_v52 = vadd.f32 %v3414_v48, %v3413_v46  ;;  %v5181_v53 = vadd.f32 %v3438_v49, %v3437_v47  ;;  %v3416_v54 = vpop.f32.mrb[14].mxu0  ;;  %v3440_v55 = vpop.f32.mrb[14].mxu1  ;;  %v2084_v46 = vadd.f32 %v5149_v28, %v5196_v62  ;;  %v4317_v28 = vld [vmem:[%s5453_s0 + $0x308] ss:$72 sps:$4 sm:$0xff]  }
 0x110   :  { %v3417_v58 = vpop.f32.mrb[15].mxu0  ;;  %v3441_v59 = vpop.f32.mrb[15].mxu1 }
 0x111   :  { %v5189_v60 = vadd.f32 %v3417_v58, %v3416_v54  ;;  %v5191_v61 = vadd.f32 %v3441_v59, %v3440_v55  ;;  %v4318_v58 = vld [vmem:[%s5453_s0 + $0x310] ss:$72 sps:$4 sm:$0xff]   ;;  %v2089_v59 = vadd.f32 %v5159_v36, %v5196_v62 }
 0x112   :  { %2766 = vmatmul.mubr.bf16.gmra.mrb[120].mxu1 %v4299_v50  ;;  %2863 = vmatmul.mubr.bf16.gmra.mrb[120].mxu0 %v4300_v51 }
 0x113   :  { %2773 = vmatprep.mubr.bf16.mxu1 %v4301_v56  ;;  %2870 = vmatprep.mubr.bf16.mxu0 %v4303_v57 }
 0x115   :  { %v3459_v63 = vpop.f32.mrb[16].mxu1  ;;  %v3523_v0 = vpop.f32.mrb[16].mxu0 }
 0x116   :  { %v3460_v1 = vpop.f32.mrb[17].mxu1  ;;  %v3524_v2 = vpop.f32.mrb[17].mxu0 }
 0x117   :  { %v3461_v8 = vadd.f32 %v3460_v1, %v3459_v63  ;;  %v3525_v9 = vadd.f32 %v3524_v2, %v3523_v0  ;;  %v3462_v10 = vpop.f32.mrb[18].mxu1  ;;  %v3526_v11 = vpop.f32.mrb[18].mxu0 }
 0x118   :  { %v3463_v16 = vpop.f32.mrb[19].mxu1  ;;  %v3527_v17 = vpop.f32.mrb[19].mxu0 }
 0x119   :  { %v2170_v19 = vadd.f32 %v3461_v8, %v2073_v7  ;;  %v3464_v22 = vadd.f32 %v3463_v16, %v3462_v10  ;;  %v3528_v4 = vadd.f32 %v3527_v17, %v3526_v11 }
 0x11a   :  { %2774 = vmatmul.mubr.bf16.gmra.mrb[124].mxu1 %v4305_v3  ;;  %2871 = vmatmul.mubr.bf16.gmra.mrb[124].mxu0 %v4306_v6  ;;  %v4319_v3 = vld [vmem:[%s5453_s0 + $0x39c] ss:$72 sps:$4 sm:$0xff]  }
 0x11b   :  { %v5214_v23 = vadd.f32 %v3525_v9, %v2170_v19  ;;  %v2173_v24 = vadd.f32 %v3464_v22, %v2076_v18  ;;  %2781 = vmatprep.mubr.bf16.mxu1 %v4307_v14  ;;  %2878 = vmatprep.mubr.bf16.mxu0 %v4309_v15  ;;  %v4321_v6 = vld [vmem:[%s5453_s0 + $0x3a4] ss:$72 sps:$4 sm:$0xff]   ;;  %v2092_v9 = vadd.f32 %v5169_v44, %v5196_v62  ;;  %v4323_v44 = vld [vmem:[%s5453_s0 + $0x398] ss:$72 sps:$4 sm:$0xff]  }
 0x11d   :  { %v5216_v25 = vadd.f32 %v3528_v4, %v2173_v24  ;;  %v3465_v26 = vpop.f32.mrb[20].mxu1  ;;  %v3529_v27 = vpop.f32.mrb[20].mxu0  ;;  %v4324_v4 = vld [vmem:[%s5453_s0 + $0x3a0] ss:$72 sps:$4 sm:$0xff]   ;;  %v2097_v24 = vadd.f32 %v5179_v52, %v5196_v62 }
 0x11e   :  { %v3466_v30 = vpop.f32.mrb[21].mxu1  ;;  %v3530_v31 = vpop.f32.mrb[21].mxu0 }
 0x11f   :  { %v3467_v34 = vadd.f32 %v3466_v30, %v3465_v26  ;;  %v3531_v35 = vadd.f32 %v3530_v31, %v3529_v27  ;;  %v3468_v38 = vpop.f32.mrb[22].mxu1  ;;  %v3532_v39 = vpop.f32.mrb[22].mxu0 }
 0x120   :  { %v3469_v42 = vpop.f32.mrb[23].mxu1  ;;  %v3533_v43 = vpop.f32.mrb[23].mxu0 }
 0x121   :  { %v2178_v47 = vadd.f32 %v3467_v34, %v2081_v33  ;;  %v3470_v48 = vadd.f32 %v3469_v42, %v3468_v38  ;;  %v3534_v20 = vadd.f32 %v3533_v43, %v3532_v39 }
 0x122   :  { %2782 = vmatmul.mubr.bf16.gmra.mrb[128].mxu1 %v4311_v12  ;;  %2879 = vmatmul.mubr.bf16.gmra.mrb[128].mxu0 %v4312_v32  ;;  %v4325_v12 = vld [vmem:[%s5453_s0 + $0x42c] ss:$72 sps:$4 sm:$0xff]  }
 0x123   :  { %v5234_v49 = vadd.f32 %v3531_v35, %v2178_v47  ;;  %v2181_v50 = vadd.f32 %v3470_v48, %v2084_v46  ;;  %2789 = vmatprep.mubr.bf16.mxu1 %v4313_v40  ;;  %2886 = vmatprep.mubr.bf16.mxu0 %v4315_v41  ;;  %v4327_v32 = vld [vmem:[%s5453_s0 + $0x434] ss:$72 sps:$4 sm:$0xff]   ;;  %v2100_v35 = vadd.f32 %v5189_v60, %v5196_v62  ;;  %v4329_v60 = vld [vmem:[%s5453_s0 + $0x428] ss:$72 sps:$4 sm:$0xff]  }
 0x125   :  { %v5236_v51 = vadd.f32 %v3534_v20, %v2181_v50  ;;  %v3471_v54 = vpop.f32.mrb[24].mxu1  ;;  %v3535_v55 = vpop.f32.mrb[24].mxu0  ;;  %v4330_v20 = vld [vmem:[%s5453_s0 + $0x430] ss:$72 sps:$4 sm:$0xff]   ;;  %v2105_v50 = vadd.f32 %v5121_v5, %v5196_v62 }
 0x126   :  { %v3472_v56 = vpop.f32.mrb[25].mxu1  ;;  %v3536_v57 = vpop.f32.mrb[25].mxu0 }
 0x127   :  { %v3473_v63 = vadd.f32 %v3472_v56, %v3471_v54  ;;  %v3537_v0 = vadd.f32 %v3536_v57, %v3535_v55  ;;  %v3474_v1 = vpop.f32.mrb[26].mxu1  ;;  %v3538_v2 = vpop.f32.mrb[26].mxu0 }
 0x128   :  { %v3475_v7 = vpop.f32.mrb[27].mxu1  ;;  %v3539_v8 = vpop.f32.mrb[27].mxu0 }
 0x129   :  { %v2186_v10 = vadd.f32 %v3473_v63, %v2089_v59  ;;  %v3476_v11 = vadd.f32 %v3475_v7, %v3474_v1  ;;  %v3540_v36 = vadd.f32 %v3539_v8, %v3538_v2  ;;  %v2108_v59 = vadd.f32 %v5131_v13, %v5196_v62 }
 0x12a   :  { %2790 = vmatmul.mubr.bf16.gmra.mrb[132].mxu1 %v4317_v28  ;;  %2887 = vmatmul.mubr.bf16.gmra.mrb[132].mxu0 %v4318_v58 }
 0x12b   :  { %v5254_v14 = vadd.f32 %v3537_v0, %v2186_v10  ;;  %v2189_v15 = vadd.f32 %v3476_v11, %v2092_v9  ;;  %2797 = vmatprep.mubr.bf16.mxu1 %v4319_v3  ;;  %2894 = vmatprep.mubr.bf16.mxu0 %v4321_v6  ;;  %v2113_v10 = vadd.f32 %v5141_v21, %v5196_v62 }
 0x12d   :  { %v5256_v16 = vadd.f32 %v3540_v36, %v2189_v15  ;;  %v3477_v17 = vpop.f32.mrb[28].mxu1  ;;  %v3541_v18 = vpop.f32.mrb[28].mxu0 }
 0x12e   :  { %v3478_v19 = vpop.f32.mrb[29].mxu1  ;;  %v3542_v22 = vpop.f32.mrb[29].mxu0 }
 0x12f   :  { %v3479_v26 = vadd.f32 %v3478_v19, %v3477_v17  ;;  %v3543_v27 = vadd.f32 %v3542_v22, %v3541_v18  ;;  %v3480_v30 = vpop.f32.mrb[30].mxu1  ;;  %v3544_v31 = vpop.f32.mrb[30].mxu0  ;;  %v2116_v19 = vadd.f32 %v5151_v29, %v5196_v62 }
 0x130   :  { %v3481_v33 = vpop.f32.mrb[31].mxu1  ;;  %v3545_v34 = vpop.f32.mrb[31].mxu0 }
 0x131   :  { %v2194_v38 = vadd.f32 %v3479_v26, %v2097_v24  ;;  %v3482_v39 = vadd.f32 %v3481_v33, %v3480_v30  ;;  %v3546_v52 = vadd.f32 %v3545_v34, %v3544_v31 }
 0x132   :  { %2798 = vmatmul.mubr.bf16.gmra.mrb[136].mxu1 %v4323_v44  ;;  %2895 = vmatmul.mubr.bf16.gmra.mrb[136].mxu0 %v4324_v4 }
 0x133   :  { %v5274_v40 = vadd.f32 %v3543_v27, %v2194_v38  ;;  %v2197_v41 = vadd.f32 %v3482_v39, %v2100_v35  ;;  %2805 = vmatprep.mubr.bf16.mxu1 %v4325_v12  ;;  %2902 = vmatprep.mubr.bf16.mxu0 %v4327_v32  ;;  %v2121_v32 = vadd.f32 %v5161_v37, %v5196_v62 }
 0x135   :  { %v5276_v42 = vadd.f32 %v3546_v52, %v2197_v41  ;;  %v3483_v43 = vpop.f32.mrb[32].mxu1  ;;  %v3547_v46 = vpop.f32.mrb[32].mxu0  ;;  %v2124_v52 = vadd.f32 %v5171_v45, %v5196_v62 }
 0x136   :  { %v3484_v47 = vpop.f32.mrb[33].mxu1  ;;  %v3548_v48 = vpop.f32.mrb[33].mxu0 }
 0x137   :  { %v3485_v54 = vadd.f32 %v3484_v47, %v3483_v43  ;;  %v3549_v55 = vadd.f32 %v3548_v48, %v3547_v46  ;;  %v3486_v56 = vpop.f32.mrb[34].mxu1  ;;  %v3550_v57 = vpop.f32.mrb[34].mxu0 }
 0x138   :  { %v3487_v28 = vpop.f32.mrb[35].mxu1  ;;  %v3551_v58 = vpop.f32.mrb[35].mxu0 }
 0x139   :  { %v2202_v63 = vadd.f32 %v3485_v54, %v2105_v50  ;;  %v3488_v0 = vadd.f32 %v3487_v28, %v3486_v56  ;;  %v3552_v1 = vadd.f32 %v3551_v58, %v3550_v57 }
 0x13a   :  { %2806 = vmatmul.mubr.bf16.gmra.mrb[140].mxu1 %v4329_v60  ;;  %2903 = vmatmul.mubr.bf16.gmra.mrb[140].mxu0 %v4330_v20 }
 0x13b   :  { %v5288_v2 = vadd.f32 %v3549_v55, %v2202_v63  ;;  %v2205_v3 = vadd.f32 %v3488_v0, %v2108_v59  ;;  %v2129_v55 = vadd.f32 %v5181_v53, %v5196_v62  ;;  %v2132_v63 = vadd.f32 %v5191_v61, %v5196_v62 }
 0x13d   :  { %v5290_v6 = vadd.f32 %v3552_v1, %v2205_v3  ;;  %v3489_v5 = vpop.f32.mrb[36].mxu1  ;;  %v3553_v7 = vpop.f32.mrb[36].mxu0 }
 0x13e   :  { %v3490_v8 = vpop.f32.mrb[37].mxu1  ;;  %v3554_v9 = vpop.f32.mrb[37].mxu0 }
 0x13f   :  { %v3491_v11 = vadd.f32 %v3490_v8, %v3489_v5  ;;  %v3555_v36 = vadd.f32 %v3554_v9, %v3553_v7  ;;  %v3492_v13 = vpop.f32.mrb[38].mxu1  ;;  %v3556_v15 = vpop.f32.mrb[38].mxu0 }
 0x140   :  { %v3493_v17 = vpop.f32.mrb[39].mxu1  ;;  %v3557_v18 = vpop.f32.mrb[39].mxu0 }
 0x141   :  { %v2210_v22 = vadd.f32 %v3491_v11, %v2113_v10  ;;  %v3494_v44 = vadd.f32 %v3493_v17, %v3492_v13  ;;  %v3558_v4 = vadd.f32 %v3557_v18, %v3556_v15 }
 0x143   :  { %v5296_v24 = vadd.f32 %v3555_v36, %v2210_v22  ;;  %v2213_v26 = vadd.f32 %v3494_v44, %v2116_v19 }
 0x145   :  { %v5298_v27 = vadd.f32 %v3558_v4, %v2213_v26  ;;  %v3495_v30 = vpop.f32.mrb[40].mxu1  ;;  %v3559_v31 = vpop.f32.mrb[40].mxu0 }
 0x146   :  { %v3496_v21 = vpop.f32.mrb[41].mxu1  ;;  %v3560_v12 = vpop.f32.mrb[41].mxu0 }
 0x147   :  { %v3497_v33 = vadd.f32 %v3496_v21, %v3495_v30  ;;  %v3561_v34 = vadd.f32 %v3560_v12, %v3559_v31  ;;  %v3498_v35 = vpop.f32.mrb[42].mxu1  ;;  %v3562_v38 = vpop.f32.mrb[42].mxu0 }
 0x148   :  { %v3499_v29 = vpop.f32.mrb[43].mxu1  ;;  %v3563_v39 = vpop.f32.mrb[43].mxu0 }
 0x149   :  { %v2218_v41 = vadd.f32 %v3497_v33, %v2121_v32  ;;  %v3500_v43 = vadd.f32 %v3499_v29, %v3498_v35  ;;  %v3564_v46 = vadd.f32 %v3563_v39, %v3562_v38 }
 0x14b   :  { %v5304_v47 = vadd.f32 %v3561_v34, %v2218_v41  ;;  %v2221_v48 = vadd.f32 %v3500_v43, %v2124_v52 }
 0x14d   :  { %v5306_v60 = vadd.f32 %v3564_v46, %v2221_v48  ;;  %v3501_v20 = vpop.f32.mrb[44].mxu1  ;;  %v3565_v50 = vpop.f32.mrb[44].mxu0 }
 0x14e   :  { %v3502_v37 = vpop.f32.mrb[45].mxu1  ;;  %v3566_v54 = vpop.f32.mrb[45].mxu0 }
 0x14f   :  { %v3503_v56 = vadd.f32 %v3502_v37, %v3501_v20  ;;  %v3567_v57 = vadd.f32 %v3566_v54, %v3565_v50  ;;  %v3504_v28 = vpop.f32.mrb[46].mxu1  ;;  %v3568_v58 = vpop.f32.mrb[46].mxu0 }
 0x150   :  { %v3505_v45 = vpop.f32.mrb[47].mxu1  ;;  %v3569_v59 = vpop.f32.mrb[47].mxu0 }
 0x151   :  { %v2226_v0 = vadd.f32 %v3503_v56, %v2129_v55  ;;  %v3506_v1 = vadd.f32 %v3505_v45, %v3504_v28  ;;  %v3570_v3 = vadd.f32 %v3569_v59, %v3568_v58 }
 0x153   :  { %v5312_v5 = vadd.f32 %v3567_v57, %v2226_v0  ;;  %v2229_v7 = vadd.f32 %v3506_v1, %v2132_v63 }
 0x155   :  { %v5314_v8 = vadd.f32 %v3570_v3, %v2229_v7  ;;  %v3587_v9 = vpop.f32.mrb[48].mxu1  ;;  %v3651_v10 = vpop.f32.mrb[48].mxu0 }
 0x156   :  { %v3588_v53 = vpop.f32.mrb[49].mxu1  ;;  %v3652_v11 = vpop.f32.mrb[49].mxu0 }
 0x157   :  { %v3589_v36 = vadd.f32 %v3588_v53, %v3587_v9  ;;  %v3653_v13 = vadd.f32 %v3652_v11, %v3651_v10  ;;  %v3590_v15 = vpop.f32.mrb[50].mxu1  ;;  %v3654_v17 = vpop.f32.mrb[50].mxu0 }
 0x158   :  { %v3591_v18 = vpop.f32.mrb[51].mxu1  ;;  %v3655_v19 = vpop.f32.mrb[51].mxu0 }
 0x159   :  { %v2364_v61 = vadd.f32 %v3589_v36, %v5214_v23  ;;  %v3592_v62 = vadd.f32 %v3591_v18, %v3590_v15  ;;  %v3656_v22 = vadd.f32 %v3655_v19, %v3654_v17 }
 0x15b   :  { %v5317_v44 = vadd.f32 %v3653_v13, %v2364_v61  ;;  %v2367_v4 = vadd.f32 %v3592_v62, %v5216_v25 }
 0x15d   :  { %v5320_v26 = vadd.f32 %v3656_v22, %v2367_v4  ;;  %v3593_v30 = vpop.f32.mrb[52].mxu1  ;;  %v3657_v31 = vpop.f32.mrb[52].mxu0 }
 0x15e   :  { %v3594_v21 = vpop.f32.mrb[53].mxu1  ;;  %v3658_v12 = vpop.f32.mrb[53].mxu0 }
 0x15f   :  { %v3595_v32 = vadd.f32 %v3594_v21, %v3593_v30  ;;  %v3659_v33 = vadd.f32 %v3658_v12, %v3657_v31  ;;  %v3596_v34 = vpop.f32.mrb[54].mxu1  ;;  %v3660_v35 = vpop.f32.mrb[54].mxu0 }
 0x160   :  { %v3597_v38 = vpop.f32.mrb[55].mxu1  ;;  %v3661_v29 = vpop.f32.mrb[55].mxu0 }
 0x161   :  { %v2372_v23 = vadd.f32 %v3595_v32, %v5234_v49  ;;  %v3598_v39 = vadd.f32 %v3597_v38, %v3596_v34  ;;  %v3662_v52 = vadd.f32 %v3661_v29, %v3660_v35 }
 0x163   :  { %v5323_v41 = vadd.f32 %v3659_v33, %v2372_v23  ;;  %v2375_v25 = vadd.f32 %v3598_v39, %v5236_v51 }
 0x165   :  { %v5326_v43 = vadd.f32 %v3662_v52, %v2375_v25  ;;  %v3599_v46 = vpop.f32.mrb[56].mxu1  ;;  %v3663_v48 = vpop.f32.mrb[56].mxu0 }
 0x166   :  { %v3600_v20 = vpop.f32.mrb[57].mxu1  ;;  %v3664_v50 = vpop.f32.mrb[57].mxu0 }
 0x167   :  { %v3601_v37 = vadd.f32 %v3600_v20, %v3599_v46  ;;  %v3665_v54 = vadd.f32 %v3664_v50, %v3663_v48  ;;  %v3602_v55 = vpop.f32.mrb[58].mxu1  ;;  %v3666_v56 = vpop.f32.mrb[58].mxu0 }
 0x168   :  { %v3603_v57 = vpop.f32.mrb[59].mxu1  ;;  %v3667_v28 = vpop.f32.mrb[59].mxu0 }
 0x169   :  { %v2380_v49 = vadd.f32 %v3601_v37, %v5254_v14  ;;  %v3604_v58 = vadd.f32 %v3603_v57, %v3602_v55  ;;  %v3668_v45 = vadd.f32 %v3667_v28, %v3666_v56 }
 0x16b   :  { %v5329_v59 = vadd.f32 %v3665_v54, %v2380_v49  ;;  %v2383_v51 = vadd.f32 %v3604_v58, %v5256_v16 }
 0x16d   :  { %v5332_v63 = vadd.f32 %v3668_v45, %v2383_v51  ;;  %v3605_v0 = vpop.f32.mrb[60].mxu1  ;;  %v3669_v1 = vpop.f32.mrb[60].mxu0 }
 0x16e   :  { %v3606_v3 = vpop.f32.mrb[61].mxu1  ;;  %v3670_v7 = vpop.f32.mrb[61].mxu0 }
 0x16f   :  { %v3607_v9 = vadd.f32 %v3606_v3, %v3605_v0  ;;  %v3671_v10 = vadd.f32 %v3670_v7, %v3669_v1  ;;  %v3608_v53 = vpop.f32.mrb[62].mxu1  ;;  %v3672_v11 = vpop.f32.mrb[62].mxu0 }
 0x170   :  { %v3609_v36 = vpop.f32.mrb[63].mxu1  ;;  %v3673_v13 = vpop.f32.mrb[63].mxu0 }
 0x171   :  { %v2388_v14 = vadd.f32 %v3607_v9, %v5274_v40  ;;  %v3610_v15 = vadd.f32 %v3609_v36, %v3608_v53  ;;  %v3674_v17 = vadd.f32 %v3673_v13, %v3672_v11 }
 0x173   :  { %v5335_v18 = vadd.f32 %v3671_v10, %v2388_v14  ;;  %v2391_v16 = vadd.f32 %v3610_v15, %v5276_v42 }
 0x175   :  { %v5338_v19 = vadd.f32 %v3674_v17, %v2391_v16  ;;  %v3611_v61 = vpop.f32.mrb[64].mxu1  ;;  %v3675_v62 = vpop.f32.mrb[64].mxu0 }
 0x176   :  { %v3612_v22 = vpop.f32.mrb[65].mxu1  ;;  %v3676_v4 = vpop.f32.mrb[65].mxu0 }
 0x177   :  { %v3613_v30 = vadd.f32 %v3612_v22, %v3611_v61  ;;  %v3677_v31 = vadd.f32 %v3676_v4, %v3675_v62  ;;  %v3614_v21 = vpop.f32.mrb[66].mxu1  ;;  %v3678_v12 = vpop.f32.mrb[66].mxu0 }
 0x178   :  { %v3615_v32 = vpop.f32.mrb[67].mxu1  ;;  %v3679_v33 = vpop.f32.mrb[67].mxu0 }
 0x179   :  { %v2396_v40 = vadd.f32 %v3613_v30, %v5288_v2  ;;  %v3616_v34 = vadd.f32 %v3615_v32, %v3614_v21  ;;  %v3680_v35 = vadd.f32 %v3679_v33, %v3678_v12 }
 0x17b   :  { %v5341_v38 = vadd.f32 %v3677_v31, %v2396_v40  ;;  %v2399_v42 = vadd.f32 %v3616_v34, %v5290_v6 }
 0x17d   :  { %v5344_v29 = vadd.f32 %v3680_v35, %v2399_v42  ;;  %v3617_v23 = vpop.f32.mrb[68].mxu1  ;;  %v3681_v39 = vpop.f32.mrb[68].mxu0 }
 0x17e   :  { %v3618_v52 = vpop.f32.mrb[69].mxu1  ;;  %v3682_v25 = vpop.f32.mrb[69].mxu0 }
 0x17f   :  { %v3619_v46 = vadd.f32 %v3618_v52, %v3617_v23  ;;  %v3683_v48 = vadd.f32 %v3682_v25, %v3681_v39  ;;  %v3620_v20 = vpop.f32.mrb[70].mxu1  ;;  %v3684_v50 = vpop.f32.mrb[70].mxu0 }
 0x180   :  { %v3621_v37 = vpop.f32.mrb[71].mxu1  ;;  %v3685_v54 = vpop.f32.mrb[71].mxu0 }
 0x181   :  { %v2404_v2 = vadd.f32 %v3619_v46, %v5296_v24  ;;  %v3622_v55 = vadd.f32 %v3621_v37, %v3620_v20  ;;  %v3686_v56 = vadd.f32 %v3685_v54, %v3684_v50 }
 0x183   :  { %v5347_v57 = vadd.f32 %v3683_v48, %v2404_v2  ;;  %v2407_v6 = vadd.f32 %v3622_v55, %v5298_v27 }
 0x185   :  { %v5350_v28 = vadd.f32 %v3686_v56, %v2407_v6  ;;  %v3623_v49 = vpop.f32.mrb[72].mxu1  ;;  %v3687_v58 = vpop.f32.mrb[72].mxu0 }
 0x186   :  { %v3624_v45 = vpop.f32.mrb[73].mxu1  ;;  %v3688_v51 = vpop.f32.mrb[73].mxu0 }
 0x187   :  { %v3625_v0 = vadd.f32 %v3624_v45, %v3623_v49  ;;  %v3689_v1 = vadd.f32 %v3688_v51, %v3687_v58  ;;  %v3626_v3 = vpop.f32.mrb[74].mxu1  ;;  %v3690_v7 = vpop.f32.mrb[74].mxu0 }
 0x188   :  { %v3627_v9 = vpop.f32.mrb[75].mxu1  ;;  %v3691_v10 = vpop.f32.mrb[75].mxu0 }
 0x189   :  { %v2412_v24 = vadd.f32 %v3625_v0, %v5304_v47  ;;  %v3628_v53 = vadd.f32 %v3627_v9, %v3626_v3  ;;  %v3692_v11 = vadd.f32 %v3691_v10, %v3690_v7 }
 0x18b   :  { %v5353_v36 = vadd.f32 %v3689_v1, %v2412_v24  ;;  %v2415_v27 = vadd.f32 %v3628_v53, %v5306_v60 }
 0x18d   :  { %v5356_v13 = vadd.f32 %v3692_v11, %v2415_v27  ;;  %v3629_v14 = vpop.f32.mrb[76].mxu1  ;;  %v3693_v15 = vpop.f32.mrb[76].mxu0 }
 0x18e   :  { %v3630_v17 = vpop.f32.mrb[77].mxu1  ;;  %v3694_v16 = vpop.f32.mrb[77].mxu0 }
 0x18f   :  { %v3631_v61 = vadd.f32 %v3630_v17, %v3629_v14  ;;  %v3695_v62 = vadd.f32 %v3694_v16, %v3693_v15  ;;  %v3632_v22 = vpop.f32.mrb[78].mxu1  ;;  %v3696_v4 = vpop.f32.mrb[78].mxu0 }
 0x190   :  { %v3633_v30 = vpop.f32.mrb[79].mxu1  ;;  %v3697_v31 = vpop.f32.mrb[79].mxu0 }
 0x191   :  { %v2420_v47 = vadd.f32 %v3631_v61, %v5312_v5  ;;  %v3634_v21 = vadd.f32 %v3633_v30, %v3632_v22  ;;  %v3698_v12 = vadd.f32 %v3697_v31, %v3696_v4 }
 0x193   :  { %v5359_v32 = vadd.f32 %v3695_v62, %v2420_v47  ;;  %v2423_v60 = vadd.f32 %v3634_v21, %v5314_v8 }
 0x195   :  { %v5362_v33 = vadd.f32 %v3698_v12, %v2423_v60  ;;  %v3715_v40 = vpop.f32.mrb[80].mxu1  ;;  %v3779_v34 = vpop.f32.mrb[80].mxu0 }
 0x196   :  { %v3716_v35 = vpop.f32.mrb[81].mxu1  ;;  %v3780_v42 = vpop.f32.mrb[81].mxu0 }
 0x197   :  { %v3717_v23 = vadd.f32 %v3716_v35, %v3715_v40  ;;  %v3781_v39 = vadd.f32 %v3780_v42, %v3779_v34  ;;  %v3718_v52 = vpop.f32.mrb[82].mxu1  ;;  %v3782_v25 = vpop.f32.mrb[82].mxu0 }
 0x198   :  { %v3719_v46 = vpop.f32.mrb[83].mxu1  ;;  %v3783_v48 = vpop.f32.mrb[83].mxu0 }
 0x199   :  { %v2558_v5 = vadd.f32 %v3717_v23, %v5317_v44  ;;  %v3720_v20 = vadd.f32 %v3719_v46, %v3718_v52  ;;  %v3784_v50 = vadd.f32 %v3783_v48, %v3782_v25 }
 0x19b   :  { %v5365_v37 = vadd.f32 %v3781_v39, %v2558_v5  ;;  %v2561_v8 = vadd.f32 %v3720_v20, %v5320_v26 }
 0x19d   :  { %v5368_v54 = vadd.f32 %v3784_v50, %v2561_v8  ;;  %v3721_v2 = vpop.f32.mrb[84].mxu1  ;;  %v3785_v55 = vpop.f32.mrb[84].mxu0 }
 0x19e   :  { %v3722_v56 = vpop.f32.mrb[85].mxu1  ;;  %v3786_v6 = vpop.f32.mrb[85].mxu0 }
 0x19f   :  { %v3723_v49 = vadd.f32 %v3722_v56, %v3721_v2  ;;  %v3787_v58 = vadd.f32 %v3786_v6, %v3785_v55  ;;  %v3724_v45 = vpop.f32.mrb[86].mxu1  ;;  %v3788_v51 = vpop.f32.mrb[86].mxu0 }
 0x1a0   :  { %v3725_v0 = vpop.f32.mrb[87].mxu1  ;;  %v3789_v1 = vpop.f32.mrb[87].mxu0 }
 0x1a1   :  { %v2566_v44 = vadd.f32 %v3723_v49, %v5323_v41  ;;  %v3726_v3 = vadd.f32 %v3725_v0, %v3724_v45  ;;  %v3790_v7 = vadd.f32 %v3789_v1, %v3788_v51 }
 0x1a3   :  { %v5371_v9 = vadd.f32 %v3787_v58, %v2566_v44  ;;  %v2569_v26 = vadd.f32 %v3726_v3, %v5326_v43 }
 0x1a5   :  { %v5374_v10 = vadd.f32 %v3790_v7, %v2569_v26  ;;  %v3727_v24 = vpop.f32.mrb[88].mxu1  ;;  %v3791_v53 = vpop.f32.mrb[88].mxu0 }
 0x1a6   :  { %v3728_v11 = vpop.f32.mrb[89].mxu1  ;;  %v3792_v27 = vpop.f32.mrb[89].mxu0 }
 0x1a7   :  { %v3729_v14 = vadd.f32 %v3728_v11, %v3727_v24  ;;  %v3793_v15 = vadd.f32 %v3792_v27, %v3791_v53  ;;  %v3730_v17 = vpop.f32.mrb[90].mxu1  ;;  %v3794_v16 = vpop.f32.mrb[90].mxu0 }
 0x1a8   :  { %v3731_v61 = vpop.f32.mrb[91].mxu1  ;;  %v3795_v62 = vpop.f32.mrb[91].mxu0 }
 0x1a9   :  { %v2574_v41 = vadd.f32 %v3729_v14, %v5329_v59  ;;  %v3732_v22 = vadd.f32 %v3731_v61, %v3730_v17  ;;  %v3796_v4 = vadd.f32 %v3795_v62, %v3794_v16 }
 0x1ab   :  { %v5377_v30 = vadd.f32 %v3793_v15, %v2574_v41  ;;  %v2577_v43 = vadd.f32 %v3732_v22, %v5332_v63 }
 0x1ad   :  { %v5380_v31 = vadd.f32 %v3796_v4, %v2577_v43  ;;  %v3733_v47 = vpop.f32.mrb[92].mxu1  ;;  %v3797_v21 = vpop.f32.mrb[92].mxu0 }
 0x1ae   :  { %v3734_v12 = vpop.f32.mrb[93].mxu1  ;;  %v3798_v60 = vpop.f32.mrb[93].mxu0 }
 0x1af   :  { %v3735_v40 = vadd.f32 %v3734_v12, %v3733_v47  ;;  %v3799_v34 = vadd.f32 %v3798_v60, %v3797_v21  ;;  %v3736_v35 = vpop.f32.mrb[94].mxu1  ;;  %v3800_v42 = vpop.f32.mrb[94].mxu0 }
 0x1b0   :  { %v3737_v23 = vpop.f32.mrb[95].mxu1  ;;  %v3801_v39 = vpop.f32.mrb[95].mxu0 }
 0x1b1   :  { %v2582_v59 = vadd.f32 %v3735_v40, %v5335_v18  ;;  %v3738_v52 = vadd.f32 %v3737_v23, %v3736_v35  ;;  %v3802_v25 = vadd.f32 %v3801_v39, %v3800_v42 }
 0x1b3   :  { %v5383_v46 = vadd.f32 %v3799_v34, %v2582_v59  ;;  %v2585_v63 = vadd.f32 %v3738_v52, %v5338_v19 }
 0x1b5   :  { %v5386_v48 = vadd.f32 %v3802_v25, %v2585_v63  ;;  %v3739_v5 = vpop.f32.mrb[96].mxu1  ;;  %v3803_v20 = vpop.f32.mrb[96].mxu0 }
 0x1b6   :  { %v3740_v50 = vpop.f32.mrb[97].mxu1  ;;  %v3804_v8 = vpop.f32.mrb[97].mxu0 }
 0x1b7   :  { %v3741_v2 = vadd.f32 %v3740_v50, %v3739_v5  ;;  %v3805_v55 = vadd.f32 %v3804_v8, %v3803_v20  ;;  %v3742_v56 = vpop.f32.mrb[98].mxu1  ;;  %v3806_v6 = vpop.f32.mrb[98].mxu0 }
 0x1b8   :  { %v3743_v49 = vpop.f32.mrb[99].mxu1  ;;  %v3807_v58 = vpop.f32.mrb[99].mxu0 }
 0x1b9   :  { %v2590_v18 = vadd.f32 %v3741_v2, %v5341_v38  ;;  %v3744_v45 = vadd.f32 %v3743_v49, %v3742_v56  ;;  %v3808_v51 = vadd.f32 %v3807_v58, %v3806_v6 }
 0x1bb   :  { %v5389_v0 = vadd.f32 %v3805_v55, %v2590_v18  ;;  %v2593_v19 = vadd.f32 %v3744_v45, %v5344_v29 }
 0x1bd   :  { %v5392_v1 = vadd.f32 %v3808_v51, %v2593_v19  ;;  %v3745_v44 = vpop.f32.mrb[100].mxu1  ;;  %v3809_v3 = vpop.f32.mrb[100].mxu0 }
 0x1be   :  { %v3746_v7 = vpop.f32.mrb[101].mxu1  ;;  %v3810_v26 = vpop.f32.mrb[101].mxu0 }
 0x1bf   :  { %v3747_v24 = vadd.f32 %v3746_v7, %v3745_v44  ;;  %v3811_v53 = vadd.f32 %v3810_v26, %v3809_v3  ;;  %v3748_v11 = vpop.f32.mrb[102].mxu1  ;;  %v3812_v27 = vpop.f32.mrb[102].mxu0 }
 0x1c0   :  { %v3749_v14 = vpop.f32.mrb[103].mxu1  ;;  %v3813_v15 = vpop.f32.mrb[103].mxu0 }
 0x1c1   :  { %v2598_v38 = vadd.f32 %v3747_v24, %v5347_v57  ;;  %v3750_v17 = vadd.f32 %v3749_v14, %v3748_v11  ;;  %v3814_v16 = vadd.f32 %v3813_v15, %v3812_v27 }
 0x1c3   :  { %v5395_v61 = vadd.f32 %v3811_v53, %v2598_v38  ;;  %v2601_v29 = vadd.f32 %v3750_v17, %v5350_v28 }
 0x1c5   :  { %v5398_v62 = vadd.f32 %v3814_v16, %v2601_v29  ;;  %v3751_v41 = vpop.f32.mrb[104].mxu1  ;;  %v3815_v22 = vpop.f32.mrb[104].mxu0 }
 0x1c6   :  { %v3752_v4 = vpop.f32.mrb[105].mxu1  ;;  %v3816_v43 = vpop.f32.mrb[105].mxu0 }
 0x1c7   :  { %v3753_v47 = vadd.f32 %v3752_v4, %v3751_v41  ;;  %v3817_v21 = vadd.f32 %v3816_v43, %v3815_v22  ;;  %v3754_v12 = vpop.f32.mrb[106].mxu1  ;;  %v3818_v60 = vpop.f32.mrb[106].mxu0 }
 0x1c8   :  { %v3755_v40 = vpop.f32.mrb[107].mxu1  ;;  %v3819_v34 = vpop.f32.mrb[107].mxu0 }
 0x1c9   :  { %v2606_v57 = vadd.f32 %v3753_v47, %v5353_v36  ;;  %v3756_v35 = vadd.f32 %v3755_v40, %v3754_v12  ;;  %v3820_v42 = vadd.f32 %v3819_v34, %v3818_v60 }
 0x1cb   :  { %v5401_v23 = vadd.f32 %v3817_v21, %v2606_v57  ;;  %v2609_v28 = vadd.f32 %v3756_v35, %v5356_v13 }
 0x1cd   :  { %v5404_v39 = vadd.f32 %v3820_v42, %v2609_v28  ;;  %v3757_v59 = vpop.f32.mrb[108].mxu1  ;;  %v3821_v52 = vpop.f32.mrb[108].mxu0 }
 0x1ce   :  { %v3758_v25 = vpop.f32.mrb[109].mxu1  ;;  %v3822_v63 = vpop.f32.mrb[109].mxu0 }
 0x1cf   :  { %v3759_v5 = vadd.f32 %v3758_v25, %v3757_v59  ;;  %v3823_v20 = vadd.f32 %v3822_v63, %v3821_v52  ;;  %v3760_v50 = vpop.f32.mrb[110].mxu1  ;;  %v3824_v8 = vpop.f32.mrb[110].mxu0 }
 0x1d0   :  { %v3761_v2 = vpop.f32.mrb[111].mxu1  ;;  %v3825_v55 = vpop.f32.mrb[111].mxu0 }
 0x1d1   :  { %v2614_v36 = vadd.f32 %v3759_v5, %v5359_v32  ;;  %v3762_v56 = vadd.f32 %v3761_v2, %v3760_v50  ;;  %v3826_v6 = vadd.f32 %v3825_v55, %v3824_v8 }
 0x1d3   :  { %v5407_v49 = vadd.f32 %v3823_v20, %v2614_v36  ;;  %v2617_v13 = vadd.f32 %v3762_v56, %v5362_v33 }
 0x1d5   :  { %v5410_v58 = vadd.f32 %v3826_v6, %v2617_v13  ;;  %v3843_v18 = vpop.f32.mrb[112].mxu1  ;;  %v3907_v45 = vpop.f32.mrb[112].mxu0 }
 0x1d6   :  { %v3844_v51 = vpop.f32.mrb[113].mxu1  ;;  %v3908_v19 = vpop.f32.mrb[113].mxu0 }
 0x1d7   :  { %v3845_v44 = vadd.f32 %v3844_v51, %v3843_v18  ;;  %v3909_v3 = vadd.f32 %v3908_v19, %v3907_v45  ;;  %v3846_v7 = vpop.f32.mrb[114].mxu1  ;;  %v3910_v26 = vpop.f32.mrb[114].mxu0 }
 0x1d8   :  { %v3847_v24 = vpop.f32.mrb[115].mxu1  ;;  %v3911_v53 = vpop.f32.mrb[115].mxu0 }
 0x1d9   :  { %v2752_v32 = vadd.f32 %v3845_v44, %v5365_v37  ;;  %v3848_v11 = vadd.f32 %v3847_v24, %v3846_v7  ;;  %v3912_v27 = vadd.f32 %v3911_v53, %v3910_v26 }
 0x1db   :  { %v2849_v14 = vadd.f32 %v3909_v3, %v2752_v32  ;;  %v2755_v15 = vadd.f32 %v3848_v11, %v5368_v54 }
 0x1dd   :  { %v2852_v33 = vadd.f32 %v3912_v27, %v2755_v15  ;;  %v3849_v38 = vpop.f32.mrb[116].mxu1  ;;  %v3913_v17 = vpop.f32.mrb[116].mxu0  ;;  %v2911_v41 = vmax.f32 %v2849_v14, 0.0 }
 0x1de   :  { %v3850_v16 = vpop.f32.mrb[117].mxu1  ;;  %v3914_v29 = vpop.f32.mrb[117].mxu0 }
 0x1df   :  { %v2912_v22 = vmax.f32 %v2852_v33, 0.0  ;;  %v3851_v4 = vadd.f32 %v3850_v16, %v3849_v38  ;;  %v3915_v43 = vadd.f32 %v3914_v29, %v3913_v17  ;;  %v3852_v47 = vpop.f32.mrb[118].mxu1  ;;  %v3916_v21 = vpop.f32.mrb[118].mxu0 }
 0x1e0   :  { %v3853_v12 = vpop.f32.mrb[119].mxu1  ;;  %v3917_v60 = vpop.f32.mrb[119].mxu0 }
 0x1e1   :  { %v3335_v40 = vpack.c.bf16 %v2912_v22, %v2911_v41  ;;  %v2760_v37 = vadd.f32 %v3851_v4, %v5371_v9  ;;  %v3854_v34 = vadd.f32 %v3853_v12, %v3852_v47  ;;  %v3918_v57 = vadd.f32 %v3917_v60, %v3916_v21 }
 0x1e3   :  { %3336 = vst [vmem:[%s5455_s3] sm:$0xff] %v3335_v40   ;;  %v2857_v54 = vadd.f32 %v3915_v43, %v2760_v37  ;;  %v2763_v35 = vadd.f32 %v3854_v34, %v5374_v10 }
 0x1e5   :  { %v2860_v42 = vadd.f32 %v3918_v57, %v2763_v35  ;;  %v3855_v28 = vpop.f32.mrb[120].mxu1  ;;  %v3919_v59 = vpop.f32.mrb[120].mxu0  ;;  %v2913_v63 = vmax.f32 %v2857_v54, 0.0 }
 0x1e6   :  { %v3856_v52 = vpop.f32.mrb[121].mxu1  ;;  %v3920_v25 = vpop.f32.mrb[121].mxu0 }
 0x1e7   :  { %v2914_v5 = vmax.f32 %v2860_v42, 0.0  ;;  %v3857_v20 = vadd.f32 %v3856_v52, %v3855_v28  ;;  %v3921_v50 = vadd.f32 %v3920_v25, %v3919_v59  ;;  %v3858_v8 = vpop.f32.mrb[122].mxu1  ;;  %v3922_v9 = vpop.f32.mrb[122].mxu0 }
 0x1e8   :  { %v3859_v2 = vpop.f32.mrb[123].mxu1  ;;  %v3923_v55 = vpop.f32.mrb[123].mxu0 }
 0x1e9   :  { %v3340_v36 = vpack.c.bf16 %v2914_v5, %v2913_v63  ;;  %v2768_v56 = vadd.f32 %v3857_v20, %v5377_v30  ;;  %v3860_v6 = vadd.f32 %v3859_v2, %v3858_v8  ;;  %v3924_v13 = vadd.f32 %v3923_v55, %v3922_v9 }
 0x1eb   :  { %3372 = vst [vmem:[%s5455_s3 + $0x8] sm:$0xff] %v3340_v36   ;;  %v2865_v10 = vadd.f32 %v3921_v50, %v2768_v56  ;;  %v2771_v18 = vadd.f32 %v3860_v6, %v5380_v31 }
 0x1ed   :  { %v2868_v45 = vadd.f32 %v3924_v13, %v2771_v18  ;;  %v3861_v51 = vpop.f32.mrb[124].mxu1  ;;  %v3925_v19 = vpop.f32.mrb[124].mxu0  ;;  %v2915_v7 = vmax.f32 %v2865_v10, 0.0 }
 0x1ee   :  { %v3862_v44 = vpop.f32.mrb[125].mxu1  ;;  %v3926_v3 = vpop.f32.mrb[125].mxu0 }
 0x1ef   :  { %v2916_v26 = vmax.f32 %v2868_v45, 0.0  ;;  %v3863_v24 = vadd.f32 %v3862_v44, %v3861_v51  ;;  %v3927_v53 = vadd.f32 %v3926_v3, %v3925_v19  ;;  %v3864_v32 = vpop.f32.mrb[126].mxu1  ;;  %v3928_v30 = vpop.f32.mrb[126].mxu0 }
 0x1f0   :  { %v3865_v11 = vpop.f32.mrb[127].mxu1  ;;  %v3929_v27 = vpop.f32.mrb[127].mxu0 }
 0x1f1   :  { %v3345_v14 = vpack.c.bf16 %v2916_v26, %v2915_v7  ;;  %v2776_v15 = vadd.f32 %v3863_v24, %v5383_v46  ;;  %v3866_v33 = vadd.f32 %v3865_v11, %v3864_v32  ;;  %v3930_v38 = vadd.f32 %v3929_v27, %v3928_v30 }
 0x1f3   :  { %3373 = vst [vmem:[%s5455_s3 + $0x10] sm:$0xff] %v3345_v14   ;;  %v2873_v31 = vadd.f32 %v3927_v53, %v2776_v15  ;;  %v2779_v17 = vadd.f32 %v3866_v33, %v5386_v48 }
 0x1f5   :  { %v2876_v16 = vadd.f32 %v3930_v38, %v2779_v17  ;;  %v3867_v29 = vpop.f32.mrb[128].mxu1  ;;  %v3931_v41 = vpop.f32.mrb[128].mxu0  ;;  %v2917_v43 = vmax.f32 %v2873_v31, 0.0 }
 0x1f6   :  { %v3868_v22 = vpop.f32.mrb[129].mxu1  ;;  %v3932_v4 = vpop.f32.mrb[129].mxu0 }
 0x1f7   :  { %v2918_v47 = vmax.f32 %v2876_v16, 0.0  ;;  %v3869_v21 = vadd.f32 %v3868_v22, %v3867_v29  ;;  %v3933_v12 = vadd.f32 %v3932_v4, %v3931_v41  ;;  %v3870_v60 = vpop.f32.mrb[130].mxu1  ;;  %v3934_v46 = vpop.f32.mrb[130].mxu0 }
 0x1f8   :  { %v3871_v40 = vpop.f32.mrb[131].mxu1  ;;  %v3935_v37 = vpop.f32.mrb[131].mxu0 }
 0x1f9   :  { %v3350_v34 = vpack.c.bf16 %v2918_v47, %v2917_v43  ;;  %v2784_v57 = vadd.f32 %v3869_v21, %v5389_v0  ;;  %v3872_v54 = vadd.f32 %v3871_v40, %v3870_v60  ;;  %v3936_v35 = vadd.f32 %v3935_v37, %v3934_v46 }
 0x1fb   :  { %3374 = vst [vmem:[%s5455_s3 + $0x18] sm:$0xff] %v3350_v34   ;;  %v2881_v48 = vadd.f32 %v3933_v12, %v2784_v57  ;;  %v2787_v42 = vadd.f32 %v3872_v54, %v5392_v1 }
 0x1fd   :  { %v2884_v28 = vadd.f32 %v3936_v35, %v2787_v42  ;;  %v3873_v59 = vpop.f32.mrb[132].mxu1  ;;  %v3937_v52 = vpop.f32.mrb[132].mxu0  ;;  %v2919_v5 = vmax.f32 %v2881_v48, 0.0 }
 0x1fe   :  { %v3874_v25 = vpop.f32.mrb[133].mxu1  ;;  %v3938_v63 = vpop.f32.mrb[133].mxu0 }
 0x1ff   :  { %v2920_v20 = vmax.f32 %v2884_v28, 0.0  ;;  %v3875_v50 = vadd.f32 %v3874_v25, %v3873_v59  ;;  %v3939_v8 = vadd.f32 %v3938_v63, %v3937_v52  ;;  %v3876_v9 = vpop.f32.mrb[134].mxu1  ;;  %v3940_v0 = vpop.f32.mrb[134].mxu0 }
 0x200   :  { %v3877_v2 = vpop.f32.mrb[135].mxu1  ;;  %v3941_v55 = vpop.f32.mrb[135].mxu0 }
 0x201   :  { %v3355_v36 = vpack.c.bf16 %v2920_v20, %v2919_v5  ;;  %v2792_v56 = vadd.f32 %v3875_v50, %v5395_v61  ;;  %v3878_v6 = vadd.f32 %v3877_v2, %v3876_v9  ;;  %v3942_v13 = vadd.f32 %v3941_v55, %v3940_v0 }
 0x203   :  { %3375 = vst [vmem:[%s5455_s3 + $0x20] sm:$0xff] %v3355_v36   ;;  %v2889_v1 = vadd.f32 %v3939_v8, %v2792_v56  ;;  %v2795_v10 = vadd.f32 %v3878_v6, %v5398_v62 }
 0x205   :  { %v2892_v18 = vadd.f32 %v3942_v13, %v2795_v10  ;;  %v3879_v45 = vpop.f32.mrb[136].mxu1  ;;  %v3943_v51 = vpop.f32.mrb[136].mxu0  ;;  %v2921_v3 = vmax.f32 %v2889_v1, 0.0 }
 0x206   :  { %v3880_v19 = vpop.f32.mrb[137].mxu1  ;;  %v3944_v44 = vpop.f32.mrb[137].mxu0 }
 0x207   :  { %v2922_v7 = vmax.f32 %v2892_v18, 0.0  ;;  %v3881_v26 = vadd.f32 %v3880_v19, %v3879_v45  ;;  %v3945_v24 = vadd.f32 %v3944_v44, %v3943_v51  ;;  %v3882_v53 = vpop.f32.mrb[138].mxu1  ;;  %v3946_v61 = vpop.f32.mrb[138].mxu0 }
 0x208   :  { %v3883_v32 = vpop.f32.mrb[139].mxu1  ;;  %v3947_v30 = vpop.f32.mrb[139].mxu0 }
 0x209   :  { %v3360_v11 = vpack.c.bf16 %v2922_v7, %v2921_v3  ;;  %v2800_v27 = vadd.f32 %v3881_v26, %v5401_v23  ;;  %v3884_v14 = vadd.f32 %v3883_v32, %v3882_v53  ;;  %v3948_v15 = vadd.f32 %v3947_v30, %v3946_v61 }
 0x20b   :  { %3376 = vst [vmem:[%s5455_s3 + $0x28] sm:$0xff] %v3360_v11   ;;  %v2897_v62 = vadd.f32 %v3945_v24, %v2800_v27  ;;  %v2803_v33 = vadd.f32 %v3884_v14, %v5404_v39 }
 0x20d   :  { %v2900_v38 = vadd.f32 %v3948_v15, %v2803_v33  ;;  %v3885_v31 = vpop.f32.mrb[140].mxu1  ;;  %v3949_v17 = vpop.f32.mrb[140].mxu0  ;;  %v2923_v41 = vmax.f32 %v2897_v62, 0.0 }
 0x20e   :  { %v3886_v16 = vpop.f32.mrb[141].mxu1  ;;  %v3950_v29 = vpop.f32.mrb[141].mxu0 }
 0x20f   :  { %v2924_v22 = vmax.f32 %v2900_v38, 0.0  ;;  %v3887_v4 = vadd.f32 %v3886_v16, %v3885_v31  ;;  %v3951_v43 = vadd.f32 %v3950_v29, %v3949_v17  ;;  %v3888_v47 = vpop.f32.mrb[142].mxu1  ;;  %v3952_v23 = vpop.f32.mrb[142].mxu0 }
 0x210   :  { %v3889_v21 = vpop.f32.mrb[143].mxu1  ;;  %v3953_v12 = vpop.f32.mrb[143].mxu0 }
 0x211   :  { %v3365_v60 = vpack.c.bf16 %v2924_v22, %v2923_v41  ;;  %v2808_v46 = vadd.f32 %v3887_v4, %v5407_v49  ;;  %v3890_v40 = vadd.f32 %v3889_v21, %v3888_v47  ;;  %v3954_v37 = vadd.f32 %v3953_v12, %v3952_v23 }
 0x213   :  { %3377 = vst [vmem:[%s5455_s3 + $0x30] sm:$0xff] %v3365_v60   ;;  %v2905_v39 = vadd.f32 %v3951_v43, %v2808_v46  ;;  %v2811_v34 = vadd.f32 %v3890_v40, %v5410_v58 }
 0x215   :  { %v2908_v57 = vadd.f32 %v3954_v37, %v2811_v34  ;;  %v2925_v54 = vmax.f32 %v2905_v39, 0.0 }
 0x217   :  { %v2926_v35 = vmax.f32 %v2908_v57, 0.0 }
 0x219   :  { %v3370_v48 = vpack.c.bf16 %v2926_v35, %v2925_v54 }
 0x21b   :  { %3378 = vst [vmem:[%s5455_s3 + $0x38] sm:$0xff] %v3370_v48  }

// kernel: forward.15
= control target key start
LH: loop header
LB: loop body
LE: loop exit
PB: predicated region body
PF: predicated region fallthrough
CT: control target
= control target key end

     0   :  { %s1297_s1 = inlined_call_operand.vmem [shape: bf16[896,128], index: 1, kind: input, shape index: {}]   ;;  %s1298_s0 = inlined_call_operand.vmem [shape: bf16[32,896], index: 0, kind: input, shape index: {}]   ;;  %s1299_s2 = inlined_call_operand.vmem [shape: f32[1,128], index: 2, kind: input, shape index: {}]   ;;  %s1300_s3 = inlined_call_operand.vmem [shape: bf16[32,128], index: 3, kind: output, shape index: {}]  }
   0x1   :  { %v982_v0 = vld [vmem:[%s1297_s1 + $0x40] sm:$0xff]   ;;  %v986_v4 = vld [vmem:[%s1297_s1 + $0x48] sm:$0xff]   ;;  %v990_v8 = vld [vmem:[%s1297_s1 + $0x50] sm:$0xff]  }
   0x2   :  { %v983_v1 = vld [vmem:[%s1297_s1] sm:$0xff]   ;;  %868 = vmatprep.subr.bf16.mxu0 %v982_v0  ;;  %v987_v5 = vld [vmem:[%s1297_s1 + $0x8] sm:$0xff]   ;;  %v991_v9 = vld [vmem:[%s1297_s1 + $0x10] sm:$0xff]  }
   0x3   :  { %v984_v2 = vld [vmem:[%s1297_s1 + $0xc0] sm:$0xff]   ;;  %869 = vmatpush3.bf16.msra.mxu0 %v983_v1  ;;  %v988_v6 = vld [vmem:[%s1297_s1 + $0xc8] sm:$0xff]   ;;  %v992_v10 = vld [vmem:[%s1297_s1 + $0xd0] sm:$0xff]  }
   0x4   :  { %v985_v3 = vld [vmem:[%s1297_s1 + $0x80] sm:$0xff]   ;;  %896 = vmatprep.subr.bf16.mxu1 %v984_v2  ;;  %870 = vmatprep.subr.bf16.mxu0 %v986_v4  ;;  %v989_v7 = vld [vmem:[%s1297_s1 + $0x88] sm:$0xff]   ;;  %v993_v11 = vld [vmem:[%s1297_s1 + $0x90] sm:$0xff]  }
   0x5   :  { %897 = vmatpush3.bf16.msra.mxu1 %v985_v3  ;;  %v994_v12 = vld [vmem:[%s1297_s1 + $0x58] sm:$0xff]   ;;  %v998_v16 = vld [vmem:[%s1297_s1 + $0x60] sm:$0xff]   ;;  %v1002_v20 = vld [vmem:[%s1297_s1 + $0x68] sm:$0xff]  }
   0x6   :  { %898 = vmatprep.subr.bf16.mxu1 %v988_v6  ;;  %v995_v13 = vld [vmem:[%s1297_s1 + $0x18] sm:$0xff]   ;;  %v999_v17 = vld [vmem:[%s1297_s1 + $0x20] sm:$0xff]   ;;  %v1003_v21 = vld [vmem:[%s1297_s1 + $0x28] sm:$0xff]  }
   0x7   :  { %871 = vmatpush3.bf16.msra.mxu0 %v987_v5  ;;  %v996_v14 = vld [vmem:[%s1297_s1 + $0xd8] sm:$0xff]   ;;  %v1000_v18 = vld [vmem:[%s1297_s1 + $0xe0] sm:$0xff]   ;;  %v1004_v22 = vld [vmem:[%s1297_s1 + $0xe8] sm:$0xff]  }
   0x8   :  { %872 = vmatprep.subr.bf16.mxu0 %v990_v8  ;;  %v997_v15 = vld [vmem:[%s1297_s1 + $0x98] sm:$0xff]   ;;  %v1001_v19 = vld [vmem:[%s1297_s1 + $0xa0] sm:$0xff]   ;;  %v1005_v23 = vld [vmem:[%s1297_s1 + $0xa8] sm:$0xff]  }
   0x9   :  { %899 = vmatpush3.bf16.msra.mxu1 %v989_v7  ;;  %v1006_v24 = vld [vmem:[%s1297_s1 + $0x70] sm:$0xff]   ;;  %v1010_v28 = vld [vmem:[%s1297_s1 + $0x78] sm:$0xff]   ;;  %v1015_v32 = vld [vmem:[%s1298_s0 + $0x4] ss:$28 sps:$4 sm:$0xff]  }
   0xa   :  { %900 = vmatprep.subr.bf16.mxu1 %v992_v10  ;;  %v1007_v25 = vld [vmem:[%s1297_s1 + $0x30] sm:$0xff]   ;;  %v1011_v29 = vld [vmem:[%s1297_s1 + $0x38] sm:$0xff]   ;;  %590 = vmatprep.mubr.bf16.mxu0 %v1015_v32  ;;  %v1017_v34 = vld [vmem:[%s1297_s1 + $0x140] sm:$0xff]  }
   0xb   :  { %873 = vmatpush3.bf16.msra.mxu0 %v991_v9  ;;  %v1008_v26 = vld [vmem:[%s1297_s1 + $0xf0] sm:$0xff]   ;;  %v1012_v30 = vld [vmem:[%s1297_s1 + $0xf8] sm:$0xff]   ;;  %v1018_v35 = vld [vmem:[%s1298_s0 + $0x8] ss:$28 sps:$4 sm:$0xff]  }
   0xc   :  { %874 = vmatprep.subr.bf16.mxu0 %v994_v12  ;;  %v1009_v27 = vld [vmem:[%s1297_s1 + $0xb0] sm:$0xff]   ;;  %v1013_v31 = vld [vmem:[%s1298_s0] ss:$28 sps:$4 sm:$0xff]   ;;  %v1020_v36 = vld [vmem:[%s1298_s0 + $0xc] ss:$28 sps:$4 sm:$0xff]  }
   0xd   :  { %901 = vmatpush3.bf16.msra.mxu1 %v993_v11  ;;  %v1016_v33 = vld [vmem:[%s1297_s1 + $0xb8] sm:$0xff]   ;;  %v1021_v37 = vld [vmem:[%s1297_s1 + $0x100] sm:$0xff]   ;;  %639 = vmatprep.mubr.bf16.mxu1 %v1020_v36  ;;  %v1022_v38 = vld [vmem:[%s1297_s1 + $0x148] sm:$0xff]  }
   0xe   :  { %902 = vmatprep.subr.bf16.mxu1 %v996_v14  ;;  %v1023_v39 = vld [vmem:[%s1297_s1 + $0x180] sm:$0xff]   ;;  %v1024_v40 = vld [vmem:[%s1297_s1 + $0x108] sm:$0xff]   ;;  %v1025_v41 = vld [vmem:[%s1297_s1 + $0x150] sm:$0xff]  }
   0xf   :  { %875 = vmatpush3.bf16.msra.mxu0 %v995_v13  ;;  %v1026_v42 = vld [vmem:[%s1297_s1 + $0x188] sm:$0xff]   ;;  %v1027_v43 = vld [vmem:[%s1297_s1 + $0x110] sm:$0xff]   ;;  %v1028_v44 = vld [vmem:[%s1297_s1 + $0x158] sm:$0xff]  }
  0x10   :  { %876 = vmatprep.subr.bf16.mxu0 %v998_v16  ;;  %v1029_v45 = vld [vmem:[%s1297_s1 + $0x190] sm:$0xff]   ;;  %v1030_v46 = vld [vmem:[%s1297_s1 + $0x118] sm:$0xff]   ;;  %v1031_v47 = vld [vmem:[%s1297_s1 + $0x160] sm:$0xff]  }
  0x11   :  { %903 = vmatpush3.bf16.msra.mxu1 %v997_v15  ;;  %v1032_v48 = vld [vmem:[%s1297_s1 + $0x198] sm:$0xff]   ;;  %v1033_v49 = vld [vmem:[%s1297_s1 + $0x120] sm:$0xff]   ;;  %v1036_v51 = vld [vmem:[%s1297_s1 + $0x168] sm:$0xff]  }
  0x12   :  { %904 = vmatprep.subr.bf16.mxu1 %v1000_v18  ;;  %v1034_v50 = vld [vmem:[%s1298_s0 + $0x3c] ss:$28 sps:$4 sm:$0xff]   ;;  %v1037_v52 = vld [vmem:[%s1297_s1 + $0x1a0] sm:$0xff]   ;;  %v1039_v54 = vld [vmem:[%s1297_s1 + $0x128] sm:$0xff]  }
  0x13   :  { %877 = vmatpush3.bf16.msra.mxu0 %v999_v17  ;;  %v1038_v53 = vld [vmem:[%s1298_s0 + $0x38] ss:$28 sps:$4 sm:$0xff]   ;;  %v1040_v55 = vld [vmem:[%s1298_s0 + $0x44] ss:$28 sps:$4 sm:$0xff]   ;;  %v1044_v58 = vld [vmem:[%s1297_s1 + $0x1a8] sm:$0xff]  }
  0x14   :  { %878 = vmatprep.subr.bf16.mxu0 %v1002_v20  ;;  %v1042_v56 = vld [vmem:[%s1298_s0 + $0x40] ss:$28 sps:$4 sm:$0xff]   ;;  %v1043_v57 = vld [vmem:[%s1297_s1 + $0x170] sm:$0xff]   ;;  %v1055_v3 = vld [vmem:[%s1298_s0 + $0x4c] ss:$28 sps:$4 sm:$0xff]  }
  0x15   :  { %905 = vmatpush3.bf16.msra.mxu1 %v1001_v19  ;;  %v1045_v59 = vld [vmem:[%s1297_s1 + $0x130] sm:$0xff]   ;;  %v1046_v60 = vld [vmem:[%s1297_s1 + $0x178] sm:$0xff]   ;;  %v1057_v5 = vld [vmem:[%s1298_s0 + $0x48] ss:$28 sps:$4 sm:$0xff]  }
  0x16   :  { %906 = vmatprep.subr.bf16.mxu1 %v1004_v22  ;;  %v1047_v61 = vld [vmem:[%s1297_s1 + $0x1b0] sm:$0xff]   ;;  %v1048_v62 = vld [vmem:[%s1297_s1 + $0x138] sm:$0xff]   ;;  %v778_v7 = vld [vmem:[%s1299_s2] ss:$0 sm:$0xff] }
  0x17   :  { %879 = vmatpush3.bf16.msra.mxu0 %v1003_v21  ;;  %v1051_v63 = vld [vmem:[%s1298_s0 + $0x14] ss:$28 sps:$4 sm:$0xff]   ;;  %v1052_v0 = vld [vmem:[%s1297_s1 + $0x1b8] sm:$0xff]  }
  0x18   :  { %880 = vmatprep.subr.bf16.mxu0 %v1006_v24  ;;  %v1053_v1 = vld [vmem:[%s1298_s0 + $0x18] ss:$28 sps:$4 sm:$0xff]   ;;  %v1049_v2 = vld [vmem:[%s1298_s0 + $0x10] ss:$28 sps:$4 sm:$0xff]  }
  0x19   :  { %907 = vmatpush3.bf16.msra.mxu1 %v1005_v23  ;;  %v1054_v4 = vld [vmem:[%s1298_s0 + $0x50] ss:$28 sps:$4 sm:$0xff]  }
  0x1a   :  { %908 = vmatprep.subr.bf16.mxu1 %v1008_v26 }
  0x1b   :  { %881 = vmatpush3.bf16.msra.mxu0 %v1007_v25 }
  0x1c   :  { %882 = vmatprep.subr.bf16.mxu0 %v1010_v28 }
  0x1d   :  { %909 = vmatpush3.bf16.msra.mxu1 %v1009_v27 }
  0x1e   :  { %910 = vmatprep.subr.bf16.mxu1 %v1012_v30 }
  0x1f   :  { %883 = vmatpush3.bf16.msra.mxu0 %v1011_v29 }
  0x20   :  { %924 = vmatprep.subr.bf16.mxu0 %v1017_v34 }
  0x21   :  { %911 = vmatpush3.bf16.msra.mxu1 %v1016_v33 }
  0x22   :  { %591 = vmatmul.mubr.bf16.vlgmr.msra.gmra.mrb[0].mxu0 %v1013_v31  ;;  %962 = vmatprep.subr.bf16.mxu1 %v1023_v39 }
  0x23   :  { %925 = vmatpush3.bf16.msra.mxu0 %v1021_v37  ;;  %598 = vmatprep.mubr.bf16.mxu0 %v1034_v50 }
  0x24   :  { %640 = vmatmul.mubr.bf16.vlgmr.msra.gmra.mrb[0].mxu1 %v1018_v35  ;;  %926 = vmatprep.subr.bf16.mxu0 %v1022_v38 }
  0x25   :  { %963 = vmatpush3.bf16.msra.mxu1 %v1023_v39  ;;  %647 = vmatprep.mubr.bf16.mxu1 %v1040_v55 }
  0x26   :  { %964 = vmatprep.subr.bf16.mxu1 %v1026_v42 }
  0x27   :  { %927 = vmatpush3.bf16.msra.mxu0 %v1024_v40 }
  0x28   :  { %928 = vmatprep.subr.bf16.mxu0 %v1025_v41 }
  0x29   :  { %965 = vmatpush3.bf16.msra.mxu1 %v1026_v42 }
  0x2a   :  { %966 = vmatprep.subr.bf16.mxu1 %v1029_v45  ;;  %599 = vmatmul.mubr.bf16.gmra.mrb[4].mxu0 %v1038_v53 }
  0x2b   :  { %929 = vmatpush3.bf16.msra.mxu0 %v1027_v43  ;;  %688 = vmatprep.mubr.bf16.mxu0 %v1051_v63 }
  0x2c   :  { %930 = vmatprep.subr.bf16.mxu0 %v1028_v44  ;;  %648 = vmatmul.mubr.bf16.gmra.mrb[4].mxu1 %v1042_v56 }
  0x2d   :  { %967 = vmatpush3.bf16.msra.mxu1 %v1029_v45  ;;  %978 = vmatprep.mubr.bf16.mxu1 %v1053_v1 }
  0x2e   :  { %968 = vmatprep.subr.bf16.mxu1 %v1032_v48 }
  0x2f   :  { %931 = vmatpush3.bf16.msra.mxu0 %v1030_v46 }
  0x30   :  { %932 = vmatprep.subr.bf16.mxu0 %v1031_v47 }
  0x31   :  { %969 = vmatpush3.bf16.msra.mxu1 %v1032_v48 }
  0x32   :  { %970 = vmatprep.subr.bf16.mxu1 %v1037_v52 }
  0x33   :  { %933 = vmatpush3.bf16.msra.mxu0 %v1033_v49 }
  0x34   :  { %934 = vmatprep.subr.bf16.mxu0 %v1036_v51 }
  0x35   :  { %971 = vmatpush3.bf16.msra.mxu1 %v1037_v52 }
  0x36   :  { %972 = vmatprep.subr.bf16.mxu1 %v1044_v58 }
  0x37   :  { %935 = vmatpush3.bf16.msra.mxu0 %v1039_v54 }
  0x38   :  { %936 = vmatprep.subr.bf16.mxu0 %v1043_v57 }
  0x39   :  { %973 = vmatpush3.bf16.msra.mxu1 %v1044_v58 }
  0x3a   :  { %974 = vmatprep.subr.bf16.mxu1 %v1047_v61 }
  0x3b   :  { %937 = vmatpush3.bf16.msra.mxu0 %v1045_v59 }
  0x3c   :  { %938 = vmatprep.subr.bf16.mxu0 %v1046_v60 }
  0x3d   :  { %975 = vmatpush3.bf16.msra.mxu1 %v1047_v61 }
  0x3e   :  { %976 = vmatprep.subr.bf16.mxu1 %v1052_v0 }
  0x3f   :  { %939 = vmatpush3.bf16.msra.mxu0 %v1048_v62 }
  0x41   :  { %977 = vmatpush3.bf16.msra.mxu1 %v1052_v0 }
  0x42   :  { %689 = vmatmul.mubr.bf16.vlgmr.msra.gmra.mrb[8].mxu0 %v1049_v2 }
  0x43   :  { %696 = vmatprep.mubr.bf16.mxu0 %v1055_v3 }
  0x44   :  { %979 = vmatmul.mubr.bf16.vlgmr.msra.gmra.mrb[8].mxu1 %v1054_v4 }
  0x4a   :  { %697 = vmatmul.mubr.bf16.gmra.mrb[12].mxu0 %v1057_v5 }
  0xf5   :  { %v884_v6 = vpop.f32.mrb[0].mxu0 }
  0xf6   :  { %v885_v8 = vpop.f32.mrb[1].mxu0 }
  0xf7   :  { %v886_v9 = vadd.f32 %v885_v8, %v884_v6  ;;  %v887_v10 = vpop.f32.mrb[2].mxu0  ;;  %v912_v11 = vpop.f32.mrb[0].mxu1 }
  0xf8   :  { %v888_v12 = vpop.f32.mrb[3].mxu0  ;;  %v913_v15 = vpop.f32.mrb[1].mxu1 }
  0xf9   :  { %v593_v13 = vadd.f32 %v886_v9, %v778_v7  ;;  %v889_v14 = vadd.f32 %v888_v12, %v887_v10  ;;  %v914_v16 = vadd.f32 %v913_v15, %v912_v11  ;;  %v915_v17 = vpop.f32.mrb[2].mxu1 }
  0xfa   :  { %v916_v19 = vpop.f32.mrb[3].mxu1 }
  0xfb   :  { %v596_v18 = vadd.f32 %v889_v14, %v778_v7  ;;  %v642_v20 = vadd.f32 %v914_v16, %v593_v13  ;;  %v917_v21 = vadd.f32 %v916_v19, %v915_v17 }
  0xfd   :  { %v645_v22 = vadd.f32 %v917_v21, %v596_v18  ;;  %v890_v23 = vpop.f32.mrb[4].mxu0 }
  0xfe   :  { %v891_v24 = vpop.f32.mrb[5].mxu0 }
  0xff   :  { %v892_v25 = vadd.f32 %v891_v24, %v890_v23  ;;  %v893_v26 = vpop.f32.mrb[6].mxu0  ;;  %v918_v27 = vpop.f32.mrb[4].mxu1 }
 0x100   :  { %v894_v28 = vpop.f32.mrb[7].mxu0  ;;  %v919_v31 = vpop.f32.mrb[5].mxu1 }
 0x101   :  { %v601_v29 = vadd.f32 %v892_v25, %v778_v7  ;;  %v895_v30 = vadd.f32 %v894_v28, %v893_v26  ;;  %v920_v32 = vadd.f32 %v919_v31, %v918_v27  ;;  %v921_v33 = vpop.f32.mrb[6].mxu1 }
 0x102   :  { %v922_v35 = vpop.f32.mrb[7].mxu1 }
 0x103   :  { %v604_v34 = vadd.f32 %v895_v30, %v778_v7  ;;  %v650_v36 = vadd.f32 %v920_v32, %v601_v29  ;;  %v923_v37 = vadd.f32 %v922_v35, %v921_v33 }
 0x105   :  { %v653_v38 = vadd.f32 %v923_v37, %v604_v34 }
 0x115   :  { %v940_v39 = vpop.f32.mrb[8].mxu0 }
 0x116   :  { %v941_v40 = vpop.f32.mrb[9].mxu0 }
 0x117   :  { %v942_v41 = vadd.f32 %v941_v40, %v940_v39  ;;  %v943_v42 = vpop.f32.mrb[10].mxu0  ;;  %v980_v44 = vpop.f32.mrb[8].mxu1 }
 0x118   :  { %v944_v43 = vpop.f32.mrb[11].mxu0  ;;  %v739_v47 = vpop.f32.mrb[9].mxu1 }
 0x119   :  { %v945_v45 = vadd.f32 %v944_v43, %v943_v42  ;;  %v691_v46 = vadd.f32 %v942_v41, %v642_v20  ;;  %v981_v48 = vpop.f32.mrb[10].mxu1 }
 0x11a   :  { %v742_v51 = vpop.f32.mrb[11].mxu1 }
 0x11b   :  { %v740_v49 = vadd.f32 %v739_v47, %v691_v46  ;;  %v694_v50 = vadd.f32 %v945_v45, %v645_v22 }
 0x11d   :  { %v743_v52 = vadd.f32 %v742_v51, %v694_v50  ;;  %v946_v53 = vpop.f32.mrb[12].mxu0 }
 0x11e   :  { %v947_v54 = vpop.f32.mrb[13].mxu0 }
 0x11f   :  { %v860_v55 = vpack.c.bf16 %v743_v52, %v740_v49  ;;  %v948_v56 = vadd.f32 %v947_v54, %v946_v53  ;;  %v949_v57 = vpop.f32.mrb[14].mxu0 }
 0x120   :  { %v950_v58 = vpop.f32.mrb[15].mxu0 }
 0x121   :  { %861 = vst [vmem:[%s1300_s3] sm:$0xff] %v860_v55   ;;  %v699_v59 = vadd.f32 %v948_v56, %v650_v36  ;;  %v951_v60 = vadd.f32 %v950_v58, %v949_v57 }
 0x123   :  { %v748_v61 = vadd.f32 %v980_v44, %v699_v59  ;;  %v702_v62 = vadd.f32 %v951_v60, %v653_v38 }
 0x125   :  { %v751_v63 = vadd.f32 %v981_v48, %v702_v62 }
 0x127   :  { %v865_v0 = vpack.c.bf16 %v751_v63, %v748_v61 }
 0x129   :  { %867 = vst [vmem:[%s1300_s3 + $0x8] sm:$0xff] %v865_v0  }

// kernel: forward.17
= control target key start
LH: loop header
LB: loop body
LE: loop exit
PB: predicated region body
PF: predicated region fallthrough
CT: control target
= control target key end

     0   :  { %vm1392_vm0 = vmmov 0   ;;  %s1719_s1 = inlined_call_operand.vmem [shape: bf16[1408,128], index: 1, kind: input, shape index: {}]   ;;  %s1720_s0 = inlined_call_operand.vmem [shape: bf16[16,1408], index: 0, kind: input, shape index: {}]   ;;  %s1721_s2 = inlined_call_operand.vmem [shape: f32[1,128], index: 2, kind: input, shape index: {}]   ;;  %s1722_s3 = inlined_call_operand.vmem [shape: f32[16,128], index: 3, kind: output, shape index: {}]  }
   0x1   :  { %v1287_v0 = vld [vmem:[%s1719_s1 + $0x40] sm:$0xff]   ;;  %v1291_v4 = vld [vmem:[%s1719_s1 + $0x48] sm:$0xff]   ;;  %v1295_v8 = vld [vmem:[%s1719_s1 + $0x50] sm:$0xff]  }
   0x2   :  { %v1288_v1 = vld [vmem:[%s1719_s1] sm:$0xff]   ;;  %1146 = vmatprep.subr.bf16.mxu0 %v1287_v0  ;;  %v1292_v5 = vld [vmem:[%s1719_s1 + $0x8] sm:$0xff]   ;;  %v1296_v9 = vld [vmem:[%s1719_s1 + $0x10] sm:$0xff]  }
   0x3   :  { %v1289_v2 = vld [vmem:[%s1719_s1 + $0xc0] sm:$0xff]   ;;  %1147 = vmatpush3.bf16.msra.mxu0 %v1288_v1  ;;  %v1293_v6 = vld [vmem:[%s1719_s1 + $0xc8] sm:$0xff]   ;;  %v1297_v10 = vld [vmem:[%s1719_s1 + $0xd0] sm:$0xff]  }
   0x4   :  { %v1290_v3 = vld [vmem:[%s1719_s1 + $0x80] sm:$0xff]   ;;  %1168 = vmatprep.subr.bf16.mxu1 %v1289_v2  ;;  %1148 = vmatprep.subr.bf16.mxu0 %v1291_v4  ;;  %v1294_v7 = vld [vmem:[%s1719_s1 + $0x88] sm:$0xff]   ;;  %v1298_v11 = vld [vmem:[%s1719_s1 + $0x90] sm:$0xff]  }
   0x5   :  { %1169 = vmatpush3.bf16.msra.mxu1 %v1290_v3  ;;  %v1299_v12 = vld [vmem:[%s1719_s1 + $0x58] sm:$0xff]   ;;  %v1303_v16 = vld [vmem:[%s1719_s1 + $0x60] sm:$0xff]   ;;  %v1307_v20 = vld [vmem:[%s1719_s1 + $0x68] sm:$0xff]  }
   0x6   :  { %1170 = vmatprep.subr.bf16.mxu1 %v1293_v6  ;;  %v1300_v13 = vld [vmem:[%s1719_s1 + $0x18] sm:$0xff]   ;;  %v1304_v17 = vld [vmem:[%s1719_s1 + $0x20] sm:$0xff]   ;;  %v1308_v21 = vld [vmem:[%s1719_s1 + $0x28] sm:$0xff]  }
   0x7   :  { %1149 = vmatpush3.bf16.msra.mxu0 %v1292_v5  ;;  %v1301_v14 = vld [vmem:[%s1719_s1 + $0xd8] sm:$0xff]   ;;  %v1305_v18 = vld [vmem:[%s1719_s1 + $0xe0] sm:$0xff]   ;;  %v1309_v22 = vld [vmem:[%s1719_s1 + $0xe8] sm:$0xff]  }
   0x8   :  { %1150 = vmatprep.subr.bf16.mxu0 %v1295_v8  ;;  %v1302_v15 = vld [vmem:[%s1719_s1 + $0x98] sm:$0xff]   ;;  %v1306_v19 = vld [vmem:[%s1719_s1 + $0xa0] sm:$0xff]   ;;  %v1310_v23 = vld [vmem:[%s1719_s1 + $0xa8] sm:$0xff]  }
   0x9   :  { %1171 = vmatpush3.bf16.msra.mxu1 %v1294_v7  ;;  %v1311_v24 = vld [vmem:[%s1719_s1 + $0x70] sm:$0xff]   ;;  %v1315_v28 = vld [vmem:[%s1719_s1 + $0x78] sm:$0xff]   ;;  %v1318_v31 = vld [vmem:[%s1720_s0] ss:$44 sps:$4 sm:$0xff]  }
   0xa   :  { %1172 = vmatprep.subr.bf16.mxu1 %v1297_v10  ;;  %v1312_v25 = vld [vmem:[%s1719_s1 + $0x30] sm:$0xff]   ;;  %v1316_v29 = vld [vmem:[%s1719_s1 + $0x38] sm:$0xff]   ;;  %v1322_v34 = vld [vmem:[%s1719_s1 + $0x140] sm:$0xff]  }
   0xb   :  { %1151 = vmatpush3.bf16.msra.mxu0 %v1296_v9  ;;  %v1313_v26 = vld [vmem:[%s1719_s1 + $0xf0] sm:$0xff]   ;;  %v1317_v30 = vld [vmem:[%s1719_s1 + $0xf8] sm:$0xff]   ;;  %v1326_v37 = vld [vmem:[%s1719_s1 + $0x100] sm:$0xff]   ;;  %v1391_v9 = vmov 0.0  }
   0xc   :  { %1152 = vmatprep.subr.bf16.mxu0 %v1299_v12  ;;  %v1314_v27 = vld [vmem:[%s1719_s1 + $0xb0] sm:$0xff]   ;;  %v1321_v33 = vld [vmem:[%s1719_s1 + $0xb8] sm:$0xff]   ;;  %v1327_v38 = vld [vmem:[%s1719_s1 + $0x1c0] sm:$0xff]  }
   0xd   :  { %1173 = vmatpush3.bf16.msra.mxu1 %v1298_v11  ;;  %v1320_v32 = vld [vmem:[%s1720_s0 + $0x4] ss:$44 sps:$4 sm:$0xff]   ;;  %v1323_v35 = vld [vmem:[%s1720_s0 + $0x8] ss:$44 sps:$4 sm:$0xff]   ;;  %v1325_v36 = vld [vmem:[%s1720_s0 + $0xc] ss:$44 sps:$4 sm:$0xff]  }
   0xe   :  { %1174 = vmatprep.subr.bf16.mxu1 %v1301_v14  ;;  %826 = vmatprep.mubr.bf16.mxu0 %v1320_v32  ;;  %v1328_v39 = vld [vmem:[%s1719_s1 + $0x180] sm:$0xff]   ;;  %v1329_v40 = vld [vmem:[%s1719_s1 + $0x148] sm:$0xff]   ;;  %v1333_v44 = vld [vmem:[%s1719_s1 + $0x150] sm:$0xff]  }
   0xf   :  { %1153 = vmatpush3.bf16.msra.mxu0 %v1300_v13  ;;  %867 = vmatprep.mubr.bf16.mxu1 %v1325_v36  ;;  %v1330_v41 = vld [vmem:[%s1719_s1 + $0x108] sm:$0xff]   ;;  %v1334_v45 = vld [vmem:[%s1719_s1 + $0x110] sm:$0xff]   ;;  %v1337_v48 = vld [vmem:[%s1719_s1 + $0x158] sm:$0xff]  }
  0x10   :  { %1154 = vmatprep.subr.bf16.mxu0 %v1303_v16  ;;  %v1331_v42 = vld [vmem:[%s1719_s1 + $0x1c8] sm:$0xff]   ;;  %v1335_v46 = vld [vmem:[%s1719_s1 + $0x1d0] sm:$0xff]   ;;  %v1338_v49 = vld [vmem:[%s1719_s1 + $0x118] sm:$0xff]  }
  0x11   :  { %1175 = vmatpush3.bf16.msra.mxu1 %v1302_v15  ;;  %v1332_v43 = vld [vmem:[%s1719_s1 + $0x188] sm:$0xff]   ;;  %v1336_v47 = vld [vmem:[%s1719_s1 + $0x190] sm:$0xff]   ;;  %v1339_v50 = vld [vmem:[%s1719_s1 + $0x1d8] sm:$0xff]  }
  0x12   :  { %1176 = vmatprep.subr.bf16.mxu1 %v1305_v18  ;;  %v1340_v51 = vld [vmem:[%s1719_s1 + $0x198] sm:$0xff]   ;;  %v1341_v52 = vld [vmem:[%s1719_s1 + $0x160] sm:$0xff]   ;;  %v1345_v56 = vld [vmem:[%s1719_s1 + $0x168] sm:$0xff]  }
  0x13   :  { %1155 = vmatpush3.bf16.msra.mxu0 %v1304_v17  ;;  %v1342_v53 = vld [vmem:[%s1719_s1 + $0x120] sm:$0xff]   ;;  %v1346_v57 = vld [vmem:[%s1719_s1 + $0x128] sm:$0xff]   ;;  %v1349_v60 = vld [vmem:[%s1719_s1 + $0x170] sm:$0xff]  }
  0x14   :  { %1156 = vmatprep.subr.bf16.mxu0 %v1307_v20  ;;  %v1343_v54 = vld [vmem:[%s1719_s1 + $0x1e0] sm:$0xff]   ;;  %v1347_v58 = vld [vmem:[%s1719_s1 + $0x1e8] sm:$0xff]   ;;  %v1350_v61 = vld [vmem:[%s1719_s1 + $0x130] sm:$0xff]  }
  0x15   :  { %1177 = vmatpush3.bf16.msra.mxu1 %v1306_v19  ;;  %v1344_v55 = vld [vmem:[%s1719_s1 + $0x1a0] sm:$0xff]   ;;  %v1348_v59 = vld [vmem:[%s1719_s1 + $0x1a8] sm:$0xff]   ;;  %v1351_v62 = vld [vmem:[%s1719_s1 + $0x1f0] sm:$0xff]  }
  0x16   :  { %1178 = vmatprep.subr.bf16.mxu1 %v1309_v22  ;;  %v1352_v63 = vld [vmem:[%s1719_s1 + $0x1b0] sm:$0xff]   ;;  %v1353_v0 = vld [vmem:[%s1719_s1 + $0x178] sm:$0xff]   ;;  %v1360_v6 = vld [vmem:[%s1719_s1 + $0x240] sm:$0xff]  }
  0x17   :  { %1157 = vmatpush3.bf16.msra.mxu0 %v1308_v21  ;;  %v1354_v1 = vld [vmem:[%s1719_s1 + $0x138] sm:$0xff]   ;;  %v1358_v4 = vld [vmem:[%s1720_s0 + $0x14] ss:$44 sps:$4 sm:$0xff]   ;;  %v1366_v12 = vld [vmem:[%s1719_s1 + $0x248] sm:$0xff]  }
  0x18   :  { %1158 = vmatprep.subr.bf16.mxu0 %v1311_v24  ;;  %v1355_v2 = vld [vmem:[%s1719_s1 + $0x1f8] sm:$0xff]   ;;  %v1364_v10 = vld [vmem:[%s1719_s1 + $0x200] sm:$0xff]   ;;  %v1367_v13 = vld [vmem:[%s1719_s1 + $0x208] sm:$0xff]  }
  0x19   :  { %1179 = vmatpush3.bf16.msra.mxu1 %v1310_v23  ;;  %v1356_v3 = vld [vmem:[%s1720_s0 + $0x10] ss:$44 sps:$4 sm:$0xff]   ;;  %v1361_v7 = vld [vmem:[%s1720_s0 + $0x18] ss:$44 sps:$4 sm:$0xff]   ;;  %v1368_v14 = vld [vmem:[%s1719_s1 + $0x288] sm:$0xff]  }
  0x1a   :  { %1180 = vmatprep.subr.bf16.mxu1 %v1313_v26  ;;  %v1359_v5 = vld [vmem:[%s1719_s1 + $0x1b8] sm:$0xff]   ;;  %v1365_v11 = vld [vmem:[%s1719_s1 + $0x280] sm:$0xff]   ;;  %v1369_v15 = vld [vmem:[%s1719_s1 + $0x250] sm:$0xff]  }
  0x1b   :  { %1159 = vmatpush3.bf16.msra.mxu0 %v1312_v25  ;;  %v1363_v8 = vld [vmem:[%s1720_s0 + $0x1c] ss:$44 sps:$4 sm:$0xff]   ;;  %v1370_v16 = vld [vmem:[%s1719_s1 + $0x210] sm:$0xff]   ;;  %v1375_v21 = vld [vmem:[%s1719_s1 + $0x260] sm:$0xff]  }
  0x1c   :  { %1160 = vmatprep.subr.bf16.mxu0 %v1315_v28  ;;  %v1371_v17 = vld [vmem:[%s1719_s1 + $0x290] sm:$0xff]   ;;  %v1372_v18 = vld [vmem:[%s1719_s1 + $0x258] sm:$0xff]   ;;  %v1376_v22 = vld [vmem:[%s1719_s1 + $0x220] sm:$0xff]  }
  0x1d   :  { %1181 = vmatpush3.bf16.msra.mxu1 %v1314_v27  ;;  %v1373_v19 = vld [vmem:[%s1719_s1 + $0x218] sm:$0xff]   ;;  %v1377_v23 = vld [vmem:[%s1719_s1 + $0x2a0] sm:$0xff]   ;;  %v1378_v24 = vld [vmem:[%s1719_s1 + $0x268] sm:$0xff]  }
  0x1e   :  { %1182 = vmatprep.subr.bf16.mxu1 %v1317_v30  ;;  %v1374_v20 = vld [vmem:[%s1719_s1 + $0x298] sm:$0xff]   ;;  %v1379_v25 = vld [vmem:[%s1719_s1 + $0x228] sm:$0xff]   ;;  %v1381_v27 = vld [vmem:[%s1719_s1 + $0x270] sm:$0xff]  }
  0x1f   :  { %1161 = vmatpush3.bf16.msra.mxu0 %v1316_v29  ;;  %v1380_v26 = vld [vmem:[%s1719_s1 + $0x2a8] sm:$0xff]   ;;  %v1382_v28 = vld [vmem:[%s1719_s1 + $0x230] sm:$0xff]   ;;  %v1385_v32 = vld [vmem:[%s1719_s1 + $0x238] sm:$0xff]  }
  0x20   :  { %1190 = vmatprep.subr.bf16.mxu0 %v1322_v34  ;;  %v1383_v29 = vld [vmem:[%s1719_s1 + $0x2b0] sm:$0xff]   ;;  %v1386_v34 = vld [vmem:[%s1720_s0 + $0x20] ss:$44 sps:$4 sm:$0xff]  }
  0x21   :  { %1183 = vmatpush3.bf16.msra.mxu1 %v1321_v33  ;;  %v1388_v30 = vld [vmem:[%s1720_s0 + $0x24] ss:$44 sps:$4 sm:$0xff]   ;;  %v1389_v33 = vld [vmem:[%s1719_s1 + $0x2b8] sm:$0xff]  }
  0x22   :  { %827 = vmatmul.mubr.bf16.vlgmr.msra.gmra.mrb[0].mxu0 %v1318_v31  ;;  %1212 = vmatprep.subr.bf16.mxu1 %v1327_v38  ;;  %v1384_v31 = vld [vmem:[%s1719_s1 + $0x278] sm:$0xff]  }
  0x23   :  { %1191 = vmatpush3.bf16.msra.mxu0 %v1326_v37  ;;  %908 = vmatprep.mubr.bf16.mxu0 %v1358_v4  ;;  %v1046_v37 = vld [vmem:[%s1721_s2] ss:$0 sm:$0xff] }
  0x24   :  { %868 = vmatmul.mubr.bf16.vlgmr.msra.gmra.mrb[0].mxu1 %v1323_v35  ;;  %1192 = vmatprep.subr.bf16.mxu0 %v1329_v40  ;;  %v1390_v35 = vld [vmem:[%s1720_s0 + $0x28] ss:$44 sps:$4 sm:$0xff]  }
  0x25   :  { %1213 = vmatpush3.bf16.msra.mxu1 %v1328_v39  ;;  %949 = vmatprep.mubr.bf16.mxu1 %v1363_v8 }
  0x26   :  { %1214 = vmatprep.subr.bf16.mxu1 %v1331_v42 }
  0x27   :  { %1193 = vmatpush3.bf16.msra.mxu0 %v1330_v41 }
  0x28   :  { %1194 = vmatprep.subr.bf16.mxu0 %v1333_v44 }
  0x29   :  { %1215 = vmatpush3.bf16.msra.mxu1 %v1332_v43 }
  0x2a   :  { %1216 = vmatprep.subr.bf16.mxu1 %v1335_v46 }
  0x2b   :  { %1195 = vmatpush3.bf16.msra.mxu0 %v1334_v45 }
  0x2c   :  { %1196 = vmatprep.subr.bf16.mxu0 %v1337_v48 }
  0x2d   :  { %1217 = vmatpush3.bf16.msra.mxu1 %v1336_v47 }
  0x2e   :  { %1218 = vmatprep.subr.bf16.mxu1 %v1339_v50 }
  0x2f   :  { %1197 = vmatpush3.bf16.msra.mxu0 %v1338_v49 }
  0x30   :  { %1198 = vmatprep.subr.bf16.mxu0 %v1341_v52 }
  0x31   :  { %1219 = vmatpush3.bf16.msra.mxu1 %v1340_v51 }
  0x32   :  { %1220 = vmatprep.subr.bf16.mxu1 %v1343_v54 }
  0x33   :  { %1199 = vmatpush3.bf16.msra.mxu0 %v1342_v53 }
  0x34   :  { %1200 = vmatprep.subr.bf16.mxu0 %v1345_v56 }
  0x35   :  { %1221 = vmatpush3.bf16.msra.mxu1 %v1344_v55 }
  0x36   :  { %1222 = vmatprep.subr.bf16.mxu1 %v1347_v58 }
  0x37   :  { %1201 = vmatpush3.bf16.msra.mxu0 %v1346_v57 }
  0x38   :  { %1202 = vmatprep.subr.bf16.mxu0 %v1349_v60 }
  0x39   :  { %1223 = vmatpush3.bf16.msra.mxu1 %v1348_v59 }
  0x3a   :  { %1224 = vmatprep.subr.bf16.mxu1 %v1351_v62 }
  0x3b   :  { %1203 = vmatpush3.bf16.msra.mxu0 %v1350_v61 }
  0x3c   :  { %1204 = vmatprep.subr.bf16.mxu0 %v1353_v0 }
  0x3d   :  { %1225 = vmatpush3.bf16.msra.mxu1 %v1352_v63 }
  0x3e   :  { %1226 = vmatprep.subr.bf16.mxu1 %v1355_v2 }
  0x3f   :  { %1205 = vmatpush3.bf16.msra.mxu0 %v1354_v1 }
  0x40   :  { %1234 = vmatprep.subr.bf16.mxu0 %v1360_v6 }
  0x41   :  { %1227 = vmatpush3.bf16.msra.mxu1 %v1359_v5 }
  0x42   :  { %909 = vmatmul.mubr.bf16.vlgmr.msra.gmra.mrb[4].mxu0 %v1356_v3  ;;  %1265 = vmatprep.subr.bf16.mxu1 %v1391_v9 }
  0x43   :  { %1235 = vmatpush3.bf16.msra.mxu0 %v1364_v10  ;;  %990 = vmatprep.mubr.bf16.mxu0 %v1388_v30 }
  0x44   :  { %950 = vmatmul.mubr.bf16.vlgmr.msra.gmra.mrb[4].mxu1 %v1361_v7  ;;  %1236 = vmatprep.subr.bf16.mxu0 %v1366_v12 }
  0x45   :  { %1266 = vmatpush3.bf16.msra.mxu1 %v1365_v11  ;;  %1281 = vmatprep.mubr.msk.bf16.mxu1 %vm1392_vm0, %v1391_v9 }
  0x46   :  { %1267 = vmatprep.subr.bf16.mxu1 %v1391_v9 }
  0x47   :  { %1237 = vmatpush3.bf16.msra.mxu0 %v1367_v13 }
  0x48   :  { %1238 = vmatprep.subr.bf16.mxu0 %v1369_v15 }
  0x49   :  { %1268 = vmatpush3.bf16.msra.mxu1 %v1368_v14 }
  0x4a   :  { %1269 = vmatprep.subr.bf16.mxu1 %v1391_v9 }
  0x4b   :  { %1239 = vmatpush3.bf16.msra.mxu0 %v1370_v16 }
  0x4c   :  { %1240 = vmatprep.subr.bf16.mxu0 %v1372_v18 }
  0x4d   :  { %1270 = vmatpush3.bf16.msra.mxu1 %v1371_v17 }
  0x4e   :  { %1271 = vmatprep.subr.bf16.mxu1 %v1391_v9 }
  0x4f   :  { %1241 = vmatpush3.bf16.msra.mxu0 %v1373_v19 }
  0x50   :  { %1242 = vmatprep.subr.bf16.mxu0 %v1375_v21 }
  0x51   :  { %1272 = vmatpush3.bf16.msra.mxu1 %v1374_v20 }
  0x52   :  { %1273 = vmatprep.subr.bf16.mxu1 %v1391_v9 }
  0x53   :  { %1243 = vmatpush3.bf16.msra.mxu0 %v1376_v22 }
  0x54   :  { %1244 = vmatprep.subr.bf16.mxu0 %v1378_v24 }
  0x55   :  { %1274 = vmatpush3.bf16.msra.mxu1 %v1377_v23 }
  0x56   :  { %1275 = vmatprep.subr.bf16.mxu1 %v1391_v9 }
  0x57   :  { %1245 = vmatpush3.bf16.msra.mxu0 %v1379_v25 }
  0x58   :  { %1246 = vmatprep.subr.bf16.mxu0 %v1381_v27 }
  0x59   :  { %1276 = vmatpush3.bf16.msra.mxu1 %v1380_v26 }
  0x5a   :  { %1277 = vmatprep.subr.bf16.mxu1 %v1391_v9 }
  0x5b   :  { %1247 = vmatpush3.bf16.msra.mxu0 %v1382_v28 }
  0x5c   :  { %1248 = vmatprep.subr.bf16.mxu0 %v1384_v31 }
  0x5d   :  { %1278 = vmatpush3.bf16.msra.mxu1 %v1383_v29 }
  0x5e   :  { %1279 = vmatprep.subr.bf16.mxu1 %v1391_v9 }
  0x5f   :  { %1249 = vmatpush3.bf16.msra.mxu0 %v1385_v32 }
  0x61   :  { %1280 = vmatpush3.bf16.msra.mxu1 %v1389_v33 }
  0x62   :  { %991 = vmatmul.mubr.bf16.vlgmr.msra.gmra.mrb[8].mxu0 %v1386_v34 }
  0x64   :  { %1282 = vmatmul.mubr.bf16.vlgmr.msra.gmra.mrb[8].mxu1 %v1390_v35 }
  0xf5   :  { %v1162_v36 = vpop.f32.mrb[0].mxu0 }
  0xf6   :  { %v1163_v38 = vpop.f32.mrb[1].mxu0 }
  0xf7   :  { %v1164_v39 = vadd.f32 %v1163_v38, %v1162_v36  ;;  %v1165_v40 = vpop.f32.mrb[2].mxu0  ;;  %v1184_v41 = vpop.f32.mrb[0].mxu1 }
  0xf8   :  { %v1166_v42 = vpop.f32.mrb[3].mxu0  ;;  %v1185_v45 = vpop.f32.mrb[1].mxu1 }
  0xf9   :  { %v829_v43 = vadd.f32 %v1164_v39, %v1046_v37  ;;  %v1167_v44 = vadd.f32 %v1166_v42, %v1165_v40  ;;  %v1186_v46 = vadd.f32 %v1185_v45, %v1184_v41  ;;  %v1187_v47 = vpop.f32.mrb[2].mxu1 }
  0xfa   :  { %v1188_v49 = vpop.f32.mrb[3].mxu1 }
  0xfb   :  { %v832_v48 = vadd.f32 %v1167_v44, %v1046_v37  ;;  %v870_v50 = vadd.f32 %v1186_v46, %v829_v43  ;;  %v1189_v51 = vadd.f32 %v1188_v49, %v1187_v47 }
  0xfd   :  { %v873_v52 = vadd.f32 %v1189_v51, %v832_v48 }
 0x115   :  { %v1206_v53 = vpop.f32.mrb[4].mxu0 }
 0x116   :  { %v1207_v54 = vpop.f32.mrb[5].mxu0 }
 0x117   :  { %v1208_v55 = vadd.f32 %v1207_v54, %v1206_v53  ;;  %v1209_v56 = vpop.f32.mrb[6].mxu0  ;;  %v1228_v59 = vpop.f32.mrb[4].mxu1 }
 0x118   :  { %v1210_v57 = vpop.f32.mrb[7].mxu0  ;;  %v1229_v61 = vpop.f32.mrb[5].mxu1 }
 0x119   :  { %v911_v58 = vadd.f32 %v1208_v55, %v870_v50  ;;  %v1211_v60 = vadd.f32 %v1210_v57, %v1209_v56  ;;  %v1230_v63 = vadd.f32 %v1229_v61, %v1228_v59  ;;  %v1231_v0 = vpop.f32.mrb[6].mxu1 }
 0x11a   :  { %v1232_v1 = vpop.f32.mrb[7].mxu1 }
 0x11b   :  { %v914_v62 = vadd.f32 %v1211_v60, %v873_v52  ;;  %v952_v2 = vadd.f32 %v1230_v63, %v911_v58  ;;  %v1233_v3 = vadd.f32 %v1232_v1, %v1231_v0 }
 0x11d   :  { %v955_v4 = vadd.f32 %v1233_v3, %v914_v62 }
 0x135   :  { %v1250_v5 = vpop.f32.mrb[8].mxu0 }
 0x136   :  { %v1251_v6 = vpop.f32.mrb[9].mxu0 }
 0x137   :  { %v1033_v7 = vpop.f32.mrb[8].mxu1  ;;  %v1252_v8 = vadd.f32 %v1251_v6, %v1250_v5  ;;  %v1253_v9 = vpop.f32.mrb[10].mxu0 }
 0x138   :  { %v1283_v10 = vpop.f32.mrb[9].mxu1  ;;  %v1254_v11 = vpop.f32.mrb[11].mxu0 }
 0x139   :  { %v1036_v12 = vpop.f32.mrb[10].mxu1  ;;  %v993_v13 = vadd.f32 %v1252_v8, %v952_v2  ;;  %v1255_v14 = vadd.f32 %v1254_v11, %v1253_v9 }
 0x13a   :  { %v1284_v15 = vpop.f32.mrb[11].mxu1 }
 0x13b   :  { %v1034_v16 = vadd.f32 %v1033_v7, %v993_v13  ;;  %v996_v17 = vadd.f32 %v1255_v14, %v955_v4 }
 0x13d   :  { %1040 = vst [vmem:[%s1722_s3] sm:$0xff] %v1034_v16  ;;  %v1037_v18 = vadd.f32 %v1036_v12, %v996_v17 }
 0x13f   :  { %1041 = vst [vmem:[%s1722_s3 + $0x8] sm:$0xff] %v1037_v18 }

</bundles_post_ra>
